<compile_context>
chip_gen: v5e
topology: v5e:2x2
jax: 0.10.0
libtpu: 0.0.40
codegen_flags: <defaults>
</compile_context>

<pallas_src>
import functools
from dataclasses import dataclass

import jax
import jax.numpy as jnp
from jax.experimental import pallas as pl
from jax.experimental.pallas import tpu as pltpu


CP = 128  # padded channel width (one full vreg lane dim)


# ---------------------------------------------------------------- configs ---

@dataclass(frozen=True)
class EncoderConfig:
    in_channels: int = 3
    latent_dim: int = 8
    proj_kernel_size: int = 1
    proj_stride: int = 1
    proj_padding: int = 0


@dataclass(frozen=True)
class QuantizerConfig:
    num_embeddings: int = 32
    latent_dim: int = 8
    beta: float = 0.25


@dataclass(frozen=True)
class DecoderConfig:
    out_channels: int = 3
    latent_dim: int = 8


def _round_up(x, m):
    return (x + m - 1) // m * m


def _pad_last(x, target):
    pad = target - x.shape[-1]
    if pad == 0:
        return x
    return jnp.pad(x, [(0, 0)] * (x.ndim - 1) + [(0, pad)])


# --------------------------------------------------------- Pallas kernels ---

def _encoder_kernel(x_ref, w1_ref, b1_ref, w2_ref, b2_ref, ze_ref, hpad_ref,
                    *, Ho, Wo):
    """Fused: 3x3 s2 conv (as 2x2 s1 conv on space-to-depth input) + ReLU +
    3x3 s1 conv.  One batch image per grid step; im2col happens in VMEM."""
    M = Ho * Wo
    C4 = x_ref.shape[-1]

    acc = jnp.zeros((M, CP), jnp.float32)
    for a in range(2):
        for b in range(2):
            patch = x_ref[pl.ds(a, Ho), pl.ds(b, Wo), :].reshape(M, C4)
            acc = acc + jnp.dot(patch, w1_ref[a * 2 + b],
                                preferred_element_type=jnp.float32)
    h1 = jnp.maximum(acc + b1_ref[...], 0.0)

    # zero-padded conv1 activation kept in VMEM for the second 3x3 conv
    hpad_ref[...] = jnp.zeros_like(hpad_ref)
    hpad_ref[pl.ds(1, Ho), pl.ds(1, Wo), :] = h1.reshape(Ho, Wo, CP)

    acc2 = jnp.zeros((M, CP), jnp.float32)
    for i in range(3):
        for j in range(3):
            patch = hpad_ref[pl.ds(i, Ho), pl.ds(j, Wo), :].reshape(M, CP)
            acc2 = acc2 + jnp.dot(patch, w2_ref[i * 3 + j],
                                  preferred_element_type=jnp.float32)
    ze_ref[...] = (acc2 + b2_ref[...]).astype(ze_ref.dtype)


def _vq_stage_kernel(ze_ref, wpre_ref, bpre_ref, cb_ref, cbT_ref, e2_ref,
                     wpost_ref, bpost_ref, zq_ref, idx_ref, sq_ref, *, n_codes):
    """Fused: pre_quant 1x1 conv + nearest-codebook VQ + post_quant 1x1 conv,
    for one (tm, CP) tile of flattened latents."""
    ze = ze_ref[...]                                                 # (tm, CP)
    ze_p = (jnp.dot(ze, wpre_ref[...], preferred_element_type=jnp.float32)
            + bpre_ref[...])

    x2 = jnp.sum(ze_p * ze_p, axis=1, keepdims=True)                 # (tm, 1)
    xe = jnp.dot(ze_p, cbT_ref[...], preferred_element_type=jnp.float32)
    dist = x2 + e2_ref[...] - 2.0 * xe                               # (tm, KcP)

    col = jax.lax.broadcasted_iota(jnp.int32, dist.shape, 1)
    dist = jnp.where(col < n_codes, dist, jnp.float32(1e30))         # pad codes
    dmin = jnp.min(dist, axis=1, keepdims=True)
    cand = jnp.where(dist <= dmin, col, jnp.int32(dist.shape[1]))
    idx = jnp.min(cand, axis=1, keepdims=True)                       # first min

    onehot = (col == idx).astype(jnp.float32)
    zq = jnp.dot(onehot, cb_ref[...], preferred_element_type=jnp.float32)

    diff = zq - ze_p
    sq_ref[...] = jnp.sum(diff * diff, axis=1, keepdims=True)
    idx_ref[...] = idx.astype(jnp.int32)
    zq_ref[...] = (jnp.dot(zq, wpost_ref[...],
                           preferred_element_type=jnp.float32)
                   + bpost_ref[...]).astype(zq_ref.dtype)


def _decoder_kernel(zq_ref, w1_ref, b1_ref, w2_ref, b2_ref, out_ref, hpad_ref,
                    *, Hq, Wq):
    """Fused: 3x3 s1 conv + ReLU, then (nearest 2x upsample + 3x3 s1 conv)
    expressed as four phase-specific 2x2 convs on the low-res activation."""
    M = Hq * Wq

    acc = jnp.zeros((M, CP), jnp.float32)
    for i in range(3):
        for j in range(3):
            patch = zq_ref[pl.ds(i, Hq), pl.ds(j, Wq), :].reshape(M, CP)
            acc = acc + jnp.dot(patch, w1_ref[i * 3 + j],
                                preferred_element_type=jnp.float32)
    h1 = jnp.maximum(acc + b1_ref[...], 0.0)

    hpad_ref[...] = jnp.zeros_like(hpad_ref)
    hpad_ref[pl.ds(1, Hq), pl.ds(1, Wq), :] = h1.reshape(Hq, Wq, CP)

    for p in range(2):
        for q in range(2):
            acc2 = jnp.zeros((M, CP), jnp.float32)
            for a in range(2):
                for b in range(2):
                    patch = hpad_ref[pl.ds(p + a, Hq),
                                     pl.ds(q + b, Wq), :].reshape(M, CP)
                    acc2 = acc2 + jnp.dot(patch, w2_ref[p * 2 + q, a * 2 + b],
                                          preferred_element_type=jnp.float32)
            out_ref[p * 2 + q, :, :] = (acc2 + b2_ref[...]).astype(out_ref.dtype)


# ------------------------------------------------------- pallas_call glue ---

def encoder_call(x_s2d, w1, b1, w2, b2, *, Ho, Wo):
    N, Hs, Ws, C4 = x_s2d.shape
    M = Ho * Wo
    return pl.pallas_call(
        functools.partial(_encoder_kernel, Ho=Ho, Wo=Wo),
        out_shape=jax.ShapeDtypeStruct((N, M, CP), jnp.float32),
        grid_spec=pltpu.PrefetchScalarGridSpec(
            num_scalar_prefetch=0,
            grid=(N,),
            in_specs=[
                pl.BlockSpec((None, Hs, Ws, C4), lambda n: (n, 0, 0, 0)),
                pl.BlockSpec((4, C4, CP), lambda n: (0, 0, 0)),
                pl.BlockSpec((1, CP), lambda n: (0, 0)),
                pl.BlockSpec((9, CP, CP), lambda n: (0, 0, 0)),
                pl.BlockSpec((1, CP), lambda n: (0, 0)),
            ],
            out_specs=pl.BlockSpec((None, M, CP), lambda n: (n, 0, 0)),
            scratch_shapes=[pltpu.VMEM((Ho + 2, Wo + 2, CP), jnp.float32)],
        ),
        compiler_params=pltpu.CompilerParams(
            dimension_semantics=("parallel",)),
    )(x_s2d, w1, b1, w2, b2)


def vq_stage_call(ze_flat, wpre, bpre, cb, cbT, e2, wpost, bpost, *,
                  tm, n_codes):
    Mp, C = ze_flat.shape
    KcP = cb.shape[0]
    return pl.pallas_call(
        functools.partial(_vq_stage_kernel, n_codes=n_codes),
        out_shape=(
            jax.ShapeDtypeStruct((Mp, C), jnp.float32),
            jax.ShapeDtypeStruct((Mp, 1), jnp.int32),
            jax.ShapeDtypeStruct((Mp, 1), jnp.float32),
        ),
        grid_spec=pltpu.PrefetchScalarGridSpec(
            num_scalar_prefetch=0,
            grid=(Mp // tm,),
            in_specs=[
                pl.BlockSpec((tm, C), lambda i: (i, 0)),
                pl.BlockSpec((C, C), lambda i: (0, 0)),
                pl.BlockSpec((1, C), lambda i: (0, 0)),
                pl.BlockSpec((KcP, C), lambda i: (0, 0)),
                pl.BlockSpec((C, KcP), lambda i: (0, 0)),
                pl.BlockSpec((1, KcP), lambda i: (0, 0)),
                pl.BlockSpec((C, C), lambda i: (0, 0)),
                pl.BlockSpec((1, C), lambda i: (0, 0)),
            ],
            out_specs=(
                pl.BlockSpec((tm, C), lambda i: (i, 0)),
                pl.BlockSpec((tm, 1), lambda i: (i, 0)),
                pl.BlockSpec((tm, 1), lambda i: (i, 0)),
            ),
        ),
        compiler_params=pltpu.CompilerParams(
            dimension_semantics=("parallel",)),
    )(ze_flat, wpre, bpre, cb, cbT, e2, wpost, bpost)


def decoder_call(zq_pad, w1, b1, w2, b2, *, Hq, Wq):
    N = zq_pad.shape[0]
    M = Hq * Wq
    return pl.pallas_call(
        functools.partial(_decoder_kernel, Hq=Hq, Wq=Wq),
        out_shape=jax.ShapeDtypeStruct((N, 4, M, CP), jnp.float32),
        grid_spec=pltpu.PrefetchScalarGridSpec(
            num_scalar_prefetch=0,
            grid=(N,),
            in_specs=[
                pl.BlockSpec((None, Hq + 2, Wq + 2, CP),
                             lambda n: (n, 0, 0, 0)),
                pl.BlockSpec((9, CP, CP), lambda n: (0, 0, 0)),
                pl.BlockSpec((1, CP), lambda n: (0, 0)),
                pl.BlockSpec((4, 4, CP, CP), lambda n: (0, 0, 0, 0)),
                pl.BlockSpec((1, CP), lambda n: (0, 0)),
            ],
            out_specs=pl.BlockSpec((None, 4, M, CP), lambda n: (n, 0, 0, 0)),
            scratch_shapes=[pltpu.VMEM((Hq + 2, Wq + 2, CP), jnp.float32)],
        ),
        compiler_params=pltpu.CompilerParams(
            dimension_semantics=("parallel",)),
    )(zq_pad, w1, b1, w2, b2)


# ------------------------------------------------------------------ params ---

def conv_params(key, cin, cout, kh, kw, scale=0.1):
    k1, k2 = jax.random.split(key)
    w = jax.random.normal(k1, (kh, kw, cin, cout), jnp.float32) * scale
    b = jax.random.normal(k2, (cout,), jnp.float32) * scale
    return w, b


def init_raw_params(key, enc_cfg, q_cfg, dec_cfg):
    keys = jax.random.split(key, 7)
    k = enc_cfg.proj_kernel_size
    Dl = enc_cfg.latent_dim
    return {
        "enc_conv1": conv_params(keys[0], enc_cfg.in_channels, Dl, 3, 3),
        "enc_conv2": conv_params(keys[1], Dl, Dl, 3, 3),
        "pre_quant": conv_params(keys[2], Dl, Dl, k, k),
        "codebook": jax.random.normal(keys[3], (q_cfg.num_embeddings, Dl),
                                      jnp.float32),
        "post_quant": conv_params(keys[4], Dl, Dl, k, k),
        "dec_conv1": conv_params(keys[5], dec_cfg.latent_dim,
                                 dec_cfg.latent_dim, 3, 3),
        "dec_conv2": conv_params(keys[6], dec_cfg.latent_dim,
                                 dec_cfg.out_channels, 3, 3),
    }


def _pad_w(w, cin_p=CP, cout_p=CP):
    kh, kw, cin, cout = w.shape
    out = jnp.zeros((kh, kw, cin_p, cout_p), jnp.float32)
    return out.at[:, :, :cin, :cout].set(w)


def _pad_b(b, cout_p=CP):
    return jnp.zeros((1, cout_p), jnp.float32).at[0, :b.shape[0]].set(b)


def prepare_kernel_params(raw, enc_cfg, q_cfg, dec_cfg):
    """Build lane-dense (channel-padded) kernel-ready weight matrices."""
    assert (enc_cfg.proj_kernel_size == 1 and enc_cfg.proj_stride == 1
            and enc_cfg.proj_padding == 0), \
        "fused VQ stage assumes 1x1/s1/p0 projection convs"
    Dl = enc_cfg.latent_dim
    kp = {}

    # encoder conv1: 3x3 stride-2  ->  2x2 stride-1 over a space-to-depth input
    w1, b1 = raw["enc_conv1"]
    w1e = jnp.zeros((4, 4, CP, CP), jnp.float32)
    w1e = w1e.at[:3, :3, :w1.shape[2], :Dl].set(w1)
    # [i=2a+p, j=2b+q, c, o] -> [tap=2a+b, (p*2+q)*CP + c, o]
    kp["enc_w1"] = (w1e.reshape(2, 2, 2, 2, CP, CP)
                    .transpose(0, 2, 1, 3, 4, 5)
                    .reshape(4, 4 * CP, CP))
    kp["enc_b1"] = _pad_b(b1)

    w2, b2 = raw["enc_conv2"]
    kp["enc_w2"] = _pad_w(w2).reshape(9, CP, CP)
    kp["enc_b2"] = _pad_b(b2)

    # fused pre_quant / quantizer / post_quant
    wpre, bpre = raw["pre_quant"]
    kp["wpre"] = _pad_w(wpre)[0, 0]
    kp["bpre"] = _pad_b(bpre)
    cb = raw["codebook"]
    KcP = _round_up(cb.shape[0], 128)
    cbp = jnp.zeros((KcP, CP), jnp.float32).at[:cb.shape[0], :Dl].set(cb)
    kp["cb"] = cbp
    kp["cbT"] = cbp.T
    kp["e2"] = jnp.sum(cbp * cbp, axis=1)[None, :]
    wpost, bpost = raw["post_quant"]
    kp["wpost"] = _pad_w(wpost)[0, 0]
    kp["bpost"] = _pad_b(bpost)

    # decoder
    wd1, bd1 = raw["dec_conv1"]
    kp["dec_w1"] = _pad_w(wd1).reshape(9, CP, CP)
    kp["dec_b1"] = _pad_b(bd1)

    # dec_conv2 on the nearest-2x-upsampled activation == four phase-specific
    # 2x2 convs on the low-res activation (transposed-conv decomposition).
    wd2, bd2 = raw["dec_conv2"]
    wd2p = _pad_w(wd2)                                           # (3,3,CP,CP)
    weff = jnp.zeros((2, 2, 2, 2, CP, CP), jnp.float32)
    for p in range(2):
        for q in range(2):
            for a in range(2):
                for b in range(2):
                    acc = jnp.zeros((CP, CP), jnp.float32)
                    for i in range(3):
                        if (p + i - 1) // 2 != a - 1 + p:
                            continue
                        for j in range(3):
                            if (q + j - 1) // 2 != b - 1 + q:
                                continue
                            acc = acc + wd2p[i, j]
                    weff = weff.at[p, q, a, b].set(acc)
    kp["dec_w2"] = weff.reshape(4, 4, CP, CP)
    kp["dec_b2"] = _pad_b(bd2)
    return kp


# ----------------------------------------------------------------- forward ---

def _prep_encoder_input(x_nchw):
    """NCHW -> channel-padded NHWC, spatial pad 1, 2x2 space-to-depth.
    Cheap layout glue only (no im2col materialization)."""
    N, _, H, W = x_nchw.shape
    assert H % 2 == 0 and W % 2 == 0, "stride-2 encoder conv expects even H,W"
    Ho, Wo = H // 2, W // 2
    assert (Ho * Wo) % 8 == 0
    x = jnp.transpose(x_nchw, (0, 2, 3, 1))
    x = _pad_last(x, CP)
    x = jnp.pad(x, ((0, 0), (1, 1), (1, 1), (0, 0)))
    x = (x.reshape(N, Ho + 1, 2, Wo + 1, 2, CP)
          .transpose(0, 1, 3, 2, 4, 5)
          .reshape(N, Ho + 1, Wo + 1, 4 * CP))
    return x, Ho, Wo


def vqgan_forward(kp, x_nchw, enc_cfg, q_cfg, dec_cfg):
    N = x_nchw.shape[0]
    x_s2d, Ho, Wo = _prep_encoder_input(x_nchw)

    # Encoder (one fused kernel)
    ze = encoder_call(x_s2d, kp["enc_w1"], kp["enc_b1"], kp["enc_w2"],
                      kp["enc_b2"], Ho=Ho, Wo=Wo)             # (N, Ho*Wo, CP)

    # Fused pre_quant conv + vector quantizer + post_quant conv
    M = N * Ho * Wo
    tm = min(512, _round_up(M, 8))
    M_pad = _round_up(M, tm)
    ze_flat = ze.reshape(M, CP)
    if M_pad > M:
        ze_flat = jnp.pad(ze_flat, ((0, M_pad - M), (0, 0)))
    zq_post, idx, sq = vq_stage_call(
        ze_flat, kp["wpre"], kp["bpre"], kp["cb"], kp["cbT"], kp["e2"],
        kp["wpost"], kp["bpost"], tm=tm, n_codes=q_cfg.num_embeddings)
    # padded rows excluded from loss / indices here
    vq_loss = (1.0 + q_cfg.beta) * jnp.sum(sq[:M, 0]) / (M * q_cfg.latent_dim)
    encoding_indices = idx[:M, 0].reshape(N, Ho, Wo)
    zq_sp = zq_post[:M].reshape(N, Ho, Wo, CP)

    # Decoder (one fused kernel; upsample folded into the phase conv)
    zq_pad = jnp.pad(zq_sp, ((0, 0), (1, 1), (1, 1), (0, 0)))
    out_ph = decoder_call(zq_pad, kp["dec_w1"], kp["dec_b1"], kp["dec_w2"],
                          kp["dec_b2"], Hq=Ho, Wq=Wo)          # (N,4,Ho*Wo,CP)
    img = (out_ph.reshape(N, 2, 2, Ho, Wo, CP)
           .transpose(0, 3, 1, 4, 2, 5)
           .reshape(N, 2 * Ho, 2 * Wo, CP)[..., :dec_cfg.out_channels])
    x_dec = jnp.transpose(img, (0, 3, 1, 2))
    return x_dec, encoding_indices, vq_loss

# TODO(synk): no straight-through estimator / stop_gradient structure -- this
# is an inference-only forward; training would need a custom_vjp.
# TODO(synk): compute_lambda uses torch.autograd.grad (training utility) and
# is not translated.


# --------------------------------------------- pure-JAX reference (checks) ---

def _ref_conv(x, w, b, stride, pad):
    out = jax.lax.conv_general_dilated(
        x, w, window_strides=(stride, stride),
        padding=[(pad, pad), (pad, pad)],
        dimension_numbers=("NHWC", "HWIO", "NHWC"))
    return out + b


def _ref_encoder(raw, x_nchw):
    x = jnp.transpose(x_nchw, (0, 2, 3, 1))
    w, b = raw["enc_conv1"]
    h = jax.nn.relu(_ref_conv(x, w, b, 2, 1))
    w, b = raw["enc_conv2"]
    return _ref_conv(h, w, b, 1, 1)


def _ref_from_indices(raw, ze, idx, beta):
    """Reference pre_quant / distances / (decode from given indices)."""
    N, Hq, Wq, D = ze.shape
    w, b = raw["pre_quant"]
    zep = _ref_conv(ze, w, b, 1, 0).reshape(-1, D)
    cb = raw["codebook"]
    dist = (jnp.sum(zep * zep, 1, keepdims=True)
            + jnp.sum(cb * cb, 1)[None, :] - 2.0 * zep @ cb.T)
    zq = cb[idx.reshape(-1)]
    loss = (1.0 + beta) * jnp.mean((zq - zep) ** 2)
    zq = zq.reshape(N, Hq, Wq, D)
    w, b = raw["post_quant"]
    zq = _ref_conv(zq, w, b, 1, 0)
    w, b = raw["dec_conv1"]
    h = jax.nn.relu(_ref_conv(zq, w, b, 1, 1))
    h = jnp.repeat(jnp.repeat(h, 2, axis=1), 2, axis=2)
    w, b = raw["dec_conv2"]
    xd = _ref_conv(h, w, b, 1, 1)
    return jnp.transpose(xd, (0, 3, 1, 2)), dist, loss


if __name__ == "__main__":
    enc_cfg = EncoderConfig()
    q_cfg = QuantizerConfig()
    dec_cfg = DecoderConfig()

    key = jax.random.PRNGKey(0)
    pkey, xkey = jax.random.split(key)
    raw = init_raw_params(pkey, enc_cfg, q_cfg, dec_cfg)
    kp = prepare_kernel_params(raw, enc_cfg, q_cfg, dec_cfg)

    X = jax.random.normal(xkey, (2, 3, 16, 16), jnp.float32)  # NCHW like torch

    fwd = jax.jit(functools.partial(vqgan_forward, enc_cfg=enc_cfg,
                                    q_cfg=q_cfg, dec_cfg=dec_cfg))
    x_dec, encoding_indices, vq_loss = fwd(kp, X)
    jax.block_until_ready((x_dec, encoding_indices, vq_loss))

    assert x_dec.shape == (2, 3, 16, 16)
    assert encoding_indices.shape == (2, 8, 8)
    assert encoding_indices.dtype == jnp.int32
    assert vq_loss.shape == ()

    # ---- numerical self-checks vs a plain-JAX reference ----
    Dl = enc_cfg.latent_dim
    # encoder kernel vs reference encoder
    x_s2d, Ho, Wo = _prep_encoder_input(X)
    ze_k = encoder_call(x_s2d, kp["enc_w1"], kp["enc_b1"], kp["enc_w2"],
                        kp["enc_b2"], Ho=Ho, Wo=Wo)
    ze_ref = _ref_encoder(raw, X)
    assert float(jnp.max(jnp.abs(ze_k[..., Dl:]))) < 1e-5
    assert jnp.allclose(ze_k[..., :Dl].reshape(ze_ref.shape), ze_ref,
                        atol=3e-2, rtol=3e-2)
    # selected codes are (near-)optimal under reference distances, and decode
    # from the kernel's indices matches the kernel decode (tie-robust checks)
    x_dec_ref, dist_ref, loss_ref = _ref_from_indices(
        raw, ze_ref, encoding_indices, q_cfg.beta)
    idx_flat = encoding_indices.reshape(-1)
    d_sel = jnp.take_along_axis(dist_ref, idx_flat[:, None], axis=1)[:, 0]
    assert bool(jnp.all(d_sel <= jnp.min(dist_ref, axis=1) + 5e-2))
    assert jnp.allclose(x_dec, x_dec_ref, atol=3e-2, rtol=3e-2)
    assert jnp.allclose(vq_loss, loss_ref, atol=5e-2, rtol=5e-2)

    print("KERNEL_OK")
</pallas_src>

<mosaic_0001>
module attributes {stable_mosaic.version = 11 : i64} {
  func.func @_encoder_kernel(%arg0: i32, %arg1: memref<1x9x9x512xf32, #tpu.memory_space<vmem>>, %arg2: memref<4x512x128xf32, #tpu.memory_space<vmem>>, %arg3: memref<1x128xf32, #tpu.memory_space<vmem>>, %arg4: memref<9x128x128xf32, #tpu.memory_space<vmem>>, %arg5: memref<1x128xf32, #tpu.memory_space<vmem>>, %arg6: memref<1x64x128xf32, #tpu.memory_space<vmem>>, %arg7: memref<10x10x128xf32, #tpu.memory_space<vmem>>) attributes {dimension_semantics = [#tpu.dimension_semantics<parallel>], iteration_bounds = array<i64: 2>, scalar_prefetch = 0 : i64, scratch_operands = 1 : i64, tpu.core_type = #tpu.core_type<tc>, window_params = [{transform_indices = @transform_0, window_bounds = array<i64: 1, 9, 9, 512>}, {pipeline_mode = #tpu.pipeline_mode<synchronous>, transform_indices = @transform_1, window_bounds = array<i64: 4, 512, 128>}, {pipeline_mode = #tpu.pipeline_mode<synchronous>, transform_indices = @transform_2, window_bounds = array<i64: 1, 128>}, {pipeline_mode = #tpu.pipeline_mode<synchronous>, transform_indices = @transform_3, window_bounds = array<i64: 9, 128, 128>}, {pipeline_mode = #tpu.pipeline_mode<synchronous>, transform_indices = @transform_4, window_bounds = array<i64: 1, 128>}, {transform_indices = @transform_5, window_bounds = array<i64: 1, 64, 128>}]} {
    %cst = arith.constant 0.000000e+00 : f32
    %0 = vector.broadcast %cst : f32 to vector<64x128xf32>
    %c0 = arith.constant 0 : index
    %c0_0 = arith.constant 0 : index
    %c0_1 = arith.constant 0 : index
    %c0_2 = arith.constant 0 : index
    %1 = vector.load %arg1[%c0, %c0_0, %c0_1, %c0_2] : memref<1x9x9x512xf32, #tpu.memory_space<vmem>>, vector<1x8x8x512xf32>
    %2 = vector.shape_cast %1 : vector<1x8x8x512xf32> to vector<8x8x512xf32>
    %3 = vector.shape_cast %2 : vector<8x8x512xf32> to vector<64x512xf32>
    %c0_3 = arith.constant 0 : index
    %c0_4 = arith.constant 0 : index
    %c0_5 = arith.constant 0 : index
    %4 = vector.load %arg2[%c0_3, %c0_4, %c0_5] : memref<4x512x128xf32, #tpu.memory_space<vmem>>, vector<1x512x128xf32>
    %5 = vector.shape_cast %4 : vector<1x512x128xf32> to vector<512x128xf32>
    %cst_6 = arith.constant dense<0.000000e+00> : vector<64x128xf32>
    %6 = tpu.matmul %3, %5, %cst_6 {dimension_numbers = #tpu.dot_dimension_numbers<[1], [0], [0], [1], [0, 0, 1, 1], [], []>} : vector<64x512xf32>, vector<512x128xf32>, vector<64x128xf32> -> vector<64x128xf32>
    %7 = arith.addf %0, %6 : vector<64x128xf32>
    %c0_7 = arith.constant 0 : index
    %c0_8 = arith.constant 0 : index
    %c1 = arith.constant 1 : index
    %c0_9 = arith.constant 0 : index
    %8 = vector.load %arg1[%c0_7, %c0_8, %c1, %c0_9] : memref<1x9x9x512xf32, #tpu.memory_space<vmem>>, vector<1x8x8x512xf32>
    %9 = vector.shape_cast %8 : vector<1x8x8x512xf32> to vector<8x8x512xf32>
    %10 = vector.shape_cast %9 : vector<8x8x512xf32> to vector<64x512xf32>
    %c1_10 = arith.constant 1 : index
    %c0_11 = arith.constant 0 : index
    %c0_12 = arith.constant 0 : index
    %11 = vector.load %arg2[%c1_10, %c0_11, %c0_12] : memref<4x512x128xf32, #tpu.memory_space<vmem>>, vector<1x512x128xf32>
    %12 = vector.shape_cast %11 : vector<1x512x128xf32> to vector<512x128xf32>
    %cst_13 = arith.constant dense<0.000000e+00> : vector<64x128xf32>
    %13 = tpu.matmul %10, %12, %cst_13 {dimension_numbers = #tpu.dot_dimension_numbers<[1], [0], [0], [1], [0, 0, 1, 1], [], []>} : vector<64x512xf32>, vector<512x128xf32>, vector<64x128xf32> -> vector<64x128xf32>
    %14 = arith.addf %7, %13 : vector<64x128xf32>
    %c0_14 = arith.constant 0 : index
    %c1_15 = arith.constant 1 : index
    %c0_16 = arith.constant 0 : index
    %c0_17 = arith.constant 0 : index
    %15 = vector.load %arg1[%c0_14, %c1_15, %c0_16, %c0_17] : memref<1x9x9x512xf32, #tpu.memory_space<vmem>>, vector<1x8x8x512xf32>
    %16 = vector.shape_cast %15 : vector<1x8x8x512xf32> to vector<8x8x512xf32>
    %17 = vector.shape_cast %16 : vector<8x8x512xf32> to vector<64x512xf32>
    %c2 = arith.constant 2 : index
    %c0_18 = arith.constant 0 : index
    %c0_19 = arith.constant 0 : index
    %18 = vector.load %arg2[%c2, %c0_18, %c0_19] : memref<4x512x128xf32, #tpu.memory_space<vmem>>, vector<1x512x128xf32>
    %19 = vector.shape_cast %18 : vector<1x512x128xf32> to vector<512x128xf32>
    %cst_20 = arith.constant dense<0.000000e+00> : vector<64x128xf32>
    %20 = tpu.matmul %17, %19, %cst_20 {dimension_numbers = #tpu.dot_dimension_numbers<[1], [0], [0], [1], [0, 0, 1, 1], [], []>} : vector<64x512xf32>, vector<512x128xf32>, vector<64x128xf32> -> vector<64x128xf32>
    %21 = arith.addf %14, %20 : vector<64x128xf32>
    %c0_21 = arith.constant 0 : index
    %c1_22 = arith.constant 1 : index
    %c1_23 = arith.constant 1 : index
    %c0_24 = arith.constant 0 : index
    %22 = vector.load %arg1[%c0_21, %c1_22, %c1_23, %c0_24] : memref<1x9x9x512xf32, #tpu.memory_space<vmem>>, vector<1x8x8x512xf32>
    %23 = vector.shape_cast %22 : vector<1x8x8x512xf32> to vector<8x8x512xf32>
    %24 = vector.shape_cast %23 : vector<8x8x512xf32> to vector<64x512xf32>
    %c3 = arith.constant 3 : index
    %c0_25 = arith.constant 0 : index
    %c0_26 = arith.constant 0 : index
    %25 = vector.load %arg2[%c3, %c0_25, %c0_26] : memref<4x512x128xf32, #tpu.memory_space<vmem>>, vector<1x512x128xf32>
    %26 = vector.shape_cast %25 : vector<1x512x128xf32> to vector<512x128xf32>
    %cst_27 = arith.constant dense<0.000000e+00> : vector<64x128xf32>
    %27 = tpu.matmul %24, %26, %cst_27 {dimension_numbers = #tpu.dot_dimension_numbers<[1], [0], [0], [1], [0, 0, 1, 1], [], []>} : vector<64x512xf32>, vector<512x128xf32>, vector<64x128xf32> -> vector<64x128xf32>
    %28 = arith.addf %21, %27 : vector<64x128xf32>
    %c0_28 = arith.constant 0 : index
    %c0_29 = arith.constant 0 : index
    %29 = vector.load %arg3[%c0_28, %c0_29] : memref<1x128xf32, #tpu.memory_space<vmem>>, vector<1x128xf32>
    %30 = vector.broadcast %29 : vector<1x128xf32> to vector<64x128xf32>
    %31 = arith.addf %28, %30 : vector<64x128xf32>
    %cst_30 = arith.constant 0.000000e+00 : f32
    %32 = vector.broadcast %cst_30 : f32 to vector<64x128xf32>
    %33 = arith.maximumf %31, %32 : vector<64x128xf32>
    %cst_31 = arith.constant 0.000000e+00 : f32
    %34 = vector.broadcast %cst_31 : f32 to vector<10x10x128xf32>
    %c0_32 = arith.constant 0 : index
    %c0_33 = arith.constant 0 : index
    %c0_34 = arith.constant 0 : index
    %35 = vector.load %arg7[%c0_32, %c0_33, %c0_34] : memref<10x10x128xf32, #tpu.memory_space<vmem>>, vector<10x10x128xf32>
    tpu.vector_store %arg7[%c0_32, %c0_33, %c0_34], %34 {strides = array<i32>} : memref<10x10x128xf32, #tpu.memory_space<vmem>>, vector<10x10x128xf32>,
    %36 = vector.shape_cast %33 : vector<64x128xf32> to vector<8x8x128xf32>
    %c1_35 = arith.constant 1 : index
    %c1_36 = arith.constant 1 : index
    %c0_37 = arith.constant 0 : index
    %37 = vector.load %arg7[%c1_35, %c1_36, %c0_37] : memref<10x10x128xf32, #tpu.memory_space<vmem>>, vector<8x8x128xf32>
    tpu.vector_store %arg7[%c1_35, %c1_36, %c0_37], %36 {strides = array<i32>} : memref<10x10x128xf32, #tpu.memory_space<vmem>>, vector<8x8x128xf32>,
    %cst_38 = arith.constant 0.000000e+00 : f32
    %38 = vector.broadcast %cst_38 : f32 to vector<64x128xf32>
    %c0_39 = arith.constant 0 : index
    %c0_40 = arith.constant 0 : index
    %c0_41 = arith.constant 0 : index
    %39 = vector.load %arg7[%c0_39, %c0_40, %c0_41] : memref<10x10x128xf32, #tpu.memory_space<vmem>>, vector<8x8x128xf32>
    %40 = vector.shape_cast %39 : vector<8x8x128xf32> to vector<64x128xf32>
    %c0_42 = arith.constant 0 : index
    %c0_43 = arith.constant 0 : index
    %c0_44 = arith.constant 0 : index
    %41 = vector.load %arg4[%c0_42, %c0_43, %c0_44] : memref<9x128x128xf32, #tpu.memory_space<vmem>>, vector<1x128x128xf32>
    %42 = vector.shape_cast %41 : vector<1x128x128xf32> to vector<128x128xf32>
    %cst_45 = arith.constant dense<0.000000e+00> : vector<64x128xf32>
    %43 = tpu.matmul %40, %42, %cst_45 {dimension_numbers = #tpu.dot_dimension_numbers<[1], [0], [0], [1], [0, 0, 1, 1], [], []>} : vector<64x128xf32>, vector<128x128xf32>, vector<64x128xf32> -> vector<64x128xf32>
    %44 = arith.addf %38, %43 : vector<64x128xf32>
    %c0_46 = arith.constant 0 : index
    %c1_47 = arith.constant 1 : index
    %c0_48 = arith.constant 0 : index
    %45 = vector.load %arg7[%c0_46, %c1_47, %c0_48] : memref<10x10x128xf32, #tpu.memory_space<vmem>>, vector<8x8x128xf32>
    %46 = vector.shape_cast %45 : vector<8x8x128xf32> to vector<64x128xf32>
    %c1_49 = arith.constant 1 : index
    %c0_50 = arith.constant 0 : index
    %c0_51 = arith.constant 0 : index
    %47 = vector.load %arg4[%c1_49, %c0_50, %c0_51] : memref<9x128x128xf32, #tpu.memory_space<vmem>>, vector<1x128x128xf32>
    %48 = vector.shape_cast %47 : vector<1x128x128xf32> to vector<128x128xf32>
    %cst_52 = arith.constant dense<0.000000e+00> : vector<64x128xf32>
    %49 = tpu.matmul %46, %48, %cst_52 {dimension_numbers = #tpu.dot_dimension_numbers<[1], [0], [0], [1], [0, 0, 1, 1], [], []>} : vector<64x128xf32>, vector<128x128xf32>, vector<64x128xf32> -> vector<64x128xf32>
    %50 = arith.addf %44, %49 : vector<64x128xf32>
    %c0_53 = arith.constant 0 : index
    %c2_54 = arith.constant 2 : index
    %c0_55 = arith.constant 0 : index
    %51 = vector.load %arg7[%c0_53, %c2_54, %c0_55] : memref<10x10x128xf32, #tpu.memory_space<vmem>>, vector<8x8x128xf32>
    %52 = vector.shape_cast %51 : vector<8x8x128xf32> to vector<64x128xf32>
    %c2_56 = arith.constant 2 : index
    %c0_57 = arith.constant 0 : index
    %c0_58 = arith.constant 0 : index
    %53 = vector.load %arg4[%c2_56, %c0_57, %c0_58] : memref<9x128x128xf32, #tpu.memory_space<vmem>>, vector<1x128x128xf32>
    %54 = vector.shape_cast %53 : vector<1x128x128xf32> to vector<128x128xf32>
    %cst_59 = arith.constant dense<0.000000e+00> : vector<64x128xf32>
    %55 = tpu.matmul %52, %54, %cst_59 {dimension_numbers = #tpu.dot_dimension_numbers<[1], [0], [0], [1], [0, 0, 1, 1], [], []>} : vector<64x128xf32>, vector<128x128xf32>, vector<64x128xf32> -> vector<64x128xf32>
    %56 = arith.addf %50, %55 : vector<64x128xf32>
    %c1_60 = arith.constant 1 : index
    %c0_61 = arith.constant 0 : index
    %c0_62 = arith.constant 0 : index
    %57 = vector.load %arg7[%c1_60, %c0_61, %c0_62] : memref<10x10x128xf32, #tpu.memory_space<vmem>>, vector<8x8x128xf32>
    %58 = vector.shape_cast %57 : vector<8x8x128xf32> to vector<64x128xf32>
    %c3_63 = arith.constant 3 : index
    %c0_64 = arith.constant 0 : index
    %c0_65 = arith.constant 0 : index
    %59 = vector.load %arg4[%c3_63, %c0_64, %c0_65] : memref<9x128x128xf32, #tpu.memory_space<vmem>>, vector<1x128x128xf32>
    %60 = vector.shape_cast %59 : vector<1x128x128xf32> to vector<128x128xf32>
    %cst_66 = arith.constant dense<0.000000e+00> : vector<64x128xf32>
    %61 = tpu.matmul %58, %60, %cst_66 {dimension_numbers = #tpu.dot_dimension_numbers<[1], [0], [0], [1], [0, 0, 1, 1], [], []>} : vector<64x128xf32>, vector<128x128xf32>, vector<64x128xf32> -> vector<64x128xf32>
    %62 = arith.addf %56, %61 : vector<64x128xf32>
    %c1_67 = arith.constant 1 : index
    %c1_68 = arith.constant 1 : index
    %c0_69 = arith.constant 0 : index
    %63 = vector.load %arg7[%c1_67, %c1_68, %c0_69] : memref<10x10x128xf32, #tpu.memory_space<vmem>>, vector<8x8x128xf32>
    %64 = vector.shape_cast %63 : vector<8x8x128xf32> to vector<64x128xf32>
    %c4 = arith.constant 4 : index
    %c0_70 = arith.constant 0 : index
    %c0_71 = arith.constant 0 : index
    %65 = vector.load %arg4[%c4, %c0_70, %c0_71] : memref<9x128x128xf32, #tpu.memory_space<vmem>>, vector<1x128x128xf32>
    %66 = vector.shape_cast %65 : vector<1x128x128xf32> to vector<128x128xf32>
    %cst_72 = arith.constant dense<0.000000e+00> : vector<64x128xf32>
    %67 = tpu.matmul %64, %66, %cst_72 {dimension_numbers = #tpu.dot_dimension_numbers<[1], [0], [0], [1], [0, 0, 1, 1], [], []>} : vector<64x128xf32>, vector<128x128xf32>, vector<64x128xf32> -> vector<64x128xf32>
    %68 = arith.addf %62, %67 : vector<64x128xf32>
    %c1_73 = arith.constant 1 : index
    %c2_74 = arith.constant 2 : index
    %c0_75 = arith.constant 0 : index
    %69 = vector.load %arg7[%c1_73, %c2_74, %c0_75] : memref<10x10x128xf32, #tpu.memory_space<vmem>>, vector<8x8x128xf32>
    %70 = vector.shape_cast %69 : vector<8x8x128xf32> to vector<64x128xf32>
    %c5 = arith.constant 5 : index
    %c0_76 = arith.constant 0 : index
    %c0_77 = arith.constant 0 : index
    %71 = vector.load %arg4[%c5, %c0_76, %c0_77] : memref<9x128x128xf32, #tpu.memory_space<vmem>>, vector<1x128x128xf32>
    %72 = vector.shape_cast %71 : vector<1x128x128xf32> to vector<128x128xf32>
    %cst_78 = arith.constant dense<0.000000e+00> : vector<64x128xf32>
    %73 = tpu.matmul %70, %72, %cst_78 {dimension_numbers = #tpu.dot_dimension_numbers<[1], [0], [0], [1], [0, 0, 1, 1], [], []>} : vector<64x128xf32>, vector<128x128xf32>, vector<64x128xf32> -> vector<64x128xf32>
    %74 = arith.addf %68, %73 : vector<64x128xf32>
    %c2_79 = arith.constant 2 : index
    %c0_80 = arith.constant 0 : index
    %c0_81 = arith.constant 0 : index
    %75 = vector.load %arg7[%c2_79, %c0_80, %c0_81] : memref<10x10x128xf32, #tpu.memory_space<vmem>>, vector<8x8x128xf32>
    %76 = vector.shape_cast %75 : vector<8x8x128xf32> to vector<64x128xf32>
    %c6 = arith.constant 6 : index
    %c0_82 = arith.constant 0 : index
    %c0_83 = arith.constant 0 : index
    %77 = vector.load %arg4[%c6, %c0_82, %c0_83] : memref<9x128x128xf32, #tpu.memory_space<vmem>>, vector<1x128x128xf32>
    %78 = vector.shape_cast %77 : vector<1x128x128xf32> to vector<128x128xf32>
    %cst_84 = arith.constant dense<0.000000e+00> : vector<64x128xf32>
    %79 = tpu.matmul %76, %78, %cst_84 {dimension_numbers = #tpu.dot_dimension_numbers<[1], [0], [0], [1], [0, 0, 1, 1], [], []>} : vector<64x128xf32>, vector<128x128xf32>, vector<64x128xf32> -> vector<64x128xf32>
    %80 = arith.addf %74, %79 : vector<64x128xf32>
    %c2_85 = arith.constant 2 : index
    %c1_86 = arith.constant 1 : index
    %c0_87 = arith.constant 0 : index
    %81 = vector.load %arg7[%c2_85, %c1_86, %c0_87] : memref<10x10x128xf32, #tpu.memory_space<vmem>>, vector<8x8x128xf32>
    %82 = vector.shape_cast %81 : vector<8x8x128xf32> to vector<64x128xf32>
    %c7 = arith.constant 7 : index
    %c0_88 = arith.constant 0 : index
    %c0_89 = arith.constant 0 : index
    %83 = vector.load %arg4[%c7, %c0_88, %c0_89] : memref<9x128x128xf32, #tpu.memory_space<vmem>>, vector<1x128x128xf32>
    %84 = vector.shape_cast %83 : vector<1x128x128xf32> to vector<128x128xf32>
    %cst_90 = arith.constant dense<0.000000e+00> : vector<64x128xf32>
    %85 = tpu.matmul %82, %84, %cst_90 {dimension_numbers = #tpu.dot_dimension_numbers<[1], [0], [0], [1], [0, 0, 1, 1], [], []>} : vector<64x128xf32>, vector<128x128xf32>, vector<64x128xf32> -> vector<64x128xf32>
    %86 = arith.addf %80, %85 : vector<64x128xf32>
    %c2_91 = arith.constant 2 : index
    %c2_92 = arith.constant 2 : index
    %c0_93 = arith.constant 0 : index
    %87 = vector.load %arg7[%c2_91, %c2_92, %c0_93] : memref<10x10x128xf32, #tpu.memory_space<vmem>>, vector<8x8x128xf32>
    %88 = vector.shape_cast %87 : vector<8x8x128xf32> to vector<64x128xf32>
    %c8 = arith.constant 8 : index
    %c0_94 = arith.constant 0 : index
    %c0_95 = arith.constant 0 : index
    %89 = vector.load %arg4[%c8, %c0_94, %c0_95] : memref<9x128x128xf32, #tpu.memory_space<vmem>>, vector<1x128x128xf32>
    %90 = vector.shape_cast %89 : vector<1x128x128xf32> to vector<128x128xf32>
    %cst_96 = arith.constant dense<0.000000e+00> : vector<64x128xf32>
    %91 = tpu.matmul %88, %90, %cst_96 {dimension_numbers = #tpu.dot_dimension_numbers<[1], [0], [0], [1], [0, 0, 1, 1], [], []>} : vector<64x128xf32>, vector<128x128xf32>, vector<64x128xf32> -> vector<64x128xf32>
    %92 = arith.addf %86, %91 : vector<64x128xf32>
    %c0_97 = arith.constant 0 : index
    %c0_98 = arith.constant 0 : index
    %93 = vector.load %arg5[%c0_97, %c0_98] : memref<1x128xf32, #tpu.memory_space<vmem>>, vector<1x128xf32>
    %94 = vector.broadcast %93 : vector<1x128xf32> to vector<64x128xf32>
    %95 = arith.addf %92, %94 : vector<64x128xf32>
    %c0_99 = arith.constant 0 : index
    %c0_100 = arith.constant 0 : index
    %c0_101 = arith.constant 0 : index
    %96 = vector.load %arg6[%c0_99, %c0_100, %c0_101] : memref<1x64x128xf32, #tpu.memory_space<vmem>>, vector<1x64x128xf32>
    %97 = vector.shape_cast %96 : vector<1x64x128xf32> to vector<64x128xf32>
    %98 = vector.shape_cast %95 : vector<64x128xf32> to vector<1x64x128xf32>
    tpu.vector_store %arg6[%c0_99, %c0_100, %c0_101], %98 {strides = array<i32>} : memref<1x64x128xf32, #tpu.memory_space<vmem>>, vector<1x64x128xf32>,
    return
  }
  func.func @transform_0(%arg0: i32) -> (i32, i32, i32, i32) {
    %c0_i32 = arith.constant 0 : i32
    %c0_i32_0 = arith.constant 0 : i32
    %c0_i32_1 = arith.constant 0 : i32
    %c0_i32_2 = arith.constant 0 : i32
    return %arg0, %c0_i32, %c0_i32_0, %c0_i32_1 : i32, i32, i32, i32
  }
  func.func @transform_1(%arg0: i32) -> (i32, i32, i32) {
    %c0_i32 = arith.constant 0 : i32
    %c0_i32_0 = arith.constant 0 : i32
    %c0_i32_1 = arith.constant 0 : i32
    %c0_i32_2 = arith.constant 0 : i32
    return %c0_i32, %c0_i32_0, %c0_i32_1 : i32, i32, i32
  }
  func.func @transform_2(%arg0: i32) -> (i32, i32) {
    %c0_i32 = arith.constant 0 : i32
    %c0_i32_0 = arith.constant 0 : i32
    %c0_i32_1 = arith.constant 0 : i32
    return %c0_i32, %c0_i32_0 : i32, i32
  }
  func.func @transform_3(%arg0: i32) -> (i32, i32, i32) {
    %c0_i32 = arith.constant 0 : i32
    %c0_i32_0 = arith.constant 0 : i32
    %c0_i32_1 = arith.constant 0 : i32
    %c0_i32_2 = arith.constant 0 : i32
    return %c0_i32, %c0_i32_0, %c0_i32_1 : i32, i32, i32
  }
  func.func @transform_4(%arg0: i32) -> (i32, i32) {
    %c0_i32 = arith.constant 0 : i32
    %c0_i32_0 = arith.constant 0 : i32
    %c0_i32_1 = arith.constant 0 : i32
    return %c0_i32, %c0_i32_0 : i32, i32
  }
  func.func @transform_5(%arg0: i32) -> (i32, i32, i32) {
    %c0_i32 = arith.constant 0 : i32
    %c0_i32_0 = arith.constant 0 : i32
    %c0_i32_1 = arith.constant 0 : i32
    return %arg0, %c0_i32, %c0_i32_0 : i32, i32, i32
  }
}

module attributes {stable_mosaic.version = 11 : i64} {
  func.func @_vq_stage_kernel(%arg0: i32, %arg1: memref<128x128xf32, #tpu.memory_space<vmem>>, %arg2: memref<128x128xf32, #tpu.memory_space<vmem>>, %arg3: memref<1x128xf32, #tpu.memory_space<vmem>>, %arg4: memref<128x128xf32, #tpu.memory_space<vmem>>, %arg5: memref<128x128xf32, #tpu.memory_space<vmem>>, %arg6: memref<1x128xf32, #tpu.memory_space<vmem>>, %arg7: memref<128x128xf32, #tpu.memory_space<vmem>>, %arg8: memref<1x128xf32, #tpu.memory_space<vmem>>, %arg9: memref<128x128xf32, #tpu.memory_space<vmem>>, %arg10: memref<128x1xi32, #tpu.memory_space<vmem>>, %arg11: memref<128x1xf32, #tpu.memory_space<vmem>>) attributes {dimension_semantics = [#tpu.dimension_semantics<parallel>], iteration_bounds = array<i64: 1>, scalar_prefetch = 0 : i64, scratch_operands = 0 : i64, tpu.core_type = #tpu.core_type<tc>, window_params = [{transform_indices = @transform_0, window_bounds = array<i64: 128, 128>}, {pipeline_mode = #tpu.pipeline_mode<synchronous>, transform_indices = @transform_1, window_bounds = array<i64: 128, 128>}, {pipeline_mode = #tpu.pipeline_mode<synchronous>, transform_indices = @transform_2, window_bounds = array<i64: 1, 128>}, {pipeline_mode = #tpu.pipeline_mode<synchronous>, transform_indices = @transform_3, window_bounds = array<i64: 128, 128>}, {pipeline_mode = #tpu.pipeline_mode<synchronous>, transform_indices = @transform_4, window_bounds = array<i64: 128, 128>}, {pipeline_mode = #tpu.pipeline_mode<synchronous>, transform_indices = @transform_5, window_bounds = array<i64: 1, 128>}, {pipeline_mode = #tpu.pipeline_mode<synchronous>, transform_indices = @transform_6, window_bounds = array<i64: 128, 128>}, {pipeline_mode = #tpu.pipeline_mode<synchronous>, transform_indices = @transform_7, window_bounds = array<i64: 1, 128>}, {transform_indices = @transform_8, window_bounds = array<i64: 128, 128>}, {transform_indices = @transform_9, window_bounds = array<i64: 128, 1>}, {transform_indices = @transform_10, window_bounds = array<i64: 128, 1>}]} {
    %c0 = arith.constant 0 : index
    %c0_0 = arith.constant 0 : index
    %0 = vector.load %arg1[%c0, %c0_0] : memref<128x128xf32, #tpu.memory_space<vmem>>, vector<128x128xf32>
    %c0_1 = arith.constant 0 : index
    %c0_2 = arith.constant 0 : index
    %1 = vector.load %arg2[%c0_1, %c0_2] : memref<128x128xf32, #tpu.memory_space<vmem>>, vector<128x128xf32>
    %cst = arith.constant dense<0.000000e+00> : vector<128x128xf32>
    %2 = tpu.matmul %0, %1, %cst {dimension_numbers = #tpu.dot_dimension_numbers<[1], [0], [0], [1], [0, 0, 1, 1], [], []>} : vector<128x128xf32>, vector<128x128xf32>, vector<128x128xf32> -> vector<128x128xf32>
    %c0_3 = arith.constant 0 : index
    %c0_4 = arith.constant 0 : index
    %3 = vector.load %arg3[%c0_3, %c0_4] : memref<1x128xf32, #tpu.memory_space<vmem>>, vector<1x128xf32>
    %4 = vector.broadcast %3 : vector<1x128xf32> to vector<128x128xf32>
    %5 = arith.addf %2, %4 : vector<128x128xf32>
    %6 = arith.mulf %5, %5 : vector<128x128xf32>
    %cst_5 = arith.constant dense<0.000000e+00> : vector<128xf32>
    %7 = vector.multi_reduction <add>, %6, %cst_5 [1] : vector<128x128xf32> to vector<128xf32>
    %8 = vector.shape_cast %7 : vector<128xf32> to vector<128x1xf32>
    %c0_6 = arith.constant 0 : index
    %c0_7 = arith.constant 0 : index
    %9 = vector.load %arg5[%c0_6, %c0_7] : memref<128x128xf32, #tpu.memory_space<vmem>>, vector<128x128xf32>
    %cst_8 = arith.constant dense<0.000000e+00> : vector<128x128xf32>
    %10 = tpu.matmul %5, %9, %cst_8 {dimension_numbers = #tpu.dot_dimension_numbers<[1], [0], [0], [1], [0, 0, 1, 1], [], []>} : vector<128x128xf32>, vector<128x128xf32>, vector<128x128xf32> -> vector<128x128xf32>
    %c0_9 = arith.constant 0 : index
    %c0_10 = arith.constant 0 : index
    %11 = vector.load %arg6[%c0_9, %c0_10] : memref<1x128xf32, #tpu.memory_space<vmem>>, vector<1x128xf32>
    %12 = vector.broadcast %8 : vector<128x1xf32> to vector<128x128xf32>
    %13 = vector.broadcast %11 : vector<1x128xf32> to vector<128x128xf32>
    %14 = arith.addf %12, %13 : vector<128x128xf32>
    %cst_11 = arith.constant 2.000000e+00 : f32
    %15 = vector.broadcast %cst_11 : f32 to vector<128x128xf32>
    %16 = arith.mulf %15, %10 : vector<128x128xf32>
    %17 = arith.subf %14, %16 : vector<128x128xf32>
    %18 = tpu.iota {dimensions = array<i32: 1>} : vector<128x128xi32>
    %c32_i32 = arith.constant 32 : i32
    %19 = vector.broadcast %c32_i32 : i32 to vector<128x128xi32>
    %20 = arith.cmpi slt, %18, %19 : vector<128x128xi32>
    %cst_12 = arith.constant 1.000000e+30 : f32
    %21 = vector.broadcast %cst_12 : f32 to vector<128x128xf32>
    %22 = arith.select %20, %17, %21 : vector<128x128xi1>, vector<128x128xf32>
    %cst_13 = arith.constant dense<0x7F800000> : vector<128xf32>
    %23 = vector.multi_reduction <minimumf>, %22, %cst_13 [1] : vector<128x128xf32> to vector<128xf32>
    %24 = vector.shape_cast %23 : vector<128xf32> to vector<128x1xf32>
    %25 = vector.broadcast %24 : vector<128x1xf32> to vector<128x128xf32>
    %26 = arith.cmpf ole, %22, %25 : vector<128x128xf32>
    %c128_i32 = arith.constant 128 : i32
    %27 = vector.broadcast %c128_i32 : i32 to vector<128x128xi32>
    %28 = arith.select %26, %18, %27 : vector<128x128xi1>, vector<128x128xi32>
    %cst_14 = arith.constant dense<2147483647> : vector<128xi32>
    %29 = vector.multi_reduction <minsi>, %28, %cst_14 [1] : vector<128x128xi32> to vector<128xi32>
    %30 = vector.shape_cast %29 : vector<128xi32> to vector<128x1xi32>
    %31 = vector.broadcast %30 : vector<128x1xi32> to vector<128x128xi32>
    %32 = arith.cmpi eq, %18, %31 : vector<128x128xi32>
    %33 = arith.extui %32 : vector<128x128xi1> to vector<128x128xi32>
    %34 = arith.sitofp %33 : vector<128x128xi32> to vector<128x128xf32>
    %c0_15 = arith.constant 0 : index
    %c0_16 = arith.constant 0 : index
    %35 = vector.load %arg4[%c0_15, %c0_16] : memref<128x128xf32, #tpu.memory_space<vmem>>, vector<128x128xf32>
    %cst_17 = arith.constant dense<0.000000e+00> : vector<128x128xf32>
    %36 = tpu.matmul %34, %35, %cst_17 {dimension_numbers = #tpu.dot_dimension_numbers<[1], [0], [0], [1], [0, 0, 1, 1], [], []>} : vector<128x128xf32>, vector<128x128xf32>, vector<128x128xf32> -> vector<128x128xf32>
    %37 = arith.subf %36, %5 : vector<128x128xf32>
    %38 = arith.mulf %37, %37 : vector<128x128xf32>
    %cst_18 = arith.constant dense<0.000000e+00> : vector<128xf32>
    %39 = vector.multi_reduction <add>, %38, %cst_18 [1] : vector<128x128xf32> to vector<128xf32>
    %40 = vector.shape_cast %39 : vector<128xf32> to vector<128x1xf32>
    %c0_19 = arith.constant 0 : index
    %c0_20 = arith.constant 0 : index
    %41 = vector.load %arg11[%c0_19, %c0_20] : memref<128x1xf32, #tpu.memory_space<vmem>>, vector<128x1xf32>
    tpu.vector_store %arg11[%c0_19, %c0_20], %40 {strides = array<i32>} : memref<128x1xf32, #tpu.memory_space<vmem>>, vector<128x1xf32>,
    %c0_21 = arith.constant 0 : index
    %c0_22 = arith.constant 0 : index
    %42 = vector.load %arg10[%c0_21, %c0_22] : memref<128x1xi32, #tpu.memory_space<vmem>>, vector<128x1xi32>
    tpu.vector_store %arg10[%c0_21, %c0_22], %30 {strides = array<i32>} : memref<128x1xi32, #tpu.memory_space<vmem>>, vector<128x1xi32>,
    %c0_23 = arith.constant 0 : index
    %c0_24 = arith.constant 0 : index
    %43 = vector.load %arg7[%c0_23, %c0_24] : memref<128x128xf32, #tpu.memory_space<vmem>>, vector<128x128xf32>
    %cst_25 = arith.constant dense<0.000000e+00> : vector<128x128xf32>
    %44 = tpu.matmul %36, %43, %cst_25 {dimension_numbers = #tpu.dot_dimension_numbers<[1], [0], [0], [1], [0, 0, 1, 1], [], []>} : vector<128x128xf32>, vector<128x128xf32>, vector<128x128xf32> -> vector<128x128xf32>
    %c0_26 = arith.constant 0 : index
    %c0_27 = arith.constant 0 : index
    %45 = vector.load %arg8[%c0_26, %c0_27] : memref<1x128xf32, #tpu.memory_space<vmem>>, vector<1x128xf32>
    %46 = vector.broadcast %45 : vector<1x128xf32> to vector<128x128xf32>
    %47 = arith.addf %44, %46 : vector<128x128xf32>
    %c0_28 = arith.constant 0 : index
    %c0_29 = arith.constant 0 : index
    %48 = vector.load %arg9[%c0_28, %c0_29] : memref<128x128xf32, #tpu.memory_space<vmem>>, vector<128x128xf32>
    tpu.vector_store %arg9[%c0_28, %c0_29], %47 {strides = array<i32>} : memref<128x128xf32, #tpu.memory_space<vmem>>, vector<128x128xf32>,
    return
  }
  func.func @transform_0(%arg0: i32) -> (i32, i32) {
    %c0_i32 = arith.constant 0 : i32
    %c0_i32_0 = arith.constant 0 : i32
    return %arg0, %c0_i32 : i32, i32
  }
  func.func @transform_1(%arg0: i32) -> (i32, i32) {
    %c0_i32 = arith.constant 0 : i32
    %c0_i32_0 = arith.constant 0 : i32
    %c0_i32_1 = arith.constant 0 : i32
    return %c0_i32, %c0_i32_0 : i32, i32
  }
  func.func @transform_2(%arg0: i32) -> (i32, i32) {
    %c0_i32 = arith.constant 0 : i32
    %c0_i32_0 = arith.constant 0 : i32
    %c0_i32_1 = arith.constant 0 : i32
    return %c0_i32, %c0_i32_0 : i32, i32
  }
  func.func @transform_3(%arg0: i32) -> (i32, i32) {
    %c0_i32 = arith.constant 0 : i32
    %c0_i32_0 = arith.constant 0 : i32
    %c0_i32_1 = arith.constant 0 : i32
    return %c0_i32, %c0_i32_0 : i32, i32
  }
  func.func @transform_4(%arg0: i32) -> (i32, i32) {
    %c0_i32 = arith.constant 0 : i32
    %c0_i32_0 = arith.constant 0 : i32
    %c0_i32_1 = arith.constant 0 : i32
    return %c0_i32, %c0_i32_0 : i32, i32
  }
  func.func @transform_5(%arg0: i32) -> (i32, i32) {
    %c0_i32 = arith.constant 0 : i32
    %c0_i32_0 = arith.constant 0 : i32
    %c0_i32_1 = arith.constant 0 : i32
    return %c0_i32, %c0_i32_0 : i32, i32
  }
  func.func @transform_6(%arg0: i32) -> (i32, i32) {
    %c0_i32 = arith.constant 0 : i32
    %c0_i32_0 = arith.constant 0 : i32
    %c0_i32_1 = arith.constant 0 : i32
    return %c0_i32, %c0_i32_0 : i32, i32
  }
  func.func @transform_7(%arg0: i32) -> (i32, i32) {
    %c0_i32 = arith.constant 0 : i32
    %c0_i32_0 = arith.constant 0 : i32
    %c0_i32_1 = arith.constant 0 : i32
    return %c0_i32, %c0_i32_0 : i32, i32
  }
  func.func @transform_8(%arg0: i32) -> (i32, i32) {
    %c0_i32 = arith.constant 0 : i32
    %c0_i32_0 = arith.constant 0 : i32
    return %arg0, %c0_i32 : i32, i32
  }
  func.func @transform_9(%arg0: i32) -> (i32, i32) {
    %c0_i32 = arith.constant 0 : i32
    %c0_i32_0 = arith.constant 0 : i32
    return %arg0, %c0_i32 : i32, i32
  }
  func.func @transform_10(%arg0: i32) -> (i32, i32) {
    %c0_i32 = arith.constant 0 : i32
    %c0_i32_0 = arith.constant 0 : i32
    return %arg0, %c0_i32 : i32, i32
  }
}

module attributes {stable_mosaic.version = 11 : i64} {
  func.func @_decoder_kernel(%arg0: i32, %arg1: memref<1x10x10x128xf32, #tpu.memory_space<vmem>>, %arg2: memref<9x128x128xf32, #tpu.memory_space<vmem>>, %arg3: memref<1x128xf32, #tpu.memory_space<vmem>>, %arg4: memref<4x4x128x128xf32, #tpu.memory_space<vmem>>, %arg5: memref<1x128xf32, #tpu.memory_space<vmem>>, %arg6: memref<1x4x64x128xf32, #tpu.memory_space<vmem>>, %arg7: memref<10x10x128xf32, #tpu.memory_space<vmem>>) attributes {dimension_semantics = [#tpu.dimension_semantics<parallel>], iteration_bounds = array<i64: 2>, scalar_prefetch = 0 : i64, scratch_operands = 1 : i64, tpu.core_type = #tpu.core_type<tc>, window_params = [{transform_indices = @transform_0, window_bounds = array<i64: 1, 10, 10, 128>}, {pipeline_mode = #tpu.pipeline_mode<synchronous>, transform_indices = @transform_1, window_bounds = array<i64: 9, 128, 128>}, {pipeline_mode = #tpu.pipeline_mode<synchronous>, transform_indices = @transform_2, window_bounds = array<i64: 1, 128>}, {pipeline_mode = #tpu.pipeline_mode<synchronous>, transform_indices = @transform_3, window_bounds = array<i64: 4, 4, 128, 128>}, {pipeline_mode = #tpu.pipeline_mode<synchronous>, transform_indices = @transform_4, window_bounds = array<i64: 1, 128>}, {transform_indices = @transform_5, window_bounds = array<i64: 1, 4, 64, 128>}]} {
    %cst = arith.constant 0.000000e+00 : f32
    %0 = vector.broadcast %cst : f32 to vector<64x128xf32>
    %c0 = arith.constant 0 : index
    %c0_0 = arith.constant 0 : index
    %c0_1 = arith.constant 0 : index
    %c0_2 = arith.constant 0 : index
    %1 = vector.load %arg1[%c0, %c0_0, %c0_1, %c0_2] : memref<1x10x10x128xf32, #tpu.memory_space<vmem>>, vector<1x8x8x128xf32>
    %2 = vector.shape_cast %1 : vector<1x8x8x128xf32> to vector<8x8x128xf32>
    %3 = vector.shape_cast %2 : vector<8x8x128xf32> to vector<64x128xf32>
    %c0_3 = arith.constant 0 : index
    %c0_4 = arith.constant 0 : index
    %c0_5 = arith.constant 0 : index
    %4 = vector.load %arg2[%c0_3, %c0_4, %c0_5] : memref<9x128x128xf32, #tpu.memory_space<vmem>>, vector<1x128x128xf32>
    %5 = vector.shape_cast %4 : vector<1x128x128xf32> to vector<128x128xf32>
    %cst_6 = arith.constant dense<0.000000e+00> : vector<64x128xf32>
    %6 = tpu.matmul %3, %5, %cst_6 {dimension_numbers = #tpu.dot_dimension_numbers<[1], [0], [0], [1], [0, 0, 1, 1], [], []>} : vector<64x128xf32>, vector<128x128xf32>, vector<64x128xf32> -> vector<64x128xf32>
    %7 = arith.addf %0, %6 : vector<64x128xf32>
    %c0_7 = arith.constant 0 : index
    %c0_8 = arith.constant 0 : index
    %c1 = arith.constant 1 : index
    %c0_9 = arith.constant 0 : index
    %8 = vector.load %arg1[%c0_7, %c0_8, %c1, %c0_9] : memref<1x10x10x128xf32, #tpu.memory_space<vmem>>, vector<1x8x8x128xf32>
    %9 = vector.shape_cast %8 : vector<1x8x8x128xf32> to vector<8x8x128xf32>
    %10 = vector.shape_cast %9 : vector<8x8x128xf32> to vector<64x128xf32>
    %c1_10 = arith.constant 1 : index
    %c0_11 = arith.constant 0 : index
    %c0_12 = arith.constant 0 : index
    %11 = vector.load %arg2[%c1_10, %c0_11, %c0_12] : memref<9x128x128xf32, #tpu.memory_space<vmem>>, vector<1x128x128xf32>
    %12 = vector.shape_cast %11 : vector<1x128x128xf32> to vector<128x128xf32>
    %cst_13 = arith.constant dense<0.000000e+00> : vector<64x128xf32>
    %13 = tpu.matmul %10, %12, %cst_13 {dimension_numbers = #tpu.dot_dimension_numbers<[1], [0], [0], [1], [0, 0, 1, 1], [], []>} : vector<64x128xf32>, vector<128x128xf32>, vector<64x128xf32> -> vector<64x128xf32>
    %14 = arith.addf %7, %13 : vector<64x128xf32>
    %c0_14 = arith.constant 0 : index
    %c0_15 = arith.constant 0 : index
    %c2 = arith.constant 2 : index
    %c0_16 = arith.constant 0 : index
    %15 = vector.load %arg1[%c0_14, %c0_15, %c2, %c0_16] : memref<1x10x10x128xf32, #tpu.memory_space<vmem>>, vector<1x8x8x128xf32>
    %16 = vector.shape_cast %15 : vector<1x8x8x128xf32> to vector<8x8x128xf32>
    %17 = vector.shape_cast %16 : vector<8x8x128xf32> to vector<64x128xf32>
    %c2_17 = arith.constant 2 : index
    %c0_18 = arith.constant 0 : index
    %c0_19 = arith.constant 0 : index
    %18 = vector.load %arg2[%c2_17, %c0_18, %c0_19] : memref<9x128x128xf32, #tpu.memory_space<vmem>>, vector<1x128x128xf32>
    %19 = vector.shape_cast %18 : vector<1x128x128xf32> to vector<128x128xf32>
    %cst_20 = arith.constant dense<0.000000e+00> : vector<64x128xf32>
    %20 = tpu.matmul %17, %19, %cst_20 {dimension_numbers = #tpu.dot_dimension_numbers<[1], [0], [0], [1], [0, 0, 1, 1], [], []>} : vector<64x128xf32>, vector<128x128xf32>, vector<64x128xf32> -> vector<64x128xf32>
    %21 = arith.addf %14, %20 : vector<64x128xf32>
    %c0_21 = arith.constant 0 : index
    %c1_22 = arith.constant 1 : index
    %c0_23 = arith.constant 0 : index
    %c0_24 = arith.constant 0 : index
    %22 = vector.load %arg1[%c0_21, %c1_22, %c0_23, %c0_24] : memref<1x10x10x128xf32, #tpu.memory_space<vmem>>, vector<1x8x8x128xf32>
    %23 = vector.shape_cast %22 : vector<1x8x8x128xf32> to vector<8x8x128xf32>
    %24 = vector.shape_cast %23 : vector<8x8x128xf32> to vector<64x128xf32>
    %c3 = arith.constant 3 : index
    %c0_25 = arith.constant 0 : index
    %c0_26 = arith.constant 0 : index
    %25 = vector.load %arg2[%c3, %c0_25, %c0_26] : memref<9x128x128xf32, #tpu.memory_space<vmem>>, vector<1x128x128xf32>
    %26 = vector.shape_cast %25 : vector<1x128x128xf32> to vector<128x128xf32>
    %cst_27 = arith.constant dense<0.000000e+00> : vector<64x128xf32>
    %27 = tpu.matmul %24, %26, %cst_27 {dimension_numbers = #tpu.dot_dimension_numbers<[1], [0], [0], [1], [0, 0, 1, 1], [], []>} : vector<64x128xf32>, vector<128x128xf32>, vector<64x128xf32> -> vector<64x128xf32>
    %28 = arith.addf %21, %27 : vector<64x128xf32>
    %c0_28 = arith.constant 0 : index
    %c1_29 = arith.constant 1 : index
    %c1_30 = arith.constant 1 : index
    %c0_31 = arith.constant 0 : index
    %29 = vector.load %arg1[%c0_28, %c1_29, %c1_30, %c0_31] : memref<1x10x10x128xf32, #tpu.memory_space<vmem>>, vector<1x8x8x128xf32>
    %30 = vector.shape_cast %29 : vector<1x8x8x128xf32> to vector<8x8x128xf32>
    %31 = vector.shape_cast %30 : vector<8x8x128xf32> to vector<64x128xf32>
    %c4 = arith.constant 4 : index
    %c0_32 = arith.constant 0 : index
    %c0_33 = arith.constant 0 : index
    %32 = vector.load %arg2[%c4, %c0_32, %c0_33] : memref<9x128x128xf32, #tpu.memory_space<vmem>>, vector<1x128x128xf32>
    %33 = vector.shape_cast %32 : vector<1x128x128xf32> to vector<128x128xf32>
    %cst_34 = arith.constant dense<0.000000e+00> : vector<64x128xf32>
    %34 = tpu.matmul %31, %33, %cst_34 {dimension_numbers = #tpu.dot_dimension_numbers<[1], [0], [0], [1], [0, 0, 1, 1], [], []>} : vector<64x128xf32>, vector<128x128xf32>, vector<64x128xf32> -> vector<64x128xf32>
    %35 = arith.addf %28, %34 : vector<64x128xf32>
    %c0_35 = arith.constant 0 : index
    %c1_36 = arith.constant 1 : index
    %c2_37 = arith.constant 2 : index
    %c0_38 = arith.constant 0 : index
    %36 = vector.load %arg1[%c0_35, %c1_36, %c2_37, %c0_38] : memref<1x10x10x128xf32, #tpu.memory_space<vmem>>, vector<1x8x8x128xf32>
    %37 = vector.shape_cast %36 : vector<1x8x8x128xf32> to vector<8x8x128xf32>
    %38 = vector.shape_cast %37 : vector<8x8x128xf32> to vector<64x128xf32>
    %c5 = arith.constant 5 : index
    %c0_39 = arith.constant 0 : index
    %c0_40 = arith.constant 0 : index
    %39 = vector.load %arg2[%c5, %c0_39, %c0_40] : memref<9x128x128xf32, #tpu.memory_space<vmem>>, vector<1x128x128xf32>
    %40 = vector.shape_cast %39 : vector<1x128x128xf32> to vector<128x128xf32>
    %cst_41 = arith.constant dense<0.000000e+00> : vector<64x128xf32>
    %41 = tpu.matmul %38, %40, %cst_41 {dimension_numbers = #tpu.dot_dimension_numbers<[1], [0], [0], [1], [0, 0, 1, 1], [], []>} : vector<64x128xf32>, vector<128x128xf32>, vector<64x128xf32> -> vector<64x128xf32>
    %42 = arith.addf %35, %41 : vector<64x128xf32>
    %c0_42 = arith.constant 0 : index
    %c2_43 = arith.constant 2 : index
    %c0_44 = arith.constant 0 : index
    %c0_45 = arith.constant 0 : index
    %43 = vector.load %arg1[%c0_42, %c2_43, %c0_44, %c0_45] : memref<1x10x10x128xf32, #tpu.memory_space<vmem>>, vector<1x8x8x128xf32>
    %44 = vector.shape_cast %43 : vector<1x8x8x128xf32> to vector<8x8x128xf32>
    %45 = vector.shape_cast %44 : vector<8x8x128xf32> to vector<64x128xf32>
    %c6 = arith.constant 6 : index
    %c0_46 = arith.constant 0 : index
    %c0_47 = arith.constant 0 : index
    %46 = vector.load %arg2[%c6, %c0_46, %c0_47] : memref<9x128x128xf32, #tpu.memory_space<vmem>>, vector<1x128x128xf32>
    %47 = vector.shape_cast %46 : vector<1x128x128xf32> to vector<128x128xf32>
    %cst_48 = arith.constant dense<0.000000e+00> : vector<64x128xf32>
    %48 = tpu.matmul %45, %47, %cst_48 {dimension_numbers = #tpu.dot_dimension_numbers<[1], [0], [0], [1], [0, 0, 1, 1], [], []>} : vector<64x128xf32>, vector<128x128xf32>, vector<64x128xf32> -> vector<64x128xf32>
    %49 = arith.addf %42, %48 : vector<64x128xf32>
    %c0_49 = arith.constant 0 : index
    %c2_50 = arith.constant 2 : index
    %c1_51 = arith.constant 1 : index
    %c0_52 = arith.constant 0 : index
    %50 = vector.load %arg1[%c0_49, %c2_50, %c1_51, %c0_52] : memref<1x10x10x128xf32, #tpu.memory_space<vmem>>, vector<1x8x8x128xf32>
    %51 = vector.shape_cast %50 : vector<1x8x8x128xf32> to vector<8x8x128xf32>
    %52 = vector.shape_cast %51 : vector<8x8x128xf32> to vector<64x128xf32>
    %c7 = arith.constant 7 : index
    %c0_53 = arith.constant 0 : index
    %c0_54 = arith.constant 0 : index
    %53 = vector.load %arg2[%c7, %c0_53, %c0_54] : memref<9x128x128xf32, #tpu.memory_space<vmem>>, vector<1x128x128xf32>
    %54 = vector.shape_cast %53 : vector<1x128x128xf32> to vector<128x128xf32>
    %cst_55 = arith.constant dense<0.000000e+00> : vector<64x128xf32>
    %55 = tpu.matmul %52, %54, %cst_55 {dimension_numbers = #tpu.dot_dimension_numbers<[1], [0], [0], [1], [0, 0, 1, 1], [], []>} : vector<64x128xf32>, vector<128x128xf32>, vector<64x128xf32> -> vector<64x128xf32>
    %56 = arith.addf %49, %55 : vector<64x128xf32>
    %c0_56 = arith.constant 0 : index
    %c2_57 = arith.constant 2 : index
    %c2_58 = arith.constant 2 : index
    %c0_59 = arith.constant 0 : index
    %57 = vector.load %arg1[%c0_56, %c2_57, %c2_58, %c0_59] : memref<1x10x10x128xf32, #tpu.memory_space<vmem>>, vector<1x8x8x128xf32>
    %58 = vector.shape_cast %57 : vector<1x8x8x128xf32> to vector<8x8x128xf32>
    %59 = vector.shape_cast %58 : vector<8x8x128xf32> to vector<64x128xf32>
    %c8 = arith.constant 8 : index
    %c0_60 = arith.constant 0 : index
    %c0_61 = arith.constant 0 : index
    %60 = vector.load %arg2[%c8, %c0_60, %c0_61] : memref<9x128x128xf32, #tpu.memory_space<vmem>>, vector<1x128x128xf32>
    %61 = vector.shape_cast %60 : vector<1x128x128xf32> to vector<128x128xf32>
    %cst_62 = arith.constant dense<0.000000e+00> : vector<64x128xf32>
    %62 = tpu.matmul %59, %61, %cst_62 {dimension_numbers = #tpu.dot_dimension_numbers<[1], [0], [0], [1], [0, 0, 1, 1], [], []>} : vector<64x128xf32>, vector<128x128xf32>, vector<64x128xf32> -> vector<64x128xf32>
    %63 = arith.addf %56, %62 : vector<64x128xf32>
    %c0_63 = arith.constant 0 : index
    %c0_64 = arith.constant 0 : index
    %64 = vector.load %arg3[%c0_63, %c0_64] : memref<1x128xf32, #tpu.memory_space<vmem>>, vector<1x128xf32>
    %65 = vector.broadcast %64 : vector<1x128xf32> to vector<64x128xf32>
    %66 = arith.addf %63, %65 : vector<64x128xf32>
    %cst_65 = arith.constant 0.000000e+00 : f32
    %67 = vector.broadcast %cst_65 : f32 to vector<64x128xf32>
    %68 = arith.maximumf %66, %67 : vector<64x128xf32>
    %cst_66 = arith.constant 0.000000e+00 : f32
    %69 = vector.broadcast %cst_66 : f32 to vector<10x10x128xf32>
    %c0_67 = arith.constant 0 : index
    %c0_68 = arith.constant 0 : index
    %c0_69 = arith.constant 0 : index
    %70 = vector.load %arg7[%c0_67, %c0_68, %c0_69] : memref<10x10x128xf32, #tpu.memory_space<vmem>>, vector<10x10x128xf32>
    tpu.vector_store %arg7[%c0_67, %c0_68, %c0_69], %69 {strides = array<i32>} : memref<10x10x128xf32, #tpu.memory_space<vmem>>, vector<10x10x128xf32>,
    %71 = vector.shape_cast %68 : vector<64x128xf32> to vector<8x8x128xf32>
    %c1_70 = arith.constant 1 : index
    %c1_71 = arith.constant 1 : index
    %c0_72 = arith.constant 0 : index
    %72 = vector.load %arg7[%c1_70, %c1_71, %c0_72] : memref<10x10x128xf32, #tpu.memory_space<vmem>>, vector<8x8x128xf32>
    tpu.vector_store %arg7[%c1_70, %c1_71, %c0_72], %71 {strides = array<i32>} : memref<10x10x128xf32, #tpu.memory_space<vmem>>, vector<8x8x128xf32>,
    %cst_73 = arith.constant 0.000000e+00 : f32
    %73 = vector.broadcast %cst_73 : f32 to vector<64x128xf32>
    %c0_74 = arith.constant 0 : index
    %c0_75 = arith.constant 0 : index
    %c0_76 = arith.constant 0 : index
    %74 = vector.load %arg7[%c0_74, %c0_75, %c0_76] : memref<10x10x128xf32, #tpu.memory_space<vmem>>, vector<8x8x128xf32>
    %75 = vector.shape_cast %74 : vector<8x8x128xf32> to vector<64x128xf32>
    %c0_77 = arith.constant 0 : index
    %c0_78 = arith.constant 0 : index
    %c0_79 = arith.constant 0 : index
    %c0_80 = arith.constant 0 : index
    %76 = vector.load %arg4[%c0_77, %c0_78, %c0_79, %c0_80] : memref<4x4x128x128xf32, #tpu.memory_space<vmem>>, vector<1x1x128x128xf32>
    %77 = vector.shape_cast %76 : vector<1x1x128x128xf32> to vector<128x128xf32>
    %cst_81 = arith.constant dense<0.000000e+00> : vector<64x128xf32>
    %78 = tpu.matmul %75, %77, %cst_81 {dimension_numbers = #tpu.dot_dimension_numbers<[1], [0], [0], [1], [0, 0, 1, 1], [], []>} : vector<64x128xf32>, vector<128x128xf32>, vector<64x128xf32> -> vector<64x128xf32>
    %79 = arith.addf %73, %78 : vector<64x128xf32>
    %c0_82 = arith.constant 0 : index
    %c1_83 = arith.constant 1 : index
    %c0_84 = arith.constant 0 : index
    %80 = vector.load %arg7[%c0_82, %c1_83, %c0_84] : memref<10x10x128xf32, #tpu.memory_space<vmem>>, vector<8x8x128xf32>
    %81 = vector.shape_cast %80 : vector<8x8x128xf32> to vector<64x128xf32>
    %c0_85 = arith.constant 0 : index
    %c1_86 = arith.constant 1 : index
    %c0_87 = arith.constant 0 : index
    %c0_88 = arith.constant 0 : index
    %82 = vector.load %arg4[%c0_85, %c1_86, %c0_87, %c0_88] : memref<4x4x128x128xf32, #tpu.memory_space<vmem>>, vector<1x1x128x128xf32>
    %83 = vector.shape_cast %82 : vector<1x1x128x128xf32> to vector<128x128xf32>
    %cst_89 = arith.constant dense<0.000000e+00> : vector<64x128xf32>
    %84 = tpu.matmul %81, %83, %cst_89 {dimension_numbers = #tpu.dot_dimension_numbers<[1], [0], [0], [1], [0, 0, 1, 1], [], []>} : vector<64x128xf32>, vector<128x128xf32>, vector<64x128xf32> -> vector<64x128xf32>
    %85 = arith.addf %79, %84 : vector<64x128xf32>
    %c1_90 = arith.constant 1 : index
    %c0_91 = arith.constant 0 : index
    %c0_92 = arith.constant 0 : index
    %86 = vector.load %arg7[%c1_90, %c0_91, %c0_92] : memref<10x10x128xf32, #tpu.memory_space<vmem>>, vector<8x8x128xf32>
    %87 = vector.shape_cast %86 : vector<8x8x128xf32> to vector<64x128xf32>
    %c0_93 = arith.constant 0 : index
    %c2_94 = arith.constant 2 : index
    %c0_95 = arith.constant 0 : index
    %c0_96 = arith.constant 0 : index
    %88 = vector.load %arg4[%c0_93, %c2_94, %c0_95, %c0_96] : memref<4x4x128x128xf32, #tpu.memory_space<vmem>>, vector<1x1x128x128xf32>
    %89 = vector.shape_cast %88 : vector<1x1x128x128xf32> to vector<128x128xf32>
    %cst_97 = arith.constant dense<0.000000e+00> : vector<64x128xf32>
    %90 = tpu.matmul %87, %89, %cst_97 {dimension_numbers = #tpu.dot_dimension_numbers<[1], [0], [0], [1], [0, 0, 1, 1], [], []>} : vector<64x128xf32>, vector<128x128xf32>, vector<64x128xf32> -> vector<64x128xf32>
    %91 = arith.addf %85, %90 : vector<64x128xf32>
    %c1_98 = arith.constant 1 : index
    %c1_99 = arith.constant 1 : index
    %c0_100 = arith.constant 0 : index
    %92 = vector.load %arg7[%c1_98, %c1_99, %c0_100] : memref<10x10x128xf32, #tpu.memory_space<vmem>>, vector<8x8x128xf32>
    %93 = vector.shape_cast %92 : vector<8x8x128xf32> to vector<64x128xf32>
    %c0_101 = arith.constant 0 : index
    %c3_102 = arith.constant 3 : index
    %c0_103 = arith.constant 0 : index
    %c0_104 = arith.constant 0 : index
    %94 = vector.load %arg4[%c0_101, %c3_102, %c0_103, %c0_104] : memref<4x4x128x128xf32, #tpu.memory_space<vmem>>, vector<1x1x128x128xf32>
    %95 = vector.shape_cast %94 : vector<1x1x128x128xf32> to vector<128x128xf32>
    %cst_105 = arith.constant dense<0.000000e+00> : vector<64x128xf32>
    %96 = tpu.matmul %93, %95, %cst_105 {dimension_numbers = #tpu.dot_dimension_numbers<[1], [0], [0], [1], [0, 0, 1, 1], [], []>} : vector<64x128xf32>, vector<128x128xf32>, vector<64x128xf32> -> vector<64x128xf32>
    %97 = arith.addf %91, %96 : vector<64x128xf32>
    %c0_106 = arith.constant 0 : index
    %c0_107 = arith.constant 0 : index
    %98 = vector.load %arg5[%c0_106, %c0_107] : memref<1x128xf32, #tpu.memory_space<vmem>>, vector<1x128xf32>
    %99 = vector.broadcast %98 : vector<1x128xf32> to vector<64x128xf32>
    %100 = arith.addf %97, %99 : vector<64x128xf32>
    %c0_108 = arith.constant 0 : index
    %c0_109 = arith.constant 0 : index
    %c0_110 = arith.constant 0 : index
    %c0_111 = arith.constant 0 : index
    %101 = vector.load %arg6[%c0_108, %c0_109, %c0_110, %c0_111] : memref<1x4x64x128xf32, #tpu.memory_space<vmem>>, vector<1x1x64x128xf32>
    %102 = vector.shape_cast %101 : vector<1x1x64x128xf32> to vector<64x128xf32>
    %103 = vector.shape_cast %100 : vector<64x128xf32> to vector<1x1x64x128xf32>
    tpu.vector_store %arg6[%c0_108, %c0_109, %c0_110, %c0_111], %103 {strides = array<i32>} : memref<1x4x64x128xf32, #tpu.memory_space<vmem>>, vector<1x1x64x128xf32>,
    %cst_112 = arith.constant 0.000000e+00 : f32
    %104 = vector.broadcast %cst_112 : f32 to vector<64x128xf32>
    %c0_113 = arith.constant 0 : index
    %c1_114 = arith.constant 1 : index
    %c0_115 = arith.constant 0 : index
    %105 = vector.load %arg7[%c0_113, %c1_114, %c0_115] : memref<10x10x128xf32, #tpu.memory_space<vmem>>, vector<8x8x128xf32>
    %106 = vector.shape_cast %105 : vector<8x8x128xf32> to vector<64x128xf32>
    %c1_116 = arith.constant 1 : index
    %c0_117 = arith.constant 0 : index
    %c0_118 = arith.constant 0 : index
    %c0_119 = arith.constant 0 : index
    %107 = vector.load %arg4[%c1_116, %c0_117, %c0_118, %c0_119] : memref<4x4x128x128xf32, #tpu.memory_space<vmem>>, vector<1x1x128x128xf32>
    %108 = vector.shape_cast %107 : vector<1x1x128x128xf32> to vector<128x128xf32>
    %cst_120 = arith.constant dense<0.000000e+00> : vector<64x128xf32>
    %109 = tpu.matmul %106, %108, %cst_120 {dimension_numbers = #tpu.dot_dimension_numbers<[1], [0], [0], [1], [0, 0, 1, 1], [], []>} : vector<64x128xf32>, vector<128x128xf32>, vector<64x128xf32> -> vector<64x128xf32>
    %110 = arith.addf %104, %109 : vector<64x128xf32>
    %c0_121 = arith.constant 0 : index
    %c2_122 = arith.constant 2 : index
    %c0_123 = arith.constant 0 : index
    %111 = vector.load %arg7[%c0_121, %c2_122, %c0_123] : memref<10x10x128xf32, #tpu.memory_space<vmem>>, vector<8x8x128xf32>
    %112 = vector.shape_cast %111 : vector<8x8x128xf32> to vector<64x128xf32>
    %c1_124 = arith.constant 1 : index
    %c1_125 = arith.constant 1 : index
    %c0_126 = arith.constant 0 : index
    %c0_127 = arith.constant 0 : index
    %113 = vector.load %arg4[%c1_124, %c1_125, %c0_126, %c0_127] : memref<4x4x128x128xf32, #tpu.memory_space<vmem>>, vector<1x1x128x128xf32>
    %114 = vector.shape_cast %113 : vector<1x1x128x128xf32> to vector<128x128xf32>
    %cst_128 = arith.constant dense<0.000000e+00> : vector<64x128xf32>
    %115 = tpu.matmul %112, %114, %cst_128 {dimension_numbers = #tpu.dot_dimension_numbers<[1], [0], [0], [1], [0, 0, 1, 1], [], []>} : vector<64x128xf32>, vector<128x128xf32>, vector<64x128xf32> -> vector<64x128xf32>
    %116 = arith.addf %110, %115 : vector<64x128xf32>
    %c1_129 = arith.constant 1 : index
    %c1_130 = arith.constant 1 : index
    %c0_131 = arith.constant 0 : index
    %117 = vector.load %arg7[%c1_129, %c1_130, %c0_131] : memref<10x10x128xf32, #tpu.memory_space<vmem>>, vector<8x8x128xf32>
    %118 = vector.shape_cast %117 : vector<8x8x128xf32> to vector<64x128xf32>
    %c1_132 = arith.constant 1 : index
    %c2_133 = arith.constant 2 : index
    %c0_134 = arith.constant 0 : index
    %c0_135 = arith.constant 0 : index
    %119 = vector.load %arg4[%c1_132, %c2_133, %c0_134, %c0_135] : memref<4x4x128x128xf32, #tpu.memory_space<vmem>>, vector<1x1x128x128xf32>
    %120 = vector.shape_cast %119 : vector<1x1x128x128xf32> to vector<128x128xf32>
    %cst_136 = arith.constant dense<0.000000e+00> : vector<64x128xf32>
    %121 = tpu.matmul %118, %120, %cst_136 {dimension_numbers = #tpu.dot_dimension_numbers<[1], [0], [0], [1], [0, 0, 1, 1], [], []>} : vector<64x128xf32>, vector<128x128xf32>, vector<64x128xf32> -> vector<64x128xf32>
    %122 = arith.addf %116, %121 : vector<64x128xf32>
    %c1_137 = arith.constant 1 : index
    %c2_138 = arith.constant 2 : index
    %c0_139 = arith.constant 0 : index
    %123 = vector.load %arg7[%c1_137, %c2_138, %c0_139] : memref<10x10x128xf32, #tpu.memory_space<vmem>>, vector<8x8x128xf32>
    %124 = vector.shape_cast %123 : vector<8x8x128xf32> to vector<64x128xf32>
    %c1_140 = arith.constant 1 : index
    %c3_141 = arith.constant 3 : index
    %c0_142 = arith.constant 0 : index
    %c0_143 = arith.constant 0 : index
    %125 = vector.load %arg4[%c1_140, %c3_141, %c0_142, %c0_143] : memref<4x4x128x128xf32, #tpu.memory_space<vmem>>, vector<1x1x128x128xf32>
    %126 = vector.shape_cast %125 : vector<1x1x128x128xf32> to vector<128x128xf32>
    %cst_144 = arith.constant dense<0.000000e+00> : vector<64x128xf32>
    %127 = tpu.matmul %124, %126, %cst_144 {dimension_numbers = #tpu.dot_dimension_numbers<[1], [0], [0], [1], [0, 0, 1, 1], [], []>} : vector<64x128xf32>, vector<128x128xf32>, vector<64x128xf32> -> vector<64x128xf32>
    %128 = arith.addf %122, %127 : vector<64x128xf32>
    %c0_145 = arith.constant 0 : index
    %c0_146 = arith.constant 0 : index
    %129 = vector.load %arg5[%c0_145, %c0_146] : memref<1x128xf32, #tpu.memory_space<vmem>>, vector<1x128xf32>
    %130 = vector.broadcast %129 : vector<1x128xf32> to vector<64x128xf32>
    %131 = arith.addf %128, %130 : vector<64x128xf32>
    %c0_147 = arith.constant 0 : index
    %c1_148 = arith.constant 1 : index
    %c0_149 = arith.constant 0 : index
    %c0_150 = arith.constant 0 : index
    %132 = vector.load %arg6[%c0_147, %c1_148, %c0_149, %c0_150] : memref<1x4x64x128xf32, #tpu.memory_space<vmem>>, vector<1x1x64x128xf32>
    %133 = vector.shape_cast %132 : vector<1x1x64x128xf32> to vector<64x128xf32>
    %134 = vector.shape_cast %131 : vector<64x128xf32> to vector<1x1x64x128xf32>
    tpu.vector_store %arg6[%c0_147, %c1_148, %c0_149, %c0_150], %134 {strides = array<i32>} : memref<1x4x64x128xf32, #tpu.memory_space<vmem>>, vector<1x1x64x128xf32>,
    %cst_151 = arith.constant 0.000000e+00 : f32
    %135 = vector.broadcast %cst_151 : f32 to vector<64x128xf32>
    %c1_152 = arith.constant 1 : index
    %c0_153 = arith.constant 0 : index
    %c0_154 = arith.constant 0 : index
    %136 = vector.load %arg7[%c1_152, %c0_153, %c0_154] : memref<10x10x128xf32, #tpu.memory_space<vmem>>, vector<8x8x128xf32>
    %137 = vector.shape_cast %136 : vector<8x8x128xf32> to vector<64x128xf32>
    %c2_155 = arith.constant 2 : index
    %c0_156 = arith.constant 0 : index
    %c0_157 = arith.constant 0 : index
    %c0_158 = arith.constant 0 : index
    %138 = vector.load %arg4[%c2_155, %c0_156, %c0_157, %c0_158] : memref<4x4x128x128xf32, #tpu.memory_space<vmem>>, vector<1x1x128x128xf32>
    %139 = vector.shape_cast %138 : vector<1x1x128x128xf32> to vector<128x128xf32>
    %cst_159 = arith.constant dense<0.000000e+00> : vector<64x128xf32>
    %140 = tpu.matmul %137, %139, %cst_159 {dimension_numbers = #tpu.dot_dimension_numbers<[1], [0], [0], [1], [0, 0, 1, 1], [], []>} : vector<64x128xf32>, vector<128x128xf32>, vector<64x128xf32> -> vector<64x128xf32>
    %141 = arith.addf %135, %140 : vector<64x128xf32>
    %c1_160 = arith.constant 1 : index
    %c1_161 = arith.constant 1 : index
    %c0_162 = arith.constant 0 : index
    %142 = vector.load %arg7[%c1_160, %c1_161, %c0_162] : memref<10x10x128xf32, #tpu.memory_space<vmem>>, vector<8x8x128xf32>
    %143 = vector.shape_cast %142 : vector<8x8x128xf32> to vector<64x128xf32>
    %c2_163 = arith.constant 2 : index
    %c1_164 = arith.constant 1 : index
    %c0_165 = arith.constant 0 : index
    %c0_166 = arith.constant 0 : index
    %144 = vector.load %arg4[%c2_163, %c1_164, %c0_165, %c0_166] : memref<4x4x128x128xf32, #tpu.memory_space<vmem>>, vector<1x1x128x128xf32>
    %145 = vector.shape_cast %144 : vector<1x1x128x128xf32> to vector<128x128xf32>
    %cst_167 = arith.constant dense<0.000000e+00> : vector<64x128xf32>
    %146 = tpu.matmul %143, %145, %cst_167 {dimension_numbers = #tpu.dot_dimension_numbers<[1], [0], [0], [1], [0, 0, 1, 1], [], []>} : vector<64x128xf32>, vector<128x128xf32>, vector<64x128xf32> -> vector<64x128xf32>
    %147 = arith.addf %141, %146 : vector<64x128xf32>
    %c2_168 = arith.constant 2 : index
    %c0_169 = arith.constant 0 : index
    %c0_170 = arith.constant 0 : index
    %148 = vector.load %arg7[%c2_168, %c0_169, %c0_170] : memref<10x10x128xf32, #tpu.memory_space<vmem>>, vector<8x8x128xf32>
    %149 = vector.shape_cast %148 : vector<8x8x128xf32> to vector<64x128xf32>
    %c2_171 = arith.constant 2 : index
    %c2_172 = arith.constant 2 : index
    %c0_173 = arith.constant 0 : index
    %c0_174 = arith.constant 0 : index
    %150 = vector.load %arg4[%c2_171, %c2_172, %c0_173, %c0_174] : memref<4x4x128x128xf32, #tpu.memory_space<vmem>>, vector<1x1x128x128xf32>
    %151 = vector.shape_cast %150 : vector<1x1x128x128xf32> to vector<128x128xf32>
    %cst_175 = arith.constant dense<0.000000e+00> : vector<64x128xf32>
    %152 = tpu.matmul %149, %151, %cst_175 {dimension_numbers = #tpu.dot_dimension_numbers<[1], [0], [0], [1], [0, 0, 1, 1], [], []>} : vector<64x128xf32>, vector<128x128xf32>, vector<64x128xf32> -> vector<64x128xf32>
    %153 = arith.addf %147, %152 : vector<64x128xf32>
    %c2_176 = arith.constant 2 : index
    %c1_177 = arith.constant 1 : index
    %c0_178 = arith.constant 0 : index
    %154 = vector.load %arg7[%c2_176, %c1_177, %c0_178] : memref<10x10x128xf32, #tpu.memory_space<vmem>>, vector<8x8x128xf32>
    %155 = vector.shape_cast %154 : vector<8x8x128xf32> to vector<64x128xf32>
    %c2_179 = arith.constant 2 : index
    %c3_180 = arith.constant 3 : index
    %c0_181 = arith.constant 0 : index
    %c0_182 = arith.constant 0 : index
    %156 = vector.load %arg4[%c2_179, %c3_180, %c0_181, %c0_182] : memref<4x4x128x128xf32, #tpu.memory_space<vmem>>, vector<1x1x128x128xf32>
    %157 = vector.shape_cast %156 : vector<1x1x128x128xf32> to vector<128x128xf32>
    %cst_183 = arith.constant dense<0.000000e+00> : vector<64x128xf32>
    %158 = tpu.matmul %155, %157, %cst_183 {dimension_numbers = #tpu.dot_dimension_numbers<[1], [0], [0], [1], [0, 0, 1, 1], [], []>} : vector<64x128xf32>, vector<128x128xf32>, vector<64x128xf32> -> vector<64x128xf32>
    %159 = arith.addf %153, %158 : vector<64x128xf32>
    %c0_184 = arith.constant 0 : index
    %c0_185 = arith.constant 0 : index
    %160 = vector.load %arg5[%c0_184, %c0_185] : memref<1x128xf32, #tpu.memory_space<vmem>>, vector<1x128xf32>
    %161 = vector.broadcast %160 : vector<1x128xf32> to vector<64x128xf32>
    %162 = arith.addf %159, %161 : vector<64x128xf32>
    %c0_186 = arith.constant 0 : index
    %c2_187 = arith.constant 2 : index
    %c0_188 = arith.constant 0 : index
    %c0_189 = arith.constant 0 : index
    %163 = vector.load %arg6[%c0_186, %c2_187, %c0_188, %c0_189] : memref<1x4x64x128xf32, #tpu.memory_space<vmem>>, vector<1x1x64x128xf32>
    %164 = vector.shape_cast %163 : vector<1x1x64x128xf32> to vector<64x128xf32>
    %165 = vector.shape_cast %162 : vector<64x128xf32> to vector<1x1x64x128xf32>
    tpu.vector_store %arg6[%c0_186, %c2_187, %c0_188, %c0_189], %165 {strides = array<i32>} : memref<1x4x64x128xf32, #tpu.memory_space<vmem>>, vector<1x1x64x128xf32>,
    %cst_190 = arith.constant 0.000000e+00 : f32
    %166 = vector.broadcast %cst_190 : f32 to vector<64x128xf32>
    %c1_191 = arith.constant 1 : index
    %c1_192 = arith.constant 1 : index
    %c0_193 = arith.constant 0 : index
    %167 = vector.load %arg7[%c1_191, %c1_192, %c0_193] : memref<10x10x128xf32, #tpu.memory_space<vmem>>, vector<8x8x128xf32>
    %168 = vector.shape_cast %167 : vector<8x8x128xf32> to vector<64x128xf32>
    %c3_194 = arith.constant 3 : index
    %c0_195 = arith.constant 0 : index
    %c0_196 = arith.constant 0 : index
    %c0_197 = arith.constant 0 : index
    %169 = vector.load %arg4[%c3_194, %c0_195, %c0_196, %c0_197] : memref<4x4x128x128xf32, #tpu.memory_space<vmem>>, vector<1x1x128x128xf32>
    %170 = vector.shape_cast %169 : vector<1x1x128x128xf32> to vector<128x128xf32>
    %cst_198 = arith.constant dense<0.000000e+00> : vector<64x128xf32>
    %171 = tpu.matmul %168, %170, %cst_198 {dimension_numbers = #tpu.dot_dimension_numbers<[1], [0], [0], [1], [0, 0, 1, 1], [], []>} : vector<64x128xf32>, vector<128x128xf32>, vector<64x128xf32> -> vector<64x128xf32>
    %172 = arith.addf %166, %171 : vector<64x128xf32>
    %c1_199 = arith.constant 1 : index
    %c2_200 = arith.constant 2 : index
    %c0_201 = arith.constant 0 : index
    %173 = vector.load %arg7[%c1_199, %c2_200, %c0_201] : memref<10x10x128xf32, #tpu.memory_space<vmem>>, vector<8x8x128xf32>
    %174 = vector.shape_cast %173 : vector<8x8x128xf32> to vector<64x128xf32>
    %c3_202 = arith.constant 3 : index
    %c1_203 = arith.constant 1 : index
    %c0_204 = arith.constant 0 : index
    %c0_205 = arith.constant 0 : index
    %175 = vector.load %arg4[%c3_202, %c1_203, %c0_204, %c0_205] : memref<4x4x128x128xf32, #tpu.memory_space<vmem>>, vector<1x1x128x128xf32>
    %176 = vector.shape_cast %175 : vector<1x1x128x128xf32> to vector<128x128xf32>
    %cst_206 = arith.constant dense<0.000000e+00> : vector<64x128xf32>
    %177 = tpu.matmul %174, %176, %cst_206 {dimension_numbers = #tpu.dot_dimension_numbers<[1], [0], [0], [1], [0, 0, 1, 1], [], []>} : vector<64x128xf32>, vector<128x128xf32>, vector<64x128xf32> -> vector<64x128xf32>
    %178 = arith.addf %172, %177 : vector<64x128xf32>
    %c2_207 = arith.constant 2 : index
    %c1_208 = arith.constant 1 : index
    %c0_209 = arith.constant 0 : index
    %179 = vector.load %arg7[%c2_207, %c1_208, %c0_209] : memref<10x10x128xf32, #tpu.memory_space<vmem>>, vector<8x8x128xf32>
    %180 = vector.shape_cast %179 : vector<8x8x128xf32> to vector<64x128xf32>
    %c3_210 = arith.constant 3 : index
    %c2_211 = arith.constant 2 : index
    %c0_212 = arith.constant 0 : index
    %c0_213 = arith.constant 0 : index
    %181 = vector.load %arg4[%c3_210, %c2_211, %c0_212, %c0_213] : memref<4x4x128x128xf32, #tpu.memory_space<vmem>>, vector<1x1x128x128xf32>
    %182 = vector.shape_cast %181 : vector<1x1x128x128xf32> to vector<128x128xf32>
    %cst_214 = arith.constant dense<0.000000e+00> : vector<64x128xf32>
    %183 = tpu.matmul %180, %182, %cst_214 {dimension_numbers = #tpu.dot_dimension_numbers<[1], [0], [0], [1], [0, 0, 1, 1], [], []>} : vector<64x128xf32>, vector<128x128xf32>, vector<64x128xf32> -> vector<64x128xf32>
    %184 = arith.addf %178, %183 : vector<64x128xf32>
    %c2_215 = arith.constant 2 : index
    %c2_216 = arith.constant 2 : index
    %c0_217 = arith.constant 0 : index
    %185 = vector.load %arg7[%c2_215, %c2_216, %c0_217] : memref<10x10x128xf32, #tpu.memory_space<vmem>>, vector<8x8x128xf32>
    %186 = vector.shape_cast %185 : vector<8x8x128xf32> to vector<64x128xf32>
    %c3_218 = arith.constant 3 : index
    %c3_219 = arith.constant 3 : index
    %c0_220 = arith.constant 0 : index
    %c0_221 = arith.constant 0 : index
    %187 = vector.load %arg4[%c3_218, %c3_219, %c0_220, %c0_221] : memref<4x4x128x128xf32, #tpu.memory_space<vmem>>, vector<1x1x128x128xf32>
    %188 = vector.shape_cast %187 : vector<1x1x128x128xf32> to vector<128x128xf32>
    %cst_222 = arith.constant dense<0.000000e+00> : vector<64x128xf32>
    %189 = tpu.matmul %186, %188, %cst_222 {dimension_numbers = #tpu.dot_dimension_numbers<[1], [0], [0], [1], [0, 0, 1, 1], [], []>} : vector<64x128xf32>, vector<128x128xf32>, vector<64x128xf32> -> vector<64x128xf32>
    %190 = arith.addf %184, %189 : vector<64x128xf32>
    %c0_223 = arith.constant 0 : index
    %c0_224 = arith.constant 0 : index
    %191 = vector.load %arg5[%c0_223, %c0_224] : memref<1x128xf32, #tpu.memory_space<vmem>>, vector<1x128xf32>
    %192 = vector.broadcast %191 : vector<1x128xf32> to vector<64x128xf32>
    %193 = arith.addf %190, %192 : vector<64x128xf32>
    %c0_225 = arith.constant 0 : index
    %c3_226 = arith.constant 3 : index
    %c0_227 = arith.constant 0 : index
    %c0_228 = arith.constant 0 : index
    %194 = vector.load %arg6[%c0_225, %c3_226, %c0_227, %c0_228] : memref<1x4x64x128xf32, #tpu.memory_space<vmem>>, vector<1x1x64x128xf32>
    %195 = vector.shape_cast %194 : vector<1x1x64x128xf32> to vector<64x128xf32>
    %196 = vector.shape_cast %193 : vector<64x128xf32> to vector<1x1x64x128xf32>
    tpu.vector_store %arg6[%c0_225, %c3_226, %c0_227, %c0_228], %196 {strides = array<i32>} : memref<1x4x64x128xf32, #tpu.memory_space<vmem>>, vector<1x1x64x128xf32>,
    return
  }
  func.func @transform_0(%arg0: i32) -> (i32, i32, i32, i32) {
    %c0_i32 = arith.constant 0 : i32
    %c0_i32_0 = arith.constant 0 : i32
    %c0_i32_1 = arith.constant 0 : i32
    %c0_i32_2 = arith.constant 0 : i32
    return %arg0, %c0_i32, %c0_i32_0, %c0_i32_1 : i32, i32, i32, i32
  }
  func.func @transform_1(%arg0: i32) -> (i32, i32, i32) {
    %c0_i32 = arith.constant 0 : i32
    %c0_i32_0 = arith.constant 0 : i32
    %c0_i32_1 = arith.constant 0 : i32
    %c0_i32_2 = arith.constant 0 : i32
    return %c0_i32, %c0_i32_0, %c0_i32_1 : i32, i32, i32
  }
  func.func @transform_2(%arg0: i32) -> (i32, i32) {
    %c0_i32 = arith.constant 0 : i32
    %c0_i32_0 = arith.constant 0 : i32
    %c0_i32_1 = arith.constant 0 : i32
    return %c0_i32, %c0_i32_0 : i32, i32
  }
  func.func @transform_3(%arg0: i32) -> (i32, i32, i32, i32) {
    %c0_i32 = arith.constant 0 : i32
    %c0_i32_0 = arith.constant 0 : i32
    %c0_i32_1 = arith.constant 0 : i32
    %c0_i32_2 = arith.constant 0 : i32
    %c0_i32_3 = arith.constant 0 : i32
    return %c0_i32, %c0_i32_0, %c0_i32_1, %c0_i32_2 : i32, i32, i32, i32
  }
  func.func @transform_4(%arg0: i32) -> (i32, i32) {
    %c0_i32 = arith.constant 0 : i32
    %c0_i32_0 = arith.constant 0 : i32
    %c0_i32_1 = arith.constant 0 : i32
    return %c0_i32, %c0_i32_0 : i32, i32
  }
  func.func @transform_5(%arg0: i32) -> (i32, i32, i32, i32) {
    %c0_i32 = arith.constant 0 : i32
    %c0_i32_0 = arith.constant 0 : i32
    %c0_i32_1 = arith.constant 0 : i32
    %c0_i32_2 = arith.constant 0 : i32
    return %arg0, %c0_i32, %c0_i32_0, %c0_i32_1 : i32, i32, i32, i32
  }
}

</mosaic_0001>

<bundles_post_ra>
// kernel: squeeze.3
= control target key start
LH: loop header
LB: loop body
LE: loop exit
PB: predicated region body
PF: predicated region fallthrough
CT: control target
= control target key end

     0   :  { %s202_s0 = inlined_call_operand.vmem [shape: s32[128], index: 0, kind: input, shape index: {}]   ;;  %s203_s1 = inlined_call_operand.hbm [shape: s32[2,8,8], index: 1, kind: output, shape index: {}]  }
   0x1   :  { %v5_v0 = vld [vmem:[%s202_s0] sm:$0x1] }
   0x2   :  { %2 = vsyncpa [#allocation1], 0  ;;  %6 = vst [vmem:[#allocation2] sm:$0x1] %v5_v0  ;;  %s154_s0 = smov 104   ;;  %s155_s8 = smov 120  }
   0x3   :  { %s156_s9 = smov 88   ;;  %s157_s10 = smov 96   ;;  %vm8_vm0 = vcmask 64512  }
   0x4   :  { %s158_s11 = smov 112   ;;  %s159_s12 = smov 80  }
   0x5   :  { %s160_s13 = smov 64   ;;  %s161_s14 = smov 72  }
   0x6   :  { %s162_s15 = smov 56   ;;  %s163_s16 = smov 40  }
   0x7   :  { %s164_s17 = smov 48   ;;  %s165_s18 = smov 32  }
   0x8   :  { %s166_s19 = smov 16   ;;  %s167_s20 = smov 24  }
   0x9   :  { %v22_v1 = vld [vmem:[#allocation2] sm:$0x1]   ;;  %s168_s21 = smov 8   ;;  %s169_s22 = smov [#allocation0]  }
   0xa   :  { %v10_v2 = vld [vmem:[#allocation2] sm:$0x1]   ;;  %23 = vrot.lane.b32.xlu1 %v22_v1, %s154_s0  ;;  %s103_s23 = sshll.u32 %s169_s22, 4  ;;  %s105_s1 = sshll.u32 %s203_s1, 4  ;;  %s104_s23 = int_to_ptr.vmem [resolvable:$true] %s103_s23  ;;  %s106_s1 = int_to_ptr.hbm [resolvable:$true] %s105_s1 }
   0xb   :  { %11 = vrot.lane.b32.xlu0 %v10_v2, %s155_s8  ;;  %v34_v3 = vld [vmem:[#allocation2] sm:$0x1]  }
   0xc   :  { %35 = vrot.lane.b32.xlu2 %v34_v3, %s156_s9  ;;  %v28_v4 = vld [vmem:[#allocation2] sm:$0x1]  }
   0xd   :  { %v16_v5 = vld [vmem:[#allocation2] sm:$0x1]  }
   0xe   :  { %v40_v6 = vld [vmem:[#allocation2] sm:$0x1]  }
   0xf   :  { %v52_v7 = vld [vmem:[#allocation2] sm:$0x1]  }
  0x10   :  { %v46_v8 = vld [vmem:[#allocation2] sm:$0x1]  }
  0x11   :  { %v58_v9 = vld [vmem:[#allocation2] sm:$0x1]  }
  0x12   :  { %29 = vrot.lane.b32.xlu1 %v28_v4, %s157_s10  ;;  %v70_v10 = vld [vmem:[#allocation2] sm:$0x1]  }
  0x13   :  { %17 = vrot.lane.b32.xlu0 %v16_v5, %s158_s11  ;;  %v64_v11 = vld [vmem:[#allocation2] sm:$0x1]  }
  0x14   :  { %41 = vrot.lane.b32.xlu2 %v40_v6, %s159_s12  ;;  %v76_v12 = vld [vmem:[#allocation2] sm:$0x1]  }
  0x15   :  { %v88_v13 = vld [vmem:[#allocation2] sm:$0x1]  }
  0x16   :  { %v82_v14 = vld [vmem:[#allocation2] sm:$0x1]  }
  0x17   :  { %v94_v15 = vld [vmem:[#allocation2] sm:$0x1]  }
  0x18   :  { %v7_v21 = vld [vmem:[#allocation2] sm:$0x1]  }
  0x19   :  { %9 = vst.msk [vmem:[#allocation0] sm:$0x1] %vm8_vm0, %v7_v21  }
  0x1a   :  { %53 = vrot.lane.b32.xlu1 %v52_v7, %s160_s13 }
  0x1b   :  { %47 = vrot.lane.b32.xlu0 %v46_v8, %s161_s14 }
  0x1c   :  { %59 = vrot.lane.b32.xlu2 %v58_v9, %s162_s15 }
  0x22   :  { %71 = vrot.lane.b32.xlu1 %v70_v10, %s163_s16 }
  0x23   :  { %65 = vrot.lane.b32.xlu0 %v64_v11, %s164_s17 }
  0x24   :  { %77 = vrot.lane.b32.xlu2 %v76_v12, %s165_s18 }
  0x2a   :  { %89 = vrot.lane.b32.xlu1 %v88_v13, %s166_s19 }
  0x2b   :  { %83 = vrot.lane.b32.xlu0 %v82_v14, %s167_s20 }
  0x2c   :  { %95 = vrot.lane.b32.xlu2 %v94_v15, %s168_s21 }
  0x66   :  { %v36_v16 = vpop.permute.xlu2 %35  }
  0x67   :  { %39 = vst.msk [vmem:[#allocation0 + $0x5] sm:$0x1] %vm8_vm0, %v36_v16  }
  0x6e   :  { %v42_v17 = vpop.permute.xlu2 %41  }
  0x6f   :  { %45 = vst.msk [vmem:[#allocation0 + $0x6] sm:$0x1] %vm8_vm0, %v42_v17  }
  0x76   :  { %v60_v18 = vpop.permute.xlu2 %59  }
  0x77   :  { %63 = vst.msk [vmem:[#allocation0 + $0x9] sm:$0x1] %vm8_vm0, %v60_v18  }
  0x7c   :  { %v24_v19 = vpop.permute.xlu1 %23  }
  0x7d   :  { %v12_v20 = vpop.permute.xlu0 %11   ;;  %27 = vst.msk [vmem:[#allocation0 + $0x3] sm:$0x1] %vm8_vm0, %v24_v19  }
  0x7e   :  { %15 = vst.msk [vmem:[#allocation0 + $0x1] sm:$0x1] %vm8_vm0, %v12_v20   ;;  %v78_v22 = vpop.permute.xlu2 %77  }
  0x7f   :  { %81 = vst.msk [vmem:[#allocation0 + $0xc] sm:$0x1] %vm8_vm0, %v78_v22  }
  0x84   :  { %v30_v23 = vpop.permute.xlu1 %29  }
  0x85   :  { %v18_v24 = vpop.permute.xlu0 %17   ;;  %33 = vst.msk [vmem:[#allocation0 + $0x4] sm:$0x1] %vm8_vm0, %v30_v23  }
  0x86   :  { %21 = vst.msk [vmem:[#allocation0 + $0x2] sm:$0x1] %vm8_vm0, %v18_v24   ;;  %v96_v25 = vpop.permute.xlu2 %95  }
  0x87   :  { %99 = vst.msk [vmem:[#allocation0 + $0xf] sm:$0x1] %vm8_vm0, %v96_v25  }
  0x8c   :  { %v54_v26 = vpop.permute.xlu1 %53  }
  0x8d   :  { %v48_v27 = vpop.permute.xlu0 %47   ;;  %57 = vst.msk [vmem:[#allocation0 + $0x8] sm:$0x1] %vm8_vm0, %v54_v26  }
  0x8e   :  { %51 = vst.msk [vmem:[#allocation0 + $0x7] sm:$0x1] %vm8_vm0, %v48_v27  }
  0x94   :  { %v72_v28 = vpop.permute.xlu1 %71  }
  0x95   :  { %v66_v29 = vpop.permute.xlu0 %65   ;;  %75 = vst.msk [vmem:[#allocation0 + $0xb] sm:$0x1] %vm8_vm0, %v72_v28  }
  0x96   :  { %69 = vst.msk [vmem:[#allocation0 + $0xa] sm:$0x1] %vm8_vm0, %v66_v29  }
  0x9c   :  { %v90_v30 = vpop.permute.xlu1 %89  }
  0x9d   :  { %v84_v31 = vpop.permute.xlu0 %83   ;;  %93 = vst.msk [vmem:[#allocation0 + $0xe] sm:$0x1] %vm8_vm0, %v90_v30  }
  0x9e   :  { %87 = vst.msk [vmem:[#allocation0 + $0xd] sm:$0x1] %vm8_vm0, %v84_v31  }
  0x9f   :  { %108 = dma.vmem_to_hbm [thread:$0]  %s104_s23, 256, %s106_s1, [#allocation1]  }
  0xa0   :  { %152 = dma.done.wait [#allocation1], 256  }
  0xa1   :  { %153 = vsyncadd [#allocation1], 4294967040 }
  0xa2   :  { %111 = vsyncpa [#allocation1], 1 }

// kernel: vqgan_forward.4
= control target key start
LH: loop header
LB: loop body
LE: loop exit
PB: predicated region body
PF: predicated region fallthrough
CT: control target
= control target key end

     0   :  { %s1966_s1 = inlined_call_operand.vmem [shape: f32[128,128], index: 1, kind: input, shape index: {}]   ;;  %s1967_s2 = inlined_call_operand.vmem [shape: f32[1,128], index: 2, kind: input, shape index: {}]   ;;  %s1968_s0 = inlined_call_operand.vmem [shape: f32[128,128], index: 0, kind: input, shape index: {}]   ;;  %s1969_s4 = inlined_call_operand.vmem [shape: f32[128,128], index: 4, kind: input, shape index: {}]   ;;  %s1970_s5 = inlined_call_operand.vmem [shape: f32[1,128], index: 5, kind: input, shape index: {}]   ;;  %s1971_s3 = inlined_call_operand.vmem [shape: f32[128,128], index: 3, kind: input, shape index: {}]   ;;  %s1972_s9 = inlined_call_operand.vmem [shape: s32[128,1], index: 9, kind: output, shape index: {1}]   ;;  %s1973_s6 = inlined_call_operand.vmem [shape: f32[128,128], index: 6, kind: input, shape index: {}]   ;;  %s1974_s7 = inlined_call_operand.vmem [shape: f32[1,128], index: 7, kind: input, shape index: {}]   ;;  %s1975_s10 = inlined_call_operand.vmem [shape: f32[128,1], index: 10, kind: output, shape index: {2}]   ;;  %s1976_s8 = inlined_call_operand.vmem [shape: f32[128,128], index: 8, kind: output, shape index: {0}]  }
   0x1   :  { %v63_v0 = vld [vmem:[%s1966_s1 + $0x78] sm:$0xff]  ;;  %v62_v1 = vld [vmem:[%s1966_s1 + $0x70] sm:$0xff]  ;;  %v61_v2 = vld [vmem:[%s1966_s1 + $0x68] sm:$0xff] }
   0x2   :  { %68 = vmatpush.msra.mxu0 %v63_v0  ;;  %v60_v3 = vld [vmem:[%s1966_s1 + $0x60] sm:$0xff]  ;;  %v59_v4 = vld [vmem:[%s1966_s1 + $0x58] sm:$0xff]  ;;  %v58_v5 = vld [vmem:[%s1966_s1 + $0x50] sm:$0xff] }
   0x3   :  { %v57_v6 = vld [vmem:[%s1966_s1 + $0x48] sm:$0xff]  ;;  %v56_v7 = vld [vmem:[%s1966_s1 + $0x40] sm:$0xff]  ;;  %v55_v8 = vld [vmem:[%s1966_s1 + $0x38] sm:$0xff] }
   0x4   :  { %69 = vmatpush.msra.mxu0 %v62_v1  ;;  %v54_v9 = vld [vmem:[%s1966_s1 + $0x30] sm:$0xff]  ;;  %v53_v10 = vld [vmem:[%s1966_s1 + $0x28] sm:$0xff]  ;;  %v52_v11 = vld [vmem:[%s1966_s1 + $0x20] sm:$0xff] }
   0x5   :  { %v51_v12 = vld [vmem:[%s1966_s1 + $0x18] sm:$0xff]  ;;  %v50_v13 = vld [vmem:[%s1966_s1 + $0x10] sm:$0xff]  ;;  %v49_v14 = vld [vmem:[%s1966_s1 + $0x8] sm:$0xff] }
   0x6   :  { %70 = vmatpush.msra.mxu0 %v61_v2  ;;  %v48_v15 = vld [vmem:[%s1966_s1] sm:$0xff]  ;;  %v33_v17 = vld [vmem:[%s1968_s0 + $0x8] sm:$0xff]  ;;  %v34_v18 = vld [vmem:[%s1968_s0 + $0x10] sm:$0xff] }
   0x7   :  { %v32_v16 = vld [vmem:[%s1968_s0] sm:$0xff]  ;;  %v196_v19 = vld [vmem:[%s1969_s4 + $0x78] sm:$0xff]  ;;  %v195_v20 = vld [vmem:[%s1969_s4 + $0x70] sm:$0xff] }
   0x8   :  { %71 = vmatpush.msra.mxu0 %v60_v3  ;;  %197 = vmatpush.msra.mxu1 %v196_v19  ;;  %v194_v21 = vld [vmem:[%s1969_s4 + $0x68] sm:$0xff]  ;;  %v193_v22 = vld [vmem:[%s1969_s4 + $0x60] sm:$0xff]  ;;  %v35_v23 = vld [vmem:[%s1968_s0 + $0x18] sm:$0xff] }
   0x9   :  { %v192_v24 = vld [vmem:[%s1969_s4 + $0x58] sm:$0xff]  ;;  %v191_v25 = vld [vmem:[%s1969_s4 + $0x50] sm:$0xff]  ;;  %v190_v26 = vld [vmem:[%s1969_s4 + $0x48] sm:$0xff] }
   0xa   :  { %72 = vmatpush.msra.mxu0 %v59_v4  ;;  %198 = vmatpush.msra.mxu1 %v195_v20  ;;  %v189_v27 = vld [vmem:[%s1969_s4 + $0x40] sm:$0xff]  ;;  %v188_v29 = vld [vmem:[%s1969_s4 + $0x38] sm:$0xff]  ;;  %v187_v30 = vld [vmem:[%s1969_s4 + $0x30] sm:$0xff] }
   0xb   :  { %v36_v28 = vld [vmem:[%s1968_s0 + $0x20] sm:$0xff]  ;;  %v186_v31 = vld [vmem:[%s1969_s4 + $0x28] sm:$0xff]  ;;  %v184_v34 = vld [vmem:[%s1969_s4 + $0x18] sm:$0xff] }
   0xc   :  { %73 = vmatpush.msra.mxu0 %v58_v5  ;;  %199 = vmatpush.msra.mxu1 %v194_v21  ;;  %v185_v32 = vld [vmem:[%s1969_s4 + $0x20] sm:$0xff]  ;;  %v37_v33 = vld [vmem:[%s1968_s0 + $0x28] sm:$0xff]  ;;  %v183_v35 = vld [vmem:[%s1969_s4 + $0x10] sm:$0xff] }
   0xd   :  { %v38_v36 = vld [vmem:[%s1968_s0 + $0x30] sm:$0xff]  ;;  %v182_v37 = vld [vmem:[%s1969_s4 + $0x8] sm:$0xff]  ;;  %v181_v38 = vld [vmem:[%s1969_s4] sm:$0xff] }
   0xe   :  { %74 = vmatpush.msra.mxu0 %v57_v6  ;;  %200 = vmatpush.msra.mxu1 %v193_v22  ;;  %v39_v39 = vld [vmem:[%s1968_s0 + $0x38] sm:$0xff]  ;;  %v40_v40 = vld [vmem:[%s1968_s0 + $0x40] sm:$0xff]  ;;  %v41_v41 = vld [vmem:[%s1968_s0 + $0x48] sm:$0xff] }
   0xf   :  { %v42_v42 = vld [vmem:[%s1968_s0 + $0x50] sm:$0xff]  ;;  %v1184_v43 = vld [vmem:[%s1967_s2] ss:$0 sm:$0xff]  ;;  %v43_v47 = vld [vmem:[%s1968_s0 + $0x58] sm:$0xff] }
  0x10   :  { %75 = vmatpush.msra.mxu0 %v56_v7  ;;  %201 = vmatpush.msra.mxu1 %v192_v24  ;;  %v44_v51 = vld [vmem:[%s1968_s0 + $0x60] sm:$0xff]  ;;  %v45_v55 = vld [vmem:[%s1968_s0 + $0x68] sm:$0xff]  ;;  %v46_v58 = vld [vmem:[%s1968_s0 + $0x70] sm:$0xff] }
  0x11   :  { %v47_v62 = vld [vmem:[%s1968_s0 + $0x78] sm:$0xff] }
  0x12   :  { %76 = vmatpush.msra.mxu0 %v55_v8  ;;  %202 = vmatpush.msra.mxu1 %v191_v25 }
  0x14   :  { %77 = vmatpush.msra.mxu0 %v54_v9  ;;  %203 = vmatpush.msra.mxu1 %v190_v26 }
  0x16   :  { %78 = vmatpush.msra.mxu0 %v53_v10  ;;  %204 = vmatpush.msra.mxu1 %v189_v27 }
  0x18   :  { %79 = vmatpush.msra.mxu0 %v52_v11  ;;  %205 = vmatpush.msra.mxu1 %v188_v29 }
  0x1a   :  { %80 = vmatpush.msra.mxu0 %v51_v12  ;;  %206 = vmatpush.msra.mxu1 %v187_v30 }
  0x1c   :  { %81 = vmatpush.msra.mxu0 %v50_v13  ;;  %207 = vmatpush.msra.mxu1 %v186_v31  ;;  %v314_v13 = vlaneseq }
  0x1e   :  { %82 = vmatpush.msra.mxu0 %v49_v14  ;;  %208 = vmatpush.msra.mxu1 %v185_v32 }
  0x20   :  { %83 = vmatpush.msra.mxu0 %v48_v15  ;;  %209 = vmatpush.msra.mxu1 %v184_v34 }
  0x21   :  { %84 = vmatmul.f32.vlgmr.msra.gmra.mxu0 %v32_v16  ;;  %v1262_v16 = vld [vmem:[%s1970_s5] ss:$0 sm:$0xff] }
  0x22   :  { %210 = vmatpush.msra.mxu1 %v183_v35 }
  0x24   :  { %211 = vmatpush.msra.mxu1 %v182_v37 }
  0x26   :  { %212 = vmatpush.msra.mxu1 %v181_v38 }
  0x29   :  { %87 = vmatmul.f32.gmra.mxu0 %v33_v17  ;;  %v1264_v17 = vand.u32 127, %v314_v13 }
  0x2b   :  { %vm316_vm0 = vcmp.lt.s32.totalorder %v1264_v17, 32 }
  0x31   :  { %90 = vmatmul.f32.gmra.mxu0 %v34_v18 }
  0x39   :  { %93 = vmatmul.f32.gmra.mxu0 %v35_v23 }
  0x41   :  { %96 = vmatmul.f32.gmra.mxu0 %v36_v28 }
  0x49   :  { %99 = vmatmul.f32.gmra.mxu0 %v37_v33 }
  0x51   :  { %102 = vmatmul.f32.gmra.mxu0 %v38_v36 }
  0x59   :  { %105 = vmatmul.f32.gmra.mxu0 %v39_v39 }
  0x61   :  { %108 = vmatmul.f32.gmra.mxu0 %v40_v40 }
  0x69   :  { %111 = vmatmul.f32.gmra.mxu0 %v41_v41 }
  0x71   :  { %114 = vmatmul.f32.gmra.mxu0 %v42_v42 }
  0x79   :  { %117 = vmatmul.f32.gmra.mxu0 %v43_v47 }
  0x81   :  { %120 = vmatmul.f32.gmra.mxu0 %v44_v51 }
  0x89   :  { %123 = vmatmul.f32.gmra.mxu0 %v45_v55 }
  0x91   :  { %126 = vmatmul.f32.gmra.mxu0 %v46_v58 }
  0x99   :  { %129 = vmatmul.f32.gmra.mxu0 %v47_v62 }
  0x9e   :  { %v85_v44 = vpop.f32.mrf.mxu0 }
  0x9f   :  { %v1187_v45 = vadd.f32 %v1184_v43, %v85_v44 }
  0xa1   :  { %213 = vmatmul.f32.vlgmr.msra.gmra.mxu1 %v1187_v45  ;;  %v133_v46 = vmul.f32 %v1187_v45, %v1187_v45 }
  0xa3   :  { %149 = vadd.xlane.f32.xlu0 %v133_v46 }
  0xa6   :  { %v88_v48 = vpop.f32.mrf.mxu0 }
  0xa7   :  { %v1196_v49 = vadd.f32 %v1184_v43, %v88_v48 }
  0xa9   :  { %216 = vmatmul.f32.gmra.mxu1 %v1196_v49  ;;  %v134_v50 = vmul.f32 %v1196_v49, %v1196_v49 }
  0xab   :  { %151 = vadd.xlane.f32.xlu0 %v134_v50 }
  0xae   :  { %v91_v52 = vpop.f32.mrf.mxu0 }
  0xaf   :  { %v1205_v53 = vadd.f32 %v1184_v43, %v91_v52 }
  0xb1   :  { %219 = vmatmul.f32.gmra.mxu1 %v1205_v53  ;;  %v135_v54 = vmul.f32 %v1205_v53, %v1205_v53 }
  0xb3   :  { %153 = vadd.xlane.f32.xlu1 %v135_v54 }
  0xb6   :  { %v94_v56 = vpop.f32.mrf.mxu0 }
  0xb7   :  { %v1214_v57 = vadd.f32 %v1184_v43, %v94_v56 }
  0xb9   :  { %222 = vmatmul.f32.gmra.mxu1 %v1214_v57  ;;  %v136_v59 = vmul.f32 %v1214_v57, %v1214_v57 }
  0xbb   :  { %155 = vadd.xlane.f32.xlu1 %v136_v59 }
  0xbe   :  { %v97_v60 = vpop.f32.mrf.mxu0 }
  0xbf   :  { %v1223_v61 = vadd.f32 %v1184_v43, %v97_v60 }
  0xc1   :  { %225 = vmatmul.f32.gmra.mxu1 %v1223_v61  ;;  %v137_v63 = vmul.f32 %v1223_v61, %v1223_v61 }
  0xc3   :  { %157 = vadd.xlane.f32.xlu2 %v137_v63 }
  0xc6   :  { %v100_v0 = vpop.f32.mrf.mxu0 }
  0xc7   :  { %v1232_v1 = vadd.f32 %v1184_v43, %v100_v0 }
  0xc9   :  { %228 = vmatmul.f32.gmra.mxu1 %v1232_v1  ;;  %v138_v2 = vmul.f32 %v1232_v1, %v1232_v1 }
  0xcb   :  { %159 = vadd.xlane.f32.xlu2 %v138_v2 }
  0xce   :  { %v103_v3 = vpop.f32.mrf.mxu0 }
  0xcf   :  { %v1238_v4 = vadd.f32 %v1184_v43, %v103_v3 }
  0xd1   :  { %231 = vmatmul.f32.gmra.mxu1 %v1238_v4  ;;  %v139_v5 = vmul.f32 %v1238_v4, %v1238_v4 }
  0xd3   :  { %161 = vadd.xlane.f32.xlu1 %v139_v5 }
  0xd6   :  { %v106_v6 = vpop.f32.mrf.mxu0 }
  0xd7   :  { %v1244_v7 = vadd.f32 %v1184_v43, %v106_v6 }
  0xd9   :  { %234 = vmatmul.f32.gmra.mxu1 %v1244_v7  ;;  %v140_v33 = vmul.f32 %v1244_v7, %v1244_v7 }
  0xde   :  { %v109_v8 = vpop.f32.mrf.mxu0 }
  0xdf   :  { %v1248_v9 = vadd.f32 %v1184_v43, %v109_v8 }
  0xe1   :  { %237 = vmatmul.f32.gmra.mxu1 %v1248_v9  ;;  %v141_v41 = vmul.f32 %v1248_v9, %v1248_v9 }
  0xe6   :  { %v112_v10 = vpop.f32.mrf.mxu0 }
  0xe7   :  { %v1252_v11 = vadd.f32 %v1184_v43, %v112_v10 }
  0xe9   :  { %240 = vmatmul.f32.gmra.mxu1 %v1252_v11  ;;  %v142_v51 = vmul.f32 %v1252_v11, %v1252_v11 }
  0xee   :  { %v115_v12 = vpop.f32.mrf.mxu0 }
  0xef   :  { %v1256_v14 = vadd.f32 %v1184_v43, %v115_v12 }
  0xf1   :  { %243 = vmatmul.f32.gmra.mxu1 %v1256_v14  ;;  %v143_v63 = vmul.f32 %v1256_v14, %v1256_v14 }
  0xf6   :  { %v118_v21 = vpop.f32.mrf.mxu0 }
  0xf7   :  { %v1269_v22 = vadd.f32 %v1184_v43, %v118_v21 }
  0xf9   :  { %246 = vmatmul.f32.gmra.mxu1 %v1269_v22  ;;  %v144_v12 = vmul.f32 %v1269_v22, %v1269_v22 }
  0xfe   :  { %v121_v29 = vpop.f32.mrf.mxu0 }
  0xff   :  { %v1279_v31 = vadd.f32 %v1184_v43, %v121_v29 }
 0x101   :  { %249 = vmatmul.f32.gmra.mxu1 %v1279_v31  ;;  %v145_v21 = vmul.f32 %v1279_v31, %v1279_v31 }
 0x106   :  { %v124_v38 = vpop.f32.mrf.mxu0 }
 0x107   :  { %v1291_v39 = vadd.f32 %v1184_v43, %v124_v38 }
 0x109   :  { %252 = vmatmul.f32.gmra.mxu1 %v1291_v39 }
 0x10e   :  { %v127_v50 = vpop.f32.mrf.mxu0 }
 0x10f   :  { %v1305_v54 = vadd.f32 %v1184_v43, %v127_v50 }
 0x111   :  { %255 = vmatmul.f32.gmra.mxu1 %v1305_v54 }
 0x116   :  { %v150_v15 = vpop.xlane.xlu0 %149  ;;  %v130_v62 = vpop.f32.mrf.mxu0 }
 0x117   :  { %v266_v19 = vadd.f32 %v1262_v16, %v150_v15  ;;  %v1317_v0 = vadd.f32 %v1184_v43, %v130_v62 }
 0x119   :  { %258 = vmatmul.f32.gmra.mxu1 %v1317_v0 }
 0x11e   :  { %v214_v18 = vpop.f32.mrf.mxu1  ;;  %v152_v25 = vpop.xlane.xlu0 %151 }
 0x11f   :  { %v282_v20 = vmul.f32 2.0, %v214_v18  ;;  %v267_v27 = vadd.f32 %v1262_v16, %v152_v25 }
 0x121   :  { %v298_v23 = vsub.f32 %v266_v19, %v282_v20 }
 0x123   :  { %v1274_v24 = vsel %vm316_vm0, %v298_v23, 1e+30 }
 0x124   :  { %333 = vmin.xlane.f32.xlu0 %v1274_v24 }
 0x126   :  { %v217_v26 = vpop.f32.mrf.mxu1  ;;  %v154_v30 = vpop.xlane.xlu1 %153 }
 0x127   :  { %v283_v28 = vmul.f32 2.0, %v217_v26  ;;  %v268_v35 = vadd.f32 %v1262_v16, %v154_v30  ;;  %v146_v26 = vmul.f32 %v1291_v39, %v1291_v39 }
 0x129   :  { %v299_v32 = vsub.f32 %v267_v27, %v283_v28  ;;  %v147_v27 = vmul.f32 %v1305_v54, %v1305_v54  ;;  %v148_v28 = vmul.f32 %v1317_v0, %v1317_v0 }
 0x12b   :  { %v1286_v34 = vsel %vm316_vm0, %v299_v32, 1e+30 }
 0x12c   :  { %163 = vadd.xlane.f32.xlu0 %v140_v33  ;;  %335 = vmin.xlane.f32.xlu2 %v1286_v34 }
 0x12e   :  { %v220_v36 = vpop.f32.mrf.mxu1  ;;  %v156_v42 = vpop.xlane.xlu1 %155 }
 0x12f   :  { %v284_v37 = vmul.f32 2.0, %v220_v36  ;;  %v269_v46 = vadd.f32 %v1262_v16, %v156_v42 }
 0x131   :  { %v300_v40 = vsub.f32 %v268_v35, %v284_v37 }
 0x133   :  { %v1298_v44 = vsel %vm316_vm0, %v300_v40, 1e+30 }
 0x134   :  { %337 = vmin.xlane.f32.xlu1 %v1298_v44  ;;  %165 = vadd.xlane.f32.xlu2 %v141_v41 }
 0x136   :  { %v223_v47 = vpop.f32.mrf.mxu1  ;;  %v158_v52 = vpop.xlane.xlu2 %157 }
 0x137   :  { %v285_v48 = vmul.f32 2.0, %v223_v47  ;;  %v270_v58 = vadd.f32 %v1262_v16, %v158_v52 }
 0x139   :  { %v301_v55 = vsub.f32 %v269_v46, %v285_v48 }
 0x13b   :  { %v1310_v56 = vsel %vm316_vm0, %v301_v55, 1e+30 }
 0x13c   :  { %167 = vadd.xlane.f32.xlu1 %v142_v51  ;;  %339 = vmin.xlane.f32.xlu0 %v1310_v56 }
 0x13e   :  { %v226_v59 = vpop.f32.mrf.mxu1  ;;  %v160_v3 = vpop.xlane.xlu2 %159 }
 0x13f   :  { %v286_v60 = vmul.f32 2.0, %v226_v59  ;;  %v271_v6 = vadd.f32 %v1262_v16, %v160_v3 }
 0x141   :  { %v302_v2 = vsub.f32 %v270_v58, %v286_v60 }
 0x143   :  { %v1322_v5 = vsel %vm316_vm0, %v302_v2, 1e+30 }
 0x144   :  { %169 = vadd.xlane.f32.xlu0 %v143_v63  ;;  %341 = vmin.xlane.f32.xlu2 %v1322_v5 }
 0x146   :  { %v229_v8 = vpop.f32.mrf.mxu1  ;;  %v162_v13 = vpop.xlane.xlu1 %161 }
 0x147   :  { %v287_v10 = vmul.f32 2.0, %v229_v8  ;;  %v272_v18 = vadd.f32 %v1262_v16, %v162_v13 }
 0x149   :  { %v303_v43 = vsub.f32 %v271_v6, %v287_v10 }
 0x14b   :  { %v1330_v15 = vsel %vm316_vm0, %v303_v43, 1e+30 }
 0x14c   :  { %343 = vmin.xlane.f32.xlu1 %v1330_v15  ;;  %171 = vadd.xlane.f32.xlu2 %v144_v12 }
 0x14e   :  { %v232_v19 = vpop.f32.mrf.mxu1 }
 0x14f   :  { %v288_v20 = vmul.f32 2.0, %v232_v19 }
 0x151   :  { %v304_v23 = vsub.f32 %v272_v18, %v288_v20 }
 0x153   :  { %v1338_v25 = vsel %vm316_vm0, %v304_v23, 1e+30 }
 0x154   :  { %345 = vmin.xlane.f32.xlu1 %v1338_v25  ;;  %173 = vadd.xlane.f32.xlu2 %v145_v21 }
 0x156   :  { %v235_v29 = vpop.f32.mrf.mxu1 }
 0x157   :  { %v289_v37 = vmul.f32 2.0, %v235_v29 }
 0x15c   :  { %175 = vadd.xlane.f32.xlu2 %v146_v26 }
 0x15e   :  { %v238_v30 = vpop.f32.mrf.mxu1 }
 0x15f   :  { %v290_v51 = vmul.f32 2.0, %v238_v30 }
 0x164   :  { %177 = vadd.xlane.f32.xlu2 %v147_v27 }
 0x166   :  { %v241_v38 = vpop.f32.mrf.mxu1 }
 0x16c   :  { %179 = vadd.xlane.f32.xlu2 %v148_v28 }
 0x16e   :  { %v244_v58 = vpop.f32.mrf.mxu1 }
 0x16f   :  { %v292_v20 = vmul.f32 2.0, %v244_v58 }
 0x176   :  { %v247_v13 = vpop.f32.mrf.mxu1 }
 0x197   :  { %v334_v32 = vpop.xlane.xlu0 %333 }
 0x198   :  { %vm365_vm1 = vcmp.le.f32.partialorder %v1274_v24, %v334_v32  ;;  %v250_v32 = vpop.f32.mrf.mxu1 }
 0x199   :  { %v1349_v33 = vsel %vm365_vm1, %v1264_v17, 128 }
 0x19a   :  { %v398_v35 = vshra.s32 %v1349_v33, 16 }
 0x19c   :  { %v1352_v36 = vcvt.s32.f32 %v398_v35 }
 0x19e   :  { %401 = vmin.xlane.f32.xlu0 %v1352_v36 }
 0x19f   :  { %v336_v40 = vpop.xlane.xlu2 %335  ;;  %v164_v41 = vpop.xlane.xlu0 %163 }
 0x1a0   :  { %vm366_vm2 = vcmp.le.f32.partialorder %v1286_v34, %v336_v40  ;;  %v273_v42 = vadd.f32 %v1262_v16, %v164_v41 }
 0x1a1   :  { %v1358_v46 = vsel %vm366_vm2, %v1264_v17, 128 }
 0x1a2   :  { %v305_v24 = vsub.f32 %v273_v42, %v289_v37  ;;  %v412_v47 = vshra.s32 %v1358_v46, 16 }
 0x1a4   :  { %v1363_v48 = vsel %vm316_vm0, %v305_v24, 1e+30  ;;  %v1365_v50 = vcvt.s32.f32 %v412_v47 }
 0x1a5   :  { %347 = vmin.xlane.f32.xlu1 %v1363_v48 }
 0x1a6   :  { %415 = vmin.xlane.f32.xlu0 %v1365_v50 }
 0x1a7   :  { %v338_v34 = vpop.xlane.xlu1 %337  ;;  %v166_v52 = vpop.xlane.xlu2 %165 }
 0x1a8   :  { %vm367_vm3 = vcmp.le.f32.partialorder %v1298_v44, %v338_v34  ;;  %v274_v55 = vadd.f32 %v1262_v16, %v166_v52  ;;  %v291_v44 = vmul.f32 2.0, %v241_v38 }
 0x1a9   :  { %v1372_v59 = vsel %vm367_vm3, %v1264_v17, 128 }
 0x1aa   :  { %v306_v60 = vsub.f32 %v274_v55, %v290_v51  ;;  %v426_v62 = vshra.s32 %v1372_v59, 16  ;;  %v294_v51 = vmul.f32 2.0, %v250_v32 }
 0x1ac   :  { %v1377_v63 = vsel %vm316_vm0, %v306_v60, 1e+30  ;;  %v1379_v2 = vcvt.s32.f32 %v426_v62 }
 0x1ad   :  { %349 = vmin.xlane.f32.xlu1 %v1377_v63 }
 0x1ae   :  { %429 = vmin.xlane.f32.xlu0 %v1379_v2 }
 0x1af   :  { %v168_v3 = vpop.xlane.xlu1 %167  ;;  %v340_v6 = vpop.xlane.xlu0 %339 }
 0x1b0   :  { %v275_v8 = vadd.f32 %v1262_v16, %v168_v3  ;;  %vm368_vm4 = vcmp.le.f32.partialorder %v1310_v56, %v340_v6 }
 0x1b1   :  { %v1386_v10 = vsel %vm368_vm4, %v1264_v17, 128 }
 0x1b2   :  { %v307_v12 = vsub.f32 %v275_v8, %v291_v44  ;;  %v440_v43 = vshra.s32 %v1386_v10, 16 }
 0x1b4   :  { %v1391_v18 = vsel %vm316_vm0, %v307_v12, 1e+30  ;;  %v1393_v19 = vcvt.s32.f32 %v440_v43 }
 0x1b5   :  { %351 = vmin.xlane.f32.xlu1 %v1391_v18 }
 0x1b6   :  { %443 = vmin.xlane.f32.xlu0 %v1393_v19 }
 0x1b7   :  { %v342_v21 = vpop.xlane.xlu2 %341  ;;  %v170_v56 = vpop.xlane.xlu0 %169 }
 0x1b8   :  { %vm369_vm5 = vcmp.le.f32.partialorder %v1322_v5, %v342_v21  ;;  %v276_v23 = vadd.f32 %v1262_v16, %v170_v56  ;;  %v293_v5 = vmul.f32 2.0, %v247_v13 }
 0x1b9   :  { %v1400_v26 = vsel %vm369_vm5, %v1264_v17, 128 }
 0x1ba   :  { %v308_v27 = vsub.f32 %v276_v23, %v292_v20  ;;  %v454_v28 = vshra.s32 %v1400_v26, 16 }
 0x1bc   :  { %v1405_v29 = vsel %vm316_vm0, %v308_v27, 1e+30  ;;  %v1407_v30 = vcvt.s32.f32 %v454_v28 }
 0x1bd   :  { %353 = vmin.xlane.f32.xlu1 %v1405_v29 }
 0x1be   :  { %457 = vmin.xlane.f32.xlu0 %v1407_v30 }
 0x1bf   :  { %v344_v35 = vpop.xlane.xlu1 %343  ;;  %v172_v37 = vpop.xlane.xlu2 %171 }
 0x1c0   :  { %vm370_vm6 = vcmp.le.f32.partialorder %v1330_v15, %v344_v35  ;;  %v277_v38 = vadd.f32 %v1262_v16, %v172_v37  ;;  %v253_v15 = vpop.f32.mrf.mxu1 }
 0x1c1   :  { %v1414_v40 = vsel %vm370_vm6, %v1264_v17, 128  ;;  %v295_v6 = vmul.f32 2.0, %v253_v15  ;;  %vm814_vm6 = vcmask 7168  }
 0x1c2   :  { %v468_v41 = vshra.s32 %v1414_v40, 16  ;;  %v309_v42 = vsub.f32 %v277_v38, %v293_v5 }
 0x1c4   :  { %v1417_v24 = vcvt.s32.f32 %v468_v41  ;;  %v1421_v47 = vsel %vm316_vm0, %v309_v42, 1e+30  ;;  %v397_v41 = vand.u32 65535, %v1349_v33 }
 0x1c6   :  { %471 = vmin.xlane.f32.xlu2 %v1417_v24  ;;  %355 = vmin.xlane.f32.xlu0 %v1421_v47 }
 0x1c7   :  { %v346_v34 = vpop.xlane.xlu1 %345  ;;  %v174_v52 = vpop.xlane.xlu2 %173 }
 0x1c8   :  { %vm371_vm7 = vcmp.le.f32.partialorder %v1338_v25, %v346_v34  ;;  %v278_v55 = vadd.f32 %v1262_v16, %v174_v52  ;;  %v256_v12 = vpop.f32.mrf.mxu1  ;;  %v411_v34 = vand.u32 65535, %v1358_v46 }
 0x1c9   :  { %v1428_v58 = vsel %vm371_vm7, %v1264_v17, 128  ;;  %v296_v20 = vmul.f32 2.0, %v256_v12 }
 0x1ca   :  { %v482_v60 = vshra.s32 %v1428_v58, 16  ;;  %v310_v62 = vsub.f32 %v278_v55, %v294_v51  ;;  %v399_v51 = vcvt.s32.f32 %v397_v41  ;;  %v413_v55 = vcvt.s32.f32 %v411_v34 }
 0x1cc   :  { %v1431_v44 = vcvt.s32.f32 %v482_v60  ;;  %v1435_v3 = vsel %vm316_vm0, %v310_v62, 1e+30 }
 0x1ce   :  { %485 = vmin.xlane.f32.xlu2 %v1431_v44  ;;  %357 = vmin.xlane.f32.xlu0 %v1435_v3 }
 0x1cf   :  { %v176_v25 = vpop.xlane.xlu2 %175 }
 0x1d0   :  { %v279_v8 = vadd.f32 %v1262_v16, %v176_v25  ;;  %v259_v27 = vpop.f32.mrf.mxu1 }
 0x1d1   :  { %v297_v32 = vmul.f32 2.0, %v259_v27 }
 0x1d2   :  { %v311_v43 = vsub.f32 %v279_v8, %v295_v6 }
 0x1d4   :  { %v1442_v13 = vsel %vm316_vm0, %v311_v43, 1e+30 }
 0x1d6   :  { %359 = vmin.xlane.f32.xlu0 %v1442_v13 }
 0x1d7   :  { %v178_v21 = vpop.xlane.xlu2 %177 }
 0x1d8   :  { %v280_v56 = vadd.f32 %v1262_v16, %v178_v21 }
 0x1da   :  { %v312_v23 = vsub.f32 %v280_v56, %v296_v20 }
 0x1dc   :  { %v1448_v28 = vsel %vm316_vm0, %v312_v23, 1e+30 }
 0x1de   :  { %361 = vmin.xlane.f32.xlu0 %v1448_v28 }
 0x1df   :  { %v180_v5 = vpop.xlane.xlu2 %179 }
 0x1e0   :  { %v281_v35 = vadd.f32 %v1262_v16, %v180_v5 }
 0x1e2   :  { %v313_v37 = vsub.f32 %v281_v35, %v297_v32 }
 0x1e4   :  { %v1454_v38 = vsel %vm316_vm0, %v313_v37, 1e+30 }
 0x1e6   :  { %363 = vmin.xlane.f32.xlu0 %v1454_v38 }
 0x211   :  { %v1458_v42 = vpop.xlane.xlu0 %401 }
 0x212   :  { %vm403_vm8 = vcmp.eq.f32.partialorder %v1352_v36, %v1458_v42  ;;  %v425_v36 = vand.u32 65535, %v1372_v59  ;;  %v439_v59 = vand.u32 65535, %v1386_v10  ;;  %v453_v10 = vand.u32 65535, %v1400_v26 }
 0x213   :  { %v404_v15 = vsel %vm403_vm8, %v399_v51, inf  ;;  %v467_v26 = vand.u32 65535, %v1414_v40 }
 0x214   :  { %405 = vmin.xlane.f32.xlu1 %v404_v15  ;;  %v427_v25 = vcvt.s32.f32 %v425_v36  ;;  %v441_v21 = vcvt.s32.f32 %v439_v59  ;;  %v455_v5 = vcvt.s32.f32 %v453_v10 }
 0x215   :  { %v469_v15 = vcvt.s32.f32 %v467_v26  ;;  %v672_v26 = vld [vmem:[%s1971_s3 + $0x18] sm:$0xff] }
 0x218   :  { %v348_v16 = vpop.xlane.xlu1 %347 }
 0x219   :  { %vm372_vm9 = vcmp.le.f32.partialorder %v1363_v48, %v348_v16  ;;  %v1464_v52 = vpop.xlane.xlu0 %415  ;;  %v684_v16 = vld [vmem:[%s1971_s3 + $0x78] sm:$0xff] }
 0x21a   :  { %v1467_v60 = vsel %vm372_vm9, %v1264_v17, 128  ;;  %vm417_vm10 = vcmp.eq.f32.partialorder %v1365_v50, %v1464_v52  ;;  %685 = vmatpush.msra.mxu2 %v684_v16 }
 0x21b   :  { %v418_v33 = vsel %vm417_vm10, %v413_v55, inf  ;;  %v496_v62 = vshra.s32 %v1467_v60, 16  ;;  %v683_v55 = vld [vmem:[%s1971_s3 + $0x70] sm:$0xff] }
 0x21c   :  { %419 = vmin.xlane.f32.xlu1 %v418_v33  ;;  %686 = vmatpush.msra.mxu2 %v683_v55 }
 0x21d   :  { %v1473_v6 = vcvt.s32.f32 %v496_v62  ;;  %v681_v62 = vld [vmem:[%s1971_s3 + $0x60] sm:$0xff] }
 0x21f   :  { %499 = vmin.xlane.f32.xlu2 %v1473_v6 }
 0x220   :  { %v350_v46 = vpop.xlane.xlu1 %349 }
 0x221   :  { %vm373_vm11 = vcmp.le.f32.partialorder %v1377_v63, %v350_v46  ;;  %v1477_v48 = vpop.xlane.xlu0 %429 }
 0x222   :  { %v1480_v8 = vsel %vm373_vm11, %v1264_v17, 128  ;;  %vm431_vm12 = vcmp.eq.f32.partialorder %v1379_v2, %v1477_v48 }
 0x223   :  { %v432_v50 = vsel %vm431_vm12, %v427_v25, inf  ;;  %v510_v12 = vshra.s32 %v1480_v8, 16 }
 0x224   :  { %433 = vmin.xlane.f32.xlu1 %v432_v50 }
 0x225   :  { %v1486_v43 = vcvt.s32.f32 %v510_v12 }
 0x227   :  { %513 = vmin.xlane.f32.xlu2 %v1486_v43 }
 0x228   :  { %v352_v63 = vpop.xlane.xlu1 %351 }
 0x229   :  { %vm374_vm13 = vcmp.le.f32.partialorder %v1391_v18, %v352_v63  ;;  %v1490_v20 = vpop.xlane.xlu0 %443  ;;  %v679_v63 = vld [vmem:[%s1971_s3 + $0x50] sm:$0xff] }
 0x22a   :  { %v1493_v56 = vsel %vm374_vm13, %v1264_v17, 128  ;;  %vm445_vm14 = vcmp.eq.f32.partialorder %v1393_v19, %v1490_v20 }
 0x22b   :  { %v446_v2 = vsel %vm445_vm14, %v441_v21, inf  ;;  %v524_v23 = vshra.s32 %v1493_v56, 16  ;;  %v677_v21 = vld [vmem:[%s1971_s3 + $0x40] sm:$0xff] }
 0x22c   :  { %447 = vmin.xlane.f32.xlu1 %v446_v2 }
 0x22d   :  { %v1499_v27 = vcvt.s32.f32 %v524_v23  ;;  %v676_v23 = vld [vmem:[%s1971_s3 + $0x38] sm:$0xff] }
 0x22f   :  { %527 = vmin.xlane.f32.xlu2 %v1499_v27 }
 0x230   :  { %v354_v18 = vpop.xlane.xlu1 %353 }
 0x231   :  { %vm375_vm15 = vcmp.le.f32.partialorder %v1405_v29, %v354_v18  ;;  %v1503_v32 = vpop.xlane.xlu0 %457 }
 0x232   :  { %v1506_v35 = vsel %vm375_vm15, %v1264_v17, 128  ;;  %vm459_vm0 = vcmp.eq.f32.partialorder %v1407_v30, %v1503_v32 }
 0x233   :  { %v460_v19 = vsel %vm459_vm0, %v455_v5, inf  ;;  %v538_v37 = vshra.s32 %v1506_v35, 16  ;;  %v675_v5 = vld [vmem:[%s1971_s3 + $0x30] sm:$0xff] }
 0x234   :  { %461 = vmin.xlane.f32.xlu1 %v460_v19 }
 0x235   :  { %v1512_v41 = vcvt.s32.f32 %v538_v37  ;;  %v673_v37 = vld [vmem:[%s1971_s3 + $0x20] sm:$0xff] }
 0x237   :  { %541 = vmin.xlane.f32.xlu2 %v1512_v41 }
 0x239   :  { %v1515_v29 = vpop.xlane.xlu2 %471  ;;  %v356_v51 = vpop.xlane.xlu0 %355 }
 0x23a   :  { %vm376_vm1 = vcmp.le.f32.partialorder %v1421_v47, %v356_v51  ;;  %vm473_vm2 = vcmp.eq.f32.partialorder %v1417_v24, %v1515_v29  ;;  %v481_v47 = vand.u32 65535, %v1428_v58  ;;  %v682_v24 = vld [vmem:[%s1971_s3 + $0x68] sm:$0xff]  ;;  %v680_v58 = vld [vmem:[%s1971_s3 + $0x58] sm:$0xff]  ;;  %v671_v51 = vld [vmem:[%s1971_s3 + $0x10] sm:$0xff] }
 0x23b   :  { %v1521_v30 = vsel %vm376_vm1, %v1264_v17, 128  ;;  %v474_v34 = vsel %vm473_vm2, %v469_v15, inf  ;;  %687 = vmatpush.msra.mxu2 %v682_v24  ;;  %v670_v15 = vld [vmem:[%s1971_s3 + $0x8] sm:$0xff] }
 0x23c   :  { %475 = vmin.xlane.f32.xlu0 %v474_v34  ;;  %v552_v40 = vshra.s32 %v1521_v30, 16  ;;  %v483_v25 = vcvt.s32.f32 %v481_v47  ;;  %v669_v34 = vld [vmem:[%s1971_s3] sm:$0xff] }
 0x23d   :  { %688 = vmatpush.msra.mxu2 %v681_v62  ;;  %v422_v62 = vcvt.f32.s32 %v1464_v52 }
 0x23e   :  { %v1531_v33 = vcvt.s32.f32 %v552_v40  ;;  %v408_v40 = vcvt.f32.s32 %v1458_v42  ;;  %v495_v42 = vand.u32 65535, %v1467_v60 }
 0x23f   :  { %689 = vmatpush.msra.mxu2 %v680_v58 }
 0x240   :  { %555 = vmin.xlane.f32.xlu1 %v1531_v33  ;;  %v409_v55 = vshll.u32 %v408_v40, 16 }
 0x241   :  { %v1540_v36 = vpop.xlane.xlu2 %485  ;;  %v358_v46 = vpop.xlane.xlu0 %357  ;;  %690 = vmatpush.msra.mxu2 %v679_v63 }
 0x242   :  { %vm377_vm3 = vcmp.le.f32.partialorder %v1435_v3, %v358_v46  ;;  %vm487_vm4 = vcmp.eq.f32.partialorder %v1431_v44, %v1540_v36  ;;  %v678_v44 = vld [vmem:[%s1971_s3 + $0x48] sm:$0xff] }
 0x243   :  { %v1549_v50 = vsel %vm377_vm3, %v1264_v17, 128  ;;  %v488_v12 = vsel %vm487_vm4, %v483_v25, inf  ;;  %691 = vmatpush.msra.mxu2 %v678_v44  ;;  %v996_v25 = vmov 1.0   ;;  %v497_v44 = vcvt.s32.f32 %v495_v42 }
 0x244   :  { %489 = vmin.xlane.f32.xlu2 %v488_v12  ;;  %v566_v59 = vshra.s32 %v1549_v50, 16  ;;  %v423_v12 = vshll.u32 %v422_v62, 16  ;;  %v464_v62 = vcvt.f32.s32 %v1503_v32  ;;  %v537_v42 = vand.u32 65535, %v1506_v35  ;;  %v861_v32 = vld [vmem:[%s1973_s6 + $0x70] sm:$0xff] }
 0x245   :  { %692 = vmatpush.msra.mxu2 %v677_v21  ;;  %v436_v21 = vcvt.f32.s32 %v1477_v48 }
 0x246   :  { %v1555_v3 = vcvt.s32.f32 %v566_v59 }
 0x247   :  { %693 = vmatpush.msra.mxu2 %v676_v23 }
 0x248   :  { %569 = vmin.xlane.f32.xlu0 %v1555_v3 }
 0x249   :  { %v360_v2 = vpop.xlane.xlu0 %359  ;;  %694 = vmatpush.msra.mxu2 %v675_v5 }
 0x24a   :  { %vm378_vm5 = vcmp.le.f32.partialorder %v1442_v13, %v360_v2  ;;  %v674_v13 = vld [vmem:[%s1971_s3 + $0x28] sm:$0xff] }
 0x24b   :  { %v1569_v10 = vsel %vm378_vm5, %v1264_v17, 128  ;;  %695 = vmatpush.msra.mxu2 %v674_v13 }
 0x24c   :  { %v580_v18 = vshra.s32 %v1569_v10, 16 }
 0x24d   :  { %696 = vmatpush.msra.mxu2 %v673_v37 }
 0x24e   :  { %v1575_v19 = vcvt.s32.f32 %v580_v18  ;;  %v437_v18 = vshll.u32 %v436_v21, 16  ;;  %v539_v21 = vcvt.s32.f32 %v537_v42 }
 0x24f   :  { %697 = vmatpush.msra.mxu2 %v672_v26 }
 0x250   :  { %583 = vmin.xlane.f32.xlu2 %v1575_v19 }
 0x251   :  { %698 = vmatpush.msra.mxu2 %v671_v51  ;;  %v362_v46 = vpop.xlane.xlu0 %361  ;;  %v450_v51 = vcvt.f32.s32 %v1490_v20 }
 0x252   :  { %vm379_vm8 = vcmp.le.f32.partialorder %v1448_v28, %v362_v46  ;;  %v509_v28 = vand.u32 65535, %v1480_v8 }
 0x253   :  { %699 = vmatpush.msra.mxu2 %v670_v15  ;;  %v1617_v2 = vsel %vm379_vm8, %v1264_v17, 128 }
 0x254   :  { %v594_v5 = vshra.s32 %v1617_v2, 16  ;;  %v511_v26 = vcvt.s32.f32 %v509_v28  ;;  %v478_v28 = vcvt.f32.s32 %v1515_v29  ;;  %v857_v29 = vld [vmem:[%s1973_s6 + $0x50] sm:$0xff] }
 0x255   :  { %700 = vmatpush.msra.mxu2 %v669_v34  ;;  %v451_v34 = vshll.u32 %v450_v51, 16 }
 0x256   :  { %v1633_v15 = vcvt.s32.f32 %v594_v5 }
 0x259   :  { %v364_v23 = vpop.xlane.xlu0 %363 }
 0x25a   :  { %vm380_vm11 = vcmp.le.f32.partialorder %v1454_v38, %v364_v23 }
 0x25b   :  { %v1636_v38 = vsel %vm380_vm11, %v1264_v17, 128 }
 0x287   :  { %v406_v16 = vpop.xlane.xlu1 %405 }
 0x288   :  { %v407_v47 = vcvt.f32.s32 %v406_v16  ;;  %v608_v16 = vshra.s32 %v1636_v38, 16 }
 0x28a   :  { %v410_v24 = vadd.s32 %v409_v55, %v407_v47  ;;  %v1652_v46 = vcvt.s32.f32 %v608_v16  ;;  %v853_v16 = vld [vmem:[%s1973_s6 + $0x30] sm:$0xff] }
 0x28c   :  { %831 = vst.msk [vmem:[%s1972_s9] sm:$0xff] %vm814_vm6, %v410_v24  ;;  %vm621_vm7 = vcmp.eq.s32.totalorder %v1264_v17, %v410_v24 }
 0x28d   :  { %976 = vmatmul.msk.f32.vlgmr.msra.gmra.mxu2 %vm621_vm7, %v996_v25 }
 0x28f   :  { %v420_v58 = vpop.xlane.xlu1 %419 }
 0x290   :  { %v421_v59 = vcvt.f32.s32 %v420_v58 }
 0x292   :  { %v424_v63 = vadd.s32 %v423_v12, %v421_v59  ;;  %v1606_v52 = vpop.xlane.xlu2 %499  ;;  %v465_v12 = vshll.u32 %v464_v62, 16 }
 0x293   :  { %vm501_vm9 = vcmp.eq.f32.partialorder %v1473_v6, %v1606_v52 }
 0x294   :  { %832 = vst.msk [vmem:[%s1972_s9 + $0x8] sm:$0xff] %vm814_vm6, %v424_v63  ;;  %vm622_vm10 = vcmp.eq.s32.totalorder %v1264_v17, %v424_v63  ;;  %v502_v60 = vsel %vm501_vm9, %v497_v44, inf  ;;  %v860_v63 = vld [vmem:[%s1973_s6 + $0x68] sm:$0xff] }
 0x295   :  { %977 = vmatmul.msk.f32.gmra.mxu2 %vm622_vm10, %v996_v25  ;;  %503 = vmin.xlane.f32.xlu1 %v502_v60  ;;  %v859_v60 = vld [vmem:[%s1973_s6 + $0x60] sm:$0xff] }
 0x297   :  { %v434_v6 = vpop.xlane.xlu1 %433 }
 0x298   :  { %v435_v48 = vcvt.f32.s32 %v434_v6  ;;  %v551_v6 = vand.u32 65535, %v1521_v30  ;;  %v855_v30 = vld [vmem:[%s1973_s6 + $0x40] sm:$0xff] }
 0x29a   :  { %v438_v13 = vadd.s32 %v437_v18, %v435_v48  ;;  %v1623_v37 = vpop.xlane.xlu2 %513  ;;  %v479_v48 = vshll.u32 %v478_v28, 16 }
 0x29b   :  { %vm515_vm12 = vcmp.eq.f32.partialorder %v1486_v43, %v1623_v37  ;;  %v523_v43 = vand.u32 65535, %v1493_v56 }
 0x29c   :  { %833 = vst.msk [vmem:[%s1972_s9 + $0x10] sm:$0xff] %vm814_vm6, %v438_v13  ;;  %vm623_vm13 = vcmp.eq.s32.totalorder %v1264_v17, %v438_v13  ;;  %v516_v8 = vsel %vm515_vm12, %v511_v26, inf  ;;  %v856_v13 = vld [vmem:[%s1973_s6 + $0x48] sm:$0xff] }
 0x29d   :  { %978 = vmatmul.msk.f32.gmra.mxu2 %vm623_vm13, %v996_v25  ;;  %517 = vmin.xlane.f32.xlu0 %v516_v8  ;;  %v525_v24 = vcvt.s32.f32 %v523_v43  ;;  %v553_v8 = vcvt.s32.f32 %v551_v6  ;;  %v492_v43 = vcvt.f32.s32 %v1540_v36  ;;  %v565_v36 = vand.u32 65535, %v1549_v50  ;;  %v851_v50 = vld [vmem:[%s1973_s6 + $0x20] sm:$0xff] }
 0x29e   :  { %597 = vmin.xlane.f32.xlu1 %v1633_v15  ;;  %v520_v6 = vcvt.f32.s32 %v1623_v37 }
 0x29f   :  { %v448_v20 = vpop.xlane.xlu1 %447  ;;  %v567_v42 = vcvt.s32.f32 %v565_v36 }
 0x2a0   :  { %v449_v40 = vcvt.f32.s32 %v448_v20 }
 0x2a2   :  { %v452_v55 = vadd.s32 %v451_v34, %v449_v40  ;;  %v1642_v47 = vpop.xlane.xlu2 %527  ;;  %v854_v34 = vld [vmem:[%s1973_s6 + $0x38] sm:$0xff] }
 0x2a3   :  { %vm529_vm14 = vcmp.eq.f32.partialorder %v1499_v27, %v1642_v47  ;;  %v862_v27 = vld [vmem:[%s1973_s6 + $0x78] sm:$0xff] }
 0x2a4   :  { %834 = vst.msk [vmem:[%s1972_s9 + $0x18] sm:$0xff] %vm814_vm6, %v452_v55  ;;  %vm624_vm15 = vcmp.eq.s32.totalorder %v1264_v17, %v452_v55  ;;  %v530_v56 = vsel %vm529_vm14, %v525_v24, inf  ;;  %867 = vmatpush.msra.mxu3 %v862_v27  ;;  %v493_v55 = vshll.u32 %v492_v43, 16  ;;  %v534_v43 = vcvt.f32.s32 %v1642_v47 }
 0x2a5   :  { %979 = vmatmul.msk.f32.gmra.mxu2 %vm624_vm15, %v996_v25  ;;  %531 = vmin.xlane.f32.xlu2 %v530_v56 }
 0x2a6   :  { %611 = vmin.xlane.f32.xlu0 %v1652_v46  ;;  %868 = vmatpush.msra.mxu3 %v861_v32  ;;  %v579_v32 = vand.u32 65535, %v1569_v10  ;;  %v848_v10 = vld [vmem:[%s1973_s6 + $0x8] sm:$0xff] }
 0x2a7   :  { %v462_v58 = vpop.xlane.xlu1 %461 }
 0x2a8   :  { %v463_v59 = vcvt.f32.s32 %v462_v58  ;;  %869 = vmatpush.msra.mxu3 %v860_v63  ;;  %v849_v63 = vld [vmem:[%s1973_s6 + $0x10] sm:$0xff] }
 0x2aa   :  { %v466_v35 = vadd.s32 %v465_v12, %v463_v59  ;;  %v1666_v44 = vpop.xlane.xlu2 %541  ;;  %870 = vmatpush.msra.mxu3 %v859_v60  ;;  %v581_v12 = vcvt.s32.f32 %v579_v32 }
 0x2ab   :  { %vm543_vm0 = vcmp.eq.f32.partialorder %v1512_v41, %v1666_v44  ;;  %v858_v41 = vld [vmem:[%s1973_s6 + $0x58] sm:$0xff] }
 0x2ac   :  { %835 = vst.msk [vmem:[%s1972_s9 + $0x20] sm:$0xff] %vm814_vm6, %v466_v35  ;;  %vm625_vm1 = vcmp.eq.s32.totalorder %v1264_v17, %v466_v35  ;;  %v544_v23 = vsel %vm543_vm0, %v539_v21, inf  ;;  %871 = vmatpush.msra.mxu3 %v858_v41  ;;  %v506_v35 = vcvt.f32.s32 %v1606_v52  ;;  %v593_v41 = vand.u32 65535, %v1617_v2 }
 0x2ad   :  { %980 = vmatmul.msk.f32.gmra.mxu2 %vm625_vm1, %v996_v25  ;;  %545 = vmin.xlane.f32.xlu1 %v544_v23  ;;  %v521_v52 = vshll.u32 %v520_v6, 16 }
 0x2ae   :  { %872 = vmatpush.msra.mxu3 %v857_v29  ;;  %v507_v60 = vshll.u32 %v506_v35, 16  ;;  %v595_v2 = vcvt.s32.f32 %v593_v41 }
 0x2af   :  { %v476_v18 = vpop.xlane.xlu0 %475 }
 0x2b0   :  { %v477_v5 = vcvt.f32.s32 %v476_v18  ;;  %873 = vmatpush.msra.mxu3 %v856_v13 }
 0x2b2   :  { %v480_v26 = vadd.s32 %v479_v48, %v477_v5  ;;  %874 = vmatpush.msra.mxu3 %v855_v30  ;;  %v607_v30 = vand.u32 65535, %v1636_v38 }
 0x2b3   :  { %v1690_v51 = vpop.xlane.xlu1 %555 }
 0x2b4   :  { %836 = vst.msk [vmem:[%s1972_s9 + $0x28] sm:$0xff] %vm814_vm6, %v480_v26  ;;  %vm626_vm2 = vcmp.eq.s32.totalorder %v1264_v17, %v480_v26  ;;  %vm557_vm3 = vcmp.eq.f32.partialorder %v1531_v33, %v1690_v51  ;;  %875 = vmatpush.msra.mxu3 %v854_v34  ;;  %v852_v33 = vld [vmem:[%s1973_s6 + $0x28] sm:$0xff]  ;;  %v609_v38 = vcvt.s32.f32 %v607_v30 }
 0x2b5   :  { %981 = vmatmul.msk.f32.gmra.mxu2 %vm626_vm2, %v996_v25  ;;  %v558_v20 = vsel %vm557_vm3, %v553_v8, inf }
 0x2b6   :  { %559 = vmin.xlane.f32.xlu2 %v558_v20  ;;  %876 = vmatpush.msra.mxu3 %v853_v16  ;;  %v535_v20 = vshll.u32 %v534_v43, 16 }
 0x2b7   :  { %v490_v40 = vpop.xlane.xlu2 %489 }
 0x2b8   :  { %v491_v24 = vcvt.f32.s32 %v490_v40  ;;  %877 = vmatpush.msra.mxu3 %v852_v33 }
 0x2ba   :  { %v494_v62 = vadd.s32 %v493_v55, %v491_v24  ;;  %878 = vmatpush.msra.mxu3 %v851_v50  ;;  %v548_v24 = vcvt.f32.s32 %v1666_v44  ;;  %v562_v44 = vcvt.f32.s32 %v1690_v51 }
 0x2bb   :  { %v1714_v56 = vpop.xlane.xlu0 %569 }
 0x2bc   :  { %837 = vst.msk [vmem:[%s1972_s9 + $0x30] sm:$0xff] %vm814_vm6, %v494_v62  ;;  %vm627_vm4 = vcmp.eq.s32.totalorder %v1264_v17, %v494_v62  ;;  %vm571_vm5 = vcmp.eq.f32.partialorder %v1555_v3, %v1714_v56  ;;  %v850_v3 = vld [vmem:[%s1973_s6 + $0x18] sm:$0xff]  ;;  %v549_v62 = vshll.u32 %v548_v24, 16 }
 0x2bd   :  { %982 = vmatmul.msk.f32.gmra.mxu2 %vm627_vm4, %v996_v25  ;;  %v572_v27 = vsel %vm571_vm5, %v567_v42, inf  ;;  %879 = vmatpush.msra.mxu3 %v850_v3 }
 0x2be   :  { %573 = vmin.xlane.f32.xlu0 %v572_v27 }
 0x2bf   :  { %880 = vmatpush.msra.mxu3 %v849_v63 }
 0x2c1   :  { %881 = vmatpush.msra.mxu3 %v848_v10 }
 0x2c3   :  { %v1728_v58 = vpop.xlane.xlu2 %583 }
 0x2c4   :  { %vm585_vm7 = vcmp.eq.f32.partialorder %v1575_v19, %v1728_v58  ;;  %v847_v19 = vld [vmem:[%s1973_s6] sm:$0xff] }
 0x2c5   :  { %v586_v59 = vsel %vm585_vm7, %v581_v12, inf  ;;  %882 = vmatpush.msra.mxu3 %v847_v19  ;;  %v576_v19 = vcvt.f32.s32 %v1714_v56  ;;  %v590_v56 = vcvt.f32.s32 %v1728_v58 }
 0x2c6   :  { %587 = vmin.xlane.f32.xlu1 %v586_v59  ;;  %v563_v59 = vshll.u32 %v562_v44, 16 }
 0x308   :  { %v504_v21 = vpop.xlane.xlu1 %503 }
 0x309   :  { %v505_v28 = vcvt.f32.s32 %v504_v21  ;;  %v577_v21 = vshll.u32 %v576_v19, 16 }
 0x30b   :  { %v508_v23 = vadd.s32 %v507_v60, %v505_v28 }
 0x30d   :  { %838 = vst.msk [vmem:[%s1972_s9 + $0x38] sm:$0xff] %vm814_vm6, %v508_v23  ;;  %vm628_vm8 = vcmp.eq.s32.totalorder %v1264_v17, %v508_v23 }
 0x30e   :  { %983 = vmatmul.msk.f32.gmra.mxu2 %vm628_vm8, %v996_v25 }
 0x310   :  { %v702_v18 = vpop.f32.mrf.mxu2  ;;  %v518_v29 = vpop.xlane.xlu0 %517 }
 0x311   :  { %v750_v48 = vsub.f32 %v702_v18, %v1187_v45  ;;  %v1754_v5 = vpop.xlane.xlu1 %597  ;;  %v519_v13 = vcvt.f32.s32 %v518_v29  ;;  %883 = vmatmul.f32.vlgmr.msra.gmra.mxu3 %v702_v18  ;;  %v591_v18 = vshll.u32 %v590_v56, 16 }
 0x312   :  { %vm599_vm9 = vcmp.eq.f32.partialorder %v1633_v15, %v1754_v5 }
 0x313   :  { %v522_v37 = vadd.s32 %v521_v52, %v519_v13  ;;  %v600_v26 = vsel %vm599_vm9, %v595_v2, inf  ;;  %v766_v8 = vmul.f32 %v750_v48, %v750_v48  ;;  %v604_v2 = vcvt.f32.s32 %v1754_v5 }
 0x314   :  { %601 = vmin.xlane.f32.xlu2 %v600_v26 }
 0x315   :  { %839 = vst.msk [vmem:[%s1972_s9 + $0x40] sm:$0xff] %vm814_vm6, %v522_v37  ;;  %782 = vadd.xlane.f32.xlu1 %v766_v8  ;;  %vm629_vm10 = vcmp.eq.s32.totalorder %v1264_v17, %v522_v37  ;;  %v605_v26 = vshll.u32 %v604_v2, 16 }
 0x316   :  { %984 = vmatmul.msk.f32.gmra.mxu2 %vm629_vm10, %v996_v25 }
 0x318   :  { %v705_v45 = vpop.f32.mrf.mxu2  ;;  %v532_v15 = vpop.xlane.xlu2 %531 }
 0x319   :  { %v751_v34 = vsub.f32 %v705_v45, %v1196_v49  ;;  %v533_v36 = vcvt.f32.s32 %v532_v15  ;;  %v1767_v40 = vpop.xlane.xlu0 %611  ;;  %886 = vmatmul.f32.gmra.mxu3 %v705_v45 }
 0x31a   :  { %vm613_vm11 = vcmp.eq.f32.partialorder %v1652_v46, %v1767_v40  ;;  %v618_v45 = vcvt.f32.s32 %v1767_v40 }
 0x31b   :  { %v536_v47 = vadd.s32 %v535_v20, %v533_v36  ;;  %v614_v16 = vsel %vm613_vm11, %v609_v38, inf  ;;  %v767_v55 = vmul.f32 %v751_v34, %v751_v34  ;;  %v1829_v36 = vld [vmem:[%s1974_s7] ss:$0 sm:$0xff] }
 0x31c   :  { %615 = vmin.xlane.f32.xlu0 %v614_v16  ;;  %v619_v5 = vshll.u32 %v618_v45, 16 }
 0x31d   :  { %840 = vst.msk [vmem:[%s1972_s9 + $0x48] sm:$0xff] %vm814_vm6, %v536_v47  ;;  %784 = vadd.xlane.f32.xlu2 %v767_v55  ;;  %vm630_vm12 = vcmp.eq.s32.totalorder %v1264_v17, %v536_v47 }
 0x31e   :  { %985 = vmatmul.msk.f32.gmra.mxu2 %vm630_vm12, %v996_v25 }
 0x320   :  { %v708_v49 = vpop.f32.mrf.mxu2  ;;  %v546_v33 = vpop.xlane.xlu1 %545 }
 0x321   :  { %v752_v46 = vsub.f32 %v708_v49, %v1205_v53  ;;  %v547_v42 = vcvt.f32.s32 %v546_v33  ;;  %889 = vmatmul.f32.gmra.mxu3 %v708_v49 }
 0x323   :  { %v550_v50 = vadd.s32 %v549_v62, %v547_v42  ;;  %v768_v27 = vmul.f32 %v752_v46, %v752_v46 }
 0x325   :  { %841 = vst.msk [vmem:[%s1972_s9 + $0x50] sm:$0xff] %vm814_vm6, %v550_v50  ;;  %786 = vadd.xlane.f32.xlu0 %v768_v27  ;;  %vm631_vm13 = vcmp.eq.s32.totalorder %v1264_v17, %v550_v50 }
 0x326   :  { %986 = vmatmul.msk.f32.gmra.mxu2 %vm631_vm13, %v996_v25 }
 0x328   :  { %v711_v32 = vpop.f32.mrf.mxu2 }
 0x329   :  { %v753_v12 = vsub.f32 %v711_v32, %v1214_v57  ;;  %892 = vmatmul.f32.gmra.mxu3 %v711_v32  ;;  %v560_v53 = vpop.xlane.xlu2 %559 }
 0x32a   :  { %v561_v3 = vcvt.f32.s32 %v560_v53 }
 0x32b   :  { %v769_v63 = vmul.f32 %v753_v12, %v753_v12 }
 0x32c   :  { %v564_v10 = vadd.s32 %v563_v59, %v561_v3 }
 0x32d   :  { %788 = vadd.xlane.f32.xlu1 %v769_v63 }
 0x32e   :  { %842 = vst.msk [vmem:[%s1972_s9 + $0x58] sm:$0xff] %vm814_vm6, %v564_v10  ;;  %vm632_vm14 = vcmp.eq.s32.totalorder %v1264_v17, %v564_v10 }
 0x32f   :  { %987 = vmatmul.msk.f32.gmra.mxu2 %vm632_vm14, %v996_v25 }
 0x330   :  { %v714_v51 = vpop.f32.mrf.mxu2 }
 0x331   :  { %v754_v57 = vsub.f32 %v714_v51, %v1223_v61  ;;  %895 = vmatmul.f32.gmra.mxu3 %v714_v51  ;;  %v574_v35 = vpop.xlane.xlu0 %573 }
 0x332   :  { %v575_v60 = vcvt.f32.s32 %v574_v35 }
 0x333   :  { %v770_v28 = vmul.f32 %v754_v57, %v754_v57 }
 0x334   :  { %v578_v23 = vadd.s32 %v577_v21, %v575_v60 }
 0x335   :  { %790 = vadd.xlane.f32.xlu2 %v770_v28 }
 0x336   :  { %843 = vst.msk [vmem:[%s1972_s9 + $0x60] sm:$0xff] %vm814_vm6, %v578_v23  ;;  %vm633_vm15 = vcmp.eq.s32.totalorder %v1264_v17, %v578_v23 }
 0x337   :  { %988 = vmatmul.msk.f32.gmra.mxu2 %vm633_vm15, %v996_v25 }
 0x338   :  { %v717_v41 = vpop.f32.mrf.mxu2 }
 0x339   :  { %v755_v61 = vsub.f32 %v717_v41, %v1232_v1  ;;  %v588_v6 = vpop.xlane.xlu1 %587  ;;  %898 = vmatmul.f32.gmra.mxu3 %v717_v41 }
 0x33a   :  { %v589_v29 = vcvt.f32.s32 %v588_v6 }
 0x33b   :  { %v771_v52 = vmul.f32 %v755_v61, %v755_v61 }
 0x33c   :  { %v592_v48 = vadd.s32 %v591_v18, %v589_v29 }
 0x33d   :  { %792 = vadd.xlane.f32.xlu0 %v771_v52 }
 0x33e   :  { %844 = vst.msk [vmem:[%s1972_s9 + $0x68] sm:$0xff] %vm814_vm6, %v592_v48  ;;  %vm634_vm0 = vcmp.eq.s32.totalorder %v1264_v17, %v592_v48 }
 0x33f   :  { %989 = vmatmul.msk.f32.gmra.mxu2 %vm634_vm0, %v996_v25 }
 0x340   :  { %v720_v58 = vpop.f32.mrf.mxu2 }
 0x341   :  { %v756_v13 = vsub.f32 %v720_v58, %v1238_v4  ;;  %901 = vmatmul.f32.gmra.mxu3 %v720_v58 }
 0x343   :  { %v772_v1 = vmul.f32 %v756_v13, %v756_v13 }
 0x345   :  { %794 = vadd.xlane.f32.xlu1 %v772_v1 }
 0x387   :  { %v602_v37 = vpop.xlane.xlu2 %601 }
 0x388   :  { %v603_v8 = vcvt.f32.s32 %v602_v37  ;;  %v783_v30 = vpop.xlane.xlu1 %782 }
 0x389   :  { %815 = vst.msk [vmem:[%s1975_s10] sm:$0xff] %vm814_vm6, %v783_v30 }
 0x38a   :  { %v606_v43 = vadd.s32 %v605_v26, %v603_v8 }
 0x38c   :  { %845 = vst.msk [vmem:[%s1972_s9 + $0x70] sm:$0xff] %vm814_vm6, %v606_v43  ;;  %vm635_vm1 = vcmp.eq.s32.totalorder %v1264_v17, %v606_v43 }
 0x38d   :  { %990 = vmatmul.msk.f32.gmra.mxu2 %vm635_vm1, %v996_v25 }
 0x38f   :  { %v616_v4 = vpop.xlane.xlu0 %615 }
 0x390   :  { %v617_v15 = vcvt.f32.s32 %v616_v4  ;;  %v785_v20 = vpop.xlane.xlu2 %784 }
 0x391   :  { %816 = vst.msk [vmem:[%s1975_s10 + $0x8] sm:$0xff] %vm814_vm6, %v785_v20  ;;  %v723_v34 = vpop.f32.mrf.mxu2 }
 0x392   :  { %v620_v40 = vadd.s32 %v619_v5, %v617_v15  ;;  %v757_v38 = vsub.f32 %v723_v34, %v1244_v7  ;;  %904 = vmatmul.f32.gmra.mxu3 %v723_v34 }
 0x394   :  { %846 = vst.msk [vmem:[%s1972_s9 + $0x78] sm:$0xff] %vm814_vm6, %v620_v40  ;;  %vm636_vm2 = vcmp.eq.s32.totalorder %v1264_v17, %v620_v40  ;;  %v884_v47 = vpop.f32.mrf.mxu3  ;;  %v773_v16 = vmul.f32 %v757_v38, %v757_v38 }
 0x395   :  { %991 = vmatmul.msk.f32.gmra.mxu2 %vm636_vm2, %v996_v25  ;;  %v885_v55 = vadd.f32 %v1829_v36, %v884_v47 }
 0x396   :  { %796 = vadd.xlane.f32.xlu2 %v773_v16 }
 0x397   :  { %932 = vst [vmem:[%s1976_s8] sm:$0xff] %v885_v55 }
 0x398   :  { %v787_v7 = vpop.xlane.xlu0 %786 }
 0x399   :  { %817 = vst.msk [vmem:[%s1975_s10 + $0x10] sm:$0xff] %vm814_vm6, %v787_v7  ;;  %v726_v24 = vpop.f32.mrf.mxu2 }
 0x39a   :  { %v758_v17 = vsub.f32 %v726_v24, %v1248_v9  ;;  %907 = vmatmul.f32.gmra.mxu3 %v726_v24 }
 0x39c   :  { %v887_v49 = vpop.f32.mrf.mxu3  ;;  %v774_v33 = vmul.f32 %v758_v17, %v758_v17 }
 0x39d   :  { %v888_v25 = vadd.f32 %v1829_v36, %v887_v49 }
 0x39e   :  { %798 = vadd.xlane.f32.xlu0 %v774_v33 }
 0x39f   :  { %933 = vst [vmem:[%s1976_s8 + $0x8] sm:$0xff] %v888_v25 }
 0x3a0   :  { %v789_v62 = vpop.xlane.xlu1 %788 }
 0x3a1   :  { %818 = vst.msk [vmem:[%s1975_s10 + $0x18] sm:$0xff] %vm814_vm6, %v789_v62  ;;  %v729_v46 = vpop.f32.mrf.mxu2 }
 0x3a2   :  { %v759_v42 = vsub.f32 %v729_v46, %v1252_v11  ;;  %910 = vmatmul.f32.gmra.mxu3 %v729_v46 }
 0x3a4   :  { %v890_v9 = vpop.f32.mrf.mxu3  ;;  %v775_v50 = vmul.f32 %v759_v42, %v759_v42 }
 0x3a5   :  { %v891_v27 = vadd.f32 %v1829_v36, %v890_v9 }
 0x3a6   :  { %800 = vadd.xlane.f32.xlu1 %v775_v50 }
 0x3a7   :  { %934 = vst [vmem:[%s1976_s8 + $0x10] sm:$0xff] %v891_v27 }
 0x3a8   :  { %v791_v44 = vpop.xlane.xlu2 %790 }
 0x3a9   :  { %819 = vst.msk [vmem:[%s1975_s10 + $0x20] sm:$0xff] %vm814_vm6, %v791_v44  ;;  %v732_v32 = vpop.f32.mrf.mxu2 }
 0x3aa   :  { %v760_v12 = vsub.f32 %v732_v32, %v1256_v14  ;;  %913 = vmatmul.f32.gmra.mxu3 %v732_v32 }
 0x3ac   :  { %v893_v11 = vpop.f32.mrf.mxu3  ;;  %v776_v53 = vmul.f32 %v760_v12, %v760_v12 }
 0x3ad   :  { %v894_v59 = vadd.f32 %v1829_v36, %v893_v11 }
 0x3ae   :  { %802 = vadd.xlane.f32.xlu2 %v776_v53 }
 0x3af   :  { %935 = vst [vmem:[%s1976_s8 + $0x18] sm:$0xff] %v894_v59 }
 0x3b0   :  { %v793_v3 = vpop.xlane.xlu0 %792 }
 0x3b1   :  { %820 = vst.msk [vmem:[%s1975_s10 + $0x28] sm:$0xff] %vm814_vm6, %v793_v3 }
 0x3b2   :  { %v735_v63 = vpop.f32.mrf.mxu2 }
 0x3b3   :  { %v761_v10 = vsub.f32 %v735_v63, %v1269_v22  ;;  %916 = vmatmul.f32.gmra.mxu3 %v735_v63 }
 0x3b4   :  { %v896_v14 = vpop.f32.mrf.mxu3 }
 0x3b5   :  { %v897_v19 = vadd.f32 %v1829_v36, %v896_v14  ;;  %v777_v51 = vmul.f32 %v761_v10, %v761_v10 }
 0x3b7   :  { %936 = vst [vmem:[%s1976_s8 + $0x20] sm:$0xff] %v897_v19  ;;  %804 = vadd.xlane.f32.xlu0 %v777_v51 }
 0x3b8   :  { %v795_v57 = vpop.xlane.xlu1 %794 }
 0x3b9   :  { %821 = vst.msk [vmem:[%s1975_s10 + $0x30] sm:$0xff] %vm814_vm6, %v795_v57 }
 0x3ba   :  { %v738_v35 = vpop.f32.mrf.mxu2 }
 0x3bb   :  { %v762_v21 = vsub.f32 %v738_v35, %v1279_v31  ;;  %919 = vmatmul.f32.gmra.mxu3 %v738_v35 }
 0x3bc   :  { %v899_v22 = vpop.f32.mrf.mxu3 }
 0x3bd   :  { %v900_v60 = vadd.f32 %v1829_v36, %v899_v22  ;;  %v778_v28 = vmul.f32 %v762_v21, %v762_v21 }
 0x3bf   :  { %937 = vst [vmem:[%s1976_s8 + $0x28] sm:$0xff] %v900_v60  ;;  %806 = vadd.xlane.f32.xlu1 %v778_v28 }
 0x3c2   :  { %v741_v23 = vpop.f32.mrf.mxu2 }
 0x3c3   :  { %v763_v56 = vsub.f32 %v741_v23, %v1291_v39  ;;  %922 = vmatmul.f32.gmra.mxu3 %v741_v23 }
 0x3c4   :  { %v902_v41 = vpop.f32.mrf.mxu3 }
 0x3c5   :  { %v903_v61 = vadd.f32 %v1829_v36, %v902_v41  ;;  %v779_v6 = vmul.f32 %v763_v56, %v763_v56 }
 0x3c7   :  { %938 = vst [vmem:[%s1976_s8 + $0x30] sm:$0xff] %v903_v61  ;;  %808 = vadd.xlane.f32.xlu2 %v779_v6 }
 0x409   :  { %v797_v31 = vpop.xlane.xlu2 %796 }
 0x40a   :  { %822 = vst.msk [vmem:[%s1975_s10 + $0x38] sm:$0xff] %vm814_vm6, %v797_v31 }
 0x410   :  { %v744_v18 = vpop.f32.mrf.mxu2 }
 0x411   :  { %v764_v29 = vsub.f32 %v744_v18, %v1305_v54  ;;  %925 = vmatmul.f32.gmra.mxu3 %v744_v18  ;;  %v799_v39 = vpop.xlane.xlu0 %798 }
 0x412   :  { %823 = vst.msk [vmem:[%s1975_s10 + $0x40] sm:$0xff] %vm814_vm6, %v799_v39 }
 0x413   :  { %v780_v52 = vmul.f32 %v764_v29, %v764_v29 }
 0x415   :  { %810 = vadd.xlane.f32.xlu0 %v780_v52  ;;  %v905_v48 = vpop.f32.mrf.mxu3 }
 0x416   :  { %v906_v58 = vadd.f32 %v1829_v36, %v905_v48 }
 0x418   :  { %939 = vst [vmem:[%s1976_s8 + $0x38] sm:$0xff] %v906_v58  ;;  %v747_v13 = vpop.f32.mrf.mxu2 }
 0x419   :  { %v765_v1 = vsub.f32 %v747_v13, %v1317_v0  ;;  %928 = vmatmul.f32.gmra.mxu3 %v747_v13  ;;  %v801_v54 = vpop.xlane.xlu1 %800 }
 0x41a   :  { %824 = vst.msk [vmem:[%s1975_s10 + $0x48] sm:$0xff] %vm814_vm6, %v801_v54 }
 0x41b   :  { %v781_v2 = vmul.f32 %v765_v1, %v765_v1 }
 0x41d   :  { %812 = vadd.xlane.f32.xlu1 %v781_v2  ;;  %v908_v37 = vpop.f32.mrf.mxu3 }
 0x41e   :  { %v909_v26 = vadd.f32 %v1829_v36, %v908_v37 }
 0x420   :  { %940 = vst [vmem:[%s1976_s8 + $0x40] sm:$0xff] %v909_v26 }
 0x421   :  { %v803_v8 = vpop.xlane.xlu2 %802 }
 0x422   :  { %825 = vst.msk [vmem:[%s1975_s10 + $0x50] sm:$0xff] %vm814_vm6, %v803_v8 }
 0x425   :  { %v911_v0 = vpop.f32.mrf.mxu3 }
 0x426   :  { %v912_v30 = vadd.f32 %v1829_v36, %v911_v0 }
 0x428   :  { %941 = vst [vmem:[%s1976_s8 + $0x48] sm:$0xff] %v912_v30 }
 0x42a   :  { %v805_v43 = vpop.xlane.xlu0 %804 }
 0x42b   :  { %826 = vst.msk [vmem:[%s1975_s10 + $0x58] sm:$0xff] %vm814_vm6, %v805_v43 }
 0x42d   :  { %v914_v45 = vpop.f32.mrf.mxu3 }
 0x42e   :  { %v915_v4 = vadd.f32 %v1829_v36, %v914_v45 }
 0x430   :  { %942 = vst [vmem:[%s1976_s8 + $0x50] sm:$0xff] %v915_v4 }
 0x432   :  { %v807_v5 = vpop.xlane.xlu1 %806 }
 0x433   :  { %827 = vst.msk [vmem:[%s1975_s10 + $0x60] sm:$0xff] %vm814_vm6, %v807_v5 }
 0x436   :  { %v917_v15 = vpop.f32.mrf.mxu3 }
 0x437   :  { %v918_v20 = vadd.f32 %v1829_v36, %v917_v15 }
 0x439   :  { %943 = vst [vmem:[%s1976_s8 + $0x58] sm:$0xff] %v918_v20 }
 0x43a   :  { %v809_v34 = vpop.xlane.xlu2 %808 }
 0x43b   :  { %828 = vst.msk [vmem:[%s1975_s10 + $0x68] sm:$0xff] %vm814_vm6, %v809_v34 }
 0x43e   :  { %v920_v40 = vpop.f32.mrf.mxu3 }
 0x43f   :  { %v921_v38 = vadd.f32 %v1829_v36, %v920_v40 }
 0x441   :  { %944 = vst [vmem:[%s1976_s8 + $0x60] sm:$0xff] %v921_v38 }
 0x446   :  { %v923_v47 = vpop.f32.mrf.mxu3 }
 0x447   :  { %v924_v16 = vadd.f32 %v1829_v36, %v923_v47 }
 0x449   :  { %945 = vst [vmem:[%s1976_s8 + $0x68] sm:$0xff] %v924_v16 }
 0x488   :  { %v811_v55 = vpop.xlane.xlu0 %810 }
 0x489   :  { %829 = vst.msk [vmem:[%s1975_s10 + $0x70] sm:$0xff] %vm814_vm6, %v811_v55 }
 0x490   :  { %v813_v7 = vpop.xlane.xlu1 %812 }
 0x491   :  { %830 = vst.msk [vmem:[%s1975_s10 + $0x78] sm:$0xff] %vm814_vm6, %v813_v7 }
 0x494   :  { %v926_v24 = vpop.f32.mrf.mxu3 }
 0x495   :  { %v927_v17 = vadd.f32 %v1829_v36, %v926_v24 }
 0x497   :  { %946 = vst [vmem:[%s1976_s8 + $0x70] sm:$0xff] %v927_v17 }
 0x49c   :  { %v929_v49 = vpop.f32.mrf.mxu3 }
 0x49d   :  { %v930_v33 = vadd.f32 %v1829_v36, %v929_v49 }
 0x49f   :  { %947 = vst [vmem:[%s1976_s8 + $0x78] sm:$0xff] %v930_v33 }

// kernel: vqgan_forward.3
= control target key start
LH: loop header
LB: loop body
LE: loop exit
PB: predicated region body
PF: predicated region fallthrough
CT: control target
= control target key end

     0   :  { %10 = vsyncpa [#allocation4], 0  ;;  %s2971_s18 = smov 0   ;;  %s4575_s0 = inlined_call_operand.vmem [shape: f32[2,9,9,512], index: 0, kind: input, shape index: {}]   ;;  %s4576_s1 = inlined_call_operand.vmem [shape: f32[4,512,128], index: 1, kind: input, shape index: {}]   ;;  %s4577_s2 = inlined_call_operand.vmem [shape: f32[1,128], index: 2, kind: input, shape index: {}]   ;;  %s4578_s3 = inlined_call_operand.hbm [shape: f32[9,128,128], index: 3, kind: input, shape index: {}]   ;;  %s4579_s4 = inlined_call_operand.vmem [shape: f32[1,128], index: 4, kind: input, shape index: {}]   ;;  %s4580_s5 = inlined_call_operand.vmem [shape: f32[2,64,128], index: 5, kind: output, shape index: {}]  }
   0x1 LB: > { %s174_s21 = sshll.u32 %s4578_s3, 4  ;;  %s2980_s22 = sadd.s32 4294967295, %s2935_s18   ;;  %s2935_s18 = sphi %s2971_s18, %s16_s18   ;;  %s175_s21 = int_to_ptr.hbm [resolvable:$true] %s174_s21 }
   0x2   : > { %p2539_p0 = scmp.ge.s32.totalorder %s2935_s18, 1  ;;  %p157_p1 = scmp.lt.s32.totalorder %s2935_s18, 3 }
   0x3   : > { %p2879_p2 = scmp.eq.s32.totalorder %s2980_s22, 0  ;;  %s2937_s23 = smov [#allocation3]  }
   0x4   : > { %p158_p3 = pnand %p2539_p0, %p157_p1  ;;  %s176_s24 = sshll.u32 %s2937_s23, 4  ;;  %s177_s24 = int_to_ptr.vmem [resolvable:$true] %s176_s24 }
   0x5   : > { %s2938_s25 = smov 128   ;;  %s2939_s26 = smov 8  }
   0x6   : > { %p2875_p4 = pneg %p158_p3  ;;  %203 = sbr.rel (%p158_p3) target bundleno = 698 (0x2ba), region = 40 }
   0x8   : > { %p2876_p5 = pnand %p2879_p2, %p2875_p4 }
   0xa   : > { %2878 = dma.hbm_to_vmem [thread:$0]  (!%p2876_p5), %s175_s21, 18432, %s177_s24, [#allocation4], %s2938_s25, %s2938_s25, %s2939_s26  }
   0xb   : > { %2930 = dma.done.wait (%p2879_p2), [#allocation4], 18432  }
   0xc   : > { %2932 = vsyncadd (%p2879_p2), [#allocation4], 4294948864  ;;  %v2562_v0 = vld [vmem:[%s4576_s1 + $0x278] sm:$0xff]  ;;  %v2561_v1 = vld [vmem:[%s4576_s1 + $0x270] sm:$0xff]  ;;  %p232_p6 = scmp.lt.s32.totalorder %s2980_s22, 1  ;;  %vm466_vm0 = vcmask 1046528  }
   0xd   : > { %2838 = vmatpush.msra.mxu1 %v2562_v0  ;;  %660 = vmatpush.msra.mxu0 %v2562_v0  ;;  %v2560_v2 = vld [vmem:[%s4576_s1 + $0x268] sm:$0xff]  ;;  %v2559_v3 = vld [vmem:[%s4576_s1 + $0x260] sm:$0xff]  ;;  %v2594_v4 = vld [vmem:[%s4576_s1 + $0x378] sm:$0xff] }
   0xe   : > { %v2593_v5 = vld [vmem:[%s4576_s1 + $0x370] sm:$0xff]  ;;  %v2558_v6 = vld [vmem:[%s4576_s1 + $0x258] sm:$0xff]  ;;  %742 = vmatpush.msra.mxu2 %v2594_v4  ;;  %v2592_v8 = vld [vmem:[%s4576_s1 + $0x368] sm:$0xff]  ;;  %s4630_s22 = smov (!%p232_p6, %s2980_s22), 1 }
   0xf   : > { %2839 = vmatpush.msra.mxu1 %v2561_v1  ;;  %661 = vmatpush.msra.mxu0 %v2561_v1  ;;  %v2610_v7 = vld [vmem:[%s4576_s1 + $0x3f8] sm:$0xff]  ;;  %v2609_v9 = vld [vmem:[%s4576_s1 + $0x3f0] sm:$0xff]  ;;  %v2591_v11 = vld [vmem:[%s4576_s1 + $0x360] sm:$0xff]  ;;  %s2870_s20 = smul.u32 576, %s4630_s22  ;;  %s2837_s10 = sshll.u32 %s4630_s22, 6 }
  0x10   : > { %v2557_v10 = vld [vmem:[%s4576_s1 + $0x250] sm:$0xff]  ;;  %743 = vmatpush.msra.mxu2 %v2593_v5  ;;  %783 = vmatpush.msra.mxu3 %v2610_v7  ;;  %v2608_v12 = vld [vmem:[%s4576_s1 + $0x3e8] sm:$0xff]  ;;  %v2590_v14 = vld [vmem:[%s4576_s1 + $0x358] sm:$0xff]  ;;  %s4542_s16 = scalar_lea.vmem %s4580_s5, %s2837_s10 }
  0x11   : > { %2840 = vmatpush.msra.mxu1 %v2560_v2  ;;  %662 = vmatpush.msra.mxu0 %v2560_v2  ;;  %v2556_v13 = vld [vmem:[%s4576_s1 + $0x248] sm:$0xff]  ;;  %v2607_v15 = vld [vmem:[%s4576_s1 + $0x3e0] sm:$0xff]  ;;  %v2589_v17 = vld [vmem:[%s4576_s1 + $0x350] sm:$0xff]  ;;  %s3071_s11 = scalar_lea.vmem %s4575_s0, %s2870_s20 }
  0x12   : > { %744 = vmatpush.msra.mxu2 %v2592_v8  ;;  %784 = vmatpush.msra.mxu3 %v2609_v9  ;;  %v2555_v16 = vld [vmem:[%s4576_s1 + $0x240] sm:$0xff]  ;;  %v2606_v18 = vld [vmem:[%s4576_s1 + $0x3d8] sm:$0xff]  ;;  %v2588_v20 = vld [vmem:[%s4576_s1 + $0x348] sm:$0xff] }
  0x13   : > { %2841 = vmatpush.msra.mxu1 %v2559_v3  ;;  %663 = vmatpush.msra.mxu0 %v2559_v3  ;;  %v2554_v19 = vld [vmem:[%s4576_s1 + $0x238] sm:$0xff]  ;;  %v2605_v21 = vld [vmem:[%s4576_s1 + $0x3d0] sm:$0xff]  ;;  %v2587_v23 = vld [vmem:[%s4576_s1 + $0x340] sm:$0xff] }
  0x14   : > { %745 = vmatpush.msra.mxu2 %v2591_v11  ;;  %785 = vmatpush.msra.mxu3 %v2608_v12  ;;  %v2553_v22 = vld [vmem:[%s4576_s1 + $0x230] sm:$0xff]  ;;  %v2604_v24 = vld [vmem:[%s4576_s1 + $0x3c8] sm:$0xff]  ;;  %v2586_v26 = vld [vmem:[%s4576_s1 + $0x338] sm:$0xff] }
  0x15   : > { %2842 = vmatpush.msra.mxu1 %v2558_v6  ;;  %664 = vmatpush.msra.mxu0 %v2558_v6  ;;  %v2552_v25 = vld [vmem:[%s4576_s1 + $0x228] sm:$0xff]  ;;  %v2603_v27 = vld [vmem:[%s4576_s1 + $0x3c0] sm:$0xff]  ;;  %v2550_v29 = vld [vmem:[%s4576_s1 + $0x218] sm:$0xff] }
  0x16   : > { %746 = vmatpush.msra.mxu2 %v2590_v14  ;;  %786 = vmatpush.msra.mxu3 %v2607_v15  ;;  %v2551_v28 = vld [vmem:[%s4576_s1 + $0x220] sm:$0xff]  ;;  %v2585_v31 = vld [vmem:[%s4576_s1 + $0x330] sm:$0xff]  ;;  %v2602_v32 = vld [vmem:[%s4576_s1 + $0x3b8] sm:$0xff] }
  0x17   : > { %2843 = vmatpush.msra.mxu1 %v2557_v10  ;;  %665 = vmatpush.msra.mxu0 %v2557_v10  ;;  %v370_v30 = vld [vmem:[%s3071_s11 + $0x100] sm:$0xfe]  ;;  %v374_v33 = vld [vmem:[%s3071_s11 + $0x120] sm:$0x1]  ;;  %v2584_v36 = vld [vmem:[%s4576_s1 + $0x328] sm:$0xff] }
  0x18   : > { %747 = vmatpush.msra.mxu2 %v2589_v17  ;;  %787 = vmatpush.msra.mxu3 %v2606_v18  ;;  %v338_v34 = vld [vmem:[%s3071_s11] sm:$0xfe]  ;;  %v342_v35 = vld [vmem:[%s3071_s11 + $0x20] sm:$0x1]  ;;  %v2601_v37 = vld [vmem:[%s4576_s1 + $0x3b0] sm:$0xff]  ;;  %v515_v39 = vrot.slane %v370_v30, 1 }
  0x19   : > { %2844 = vmatpush.msra.mxu1 %v2556_v13  ;;  %666 = vmatpush.msra.mxu0 %v2556_v13  ;;  %v2549_v38 = vld [vmem:[%s4576_s1 + $0x210] sm:$0xff]  ;;  %v516_v40 = vrot.slane %v374_v33, 1  ;;  %v467_v41 = vrot.slane %v338_v34, 1  ;;  %v468_v42 = vrot.slane %v342_v35, 1  ;;  %v2583_v43 = vld [vmem:[%s4576_s1 + $0x320] sm:$0xff]  ;;  %v2600_v44 = vld [vmem:[%s4576_s1 + $0x3a8] sm:$0xff] }
  0x1a   : > { %748 = vmatpush.msra.mxu2 %v2588_v20  ;;  %788 = vmatpush.msra.mxu3 %v2605_v21  ;;  %v2548_v45 = vld [vmem:[%s4576_s1 + $0x208] sm:$0xff]  ;;  %v2582_v46 = vld [vmem:[%s4576_s1 + $0x318] sm:$0xff]  ;;  %v2599_v47 = vld [vmem:[%s4576_s1 + $0x3a0] sm:$0xff] }
  0x1b   : > { %2845 = vmatpush.msra.mxu1 %v2555_v16  ;;  %667 = vmatpush.msra.mxu0 %v2555_v16  ;;  %v2547_v48 = vld [vmem:[%s4576_s1 + $0x200] sm:$0xff]  ;;  %v517_v49 = vsel %vm466_vm0, %v515_v39, %v516_v40  ;;  %v2578_v50 = vld [vmem:[%s4576_s1 + $0x2f8] sm:$0xff]  ;;  %v469_v51 = vsel %vm466_vm0, %v467_v41, %v468_v42  ;;  %v2577_v57 = vld [vmem:[%s4576_s1 + $0x2f0] sm:$0xff] }
  0x1c   : > { %749 = vmatpush.msra.mxu2 %v2587_v23  ;;  %789 = vmatpush.msra.mxu3 %v2604_v24  ;;  %v289_v52 = vld [vmem:[%s4576_s1 + $0x78] sm:$0xff]  ;;  %v378_v53 = vld [vmem:[%s3071_s11 + $0x140] sm:$0xfe]  ;;  %v382_v54 = vld [vmem:[%s3071_s11 + $0x160] sm:$0x1] }
  0x1d   : > { %2846 = vmatpush.msra.mxu1 %v2554_v19  ;;  %668 = vmatpush.msra.mxu0 %v2554_v19  ;;  %v346_v55 = vld [vmem:[%s3071_s11 + $0x40] sm:$0xfe]  ;;  %v350_v56 = vld [vmem:[%s3071_s11 + $0x60] sm:$0x1]  ;;  %v2581_v58 = vld [vmem:[%s4576_s1 + $0x310] sm:$0xff]  ;;  %v527_v0 = vrot.slane %v378_v53, 1 }
  0x1e   : > { %750 = vmatpush.msra.mxu2 %v2586_v26  ;;  %790 = vmatpush.msra.mxu3 %v2603_v27  ;;  %v2598_v59 = vld [vmem:[%s4576_s1 + $0x398] sm:$0xff]  ;;  %v2576_v60 = vld [vmem:[%s4576_s1 + $0x2e8] sm:$0xff]  ;;  %v288_v61 = vld [vmem:[%s4576_s1 + $0x70] sm:$0xff]  ;;  %v528_v1 = vrot.slane %v382_v54, 1  ;;  %v479_v2 = vrot.slane %v346_v55, 1  ;;  %v480_v3 = vrot.slane %v350_v56, 1 }
  0x1f   : > { %2847 = vmatpush.msra.mxu1 %v2553_v22  ;;  %669 = vmatpush.msra.mxu0 %v2553_v22  ;;  %v340_v62 = vld [vmem:[%s3071_s11 + $0x10] sm:$0xfe]  ;;  %v344_v63 = vld [vmem:[%s3071_s11 + $0x30] sm:$0x1]  ;;  %v2580_v4 = vld [vmem:[%s4576_s1 + $0x308] sm:$0xff] }
  0x20   : > { %751 = vmatpush.msra.mxu2 %v2585_v31  ;;  %791 = vmatpush.msra.mxu3 %v2602_v32  ;;  %v2597_v5 = vld [vmem:[%s4576_s1 + $0x390] sm:$0xff]  ;;  %v287_v6 = vld [vmem:[%s4576_s1 + $0x68] sm:$0xff]  ;;  %v341_v7 = vld [vmem:[%s3071_s11 + $0x18] sm:$0xfe]  ;;  %v473_v11 = vrot.slane %v340_v62, 1  ;;  %v474_v12 = vrot.slane %v344_v63, 1  ;;  %v529_v15 = vsel %vm466_vm0, %v527_v0, %v528_v1  ;;  %v481_v17 = vsel %vm466_vm0, %v479_v2, %v480_v3 }
  0x21   : > { %2848 = vmatpush.msra.mxu1 %v2552_v25  ;;  %670 = vmatpush.msra.mxu0 %v2552_v25  ;;  %v345_v8 = vld [vmem:[%s3071_s11 + $0x38] sm:$0x1]  ;;  %v2579_v9 = vld [vmem:[%s4576_s1 + $0x300] sm:$0xff]  ;;  %v2596_v10 = vld [vmem:[%s4576_s1 + $0x388] sm:$0xff]  ;;  %v476_v20 = vrot.slane %v341_v7, 1 }
  0x22   : > { %752 = vmatpush.msra.mxu2 %v2584_v36  ;;  %792 = vmatpush.msra.mxu3 %v2601_v37  ;;  %v2575_v13 = vld [vmem:[%s4576_s1 + $0x2e0] sm:$0xff]  ;;  %v2574_v16 = vld [vmem:[%s4576_s1 + $0x2d8] sm:$0xff]  ;;  %v477_v21 = vrot.slane %v345_v8, 1  ;;  %v2573_v25 = vld [vmem:[%s4576_s1 + $0x2d0] sm:$0xff]  ;;  %v475_v26 = vsel %vm466_vm0, %v473_v11, %v474_v12 }
  0x23   : > { %2849 = vmatpush.msra.mxu1 %v2551_v28  ;;  %671 = vmatpush.msra.mxu0 %v2551_v28  ;;  %v286_v14 = vld [vmem:[%s4576_s1 + $0x60] sm:$0xff]  ;;  %v285_v18 = vld [vmem:[%s4576_s1 + $0x58] sm:$0xff]  ;;  %v348_v30 = vld [vmem:[%s3071_s11 + $0x50] sm:$0xfe] }
  0x24   : > { %753 = vmatpush.msra.mxu2 %v2583_v43  ;;  %793 = vmatpush.msra.mxu3 %v2600_v44  ;;  %v386_v19 = vld [vmem:[%s3071_s11 + $0x180] sm:$0xfe]  ;;  %v390_v22 = vld [vmem:[%s3071_s11 + $0x1a0] sm:$0x1]  ;;  %v352_v31 = vld [vmem:[%s3071_s11 + $0x70] sm:$0x1]  ;;  %v478_v37 = vsel %vm466_vm0, %v476_v20, %v477_v21 }
  0x25   : > { %2850 = vmatpush.msra.mxu1 %v2550_v29  ;;  %672 = vmatpush.msra.mxu0 %v2550_v29  ;;  %v354_v23 = vld [vmem:[%s3071_s11 + $0x80] sm:$0xfe]  ;;  %v358_v24 = vld [vmem:[%s3071_s11 + $0xa0] sm:$0x1]  ;;  %v539_v28 = vrot.slane %v386_v19, 1  ;;  %v284_v29 = vld [vmem:[%s4576_s1 + $0x50] sm:$0xff] }
  0x26   : > { %754 = vmatpush.msra.mxu2 %v2582_v46  ;;  %794 = vmatpush.msra.mxu3 %v2599_v47  ;;  %v2595_v27 = vld [vmem:[%s4576_s1 + $0x380] sm:$0xff]  ;;  %v2572_v32 = vld [vmem:[%s4576_s1 + $0x2c8] sm:$0xff]  ;;  %v540_v33 = vrot.slane %v390_v22, 1  ;;  %v491_v34 = vrot.slane %v354_v23, 1  ;;  %v492_v35 = vrot.slane %v358_v24, 1  ;;  %v321_v36 = vld [vmem:[%s4576_s1 + $0x178] sm:$0xff] }
  0x27   : > { %2851 = vmatpush.msra.mxu1 %v2549_v38  ;;  %673 = vmatpush.msra.mxu0 %v2549_v38  ;;  %v283_v38 = vld [vmem:[%s4576_s1 + $0x48] sm:$0xff]  ;;  %v349_v39 = vld [vmem:[%s3071_s11 + $0x58] sm:$0xfe]  ;;  %v353_v40 = vld [vmem:[%s3071_s11 + $0x78] sm:$0x1]  ;;  %v485_v43 = vrot.slane %v348_v30, 1 }
  0x28   : > { %755 = vmatpush.msra.mxu2 %v2581_v58  ;;  %795 = vmatpush.msra.mxu3 %v2598_v59  ;;  %v337_v41 = vld [vmem:[%s4576_s1 + $0x1f8] sm:$0xff]  ;;  %v320_v42 = vld [vmem:[%s4576_s1 + $0x170] sm:$0xff]  ;;  %v486_v44 = vrot.slane %v352_v31, 1  ;;  %v282_v46 = vld [vmem:[%s4576_s1 + $0x40] sm:$0xff]  ;;  %v541_v47 = vsel %vm466_vm0, %v539_v28, %v540_v33  ;;  %v489_v53 = vrot.slane %v353_v40, 1 }
  0x29   : > { %2852 = vmatpush.msra.mxu1 %v2548_v45  ;;  %674 = vmatpush.msra.mxu0 %v2548_v45  ;;  %v2571_v45 = vld [vmem:[%s4576_s1 + $0x2c0] sm:$0xff]  ;;  %v336_v58 = vld [vmem:[%s4576_s1 + $0x1f0] sm:$0xff]  ;;  %v2568_v0 = vld [vmem:[%s4576_s1 + $0x2a8] sm:$0xff] }
  0x2a   : > { %756 = vmatpush.msra.mxu2 %v2580_v4  ;;  %796 = vmatpush.msra.mxu3 %v2597_v5  ;;  %v398_v54 = vld [vmem:[%s3071_s11 + $0x1e0] sm:$0x1]  ;;  %v362_v55 = vld [vmem:[%s3071_s11 + $0xc0] sm:$0xfe]  ;;  %v487_v59 = vsel %vm466_vm0, %v485_v43, %v486_v44  ;;  %v356_v62 = vld [vmem:[%s3071_s11 + $0x90] sm:$0xfe] }
  0x2b   : > { %2853 = vmatpush.msra.mxu1 %v2547_v48  ;;  %675 = vmatpush.msra.mxu0 %v2547_v48  ;;  %v2570_v48 = vld [vmem:[%s4576_s1 + $0x2b8] sm:$0xff]  ;;  %v366_v56 = vld [vmem:[%s3071_s11 + $0xe0] sm:$0x1]  ;;  %v360_v63 = vld [vmem:[%s3071_s11 + $0xb0] sm:$0x1]  ;;  %v552_v1 = vrot.slane %v398_v54, 1 }
  0x2c   : > { %688 = vmatmul.f32.vlgmr.msra.gmra.mxu1 %v517_v49  ;;  %676 = vmatmul.f32.vlgmr.msra.gmra.mxu0 %v469_v51  ;;  %v493_v49 = vsel %vm466_vm0, %v491_v34, %v492_v35  ;;  %v394_v51 = vld [vmem:[%s3071_s11 + $0x1c0] sm:$0xfe]  ;;  %v503_v2 = vrot.slane %v362_v55, 1  ;;  %v504_v3 = vrot.slane %v366_v56, 1  ;;  %v319_v4 = vld [vmem:[%s4576_s1 + $0x168] sm:$0xff]  ;;  %v497_v11 = vrot.slane %v356_v62, 1 }
  0x2d   : > { %701 = vmatpush.msrb.mxu1 %v2578_v50  ;;  %824 = vmatpush.msrb.mxu0 %v289_v52  ;;  %v281_v50 = vld [vmem:[%s4576_s1 + $0x38] sm:$0xff]  ;;  %v488_v52 = vrot.slane %v349_v39, 1  ;;  %v498_v12 = vrot.slane %v360_v63, 1  ;;  %v339_v21 = vld [vmem:[%s3071_s11 + $0x8] sm:$0xfe]  ;;  %v2565_v23 = vld [vmem:[%s4576_s1 + $0x290] sm:$0xff] }
  0x2e   : > { %757 = vmatpush.msra.mxu2 %v2579_v9  ;;  %797 = vmatpush.msra.mxu3 %v2596_v10  ;;  %v357_v7 = vld [vmem:[%s3071_s11 + $0x98] sm:$0xfe]  ;;  %v361_v8 = vld [vmem:[%s3071_s11 + $0xb8] sm:$0x1]  ;;  %v335_v9 = vld [vmem:[%s4576_s1 + $0x1e8] sm:$0xff]  ;;  %v470_v30 = vrot.slane %v339_v21, 1 }
  0x2f   : > { %702 = vmatpush.msrb.mxu1 %v2577_v57  ;;  %825 = vmatpush.msrb.mxu0 %v288_v61  ;;  %v2569_v57 = vld [vmem:[%s4576_s1 + $0x2b0] sm:$0xff]  ;;  %v490_v5 = vsel %vm466_vm0, %v488_v52, %v489_v53  ;;  %v318_v10 = vld [vmem:[%s4576_s1 + $0x160] sm:$0xff]  ;;  %v501_v19 = vrot.slane %v361_v8, 1  ;;  %v277_v20 = vld [vmem:[%s4576_s1 + $0x18] sm:$0xff] }
  0x30   : > { %758 = vmatmul.f32.vlgmr.msra.gmra.mxu2 %v475_v26  ;;  %798 = vmatpush.msra.mxu3 %v2595_v27  ;;  %v280_v61 = vld [vmem:[%s4576_s1 + $0x30] sm:$0xff]  ;;  %v343_v22 = vld [vmem:[%s3071_s11 + $0x28] sm:$0x1]  ;;  %v334_v24 = vld [vmem:[%s4576_s1 + $0x1e0] sm:$0xff] }
  0x31   : > { %703 = vmatpush.msrb.mxu1 %v2576_v60  ;;  %826 = vmatpush.msrb.mxu0 %v287_v6  ;;  %v551_v60 = vrot.slane %v394_v51, 1  ;;  %v279_v6 = vld [vmem:[%s4576_s1 + $0x28] sm:$0xff]  ;;  %v276_v26 = vld [vmem:[%s4576_s1 + $0x10] sm:$0xff]  ;;  %v471_v31 = vrot.slane %v343_v22, 1  ;;  %v365_v35 = vld [vmem:[%s3071_s11 + $0xd8] sm:$0xfe] }
  0x32   : > { %906 = vmatpush.msrb.mxu2 %v321_v36  ;;  %799 = vmatmul.f32.vlgmr.msra.gmra.mxu3 %v478_v37  ;;  %v364_v27 = vld [vmem:[%s3071_s11 + $0xd0] sm:$0xfe]  ;;  %v368_v28 = vld [vmem:[%s3071_s11 + $0xf0] sm:$0x1]  ;;  %v275_v34 = vld [vmem:[%s4576_s1 + $0x8] sm:$0xff] }
  0x33   : > { %704 = vmatpush.msrb.mxu1 %v2575_v13  ;;  %827 = vmatpush.msrb.mxu0 %v286_v14  ;;  %v2567_v13 = vld [vmem:[%s4576_s1 + $0x2a0] sm:$0xff]  ;;  %v369_v36 = vld [vmem:[%s3071_s11 + $0xf8] sm:$0x1]  ;;  %v509_v39 = vrot.slane %v364_v27, 1  ;;  %v510_v40 = vrot.slane %v368_v28, 1  ;;  %v472_v43 = vsel %vm466_vm0, %v470_v30, %v471_v31  ;;  %v304_v51 = vld [vmem:[%s4576_s1 + $0xf0] sm:$0xff] }
  0x34   : > { %691 = vmatmul.f32.gmra.mxu1 %v529_v15  ;;  %679 = vmatmul.f32.gmra.mxu0 %v481_v17  ;;  %v278_v14 = vld [vmem:[%s4576_s1 + $0x20] sm:$0xff]  ;;  %v553_v15 = vsel %vm466_vm0, %v551_v60, %v552_v1  ;;  %v505_v17 = vsel %vm466_vm0, %v503_v2, %v504_v3  ;;  %v333_v37 = vld [vmem:[%s4576_s1 + $0x1d8] sm:$0xff]  ;;  %v315_v53 = vld [vmem:[%s4576_s1 + $0x148] sm:$0xff] }
  0x35   : > { %705 = vmatpush.msrb.mxu1 %v2574_v16  ;;  %828 = vmatpush.msrb.mxu0 %v285_v18  ;;  %v2566_v16 = vld [vmem:[%s4576_s1 + $0x298] sm:$0xff]  ;;  %v500_v18 = vrot.slane %v357_v7, 1  ;;  %v511_v52 = vsel %vm466_vm0, %v509_v39, %v510_v40  ;;  %v372_v54 = vld [vmem:[%s3071_s11 + $0x110] sm:$0xfe]  ;;  %v376_v55 = vld [vmem:[%s3071_s11 + $0x130] sm:$0x1] }
  0x36   : > { %947 = vmatpush.msrb.mxu3 %v337_v41  ;;  %907 = vmatpush.msrb.mxu2 %v320_v42  ;;  %v2563_v41 = vld [vmem:[%s4576_s1 + $0x280] sm:$0xff]  ;;  %v305_v44 = vld [vmem:[%s4576_s1 + $0xf8] sm:$0xff]  ;;  %v331_v60 = vld [vmem:[%s4576_s1 + $0x1c8] sm:$0xff]  ;;  %v522_v1 = vrot.slane %v376_v55, 1 }
  0x37   : > { %706 = vmatpush.msrb.mxu1 %v2573_v25  ;;  %829 = vmatpush.msrb.mxu0 %v284_v29  ;;  %v499_v25 = vsel %vm466_vm0, %v497_v11, %v498_v12  ;;  %v2564_v29 = vld [vmem:[%s4576_s1 + $0x288] sm:$0xff]  ;;  %v502_v33 = vsel %vm466_vm0, %v500_v18, %v501_v19  ;;  %v274_v42 = vld [vmem:[%s4576_s1] sm:$0xff]  ;;  %v377_v62 = vld [vmem:[%s3071_s11 + $0x138] sm:$0x1] }
  0x38   : > { %948 = vmatpush.msrb.mxu3 %v336_v58  ;;  %761 = vmatmul.f32.gmra.mxu2 %v487_v59  ;;  %v303_v58 = vld [vmem:[%s4576_s1 + $0xe8] sm:$0xff]  ;;  %v314_v63 = vld [vmem:[%s4576_s1 + $0x140] sm:$0xff]  ;;  %v525_v8 = vrot.slane %v377_v62, 1  ;;  %v313_v11 = vld [vmem:[%s4576_s1 + $0x138] sm:$0xff] }
  0x39   : > { %707 = vmatpush.msrb.mxu1 %v2572_v32  ;;  %830 = vmatpush.msrb.mxu0 %v283_v38  ;;  %v317_v32 = vld [vmem:[%s4576_s1 + $0x158] sm:$0xff]  ;;  %v316_v38 = vld [vmem:[%s4576_s1 + $0x150] sm:$0xff]  ;;  %v302_v2 = vld [vmem:[%s4576_s1 + $0xe0] sm:$0xff] }
  0x3a   : > { %908 = vmatpush.msrb.mxu2 %v319_v4  ;;  %802 = vmatmul.f32.gmra.mxu3 %v490_v5  ;;  %v330_v3 = vld [vmem:[%s4576_s1 + $0x1c0] sm:$0xff]  ;;  %v300_v12 = vld [vmem:[%s4576_s1 + $0xd0] sm:$0xff]  ;;  %v311_v27 = vld [vmem:[%s4576_s1 + $0x128] sm:$0xff] }
  0x3b   : > { %708 = vmatpush.msrb.mxu1 %v2571_v45  ;;  %831 = vmatpush.msrb.mxu0 %v282_v46  ;;  %v242_v45 = vld [vmem:[%s3071_s11] sm:$0xff]  ;;  %v512_v46 = vrot.slane %v365_v35, 1  ;;  %v328_v22 = vld [vmem:[%s4576_s1 + $0x1b0] sm:$0xff]  ;;  %v367_v35 = vld [vmem:[%s3071_s11 + $0xe8] sm:$0x1] }
  0x3c   : > { %694 = vmatmul.f32.gmra.mxu1 %v541_v47  ;;  %682 = vmatmul.f32.gmra.mxu0 %v493_v49  ;;  %v513_v47 = vrot.slane %v369_v36, 1  ;;  %v351_v49 = vld [vmem:[%s3071_s11 + $0x68] sm:$0x1]  ;;  %v3355_v5 = vld [vmem:[%s3071_s11 + $0x40] sm:$0xff]  ;;  %v297_v36 = vld [vmem:[%s4576_s1 + $0xb8] sm:$0xff] }
  0x3d   : > { %709 = vmatpush.msrb.mxu1 %v2570_v48  ;;  %832 = vmatpush.msrb.mxu0 %v281_v50  ;;  %v347_v48 = vld [vmem:[%s3071_s11 + $0x48] sm:$0xfe]  ;;  %v332_v50 = vld [vmem:[%s4576_s1 + $0x1d0] sm:$0xff]  ;;  %v298_v28 = vld [vmem:[%s4576_s1 + $0xc0] sm:$0xff] }
  0x3e   : > { %949 = vmatpush.msrb.mxu3 %v335_v9  ;;  %909 = vmatpush.msrb.mxu2 %v318_v10  ;;  %v482_v56 = vrot.slane %v347_v48, 1  ;;  %v514_v59 = vsel %vm466_vm0, %v512_v46, %v513_v47  ;;  %v359_v9 = vld [vmem:[%s3071_s11 + $0xa8] sm:$0x1]  ;;  %v301_v10 = vld [vmem:[%s4576_s1 + $0xd8] sm:$0xff]  ;;  %v3398_v31 = vld [vmem:[%s3071_s11 + $0x80] sm:$0xff] }
  0x3f   : > { %710 = vmatpush.msrb.mxu1 %v2569_v57  ;;  %833 = vmatpush.msrb.mxu0 %v280_v61  ;;  %v483_v57 = vrot.slane %v351_v49, 1  ;;  %v373_v61 = vld [vmem:[%s3071_s11 + $0x118] sm:$0xfe]  ;;  %v495_v19 = vrot.slane %v359_v9, 1  ;;  %v296_v39 = vld [vmem:[%s4576_s1 + $0xb0] sm:$0xff]  ;;  %v326_v40 = vld [vmem:[%s4576_s1 + $0x1a0] sm:$0xff] }
  0x40   : > { %950 = vmatpush.msrb.mxu3 %v334_v24  ;;  %764 = vmatmul.f32.gmra.mxu2 %v499_v25  ;;  %v524_v7 = vrot.slane %v373_v61, 1  ;;  %v385_v24 = vld [vmem:[%s3071_s11 + $0x178] sm:$0x1]  ;;  %v295_v47 = vld [vmem:[%s4576_s1 + $0xa8] sm:$0xff]  ;;  %v389_v48 = vld [vmem:[%s3071_s11 + $0x198] sm:$0xfe] }
  0x41   : > { %711 = vmatpush.msrb.mxu1 %v2568_v0  ;;  %834 = vmatpush.msrb.mxu0 %v279_v6  ;;  %v521_v0 = vrot.slane %v372_v54, 1  ;;  %v484_v4 = vsel %vm466_vm0, %v482_v56, %v483_v57  ;;  %v355_v6 = vld [vmem:[%s3071_s11 + $0x88] sm:$0xfe]  ;;  %v393_v49 = vld [vmem:[%s3071_s11 + $0x1b8] sm:$0x1]  ;;  %v294_v54 = vld [vmem:[%s4576_s1 + $0xa0] sm:$0xff] }
  0x42   : > { %910 = vmatpush.msrb.mxu2 %v317_v32  ;;  %805 = vmatmul.f32.gmra.mxu3 %v502_v33  ;;  %v494_v18 = vrot.slane %v355_v6, 1  ;;  %v526_v21 = vsel %vm466_vm0, %v524_v7, %v525_v8  ;;  %v363_v32 = vld [vmem:[%s3071_s11 + $0xc8] sm:$0xfe]  ;;  %v324_v55 = vld [vmem:[%s4576_s1 + $0x190] sm:$0xff]  ;;  %v3441_v57 = vld [vmem:[%s3071_s11 + $0xc0] sm:$0xff] }
  0x43   : > { %712 = vmatpush.msrb.mxu1 %v2567_v13  ;;  %835 = vmatpush.msrb.mxu0 %v278_v14  ;;  %v523_v13 = vsel %vm466_vm0, %v521_v0, %v522_v1  ;;  %v329_v14 = vld [vmem:[%s4576_s1 + $0x1b8] sm:$0xff]  ;;  %v375_v61 = vld [vmem:[%s3071_s11 + $0x128] sm:$0x1]  ;;  %v396_v1 = vld [vmem:[%s3071_s11 + $0x1d0] sm:$0xfe] }
  0x44   : > { %697 = vmatmul.f32.gmra.mxu1 %v553_v15  ;;  %685 = vmatmul.f32.gmra.mxu0 %v505_v17  ;;  %v312_v15 = vld [vmem:[%s4576_s1 + $0x130] sm:$0xff]  ;;  %v496_v30 = vsel %vm466_vm0, %v494_v18, %v495_v19  ;;  %v293_v62 = vld [vmem:[%s4576_s1 + $0x98] sm:$0xff]  ;;  %v306_v6 = vld [vmem:[%s4576_s1 + $0x100] sm:$0xff]  ;;  %v519_v8 = vrot.slane %v375_v61, 1 }
  0x45   : > { %713 = vmatpush.msrb.mxu1 %v2566_v16  ;;  %836 = vmatpush.msrb.mxu0 %v277_v20  ;;  %v380_v16 = vld [vmem:[%s3071_s11 + $0x150] sm:$0xfe]  ;;  %v384_v17 = vld [vmem:[%s3071_s11 + $0x170] sm:$0x1]  ;;  %v299_v20 = vld [vmem:[%s4576_s1 + $0xc8] sm:$0xff] }
  0x46   : > { %951 = vmatpush.msrb.mxu3 %v333_v37  ;;  %911 = vmatpush.msrb.mxu2 %v316_v38  ;;  %v533_v25 = vrot.slane %v380_v16, 1  ;;  %v310_v37 = vld [vmem:[%s4576_s1 + $0x120] sm:$0xff]  ;;  %v2670_v61 = vld [vmem:[%s4576_s1 + $0x4d8] sm:$0xff] }
  0x47   : > { %714 = vmatpush.msrb.mxu1 %v2565_v23  ;;  %837 = vmatpush.msrb.mxu0 %v276_v26  ;;  %v381_v23 = vld [vmem:[%s3071_s11 + $0x158] sm:$0xfe]  ;;  %v534_v26 = vrot.slane %v384_v17, 1  ;;  %v290_v18 = vld [vmem:[%s4576_s1 + $0x80] sm:$0xff] }
  0x48   : > { %952 = vmatpush.msrb.mxu3 %v332_v50  ;;  %767 = vmatmul.f32.gmra.mxu2 %v511_v52  ;;  %v536_v33 = vrot.slane %v381_v23, 1  ;;  %v325_v50 = vld [vmem:[%s4576_s1 + $0x198] sm:$0xff]  ;;  %v379_v23 = vld [vmem:[%s3071_s11 + $0x148] sm:$0xfe] }
  0x49   : > { %715 = vmatpush.msrb.mxu1 %v2564_v29  ;;  %838 = vmatpush.msrb.mxu0 %v275_v34  ;;  %v327_v29 = vld [vmem:[%s4576_s1 + $0x1a8] sm:$0xff]  ;;  %v537_v34 = vrot.slane %v385_v24, 1  ;;  %v535_v38 = vsel %vm466_vm0, %v533_v25, %v534_v26  ;;  %v2706_v17 = vld [vmem:[%s4576_s1 + $0x5f8] sm:$0xff] }
  0x4a   : > { %912 = vmatpush.msrb.mxu2 %v315_v53  ;;  %808 = vmatmul.f32.gmra.mxu3 %v514_v59  ;;  %v308_v53 = vld [vmem:[%s4576_s1 + $0x110] sm:$0xff]  ;;  %v548_v59 = vrot.slane %v389_v48, 1  ;;  %v383_v24 = vld [vmem:[%s3071_s11 + $0x168] sm:$0x1]  ;;  %v2658_v26 = vld [vmem:[%s4576_s1 + $0x478] sm:$0xff] }
  0x4b   : > { %716 = vmatpush.msrb.mxu1 %v2563_v41  ;;  %839 = vmatpush.msrb.mxu0 %v274_v42  ;;  %v388_v41 = vld [vmem:[%s3071_s11 + $0x190] sm:$0xfe]  ;;  %v392_v42 = vld [vmem:[%s3071_s11 + $0x1b0] sm:$0x1]  ;;  %v538_v46 = vsel %vm466_vm0, %v536_v33, %v537_v34  ;;  %v245_v48 = vld [vmem:[%s3071_s11 + $0x18] sm:$0xff] }
  0x4c   : > { %717 = vmatmul.f32.vlgmr.msrb.gmra.mxu1 %v472_v43  ;;  %840 = vmatmul.f32.vlgmr.msrb.gmra.mxu0 %v242_v45  ;;  %v309_v43 = vld [vmem:[%s4576_s1 + $0x118] sm:$0xff]  ;;  %v507_v45 = vrot.slane %v367_v35, 1  ;;  %v546_v52 = vrot.slane %v392_v42, 1  ;;  %v2705_v33 = vld [vmem:[%s4576_s1 + $0x5f0] sm:$0xff] }
  0x4d   : > { %865 = vmatpush.msra.mxu1 %v305_v44  ;;  %953 = vmatpush.msrb.mxu3 %v331_v60  ;;  %v506_v44 = vrot.slane %v363_v32, 1  ;;  %v549_v60 = vrot.slane %v393_v49, 1  ;;  %v2657_v34 = vld [vmem:[%s4576_s1 + $0x470] sm:$0xff]  ;;  %v2703_v49 = vld [vmem:[%s4576_s1 + $0x5e0] sm:$0xff] }
  0x4e   : > { %913 = vmatpush.msrb.mxu2 %v314_v63  ;;  %v307_v63 = vld [vmem:[%s4576_s1 + $0x108] sm:$0xff]  ;;  %1086 = vmatpush.msra.mxu0 %v2658_v26  ;;  %v2673_v35 = vld [vmem:[%s4576_s1 + $0x4f0] sm:$0xff]  ;;  %v3638_v26 = vld [vmem:[%s3071_s11 + $0xd8] sm:$0xff] }
  0x4f   : > { %866 = vmatpush.msra.mxu1 %v304_v51  ;;  %954 = vmatpush.msrb.mxu3 %v330_v3  ;;  %v545_v51 = vrot.slane %v388_v41, 1  ;;  %v508_v56 = vsel %vm466_vm0, %v506_v44, %v507_v45  ;;  %v400_v3 = vld [vmem:[%s3071_s11 + $0x1f0] sm:$0x1]  ;;  %v550_v9 = vsel %vm466_vm0, %v548_v59, %v549_v60  ;;  %v391_v41 = vld [vmem:[%s3071_s11 + $0x1a8] sm:$0x1]  ;;  %v2687_v45 = vld [vmem:[%s4576_s1 + $0x560] sm:$0xff] }
  0x50   : > { %914 = vmatpush.msrb.mxu2 %v313_v11  ;;  %v2690_v11 = vld [vmem:[%s4576_s1 + $0x578] sm:$0xff]  ;;  %v558_v16 = vrot.slane %v400_v3, 1  ;;  %1087 = vmatpush.msra.mxu0 %v2657_v34  ;;  %v244_v42 = vld [vmem:[%s3071_s11 + $0x10] sm:$0xff]  ;;  %v2672_v44 = vld [vmem:[%s4576_s1 + $0x4e8] sm:$0xff] }
  0x51   : > { %867 = vmatpush.msra.mxu1 %v303_v58  ;;  %770 = vmatmul.f32.gmra.mxu2 %v523_v13  ;;  %v371_v58 = vld [vmem:[%s3071_s11 + $0x108] sm:$0xfe]  ;;  %v547_v0 = vsel %vm466_vm0, %v545_v51, %v546_v52  ;;  %v2671_v51 = vld [vmem:[%s4576_s1 + $0x4e0] sm:$0xff]  ;;  %v2686_v52 = vld [vmem:[%s4576_s1 + $0x558] sm:$0xff] }
  0x52   : > { %955 = vmatpush.msrb.mxu3 %v329_v14  ;;  %915 = vmatpush.msrb.mxu2 %v312_v15  ;;  %v518_v7 = vrot.slane %v371_v58, 1  ;;  %v291_v13 = vld [vmem:[%s4576_s1 + $0x88] sm:$0xff]  ;;  %v322_v14 = vld [vmem:[%s4576_s1 + $0x180] sm:$0xff]  ;;  %v557_v15 = vrot.slane %v396_v1, 1  ;;  %v3555_v59 = vld [vmem:[%s3071_s11 + $0x50] sm:$0xff] }
  0x53   : > { %868 = vmatpush.msra.mxu1 %v302_v2  ;;  %811 = vmatmul.f32.gmra.mxu3 %v526_v21  ;;  %v323_v2 = vld [vmem:[%s4576_s1 + $0x188] sm:$0xff]  ;;  %v2654_v60 = vld [vmem:[%s4576_s1 + $0x458] sm:$0xff]  ;;  %v2653_v3 = vld [vmem:[%s4576_s1 + $0x450] sm:$0xff] }
  0x54   : > { %720 = vmatmul.f32.gmra.mxu1 %v484_v4  ;;  %843 = vmatmul.f32.gmra.mxu0 %v3355_v5  ;;  %v292_v4 = vld [vmem:[%s4576_s1 + $0x90] sm:$0xff]  ;;  %v520_v19 = vsel %vm466_vm0, %v518_v7, %v519_v8  ;;  %v559_v25 = vsel %vm466_vm0, %v557_v15, %v558_v16  ;;  %v399_v58 = vld [vmem:[%s3071_s11 + $0x1e8] sm:$0x1]  ;;  %v3568_v1 = vld [vmem:[%s3071_s11 + $0x58] sm:$0xff] }
  0x55   : > { %869 = vmatpush.msra.mxu1 %v301_v10  ;;  %956 = vmatpush.msrb.mxu3 %v328_v22  ;;  %v397_v10 = vld [vmem:[%s3071_s11 + $0x1d8] sm:$0xfe]  ;;  %v2700_v7 = vld [vmem:[%s4576_s1 + $0x5c8] sm:$0xff]  ;;  %v2699_v15 = vld [vmem:[%s4576_s1 + $0x5c0] sm:$0xff] }
  0x56   : > { %916 = vmatpush.msrb.mxu2 %v311_v27  ;;  %v560_v21 = vrot.slane %v397_v10, 1  ;;  %v2674_v27 = vld [vmem:[%s4576_s1 + $0x4f8] sm:$0xff]  ;;  %v3592_v10 = vld [vmem:[%s3071_s11 + $0x90] sm:$0xff]  ;;  %v2651_v16 = vld [vmem:[%s4576_s1 + $0x440] sm:$0xff] }
  0x57   : > { %870 = vmatpush.msra.mxu1 %v300_v12  ;;  %957 = vmatpush.msrb.mxu3 %v327_v29  ;;  %v401_v12 = vld [vmem:[%s3071_s11 + $0x1f8] sm:$0x1]  ;;  %v530_v29 = vrot.slane %v379_v23, 1  ;;  %v3661_v34 = vld [vmem:[%s3071_s11 + $0x110] sm:$0xff] }
  0x58   : > { %917 = vmatpush.msrb.mxu2 %v310_v37  ;;  %v561_v22 = vrot.slane %v401_v12, 1  ;;  %v2704_v37 = vld [vmem:[%s4576_s1 + $0x5e8] sm:$0xff]  ;;  %v2650_v23 = vld [vmem:[%s4576_s1 + $0x438] sm:$0xff] }
  0x59   : > { %871 = vmatpush.msra.mxu1 %v299_v20  ;;  %773 = vmatmul.f32.gmra.mxu2 %v535_v38  ;;  %v3484_v20 = vld [vmem:[%s3071_s11 + $0x100] sm:$0xff]  ;;  %v2668_v12 = vld [vmem:[%s4576_s1 + $0x4c8] sm:$0xff] }
  0x5a   : > { %958 = vmatpush.msrb.mxu3 %v326_v40  ;;  %918 = vmatpush.msrb.mxu2 %v309_v43  ;;  %v562_v32 = vsel %vm466_vm0, %v560_v21, %v561_v22  ;;  %v387_v40 = vld [vmem:[%s3071_s11 + $0x188] sm:$0xfe]  ;;  %v2698_v21 = vld [vmem:[%s4576_s1 + $0x5b8] sm:$0xff]  ;;  %v3626_v22 = vld [vmem:[%s3071_s11 + $0xd0] sm:$0xff] }
  0x5b   : > { %872 = vmatpush.msra.mxu1 %v298_v28  ;;  %814 = vmatmul.f32.gmra.mxu3 %v538_v46  ;;  %v2689_v28 = vld [vmem:[%s4576_s1 + $0x570] sm:$0xff]  ;;  %v2656_v43 = vld [vmem:[%s4576_s1 + $0x468] sm:$0xff]  ;;  %v542_v46 = vrot.slane %v387_v40, 1  ;;  %v2695_v40 = vld [vmem:[%s4576_s1 + $0x5a0] sm:$0xff] }
  0x5c   : > { %723 = vmatmul.f32.gmra.mxu1 %v496_v30  ;;  %846 = vmatmul.f32.gmra.mxu0 %v3398_v31  ;;  %v531_v30 = vrot.slane %v383_v24, 1  ;;  %v2666_v24 = vld [vmem:[%s4576_s1 + $0x4b8] sm:$0xff] }
  0x5d   : > { %873 = vmatpush.msra.mxu1 %v297_v36  ;;  %959 = vmatpush.msrb.mxu3 %v325_v50  ;;  %v2688_v36 = vld [vmem:[%s4576_s1 + $0x568] sm:$0xff]  ;;  %v2655_v50 = vld [vmem:[%s4576_s1 + $0x460] sm:$0xff] }
  0x5e   : > { %919 = vmatpush.msrb.mxu2 %v308_v53  ;;  %v532_v38 = vsel %vm466_vm0, %v530_v29, %v531_v30  ;;  %1088 = vmatpush.msra.mxu0 %v2656_v43  ;;  %v2702_v53 = vld [vmem:[%s4576_s1 + $0x5d8] sm:$0xff]  ;;  %v2665_v29 = vld [vmem:[%s4576_s1 + $0x4b0] sm:$0xff]  ;;  %v2680_v30 = vld [vmem:[%s4576_s1 + $0x528] sm:$0xff] }
  0x5f   : > { %874 = vmatpush.msra.mxu1 %v296_v39  ;;  %960 = vmatpush.msrb.mxu3 %v324_v55  ;;  %v3517_v39 = vld [vmem:[%s3071_s11 + $0x140] sm:$0xff]  ;;  %v2678_v43 = vld [vmem:[%s4576_s1 + $0x518] sm:$0xff] }
  0x60   : > { %920 = vmatpush.msrb.mxu2 %v307_v63  ;;  %1089 = vmatpush.msra.mxu0 %v2655_v50  ;;  %v3550_v55 = vld [vmem:[%s3071_s11 + $0x180] sm:$0xff]  ;;  %v3710_v50 = vld [vmem:[%s3071_s11 + $0x158] sm:$0xff] }
  0x61   : > { %875 = vmatpush.msra.mxu1 %v295_v47  ;;  %776 = vmatmul.f32.gmra.mxu2 %v547_v0  ;;  %v543_v47 = vrot.slane %v391_v41, 1  ;;  %v555_v0 = vrot.slane %v399_v58, 1  ;;  %v2647_v41 = vld [vmem:[%s4576_s1 + $0x420] sm:$0xff]  ;;  %v2692_v58 = vld [vmem:[%s4576_s1 + $0x588] sm:$0xff] }
  0x62   : > { %961 = vmatpush.msrb.mxu3 %v323_v2  ;;  %921 = vmatpush.msrb.mxu2 %v306_v6  ;;  %v2701_v2 = vld [vmem:[%s4576_s1 + $0x5d0] sm:$0xff]  ;;  %v2684_v6 = vld [vmem:[%s4576_s1 + $0x548] sm:$0xff] }
  0x63   : > { %876 = vmatpush.msra.mxu1 %v294_v54  ;;  %817 = vmatmul.f32.gmra.mxu3 %v550_v9  ;;  %v544_v54 = vsel %vm466_vm0, %v542_v46, %v543_v47  ;;  %v3589_v9 = vld [vmem:[%s3071_s11 + $0x1c0] sm:$0xff]  ;;  %v3697_v46 = vld [vmem:[%s3071_s11 + $0x150] sm:$0xff]  ;;  %v2646_v47 = vld [vmem:[%s4576_s1 + $0x418] sm:$0xff] }
  0x64   : > { %726 = vmatmul.f32.gmra.mxu1 %v508_v56  ;;  %849 = vmatmul.f32.gmra.mxu0 %v3441_v57  ;;  %v395_v56 = vld [vmem:[%s3071_s11 + $0x1c8] sm:$0xfe] }
  0x65   : > { %877 = vmatpush.msra.mxu1 %v293_v62  ;;  %1168 = vmatpush.msra.mxu2 %v2690_v11  ;;  %v2685_v62 = vld [vmem:[%s4576_s1 + $0x550] sm:$0xff]  ;;  %v554_v63 = vrot.slane %v395_v56, 1  ;;  %v2652_v11 = vld [vmem:[%s4576_s1 + $0x448] sm:$0xff] }
  0x66   : > { %962 = vmatpush.msrb.mxu3 %v322_v14  ;;  %1090 = vmatpush.msra.mxu0 %v2654_v60  ;;  %v3605_v14 = vld [vmem:[%s3071_s11 + $0x98] sm:$0xff]  ;;  %v3727_v56 = vld [vmem:[%s3071_s11 + $0xc8] sm:$0xff]  ;;  %v3733_v60 = vld [vmem:[%s3071_s11 + $0x190] sm:$0xff] }
  0x67   : > { %878 = vmatpush.msra.mxu1 %v292_v4  ;;  %1169 = vmatpush.msra.mxu2 %v2689_v28  ;;  %v2669_v4 = vld [vmem:[%s4576_s1 + $0x4d0] sm:$0xff]  ;;  %v556_v8 = vsel %vm466_vm0, %v554_v63, %v555_v0  ;;  %v2660_v63 = vld [vmem:[%s4576_s1 + $0x488] sm:$0xff]  ;;  %v2675_v0 = vld [vmem:[%s4576_s1 + $0x500] sm:$0xff] }
  0x68   : > { %1209 = vmatpush.msra.mxu3 %v2706_v17  ;;  %1091 = vmatpush.msra.mxu0 %v2653_v3  ;;  %v2667_v17 = vld [vmem:[%s4576_s1 + $0x4c0] sm:$0xff]  ;;  %v2649_v28 = vld [vmem:[%s4576_s1 + $0x430] sm:$0xff] }
  0x69   : > { %879 = vmatpush.msra.mxu1 %v291_v13  ;;  %779 = vmatmul.f32.gmra.mxu2 %v559_v25  ;;  %v2683_v13 = vld [vmem:[%s4576_s1 + $0x540] sm:$0xff]  ;;  %v2681_v25 = vld [vmem:[%s4576_s1 + $0x530] sm:$0xff] }
  0x6a   : > { %1210 = vmatpush.msra.mxu3 %v2705_v33  ;;  %1170 = vmatpush.msra.mxu2 %v2688_v36  ;;  %v2696_v33 = vld [vmem:[%s4576_s1 + $0x5a8] sm:$0xff]  ;;  %v2643_v3 = vld [vmem:[%s4576_s1 + $0x400] sm:$0xff] }
  0x6b   : > { %880 = vmatpush.msra.mxu1 %v290_v18  ;;  %820 = vmatmul.f32.gmra.mxu3 %v562_v32  ;;  %v2682_v18 = vld [vmem:[%s4576_s1 + $0x538] sm:$0xff]  ;;  %v3655_v32 = vld [vmem:[%s3071_s11 + $0x48] sm:$0xff] }
  0x6c   : > { %729 = vmatmul.f32.gmra.mxu1 %v520_v19  ;;  %852 = vmatmul.f32.gmra.mxu0 %v3484_v20  ;;  %v243_v19 = vld [vmem:[%s3071_s11 + $0x8] sm:$0xff] }
  0x6d   : > { %1127 = vmatpush.msrb.mxu1 %v2674_v27  ;;  %1211 = vmatpush.msra.mxu3 %v2704_v37  ;;  %v2697_v27 = vld [vmem:[%s4576_s1 + $0x5b0] sm:$0xff]  ;;  %v2664_v36 = vld [vmem:[%s4576_s1 + $0x4a8] sm:$0xff]  ;;  %v2679_v37 = vld [vmem:[%s4576_s1 + $0x520] sm:$0xff] }
  0x6e   : > { %1171 = vmatpush.msra.mxu2 %v2687_v45  ;;  %1092 = vmatpush.msra.mxu0 %v2652_v11  ;;  %v2694_v45 = vld [vmem:[%s4576_s1 + $0x598] sm:$0xff] }
  0x6f   : > { %1128 = vmatpush.msrb.mxu1 %v2673_v35  ;;  %1212 = vmatpush.msra.mxu3 %v2703_v49  ;;  %v2648_v35 = vld [vmem:[%s4576_s1 + $0x428] sm:$0xff]  ;;  %v2677_v49 = vld [vmem:[%s4576_s1 + $0x510] sm:$0xff]  ;;  %v2834_v11 = vld [vmem:[%s4576_s1 + $0x7f8] sm:$0xff] }
  0x70   : > { %1172 = vmatpush.msra.mxu2 %v2686_v52  ;;  %1093 = vmatpush.msra.mxu0 %v2651_v16  ;;  %v2645_v52 = vld [vmem:[%s4576_s1 + $0x410] sm:$0xff]  ;;  %v3785_v16 = vld [vmem:[%s3071_s11 + $0x1d8] sm:$0xff] }
  0x71   : > { %1129 = vmatpush.msrb.mxu1 %v2672_v44  ;;  %922 = vmatmul.f32.vlgmr.msrb.gmra.mxu2 %v244_v42  ;;  %v2663_v42 = vld [vmem:[%s4576_s1 + $0x4a0] sm:$0xff]  ;;  %v3691_v44 = vld [vmem:[%s3071_s11 + $0x88] sm:$0xff] }
  0x72   : > { %1213 = vmatpush.msra.mxu3 %v2702_v53  ;;  %1173 = vmatpush.msra.mxu2 %v2685_v62  ;;  %v2661_v53 = vld [vmem:[%s4576_s1 + $0x490] sm:$0xff]  ;;  %v2644_v62 = vld [vmem:[%s4576_s1 + $0x408] sm:$0xff] }
  0x73   : > { %963 = vmatmul.f32.vlgmr.msrb.gmra.mxu3 %v245_v48  ;;  %1130 = vmatpush.msrb.mxu1 %v2671_v51  ;;  %v2662_v48 = vld [vmem:[%s4576_s1 + $0x498] sm:$0xff]  ;;  %v2693_v51 = vld [vmem:[%s4576_s1 + $0x590] sm:$0xff] }
  0x74   : > { %732 = vmatmul.f32.gmra.mxu1 %v532_v38  ;;  %855 = vmatmul.f32.gmra.mxu0 %v3517_v39  ;;  %v3674_v38 = vld [vmem:[%s3071_s11 + $0x118] sm:$0xff] }
  0x75   : > { %1131 = vmatpush.msrb.mxu1 %v2670_v61  ;;  %1214 = vmatpush.msra.mxu3 %v2701_v2  ;;  %v3736_v61 = vld [vmem:[%s3071_s11 + $0x198] sm:$0xff]  ;;  %v2691_v2 = vld [vmem:[%s4576_s1 + $0x580] sm:$0xff] }
  0x76   : > { %1174 = vmatpush.msra.mxu2 %v2684_v6  ;;  %1094 = vmatpush.msra.mxu0 %v2650_v23  ;;  %v2818_v6 = vld [vmem:[%s4576_s1 + $0x778] sm:$0xff] }
  0x77   : > { %1132 = vmatpush.msrb.mxu1 %v2669_v4  ;;  %1215 = vmatpush.msra.mxu3 %v2700_v7  ;;  %v2659_v4 = vld [vmem:[%s4576_s1 + $0x480] sm:$0xff] }
  0x78   : > { %1175 = vmatpush.msra.mxu2 %v2683_v13  ;;  %1095 = vmatpush.msra.mxu0 %v2649_v28  ;;  %v2786_v13 = vld [vmem:[%s4576_s1 + $0x678] sm:$0xff]  ;;  %v2784_v28 = vld [vmem:[%s4576_s1 + $0x668] sm:$0xff] }
  0x79   : > { %925 = vmatmul.f32.gmra.mxu2 %v3555_v59  ;;  %1133 = vmatpush.msrb.mxu1 %v2668_v12  ;;  %v3772_v12 = vld [vmem:[%s3071_s11 + $0x1d0] sm:$0xff] }
  0x7a   : > { %1216 = vmatpush.msra.mxu3 %v2699_v15  ;;  %1176 = vmatpush.msra.mxu2 %v2682_v18  ;;  %v2802_v15 = vld [vmem:[%s4576_s1 + $0x6f8] sm:$0xff]  ;;  %v2785_v18 = vld [vmem:[%s4576_s1 + $0x670] sm:$0xff] }
  0x7b   : > { %966 = vmatmul.f32.gmra.mxu3 %v3568_v1  ;;  %1134 = vmatpush.msrb.mxu1 %v2667_v17  ;;  %v2833_v17 = vld [vmem:[%s4576_s1 + $0x7f0] sm:$0xff] }
  0x7c   : > { %735 = vmatmul.f32.gmra.mxu1 %v544_v54  ;;  %858 = vmatmul.f32.gmra.mxu0 %v3550_v55  ;;  %v2676_v54 = vld [vmem:[%s4576_s1 + $0x508] sm:$0xff] }
  0x7d   : > { %1217 = vmatpush.msra.mxu3 %v2698_v21  ;;  %1135 = vmatpush.msrb.mxu1 %v2666_v24  ;;  %v2816_v21 = vld [vmem:[%s4576_s1 + $0x768] sm:$0xff] }
  0x7e   : > { %1177 = vmatpush.msra.mxu2 %v2681_v25  ;;  %1096 = vmatpush.msra.mxu0 %v2648_v35  ;;  %v3804_v24 = vld [vmem:[%s3071_s11 + $0x148] sm:$0xff]  ;;  %v2799_v35 = vld [vmem:[%s4576_s1 + $0x6e0] sm:$0xff] }
  0x7f   : > { %1218 = vmatpush.msra.mxu3 %v2697_v27  ;;  %1136 = vmatpush.msrb.mxu1 %v2665_v29  ;;  %v2832_v25 = vld [vmem:[%s4576_s1 + $0x7e8] sm:$0xff] }
  0x80   : > { %1178 = vmatpush.msra.mxu2 %v2680_v30  ;;  %1097 = vmatpush.msra.mxu0 %v2647_v41  ;;  %v2800_v29 = vld [vmem:[%s4576_s1 + $0x6e8] sm:$0xff]  ;;  %v2815_v30 = vld [vmem:[%s4576_s1 + $0x760] sm:$0xff] }
  0x81   : > { %928 = vmatmul.f32.gmra.mxu2 %v3592_v10  ;;  %1219 = vmatpush.msra.mxu3 %v2696_v33  ;;  %v2783_v33 = vld [vmem:[%s4576_s1 + $0x660] sm:$0xff] }
  0x82   : > { %1137 = vmatpush.msrb.mxu1 %v2664_v36  ;;  %1179 = vmatpush.msra.mxu2 %v2679_v37  ;;  %v3839_v37 = vld [vmem:[%s3071_s11 + $0x188] sm:$0xff] }
  0x83   : > { %969 = vmatmul.f32.gmra.mxu3 %v3605_v14  ;;  %1098 = vmatpush.msra.mxu0 %v2646_v47 }
  0x84   : > { %738 = vmatmul.f32.gmra.mxu1 %v556_v8  ;;  %861 = vmatmul.f32.gmra.mxu0 %v3589_v9  ;;  %v3765_v8 = vld [vmem:[%s3071_s11 + $0x108] sm:$0xff] }
  0x85   : > { %1220 = vmatpush.msra.mxu3 %v2695_v40  ;;  %1138 = vmatpush.msrb.mxu1 %v2663_v42  ;;  %v2782_v42 = vld [vmem:[%s4576_s1 + $0x658] sm:$0xff] }
  0x86   : > { %1180 = vmatpush.msra.mxu2 %v2678_v43  ;;  %1099 = vmatpush.msra.mxu0 %v2645_v52  ;;  %v2798_v43 = vld [vmem:[%s4576_s1 + $0x6d8] sm:$0xff]  ;;  %v3874_v52 = vld [vmem:[%s3071_s11 + $0x1c8] sm:$0xff] }
  0x87   : > { %1221 = vmatpush.msra.mxu3 %v2694_v45  ;;  %1139 = vmatpush.msrb.mxu1 %v2662_v48  ;;  %v2813_v45 = vld [vmem:[%s4576_s1 + $0x750] sm:$0xff] }
  0x88   : > { %1181 = vmatpush.msra.mxu2 %v2677_v49  ;;  %1100 = vmatpush.msra.mxu0 %v2644_v62  ;;  %v2781_v48 = vld [vmem:[%s4576_s1 + $0x650] sm:$0xff]  ;;  %v2796_v62 = vld [vmem:[%s4576_s1 + $0x6c8] sm:$0xff] }
  0x89   : > { %931 = vmatmul.f32.gmra.mxu2 %v3626_v22  ;;  %1222 = vmatpush.msra.mxu3 %v2693_v51  ;;  %v2797_v49 = vld [vmem:[%s4576_s1 + $0x6d0] sm:$0xff] }
  0x8a   : > { %1140 = vmatpush.msrb.mxu1 %v2661_v53  ;;  %1182 = vmatpush.msra.mxu2 %v2676_v54 }
  0x8b   : > { %972 = vmatmul.f32.gmra.mxu3 %v3638_v26  ;;  %1101 = vmatpush.msra.mxu0 %v2643_v3  ;;  %v2795_v3 = vld [vmem:[%s4576_s1 + $0x6c0] sm:$0xff] }
  0x8c   : > { %881 = vmatmul.f32.vlgmr.msra.gmra.mxu1 %v243_v19  ;;  %1223 = vmatpush.msra.mxu3 %v2692_v58  ;;  %v2801_v19 = vld [vmem:[%s4576_s1 + $0x6f0] sm:$0xff]  ;;  %v2780_v58 = vld [vmem:[%s4576_s1 + $0x648] sm:$0xff] }
  0x8d   : > { %1141 = vmatpush.msrb.mxu1 %v2660_v63  ;;  %1183 = vmatpush.msra.mxu2 %v2675_v0  ;;  %v2811_v63 = vld [vmem:[%s4576_s1 + $0x740] sm:$0xff] }
  0x8e   : > { %1224 = vmatpush.msra.mxu3 %v2691_v2  ;;  %1102 = vmatmul.f32.vlgmr.msra.gmra.mxu0 %v3355_v5  ;;  %v2817_v5 = vld [vmem:[%s4576_s1 + $0x770] sm:$0xff]  ;;  %v2779_v2 = vld [vmem:[%s4576_s1 + $0x640] sm:$0xff] }
  0x8f   : > { %1142 = vmatpush.msrb.mxu1 %v2659_v4  ;;  %1661 = vmatpush.msrb.mxu2 %v2818_v6 }
  0x90   : > { %1702 = vmatpush.msrb.mxu3 %v2834_v11  ;;  %1579 = vmatpush.msrb.mxu0 %v2786_v13 }
  0x91   : > { %934 = vmatmul.f32.gmra.mxu2 %v3661_v34  ;;  %1620 = vmatpush.msra.mxu1 %v2802_v15 }
  0x92   : > { %1662 = vmatpush.msrb.mxu2 %v2817_v5  ;;  %1703 = vmatpush.msrb.mxu3 %v2833_v17  ;;  %v2778_v5 = vld [vmem:[%s4576_s1 + $0x638] sm:$0xff] }
  0x93   : > { %975 = vmatmul.f32.gmra.mxu3 %v3674_v38  ;;  %1580 = vmatpush.msrb.mxu0 %v2785_v18  ;;  %v2794_v17 = vld [vmem:[%s4576_s1 + $0x6b8] sm:$0xff]  ;;  %v2809_v18 = vld [vmem:[%s4576_s1 + $0x730] sm:$0xff] }
  0x94   : > { %884 = vmatmul.f32.gmra.mxu1 %v3655_v32  ;;  %1663 = vmatpush.msrb.mxu2 %v2816_v21  ;;  %v2793_v21 = vld [vmem:[%s4576_s1 + $0x6b0] sm:$0xff] }
  0x95   : > { %1621 = vmatpush.msra.mxu1 %v2801_v19  ;;  %1704 = vmatpush.msrb.mxu3 %v2832_v25  ;;  %v2777_v19 = vld [vmem:[%s4576_s1 + $0x630] sm:$0xff] }
  0x96   : > { %1105 = vmatmul.f32.gmra.mxu0 %v3398_v31  ;;  %v2831_v31 = vld [vmem:[%s4576_s1 + $0x7e0] sm:$0xff]  ;;  %1664 = vmatpush.msrb.mxu2 %v2815_v30 }
  0x97   : > { %1581 = vmatpush.msrb.mxu0 %v2784_v28  ;;  %1622 = vmatpush.msra.mxu1 %v2800_v29 }
  0x98   : > { %1705 = vmatpush.msrb.mxu3 %v2831_v31 }
  0x99   : > { %937 = vmatmul.f32.gmra.mxu2 %v3697_v46  ;;  %1582 = vmatpush.msrb.mxu0 %v2783_v33  ;;  %v2776_v33 = vld [vmem:[%s4576_s1 + $0x628] sm:$0xff] }
  0x9a   : > { %1623 = vmatpush.msra.mxu1 %v2799_v35  ;;  %v2792_v35 = vld [vmem:[%s4576_s1 + $0x6a8] sm:$0xff] }
  0x9b   : > { %978 = vmatmul.f32.gmra.mxu3 %v3710_v50  ;;  %1583 = vmatpush.msrb.mxu0 %v2782_v42 }
  0x9c   : > { %887 = vmatmul.f32.gmra.mxu1 %v3691_v44 }
  0x9d   : > { %1624 = vmatpush.msra.mxu1 %v2798_v43  ;;  %1584 = vmatpush.msrb.mxu0 %v2781_v48  ;;  %v2774_v48 = vld [vmem:[%s4576_s1 + $0x618] sm:$0xff] }
  0x9e   : > { %1108 = vmatmul.f32.gmra.mxu0 %v3441_v57  ;;  %v2829_v57 = vld [vmem:[%s4576_s1 + $0x7d0] sm:$0xff] }
  0x9f   : > { %1625 = vmatpush.msra.mxu1 %v2797_v49  ;;  %1585 = vmatpush.msrb.mxu0 %v2780_v58  ;;  %v2790_v49 = vld [vmem:[%s4576_s1 + $0x698] sm:$0xff] }
  0xa1   : > { %940 = vmatmul.f32.gmra.mxu2 %v3733_v60  ;;  %1626 = vmatpush.msra.mxu1 %v2796_v62 }
  0xa2   : > { %1586 = vmatpush.msrb.mxu0 %v2779_v2  ;;  %v2772_v2 = vld [vmem:[%s4576_s1 + $0x608] sm:$0xff] }
  0xa3   : > { %981 = vmatmul.f32.gmra.mxu3 %v3736_v61  ;;  %1627 = vmatpush.msra.mxu1 %v2795_v3  ;;  %v2788_v3 = vld [vmem:[%s4576_s1 + $0x688] sm:$0xff] }
  0xa4   : > { %890 = vmatmul.f32.gmra.mxu1 %v3727_v56  ;;  %1587 = vmatpush.msrb.mxu0 %v2778_v5 }
  0xa5   : > { %1628 = vmatpush.msra.mxu1 %v2794_v17 }
  0xa6   : > { %1111 = vmatmul.f32.gmra.mxu0 %v3484_v20  ;;  %v2827_v20 = vld [vmem:[%s4576_s1 + $0x7c0] sm:$0xff] }
  0xa7   : > { %1588 = vmatpush.msrb.mxu0 %v2777_v19  ;;  %1629 = vmatpush.msra.mxu1 %v2793_v21  ;;  %v2641_v19 = vld [vmem:[%s3071_s11 + $0x210] sm:$0xff] }
  0xa9   : > { %v3762_v7 = vpop.f32.mrf.mxu1  ;;  %943 = vmatmul.f32.gmra.mxu2 %v3772_v12  ;;  %v3810_v27 = vpop.f32.mrf.mxu0  ;;  %1589 = vmatpush.msrb.mxu0 %v2776_v33 }
  0xaa   : > { %1630 = vmatpush.msra.mxu1 %v2792_v35  ;;  %v2719_v35 = vld [vmem:[%s3071_s11 + $0xa0] sm:$0x1] }
  0xab   : > { %984 = vmatmul.f32.gmra.mxu3 %v3785_v16 }
  0xac   : > { %893 = vmatmul.f32.gmra.mxu1 %v3765_v8 }
  0xae   : > { %1114 = vmatmul.f32.gmra.mxu0 %v3517_v39 }
  0xb1   : > { %v3801_v23 = vpop.f32.mrf.mxu1  ;;  %1184 = vmatmul.f32.vlgmr.msra.gmra.mxu2 %v3555_v59  ;;  %v2814_v59 = vld [vmem:[%s4576_s1 + $0x758] sm:$0xff]  ;;  %v3855_v47 = vpop.f32.mrf.mxu0 }
  0xb2   : > { %1665 = vmatpush.msrb.mxu2 %v2814_v59  ;;  %v2807_v59 = vld [vmem:[%s4576_s1 + $0x720] sm:$0xff] }
  0xb3   : > { %1225 = vmatmul.f32.vlgmr.msra.gmra.mxu3 %v3568_v1  ;;  %v759_v40 = vpop.f32.mrf.mxu2  ;;  %v2830_v1 = vld [vmem:[%s4576_s1 + $0x7d8] sm:$0xff] }
  0xb4   : > { %896 = vmatmul.f32.gmra.mxu1 %v3804_v24  ;;  %1706 = vmatpush.msrb.mxu3 %v2830_v1  ;;  %v2791_v1 = vld [vmem:[%s4576_s1 + $0x6a0] sm:$0xff] }
  0xb5   : > { %v800_v41 = vpop.f32.mrf.mxu3  ;;  %1666 = vmatpush.msrb.mxu2 %v2813_v45  ;;  %1631 = vmatpush.msra.mxu1 %v2791_v1 }
  0xb6   : > { %1707 = vmatpush.msrb.mxu3 %v2829_v57  ;;  %1117 = vmatmul.f32.gmra.mxu0 %v3550_v55 }
  0xb7   : > { %1632 = vmatpush.msra.mxu1 %v2790_v49  ;;  %v2721_v49 = vld [vmem:[%s3071_s11 + $0xb0] sm:$0x1] }
  0xb9   : > { %v3836_v36 = vpop.f32.mrf.mxu1  ;;  %1187 = vmatmul.f32.gmra.mxu2 %v3592_v10  ;;  %v2812_v10 = vld [vmem:[%s4576_s1 + $0x748] sm:$0xff]  ;;  %v3894_v0 = vpop.f32.mrf.mxu0 }
  0xba   : > { %1667 = vmatpush.msrb.mxu2 %v2812_v10 }
  0xbb   : > { %1228 = vmatmul.f32.gmra.mxu3 %v3605_v14  ;;  %v762_v53 = vpop.f32.mrf.mxu2  ;;  %v2828_v14 = vld [vmem:[%s4576_s1 + $0x7c8] sm:$0xff] }
  0xbc   : > { %899 = vmatmul.f32.gmra.mxu1 %v3839_v37  ;;  %1708 = vmatpush.msrb.mxu3 %v2828_v14  ;;  %v2789_v14 = vld [vmem:[%s4576_s1 + $0x690] sm:$0xff] }
  0xbd   : > { %v803_v54 = vpop.f32.mrf.mxu3  ;;  %1668 = vmatpush.msrb.mxu2 %v2811_v63  ;;  %1633 = vmatpush.msra.mxu1 %v2789_v14 }
  0xbe   : > { %1709 = vmatpush.msrb.mxu3 %v2827_v20  ;;  %1120 = vmatmul.f32.gmra.mxu0 %v3589_v9  ;;  %v2805_v9 = vld [vmem:[%s4576_s1 + $0x710] sm:$0xff]  ;;  %v2639_v20 = vld [vmem:[%s3071_s11 + $0x200] sm:$0xff] }
  0xbf   : > { %1634 = vmatpush.msra.mxu1 %v2788_v3 }
  0xc1   : > { %v3871_v51 = vpop.f32.mrf.mxu1  ;;  %1190 = vmatmul.f32.gmra.mxu2 %v3626_v22  ;;  %v2810_v22 = vld [vmem:[%s4576_s1 + $0x738] sm:$0xff]  ;;  %v686_v25 = vpop.f32.mrf.mxu0 }
  0xc2   : > { %1669 = vmatpush.msrb.mxu2 %v2810_v22  ;;  %v2803_v22 = vld [vmem:[%s4576_s1 + $0x700] sm:$0xff] }
  0xc3   : > { %1231 = vmatmul.f32.gmra.mxu3 %v3638_v26  ;;  %v765_v11 = vpop.f32.mrf.mxu2  ;;  %v2826_v26 = vld [vmem:[%s4576_s1 + $0x7b8] sm:$0xff] }
  0xc4   : > { %902 = vmatmul.f32.gmra.mxu1 %v3874_v52  ;;  %1710 = vmatpush.msrb.mxu3 %v2826_v26  ;;  %v2787_v26 = vld [vmem:[%s4576_s1 + $0x680] sm:$0xff] }
  0xc5   : > { %v3911_v13 = vpop.f32.mrf.mxu3  ;;  %1670 = vmatpush.msrb.mxu2 %v2809_v18  ;;  %1635 = vmatpush.msra.mxu1 %v2787_v26 }
  0xc6   : > { %1123 = vmatmul.f32.gmra.mxu0 %v2639_v20 }
  0xc9   : > { %v718_v4 = vpop.f32.mrf.mxu1  ;;  %1193 = vmatmul.f32.gmra.mxu2 %v3661_v34  ;;  %v2808_v34 = vld [vmem:[%s4576_s1 + $0x728] sm:$0xff]  ;;  %v3977_v45 = vpop.f32.mrf.mxu0 }
  0xca   : > { %v719_v6 = vadd.f32 %v718_v4, %v3810_v27  ;;  %1671 = vmatpush.msrb.mxu2 %v2808_v34  ;;  %v2709_v34 = vld [vmem:[%s3071_s11 + $0x50] sm:$0xfe] }
  0xcb   : > { %1234 = vmatmul.f32.gmra.mxu3 %v3674_v38  ;;  %v768_v29 = vpop.f32.mrf.mxu2  ;;  %v2824_v38 = vld [vmem:[%s4576_s1 + $0x7a8] sm:$0xff] }
  0xcc   : > { %v760_v15 = vadd.f32 %v759_v40, %v719_v6  ;;  %1143 = vmatmul.f32.vlgmr.msrb.gmra.mxu1 %v3655_v32  ;;  %v2825_v32 = vld [vmem:[%s4576_s1 + $0x7b0] sm:$0xff]  ;;  %1672 = vmatpush.msrb.mxu2 %v2807_v59  ;;  %v2775_v40 = vld [vmem:[%s4576_s1 + $0x620] sm:$0xff] }
  0xcd   : > { %1711 = vmatpush.msrb.mxu3 %v2825_v32  ;;  %v3944_v30 = vpop.f32.mrf.mxu3  ;;  %1590 = vmatpush.msrb.mxu0 %v2775_v40  ;;  %v2819_v6 = vld [vmem:[%s4576_s1 + $0x780] sm:$0xff] }
  0xce   : > { %v3923_v39 = vadd.f32 %v800_v41, %v760_v15  ;;  %v2711_v15 = vld [vmem:[%s3071_s11 + $0x60] sm:$0x1] }
  0xcf   : > { %1712 = vmatpush.msrb.mxu3 %v2824_v38  ;;  %1591 = vmatpush.msrb.mxu0 %v2774_v48  ;;  %v1387_v18 = vrot.slane %v2711_v15, 1  ;;  %v2714_v38 = vld [vmem:[%s3071_s11 + $0x78] sm:$0x1]  ;;  %v2717_v48 = vld [vmem:[%s3071_s11 + $0x90] sm:$0xfe] }
  0xd0   : > { %v1396_v40 = vrot.slane %v2714_v38, 1  ;;  %v1404_v14 = vrot.slane %v2717_v48, 1  ;;  %v2738_v48 = vld [vmem:[%s3071_s11 + $0x138] sm:$0x1] }
  0xd1   : > { %v721_v27 = vpop.f32.mrf.mxu1  ;;  %1196 = vmatmul.f32.gmra.mxu2 %v3697_v46  ;;  %v2806_v46 = vld [vmem:[%s4576_s1 + $0x718] sm:$0xff]  ;;  %v4024_v4 = vpop.f32.mrf.mxu0 }
  0xd2   : > { %v722_v28 = vadd.f32 %v721_v27, %v3855_v47  ;;  %1673 = vmatpush.msrb.mxu2 %v2806_v46  ;;  %v1399_v46 = vrot.slane %v2719_v35, 1 }
  0xd3   : > { %1237 = vmatmul.f32.gmra.mxu3 %v3710_v50  ;;  %v2822_v50 = vld [vmem:[%s4576_s1 + $0x798] sm:$0xff] }
  0xd4   : > { %v763_v31 = vadd.f32 %v762_v53, %v722_v28  ;;  %1146 = vmatmul.f32.gmra.mxu1 %v3691_v44  ;;  %v2823_v44 = vld [vmem:[%s4576_s1 + $0x7a0] sm:$0xff]  ;;  %v771_v43 = vpop.f32.mrf.mxu2  ;;  %1674 = vmatpush.msrb.mxu2 %v2805_v9  ;;  %v2773_v53 = vld [vmem:[%s4576_s1 + $0x610] sm:$0xff]  ;;  %v2642_v28 = vld [vmem:[%s3071_s11 + $0x218] sm:$0xff] }
  0xd5   : > { %1713 = vmatpush.msrb.mxu3 %v2823_v44  ;;  %1592 = vmatpush.msrb.mxu0 %v2773_v53  ;;  %v2722_v53 = vld [vmem:[%s3071_s11 + $0xb8] sm:$0x1] }
  0xd6   : > { %v3956_v55 = vadd.f32 %v803_v54, %v763_v31  ;;  %v3979_v47 = vpop.f32.mrf.mxu3  ;;  %v1392_v31 = vrot.slane %v2709_v34, 1  ;;  %v1408_v20 = vrot.slane %v2722_v53, 1  ;;  %v2708_v34 = vld [vmem:[%s3071_s11 + $0x48] sm:$0xfe]  ;;  %v2739_v53 = vld [vmem:[%s3071_s11 + $0x140] sm:$0xfe] }
  0xd7   : > { %1714 = vmatpush.msrb.mxu3 %v2822_v50  ;;  %1593 = vmatpush.msrb.mxu0 %v2772_v2 }
  0xd9   : > { %v724_v41 = vpop.f32.mrf.mxu1  ;;  %1199 = vmatmul.f32.gmra.mxu2 %v3733_v60  ;;  %v2804_v60 = vld [vmem:[%s4576_s1 + $0x708] sm:$0xff] }
  0xda   : > { %v725_v42 = vadd.f32 %v724_v41, %v3894_v0  ;;  %1675 = vmatpush.msrb.mxu2 %v2804_v60  ;;  %v1405_v60 = vrot.slane %v2721_v49, 1 }
  0xdb   : > { %1240 = vmatmul.f32.gmra.mxu3 %v3736_v61  ;;  %v2820_v61 = vld [vmem:[%s4576_s1 + $0x788] sm:$0xff] }
  0xdc   : > { %v766_v57 = vadd.f32 %v765_v11, %v725_v42  ;;  %1149 = vmatmul.f32.gmra.mxu1 %v3727_v56  ;;  %v2821_v56 = vld [vmem:[%s4576_s1 + $0x790] sm:$0xff]  ;;  %v774_v62 = vpop.f32.mrf.mxu2  ;;  %1676 = vmatpush.msrb.mxu2 %v2803_v22  ;;  %v2771_v11 = vld [vmem:[%s4576_s1 + $0x600] sm:$0xff] }
  0xdd   : > { %1715 = vmatpush.msrb.mxu3 %v2821_v56  ;;  %1594 = vmatpush.msrb.mxu0 %v2771_v11 }
  0xde   : > { %v3992_v10 = vadd.f32 %v3911_v13, %v766_v57  ;;  %v4011_v63 = vpop.f32.mrf.mxu3 }
  0xdf   : > { %1716 = vmatpush.msrb.mxu3 %v2820_v61 }
  0xe1   : > { %v727_v54 = vpop.f32.mrf.mxu1  ;;  %1202 = vmatmul.f32.gmra.mxu2 %v3772_v12  ;;  %1717 = vmatpush.msrb.mxu3 %v2819_v6  ;;  %v2707_v12 = vld [vmem:[%s3071_s11 + $0x40] sm:$0xfe]  ;;  %v1406_v6 = vsel %vm466_vm0, %v1404_v14, %v1405_v60  ;;  %v2743_v14 = vld [vmem:[%s3071_s11 + $0x160] sm:$0x1] }
  0xe2   : > { %v728_v58 = vadd.f32 %v727_v54, %v686_v25  ;;  %v1386_v5 = vrot.slane %v2707_v12, 1  ;;  %v2713_v25 = vld [vmem:[%s3071_s11 + $0x70] sm:$0x1]  ;;  %v2723_v54 = vld [vmem:[%s3071_s11 + $0xc0] sm:$0xfe] }
  0xe3   : > { %1243 = vmatmul.f32.gmra.mxu3 %v3785_v16  ;;  %v1393_v33 = vrot.slane %v2713_v25, 1  ;;  %v2725_v12 = vld [vmem:[%s3071_s11 + $0xd0] sm:$0xfe]  ;;  %v2735_v25 = vld [vmem:[%s3071_s11 + $0x120] sm:$0x1] }
  0xe4   : > { %v769_v0 = vadd.f32 %v768_v29, %v728_v58  ;;  %1152 = vmatmul.f32.gmra.mxu1 %v3765_v8  ;;  %v777_v17 = vpop.f32.mrf.mxu2  ;;  %v1388_v27 = vsel %vm466_vm0, %v1386_v5, %v1387_v18  ;;  %v2727_v58 = vld [vmem:[%s3071_s11 + $0xe0] sm:$0x1]  ;;  %v2726_v5 = vld [vmem:[%s3071_s11 + $0xd8] sm:$0xfe]  ;;  %v2640_v18 = vld [vmem:[%s3071_s11 + $0x208] sm:$0xff] }
  0xe5   : > { %1595 = vmatmul.f32.vlgmr.msrb.gmra.mxu0 %v1388_v27  ;;  %v1394_v50 = vsel %vm466_vm0, %v1392_v31, %v1393_v33  ;;  %v1423_v31 = vrot.slane %v2735_v25, 1  ;;  %v2751_v25 = vld [vmem:[%s3071_s11 + $0x1a0] sm:$0x1] }
  0xe6   : > { %v4027_v8 = vadd.f32 %v3944_v30, %v769_v0  ;;  %v818_v32 = vpop.f32.mrf.mxu3  ;;  %v4054_v30 = vpop.f32.mrf.mxu0  ;;  %v1410_v0 = vrot.slane %v2723_v54, 1  ;;  %v2720_v54 = vld [vmem:[%s3071_s11 + $0xa8] sm:$0x1] }
  0xe9   : > { %v730_v13 = vpop.f32.mrf.mxu1  ;;  %1205 = vmatmul.f32.gmra.mxu2 %v2641_v19  ;;  %v1416_v19 = vrot.slane %v2725_v12, 1  ;;  %v2745_v12 = vld [vmem:[%s3071_s11 + $0x170] sm:$0x1] }
  0xea   : > { %v731_v16 = vadd.f32 %v730_v13, %v3762_v7  ;;  %v2710_v7 = vld [vmem:[%s3071_s11 + $0x58] sm:$0xfe]  ;;  %v2729_v13 = vld [vmem:[%s3071_s11 + $0xf0] sm:$0x1] }
  0xeb   : > { %1246 = vmatmul.f32.gmra.mxu3 %v2642_v28  ;;  %v1395_v44 = vrot.slane %v2710_v7, 1  ;;  %v1419_v28 = vrot.slane %v2726_v5, 1  ;;  %v2742_v5 = vld [vmem:[%s3071_s11 + $0x158] sm:$0xfe] }
  0xec   : > { %v772_v21 = vadd.f32 %v771_v43, %v731_v16  ;;  %1155 = vmatmul.f32.gmra.mxu1 %v3804_v24  ;;  %v2715_v24 = vld [vmem:[%s3071_s11 + $0x80] sm:$0xfe]  ;;  %v780_v42 = vpop.f32.mrf.mxu2  ;;  %v2730_v16 = vld [vmem:[%s3071_s11 + $0xf8] sm:$0x1] }
  0xed   : > { %v1398_v1 = vrot.slane %v2715_v24, 1  ;;  %v1397_v9 = vsel %vm466_vm0, %v1395_v44, %v1396_v40  ;;  %v1420_v7 = vrot.slane %v2730_v16, 1  ;;  %v2746_v16 = vld [vmem:[%s3071_s11 + $0x178] sm:$0x1] }
  0xee   : > { %v4050_v29 = vadd.f32 %v3979_v47, %v772_v21  ;;  %v4059_v43 = vpop.f32.mrf.mxu3  ;;  %v1417_v21 = vrot.slane %v2729_v13, 1 }
  0xef   : > { %v1400_v47 = vsel %vm466_vm0, %v1398_v1, %v1399_v46  ;;  %v1389_v1 = vrot.slane %v2708_v34, 1  ;;  %v2724_v34 = vld [vmem:[%s3071_s11 + $0xc8] sm:$0xfe] }
  0xf0   : > { %1598 = vmatmul.f32.gmra.mxu0 %v1400_v47 }
  0xf1   : > { %v733_v59 = vpop.f32.mrf.mxu1  ;;  %1677 = vmatmul.f32.vlgmr.msrb.gmra.mxu2 %v1394_v50  ;;  %v1421_v50 = vsel %vm466_vm0, %v1419_v28, %v1420_v7  ;;  %v1443_v28 = vrot.slane %v2742_v5, 1  ;;  %v1444_v7 = vrot.slane %v2746_v16, 1  ;;  %v2757_v16 = vld [vmem:[%s3071_s11 + $0x1d0] sm:$0xfe] }
  0xf2   : > { %v734_v41 = vadd.f32 %v733_v59, %v3801_v23  ;;  %v2718_v23 = vld [vmem:[%s3071_s11 + $0x98] sm:$0xfe]  ;;  %v1418_v59 = vsel %vm466_vm0, %v1416_v19, %v1417_v21  ;;  %v1441_v19 = vrot.slane %v2745_v12, 1 }
  0xf3   : > { %1718 = vmatmul.f32.vlgmr.msrb.gmra.mxu3 %v1397_v9  ;;  %v1407_v61 = vrot.slane %v2718_v23, 1  ;;  %v2716_v23 = vld [vmem:[%s3071_s11 + $0x88] sm:$0xfe] }
  0xf4   : > { %v775_v57 = vadd.f32 %v774_v62, %v734_v41  ;;  %1158 = vmatmul.f32.gmra.mxu1 %v3839_v37  ;;  %v4074_v62 = vpop.f32.mrf.mxu0  ;;  %v4077_v3 = vpop.f32.mrf.mxu2  ;;  %v2737_v41 = vld [vmem:[%s3071_s11 + $0x130] sm:$0x1] }
  0xf5   : > { %v1409_v15 = vsel %vm466_vm0, %v1407_v61, %v1408_v20  ;;  %v1429_v9 = vrot.slane %v2737_v41, 1  ;;  %v1435_v61 = vrot.slane %v2743_v14, 1  ;;  %v2753_v41 = vld [vmem:[%s3071_s11 + $0x1b0] sm:$0x1]  ;;  %v2755_v14 = vld [vmem:[%s3071_s11 + $0x1c0] sm:$0xfe] }
  0xf6   : > { %v4068_v56 = vadd.f32 %v4011_v63, %v775_v57  ;;  %v1411_v63 = vrot.slane %v2727_v58, 1  ;;  %v4079_v22 = vpop.f32.mrf.mxu3  ;;  %v2734_v57 = vld [vmem:[%s3071_s11 + $0x118] sm:$0xfe] }
  0xf7   : > { %v1431_v58 = vrot.slane %v2734_v57, 1  ;;  %v2750_v57 = vld [vmem:[%s3071_s11 + $0x198] sm:$0xfe] }
  0xf8   : > { %v1412_v11 = vsel %vm466_vm0, %v1410_v0, %v1411_v63 }
  0xf9   : > { %v736_v37 = vpop.f32.mrf.mxu1  ;;  %1601 = vmatmul.f32.gmra.mxu0 %v1412_v11  ;;  %1680 = vmatmul.f32.gmra.mxu2 %v1406_v6  ;;  %v1401_v6 = vrot.slane %v2716_v23, 1  ;;  %v1402_v11 = vrot.slane %v2720_v54, 1  ;;  %v2759_v54 = vld [vmem:[%s3071_s11 + $0x1e0] sm:$0x1] }
  0xfa   : > { %v737_v2 = vadd.f32 %v736_v37, %v3836_v36  ;;  %v1432_v37 = vrot.slane %v2738_v48, 1  ;;  %v2754_v48 = vld [vmem:[%s3071_s11 + $0x1b8] sm:$0x1] }
  0xfb   : > { %1721 = vmatmul.f32.gmra.mxu3 %v1409_v15  ;;  %v1403_v21 = vsel %vm466_vm0, %v1401_v6, %v1402_v11 }
  0xfc   : > { %v778_v26 = vadd.f32 %v777_v17, %v737_v2  ;;  %1161 = vmatmul.f32.gmra.mxu1 %v3874_v52  ;;  %v2731_v17 = vld [vmem:[%s3071_s11 + $0x100] sm:$0xfe]  ;;  %v2712_v52 = vld [vmem:[%s3071_s11 + $0x68] sm:$0x1]  ;;  %v4097_v33 = vpop.f32.mrf.mxu2  ;;  %v4099_v24 = vpop.f32.mrf.mxu0  ;;  %v1433_v15 = vsel %vm466_vm0, %v1431_v58, %v1432_v37 }
  0xfd   : > { %v1422_v38 = vrot.slane %v2731_v17, 1  ;;  %v1390_v46 = vrot.slane %v2712_v52, 1  ;;  %v2747_v17 = vld [vmem:[%s3071_s11 + $0x180] sm:$0xfe]  ;;  %v2728_v52 = vld [vmem:[%s3071_s11 + $0xe8] sm:$0x1] }
  0xfe   : > { %v4087_v36 = vadd.f32 %v818_v32, %v778_v26  ;;  %v4101_v35 = vpop.f32.mrf.mxu3  ;;  %v2741_v26 = vld [vmem:[%s3071_s11 + $0x150] sm:$0xfe]  ;;  %v2736_v37 = vld [vmem:[%s3071_s11 + $0x128] sm:$0x1] }
  0xff   : > { %v1424_v44 = vsel %vm466_vm0, %v1422_v38, %v1423_v31  ;;  %v1446_v38 = vrot.slane %v2747_v17, 1  ;;  %v1447_v31 = vrot.slane %v2751_v25, 1  ;;  %v1426_v5 = vrot.slane %v2736_v37, 1  ;;  %v2766_v37 = vld [vmem:[%s3071_s11 + $0x218] sm:$0xfe] }
 0x100   : > { %4582 = vst [vmem:[#allocation6_spill] sm:$0xff] %v4087_v36  ;;  %v1464_v17 = vrot.slane %v2757_v16, 1  ;;  %v2748_v16 = vld [vmem:[%s3071_s11 + $0x188] sm:$0xfe]  ;;  %v2102_v36 = vld [vmem:[#allocation3 + $0x270] sm:$0xff] }
 0x101   : > { %v739_v27 = vpop.f32.mrf.mxu1  ;;  %1604 = vmatmul.f32.gmra.mxu0 %v1424_v44  ;;  %1683 = vmatmul.f32.gmra.mxu2 %v1418_v59 }
 0x102   : > { %v740_v32 = vadd.f32 %v739_v27, %v3871_v51  ;;  %v2733_v51 = vld [vmem:[%s3071_s11 + $0x110] sm:$0xfe] }
 0x103   : > { %v1428_v49 = vrot.slane %v2733_v51, 1  ;;  %1724 = vmatmul.f32.gmra.mxu3 %v1421_v50  ;;  %v2749_v51 = vld [vmem:[%s3071_s11 + $0x190] sm:$0xfe]  ;;  %v1445_v50 = vsel %vm466_vm0, %v1443_v28, %v1444_v7  ;;  %v2763_v28 = vld [vmem:[%s3071_s11 + $0x200] sm:$0xfe] }
 0x104   : > { %v781_v40 = vadd.f32 %v780_v42, %v740_v32  ;;  %1164 = vmatmul.f32.gmra.mxu1 %v2640_v18  ;;  %v1391_v42 = vsel %vm466_vm0, %v1389_v1, %v1390_v46  ;;  %v4120_v20 = vpop.f32.mrf.mxu2  ;;  %v4128_v13 = vpop.f32.mrf.mxu0  ;;  %v1440_v18 = vrot.slane %v2741_v26, 1  ;;  %v1413_v1 = vrot.slane %v2724_v34, 1  ;;  %v2762_v34 = vld [vmem:[%s3071_s11 + $0x1f8] sm:$0x1]  ;;  %v2767_v7 = vld [vmem:[%s3071_s11 + $0x220] sm:$0x1] }
 0x105   : > { %v1430_v63 = vsel %vm466_vm0, %v1428_v49, %v1429_v9  ;;  %v1414_v46 = vrot.slane %v2728_v52, 1  ;;  %v1452_v9 = vrot.slane %v2749_v51, 1  ;;  %v2740_v51 = vld [vmem:[%s3071_s11 + $0x148] sm:$0xfe] }
 0x106   : > { %v4109_v47 = vadd.f32 %v4059_v43, %v781_v40  ;;  %v1434_v43 = vrot.slane %v2739_v53, 1  ;;  %v4122_v0 = vpop.f32.mrf.mxu3  ;;  %v1442_v44 = vsel %vm466_vm0, %v1440_v18, %v1441_v19  ;;  %v1448_v40 = vsel %vm466_vm0, %v1446_v38, %v1447_v31  ;;  %v2732_v53 = vld [vmem:[%s3071_s11 + $0x108] sm:$0xfe]  ;;  %v2761_v18 = vld [vmem:[%s3071_s11 + $0x1f0] sm:$0x1] }
 0x107   : > { %v1415_v23 = vsel %vm466_vm0, %v1413_v1, %v1414_v46  ;;  %v1465_v25 = vrot.slane %v2761_v18, 1  ;;  %v1470_v1 = vrot.slane %v2763_v28, 1  ;;  %v1471_v46 = vrot.slane %v2767_v7, 1  ;;  %v2752_v18 = vld [vmem:[%s3071_s11 + $0x1a8] sm:$0x1] }
 0x108   : > { %4583 = vst [vmem:[#allocation7_spill] sm:$0xff] %v4109_v47  ;;  %v1436_v2 = vsel %vm466_vm0, %v1434_v43, %v1435_v61  ;;  %v1455_v43 = vrot.slane %v2750_v57, 1  ;;  %v1456_v61 = vrot.slane %v2754_v48, 1  ;;  %v1814_v47 = vld [vmem:[#allocation3 + $0x30] sm:$0xff] }
 0x109   : > { %v4117_v60 = vpop.f32.mrf.mxu1  ;;  %1607 = vmatmul.f32.gmra.mxu0 %v1436_v2  ;;  %1686 = vmatmul.f32.gmra.mxu2 %v1430_v63  ;;  %v1458_v63 = vrot.slane %v2755_v14, 1  ;;  %v1459_v2 = vrot.slane %v2759_v54, 1  ;;  %v1466_v48 = vsel %vm466_vm0, %v1464_v17, %v1465_v25  ;;  %v1449_v17 = vrot.slane %v2748_v16, 1 }
 0x10a   : > { %v1457_v19 = vsel %vm466_vm0, %v1455_v43, %v1456_v61  ;;  %v2770_v43 = vld [vmem:[%s3071_s11 + $0x238] sm:$0x1]  ;;  %v1450_v25 = vrot.slane %v2752_v18, 1 }
 0x10b   : > { %1727 = vmatmul.f32.gmra.mxu3 %v1433_v15  ;;  %v1460_v12 = vsel %vm466_vm0, %v1458_v63, %v1459_v2  ;;  %v1425_v15 = vrot.slane %v2732_v53, 1  ;;  %v1437_v53 = vrot.slane %v2740_v51, 1 }
 0x10c   : > { %1636 = vmatmul.f32.vlgmr.msra.gmra.mxu1 %v1391_v42  ;;  %v4140_v32 = vpop.f32.mrf.mxu2  ;;  %v4151_v49 = vpop.f32.mrf.mxu0  ;;  %v1453_v42 = vrot.slane %v2753_v41, 1  ;;  %v2744_v41 = vld [vmem:[%s3071_s11 + $0x168] sm:$0x1]  ;;  %v1451_v7 = vsel %vm466_vm0, %v1449_v17, %v1450_v25 }
 0x10d   : > { %4584 = vst [vmem:[#allocation8_spill] sm:$0xff] %v4151_v49  ;;  %v1427_v52 = vsel %vm466_vm0, %v1425_v15, %v1426_v5  ;;  %v1438_v14 = vrot.slane %v2744_v41, 1  ;;  %v1480_v15 = vrot.slane %v2770_v43, 1 }
 0x10e   : > { %v4142_v59 = vpop.f32.mrf.mxu3  ;;  %v1454_v26 = vsel %vm466_vm0, %v1452_v9, %v1453_v42  ;;  %v1472_v9 = vsel %vm466_vm0, %v1470_v1, %v1471_v46  ;;  %v2765_v42 = vld [vmem:[%s3071_s11 + $0x210] sm:$0xfe] }
 0x10f   : > { %v1476_v61 = vrot.slane %v2765_v42, 1 }
 0x111   : > { %v4137_v27 = vpop.f32.mrf.mxu1  ;;  %1610 = vmatmul.f32.gmra.mxu0 %v1448_v40  ;;  %1689 = vmatmul.f32.gmra.mxu2 %v1442_v44  ;;  %v1468_v40 = vrot.slane %v2762_v34, 1 }
 0x113   : > { %1730 = vmatmul.f32.gmra.mxu3 %v1445_v50 }
 0x114   : > { %1639 = vmatmul.f32.gmra.mxu1 %v1403_v21  ;;  %v4160_v6 = vpop.f32.mrf.mxu2  ;;  %v2758_v21 = vld [vmem:[%s3071_s11 + $0x1d8] sm:$0xfe]  ;;  %v4174_v38 = vpop.f32.mrf.mxu0 }
 0x115   : > { %4585 = vst [vmem:[#allocation9_spill] sm:$0xff] %v4174_v38  ;;  %v1467_v44 = vrot.slane %v2758_v21, 1  ;;  %v1838_v38 = vld [vmem:[#allocation3 + $0xa8] sm:$0xff] }
 0x116   : > { %v4162_v11 = vpop.f32.mrf.mxu3 }
 0x117   : > { %v1469_v54 = vsel %vm466_vm0, %v1467_v44, %v1468_v40  ;;  %v2756_v44 = vld [vmem:[%s3071_s11 + $0x1c8] sm:$0xfe]  ;;  %v2760_v40 = vld [vmem:[%s3071_s11 + $0x1e8] sm:$0x1] }
 0x118   : > { %v1461_v41 = vrot.slane %v2756_v44, 1 }
 0x119   : > { %v4157_v58 = vpop.f32.mrf.mxu1  ;;  %1613 = vmatmul.f32.gmra.mxu0 %v1460_v12  ;;  %1692 = vmatmul.f32.gmra.mxu2 %v1454_v26  ;;  %v1439_v26 = vsel %vm466_vm0, %v1437_v53, %v1438_v14  ;;  %v1479_v12 = vrot.slane %v2766_v37, 1  ;;  %v2764_v53 = vld [vmem:[%s3071_s11 + $0x208] sm:$0xfe]  ;;  %v2768_v14 = vld [vmem:[%s3071_s11 + $0x228] sm:$0x1]  ;;  %v1847_v37 = vld [vmem:[#allocation3 + $0xf0] sm:$0xff] }
 0x11b   : > { %1733 = vmatmul.f32.gmra.mxu3 %v1457_v19 }
 0x11c   : > { %1642 = vmatmul.f32.gmra.mxu1 %v1415_v23  ;;  %v4180_v50 = vpop.f32.mrf.mxu2  ;;  %v2769_v23 = vld [vmem:[%s3071_s11 + $0x230] sm:$0x1]  ;;  %v4194_v5 = vpop.f32.mrf.mxu0 }
 0x11d   : > { %4586 = vst [vmem:[#allocation10_spill] sm:$0xff] %v4180_v50  ;;  %v1477_v63 = vrot.slane %v2769_v23, 1 }
 0x11e   : > { %v4182_v57 = vpop.f32.mrf.mxu3 }
 0x11f   : > { %4587 = vst [vmem:[#allocation11_spill] sm:$0xff] %v4182_v57  ;;  %v1478_v34 = vsel %vm466_vm0, %v1476_v61, %v1477_v63  ;;  %v1473_v61 = vrot.slane %v2764_v53, 1  ;;  %v1474_v63 = vrot.slane %v2768_v14, 1  ;;  %v1953_v53 = vld [vmem:[#allocation3 + $0x168] sm:$0xff]  ;;  %v2025_v57 = vld [vmem:[#allocation3 + $0x1d8] sm:$0xff] }
 0x120   : > { %v1842_v14 = vld [vmem:[#allocation3 + $0xc8] sm:$0xff] }
 0x121   : > { %v4176_v31 = vpop.f32.mrf.mxu1  ;;  %1616 = vmatmul.f32.gmra.mxu0 %v1472_v9  ;;  %1695 = vmatmul.f32.gmra.mxu2 %v1466_v48  ;;  %v1462_v48 = vrot.slane %v2760_v40, 1  ;;  %v1848_v9 = vld [vmem:[#allocation3 + $0xf8] sm:$0xff]  ;;  %v1475_v16 = vsel %vm466_vm0, %v1473_v61, %v1474_v63  ;;  %v1843_v40 = vld [vmem:[#allocation3 + $0xd0] sm:$0xff]  ;;  %v1952_v61 = vld [vmem:[#allocation3 + $0x160] sm:$0xff] }
 0x122   : > { %1849 = vmatpush.msra.mxu0 %v1848_v9  ;;  %v1954_v9 = vld [vmem:[#allocation3 + $0x170] sm:$0xff] }
 0x123   : > { %1736 = vmatmul.f32.gmra.mxu3 %v1469_v54  ;;  %v1463_v23 = vsel %vm466_vm0, %v1461_v41, %v1462_v48  ;;  %v1955_v41 = vld [vmem:[#allocation3 + $0x178] sm:$0xff] }
 0x124   : > { %1645 = vmatmul.f32.gmra.mxu1 %v1427_v52  ;;  %v4198_v19 = vpop.f32.mrf.mxu2  ;;  %v1481_v52 = vsel %vm466_vm0, %v1479_v12, %v1480_v15  ;;  %v4213_v51 = vpop.f32.mrf.mxu0  ;;  %1850 = vmatpush.msra.mxu0 %v1847_v37  ;;  %v1846_v12 = vld [vmem:[#allocation3 + $0xe8] sm:$0xff]  ;;  %v1822_v37 = vld [vmem:[#allocation3 + $0x70] sm:$0xff] }
 0x125   : > { %4588 = vst [vmem:[#allocation12_spill] sm:$0xff] %v4198_v19  ;;  %1956 = vmatpush.msra.mxu2 %v1955_v41 }
 0x126   : > { %v4200_v21 = vpop.f32.mrf.mxu3  ;;  %1851 = vmatpush.msra.mxu0 %v1846_v12 }
 0x127   : > { %4589 = vst [vmem:[#allocation13_spill] sm:$0xff] %v4200_v21  ;;  %1957 = vmatpush.msra.mxu2 %v1954_v9  ;;  %v1820_v9 = vld [vmem:[#allocation3 + $0x60] sm:$0xff] }
 0x129   : > { %v4191_v2 = vpop.f32.mrf.mxu1  ;;  %1698 = vmatmul.f32.gmra.mxu2 %v1478_v34  ;;  %v1845_v34 = vld [vmem:[#allocation3 + $0xe0] sm:$0xff] }
 0x12a   : > { %1852 = vmatpush.msra.mxu0 %v1845_v34  ;;  %1958 = vmatpush.msra.mxu2 %v1953_v53  ;;  %v1841_v34 = vld [vmem:[#allocation3 + $0xc0] sm:$0xff]  ;;  %v1819_v53 = vld [vmem:[#allocation3 + $0x58] sm:$0xff] }
 0x12b   : > { %1739 = vmatmul.f32.gmra.mxu3 %v1481_v52  ;;  %v1844_v52 = vld [vmem:[#allocation3 + $0xd8] sm:$0xff] }
 0x12c   : > { %1648 = vmatmul.f32.gmra.mxu1 %v1439_v26  ;;  %v4209_v1 = vpop.f32.mrf.mxu2  ;;  %v4224_v26 = vpop.f32.mrf.mxu0  ;;  %1853 = vmatpush.msra.mxu0 %v1844_v52  ;;  %v1821_v52 = vld [vmem:[#allocation3 + $0x68] sm:$0xff] }
 0x12d   : > { %4591 = vst [vmem:[#allocation15_spill] sm:$0xff] %v4209_v1  ;;  %1959 = vmatpush.msra.mxu2 %v1952_v61  ;;  %v1948_v1 = vld [vmem:[#allocation3 + $0x140] sm:$0xff] }
 0x12e   : > { %v4211_v46 = vpop.f32.mrf.mxu3  ;;  %1854 = vmatpush.msra.mxu0 %v1843_v40  ;;  %v1951_v40 = vld [vmem:[#allocation3 + $0x158] sm:$0xff] }
 0x12f   : > { %4592 = vst [vmem:[#allocation16_spill] sm:$0xff] %v4211_v46  ;;  %1960 = vmatpush.msra.mxu2 %v1951_v40  ;;  %v1949_v46 = vld [vmem:[#allocation3 + $0x148] sm:$0xff]  ;;  %v1947_v40 = vld [vmem:[#allocation3 + $0x138] sm:$0xff] }
 0x130   : > { %1855 = vmatpush.msra.mxu0 %v1842_v14  ;;  %v1840_v14 = vld [vmem:[#allocation3 + $0xb8] sm:$0xff] }
 0x131   : > { %v4204_v28 = vpop.f32.mrf.mxu1 }
 0x132   : > { %4590 = vst [vmem:[#allocation14_spill] sm:$0xff] %v4204_v28  ;;  %1856 = vmatpush.msra.mxu0 %v1841_v34  ;;  %v1839_v34 = vld [vmem:[#allocation3 + $0xb0] sm:$0xff] }
 0x134   : > { %1651 = vmatmul.f32.gmra.mxu1 %v1451_v7  ;;  %v4220_v54 = vpop.f32.mrf.mxu2  ;;  %v4233_v25 = vpop.f32.mrf.mxu0  ;;  %1857 = vmatpush.msra.mxu0 %v1840_v14  ;;  %v1815_v14 = vld [vmem:[#allocation3 + $0x38] sm:$0xff] }
 0x136   : > { %v4222_v43 = vpop.f32.mrf.mxu3  ;;  %1858 = vmatpush.msra.mxu0 %v1839_v34  ;;  %v1944_v34 = vld [vmem:[#allocation3 + $0x120] sm:$0xff] }
 0x138   : > { %1859 = vmatpush.msra.mxu0 %v1838_v38  ;;  %v2026_v38 = vld [vmem:[#allocation3 + $0x1e0] sm:$0xff] }
 0x139   : > { %v4215_v42 = vpop.f32.mrf.mxu1 }
 0x13a   : > { %4593 = vst [vmem:[#allocation17_spill] sm:$0xff] %v4215_v42  ;;  %v2027_v42 = vld [vmem:[#allocation3 + $0x1e8] sm:$0xff] }
 0x13c   : > { %1654 = vmatmul.f32.gmra.mxu1 %v1463_v23  ;;  %v4229_v18 = vpop.f32.mrf.mxu2  ;;  %v1823_v23 = vld [vmem:[#allocation3 + $0x78] sm:$0xff]  ;;  %v4243_v12 = vpop.f32.mrf.mxu0 }
 0x13d   : > { %1890 = vmatpush.msrb.mxu1 %v1823_v23  ;;  %v1950_v23 = vld [vmem:[#allocation3 + $0x150] sm:$0xff] }
 0x13e   : > { %v4231_v17 = vpop.f32.mrf.mxu3  ;;  %1961 = vmatpush.msra.mxu2 %v1950_v23  ;;  %v1946_v23 = vld [vmem:[#allocation3 + $0x130] sm:$0xff] }
 0x13f   : > { %1891 = vmatpush.msrb.mxu1 %v1822_v37  ;;  %v1818_v37 = vld [vmem:[#allocation3 + $0x50] sm:$0xff] }
 0x140   : > { %1962 = vmatpush.msra.mxu2 %v1949_v46  ;;  %v1816_v46 = vld [vmem:[#allocation3 + $0x40] sm:$0xff] }
 0x141   : > { %v4226_v15 = vpop.f32.mrf.mxu1  ;;  %1892 = vmatpush.msrb.mxu1 %v1821_v52  ;;  %v1817_v52 = vld [vmem:[#allocation3 + $0x48] sm:$0xff] }
 0x142   : > { %4594 = vst [vmem:[#allocation18_spill] sm:$0xff] %v4226_v15  ;;  %1963 = vmatpush.msra.mxu2 %v1948_v1  ;;  %v2028_v1 = vld [vmem:[#allocation3 + $0x1f0] sm:$0xff] }
 0x143   : > { %1893 = vmatpush.msrb.mxu1 %v1820_v9 }
 0x144   : > { %1657 = vmatmul.f32.gmra.mxu1 %v1475_v16  ;;  %v4237_v44 = vpop.f32.mrf.mxu2  ;;  %v4255_v9 = vpop.f32.mrf.mxu0  ;;  %1964 = vmatpush.msra.mxu2 %v1947_v40  ;;  %v1837_v40 = vld [vmem:[#allocation3 + $0xa0] sm:$0xff] }
 0x145   : > { %1894 = vmatpush.msrb.mxu1 %v1819_v53  ;;  %v2029_v53 = vld [vmem:[#allocation3 + $0x1f8] sm:$0xff]  ;;  %1860 = vmatpush.msra.mxu0 %v1837_v40  ;;  %v1941_v40 = vld [vmem:[#allocation3 + $0x108] sm:$0xff] }
 0x146   : > { %v4239_v48 = vpop.f32.mrf.mxu3  ;;  %1965 = vmatpush.msra.mxu2 %v1946_v23  ;;  %2030 = vmatpush.msra.mxu3 %v2029_v53  ;;  %v4581_v23 = vmov 0.0  }
 0x147   : > { %1895 = vmatpush.msrb.mxu1 %v1818_v37  ;;  %v1945_v37 = vld [vmem:[#allocation3 + $0x128] sm:$0xff]  ;;  %1773 = vst [vmem:[#allocation2 + $0x10] sm:$0xff] %v4581_v23 }
 0x148   : > { %1966 = vmatpush.msra.mxu2 %v1945_v37  ;;  %2031 = vmatpush.msra.mxu3 %v2028_v1  ;;  %1774 = vst [vmem:[#allocation2 + $0x18] sm:$0x3] %v4581_v23  ;;  %v1812_v37 = vld [vmem:[#allocation3 + $0x20] sm:$0xff]  ;;  %v1942_v1 = vld [vmem:[#allocation3 + $0x110] sm:$0xff] }
 0x149   : > { %v4235_v7 = vpop.f32.mrf.mxu1  ;;  %1896 = vmatpush.msrb.mxu1 %v1817_v52  ;;  %1771 = vst [vmem:[#allocation2] sm:$0xff] %v4581_v23 }
 0x14a   : > { %1967 = vmatpush.msra.mxu2 %v1944_v34  ;;  %2032 = vmatpush.msra.mxu3 %v2027_v42  ;;  %1772 = vst [vmem:[#allocation2 + $0x8] sm:$0x3] %v4581_v23  ;;  %v1836_v34 = vld [vmem:[#allocation3 + $0x98] sm:$0xff] }
 0x14b   : > { %1897 = vmatpush.msrb.mxu1 %v1816_v46  ;;  %v1813_v46 = vld [vmem:[#allocation3 + $0x28] sm:$0xff]  ;;  %1775 = vst [vmem:[#allocation2 + $0x20] sm:$0xff] %v4581_v23  ;;  %v1811_v42 = vld [vmem:[#allocation3 + $0x18] sm:$0xff]  ;;  %1861 = vmatpush.msra.mxu0 %v1836_v34 }
 0x14c   : > { %v4245_v16 = vpop.f32.mrf.mxu2  ;;  %2033 = vmatpush.msra.mxu3 %v2026_v38  ;;  %1776 = vst [vmem:[#allocation2 + $0x28] sm:$0x3] %v4581_v23  ;;  %v1810_v38 = vld [vmem:[#allocation3 + $0x10] sm:$0xff]  ;;  %v1834_v34 = vld [vmem:[#allocation3 + $0x88] sm:$0xff] }
 0x14d   : > { %1898 = vmatpush.msrb.mxu1 %v1815_v14  ;;  %v1943_v14 = vld [vmem:[#allocation3 + $0x118] sm:$0xff]  ;;  %1777 = vst [vmem:[#allocation2 + $0x30] sm:$0xff] %v4581_v23 }
 0x14e   : > { %v4247_v41 = vpop.f32.mrf.mxu3  ;;  %1968 = vmatpush.msra.mxu2 %v1943_v14  ;;  %2034 = vmatpush.msra.mxu3 %v2025_v57  ;;  %v1835_v14 = vld [vmem:[#allocation3 + $0x90] sm:$0xff]  ;;  %1778 = vst [vmem:[#allocation2 + $0x38] sm:$0x3] %v4581_v23  ;;  %v2023_v57 = vld [vmem:[#allocation3 + $0x1c8] sm:$0xff] }
 0x14f   : > { %1899 = vmatpush.msrb.mxu1 %v1814_v47  ;;  %v4266_v47 = vpop.f32.mrf.mxu0  ;;  %1862 = vmatpush.msra.mxu0 %v1835_v14  ;;  %1779 = vst [vmem:[#allocation2 + $0x40] sm:$0xff] %v4581_v23  ;;  %v1808_v14 = vld [vmem:[#allocation3] sm:$0xff] }
 0x150   : > { %4597 = vst [vmem:[#allocation21_spill] sm:$0xff] %v4266_v47  ;;  %1969 = vmatpush.msra.mxu2 %v1942_v1  ;;  %v1809_v47 = vld [vmem:[#allocation3 + $0x8] sm:$0xff] }
 0x151   : > { %v4241_v63 = vpop.f32.mrf.mxu1  ;;  %1900 = vmatpush.msrb.mxu1 %v1813_v46  ;;  %v2024_v46 = vld [vmem:[#allocation3 + $0x1d0] sm:$0xff]  ;;  %1780 = vst [vmem:[#allocation2 + $0x48] sm:$0x3] %v4581_v23  ;;  %1863 = vmatpush.msra.mxu0 %v1834_v34 }
 0x152   : > { %1970 = vmatpush.msra.mxu2 %v1941_v40  ;;  %2035 = vmatpush.msra.mxu3 %v2024_v46  ;;  %1781 = vst [vmem:[#allocation2 + $0x50] sm:$0xff] %v4581_v23  ;;  %v1833_v40 = vld [vmem:[#allocation3 + $0x80] sm:$0xff] }
 0x153   : > { %1901 = vmatpush.msrb.mxu1 %v1812_v37  ;;  %v1940_v37 = vld [vmem:[#allocation3 + $0x100] sm:$0xff]  ;;  %1782 = vst [vmem:[#allocation2 + $0x58] sm:$0x3] %v4581_v23  ;;  %1864 = vmatpush.msra.mxu0 %v1833_v40  ;;  %v2019_v40 = vld [vmem:[#allocation3 + $0x1a8] sm:$0xff] }
 0x154   : > { %v4251_v61 = vpop.f32.mrf.mxu2  ;;  %1971 = vmatpush.msra.mxu2 %v1940_v37  ;;  %2036 = vmatpush.msra.mxu3 %v2023_v57  ;;  %v1931_v46 = vld [vmem:[#allocation2 + $0x2] sm:$0xff]  ;;  %1783 = vst [vmem:[#allocation2 + $0x60] sm:$0xff] %v4581_v23  ;;  %v2021_v37 = vld [vmem:[#allocation3 + $0x1b8] sm:$0xff] }
 0x155   : > { %1902 = vmatpush.msrb.mxu1 %v1811_v42  ;;  %v2022_v42 = vld [vmem:[#allocation3 + $0x1c0] sm:$0xff]  ;;  %1972 = vmatmul.f32.vlgmr.msra.gmra.mxu2 %v1931_v46  ;;  %1784 = vst [vmem:[#allocation2 + $0x68] sm:$0x3] %v4581_v23 }
 0x156   : > { %v4253_v21 = vpop.f32.mrf.mxu3  ;;  %2037 = vmatpush.msra.mxu3 %v2022_v42  ;;  %1785 = vst [vmem:[#allocation2 + $0x70] sm:$0xff] %v4581_v23 }
 0x157   : > { %1903 = vmatpush.msrb.mxu1 %v1810_v38  ;;  %v1824_v38 = vld [vmem:[#allocation2 + $0x1] sm:$0xff]  ;;  %v4284_v57 = vpop.f32.mrf.mxu0  ;;  %1786 = vst [vmem:[#allocation2 + $0x78] sm:$0x3] %v4581_v23 }
 0x158   : > { %4600 = vst [vmem:[#allocation24_spill] sm:$0xff] %v4284_v57  ;;  %2038 = vmatpush.msra.mxu3 %v2021_v37  ;;  %1865 = vmatmul.f32.vlgmr.msra.gmra.mxu0 %v1824_v38  ;;  %v2017_v38 = vld [vmem:[#allocation3 + $0x198] sm:$0xff]  ;;  %v2016_v37 = vld [vmem:[#allocation3 + $0x190] sm:$0xff]  ;;  %v2015_v57 = vld [vmem:[#allocation3 + $0x188] sm:$0xff] }
 0x159   : > { %v4249_v15 = vpop.f32.mrf.mxu1  ;;  %1904 = vmatpush.msrb.mxu1 %v1809_v47  ;;  %v2020_v47 = vld [vmem:[#allocation3 + $0x1b0] sm:$0xff]  ;;  %1787 = vst [vmem:[#allocation2 + $0x80] sm:$0xff] %v4581_v23 }
 0x15a   : > { %2039 = vmatpush.msra.mxu3 %v2020_v47  ;;  %1788 = vst [vmem:[#allocation2 + $0x88] sm:$0x3] %v4581_v23 }
 0x15b   : > { %1905 = vmatpush.msrb.mxu1 %v1808_v14  ;;  %1789 = vst [vmem:[#allocation2 + $0x90] sm:$0xff] %v4581_v23  ;;  %v2018_v14 = vld [vmem:[#allocation3 + $0x1a0] sm:$0xff] }
 0x15c   : > { %v4259_v52 = vpop.f32.mrf.mxu2  ;;  %1906 = vmatmul.f32.vlgmr.msrb.gmra.mxu1 %v4581_v23  ;;  %2040 = vmatpush.msra.mxu3 %v2019_v40  ;;  %1790 = vst [vmem:[#allocation2 + $0x98] sm:$0x3] %v4581_v23  ;;  %v2103_v40 = vld [vmem:[#allocation3 + $0x278] sm:$0xff] }
 0x15d   : > { %4595 = vst [vmem:[#allocation19_spill] sm:$0xff] %v4259_v52  ;;  %2104 = vmatpush.msrb.mxu0 %v2103_v40  ;;  %v2101_v52 = vld [vmem:[#allocation3 + $0x268] sm:$0xff] }
 0x15e   : > { %v4262_v53 = vpop.f32.mrf.mxu3  ;;  %2041 = vmatpush.msra.mxu3 %v2018_v14  ;;  %v842_v14 = vadd.f32 %v3977_v45, %v3923_v39  ;;  %v845_v39 = vadd.f32 %v4024_v4, %v3956_v55  ;;  %v4322_v55 = vld [vmem:[%s4577_s2] ss:$0 sm:$0xff]  ;;  %v2099_v4 = vld [vmem:[#allocation3 + $0x258] sm:$0xff] }
 0x15f   : > { %4596 = vst [vmem:[#allocation20_spill] sm:$0xff] %v4262_v53  ;;  %2105 = vmatpush.msrb.mxu0 %v2102_v36  ;;  %v1148_v36 = vadd.f32 %v4241_v63, %v4213_v51  ;;  %v1151_v63 = vadd.f32 %v4249_v15, %v4224_v26  ;;  %v2252_v26 = vld [vmem:[#allocation3 + $0x378] sm:$0xff]  ;;  %v2096_v15 = vld [vmem:[#allocation3 + $0x240] sm:$0xff] }
 0x160   : > { %2042 = vmatpush.msra.mxu3 %v2017_v38  ;;  %v1145_v38 = vadd.f32 %v4235_v7, %v4194_v5  ;;  %2253 = vmatpush.msrb.mxu2 %v2252_v26  ;;  %v2093_v26 = vld [vmem:[#allocation3 + $0x228] sm:$0xff] }
 0x161   : > { %v4257_v19 = vpop.f32.mrf.mxu1  ;;  %2106 = vmatpush.msrb.mxu0 %v2101_v52 }
 0x162   : > { %2043 = vmatpush.msra.mxu3 %v2016_v37  ;;  %v883_v37 = vadd.f32 %v4117_v60, %v842_v14 }
 0x164   : > { %v4275_v1 = vpop.f32.mrf.mxu2  ;;  %2044 = vmatpush.msra.mxu3 %v2015_v57  ;;  %v1186_v57 = vadd.f32 %v4220_v54, %v1145_v38  ;;  %v924_v40 = vadd.f32 %v4077_v3, %v883_v37  ;;  %v886_v54 = vadd.f32 %v4137_v27, %v845_v39  ;;  %v1189_v3 = vadd.f32 %v4229_v18, %v1148_v36 }
 0x165   : > { %4598 = vst [vmem:[#allocation22_spill] sm:$0xff] %v4275_v1  ;;  %v848_v27 = vadd.f32 %v4054_v30, %v3992_v10  ;;  %v1192_v10 = vadd.f32 %v4237_v44, %v1151_v63  ;;  %v851_v44 = vadd.f32 %v4074_v62, %v4027_v8 }
 0x166   : > { %v4278_v49 = vpop.f32.mrf.mxu3  ;;  %v1227_v45 = vadd.f32 %v4222_v43, %v1186_v57  ;;  %v965_v5 = vadd.f32 %v4079_v22, %v924_v40  ;;  %v2098_v43 = vld [vmem:[#allocation3 + $0x250] sm:$0xff]  ;;  %v1230_v18 = vadd.f32 %v4231_v17, %v1189_v3  ;;  %v2097_v17 = vld [vmem:[#allocation3 + $0x248] sm:$0xff] }
 0x167   : > { %4599 = vst [vmem:[#allocation23_spill] sm:$0xff] %v4278_v49  ;;  %v2250_v3 = vld [vmem:[#allocation3 + $0x368] sm:$0xff]  ;;  %v892_v62 = vadd.f32 %v4176_v31, %v851_v44  ;;  %v2174_v31 = vld [vmem:[#allocation3 + $0x2e0] sm:$0xff] }
 0x168   : > { %v1250_v52 = vadd.f32 %v1227_v45, %v965_v5  ;;  %v1233_v5 = vadd.f32 %v4239_v48, %v1192_v10  ;;  %v2246_v44 = vld [vmem:[#allocation3 + $0x348] sm:$0xff] }
 0x169   : > { %v4272_v53 = vpop.f32.mrf.mxu1 }
 0x16c   : > { %v4292_v42 = vpop.f32.mrf.mxu2 }
 0x16d   : > { %4601 = vst [vmem:[#allocation25_spill] sm:$0xff] %v4292_v42  ;;  %v1596_v42 = vpop.f32.mrf.mxu0 }
 0x16e   : > { %v4295_v46 = vpop.f32.mrf.mxu3 }
 0x16f   : > { %4602 = vst [vmem:[#allocation26_spill] sm:$0xff] %v4295_v46  ;;  %v2014_v46 = vld [vmem:[#allocation3 + $0x180] sm:$0xff] }
 0x170   : > { %2045 = vmatpush.msra.mxu3 %v2014_v46  ;;  %v2100_v46 = vld [vmem:[#allocation3 + $0x260] sm:$0xff] }
 0x171   : > { %v4289_v34 = vpop.f32.mrf.mxu1  ;;  %2107 = vmatpush.msrb.mxu0 %v2100_v46  ;;  %v889_v46 = vadd.f32 %v4157_v58, %v848_v27  ;;  %v2326_v27 = vld [vmem:[#allocation3 + $0x3f8] sm:$0xff] }
 0x172   : > { %2327 = vmatpush.msrb.mxu3 %v2326_v27 }
 0x173   : > { %2108 = vmatpush.msrb.mxu0 %v2099_v4  ;;  %v930_v58 = vadd.f32 %v4120_v20, %v889_v46  ;;  %v2247_v46 = vld [vmem:[#allocation3 + $0x350] sm:$0xff] }
 0x174   : > { %v1678_v49 = vpop.f32.mrf.mxu2 }
 0x175   : > { %v1599_v23 = vpop.f32.mrf.mxu0  ;;  %2109 = vmatpush.msrb.mxu0 %v2098_v43  ;;  %v971_v8 = vadd.f32 %v4122_v0, %v930_v58  ;;  %v2095_v0 = vld [vmem:[#allocation3 + $0x238] sm:$0xff] }
 0x176   : > { %v1719_v1 = vpop.f32.mrf.mxu3 }
 0x177   : > { %2110 = vmatpush.msrb.mxu0 %v2097_v17 }
 0x179   : > { %v4300_v47 = vpop.f32.mrf.mxu1  ;;  %2111 = vmatpush.msrb.mxu0 %v2096_v15  ;;  %v2324_v15 = vld [vmem:[#allocation3 + $0x3e8] sm:$0xff] }
 0x17a   : > { %4603 = vst [vmem:[#allocation27_spill] sm:$0xff] %v4300_v47 }
 0x17b   : > { %2112 = vmatpush.msrb.mxu0 %v2095_v0 }
 0x17c   : > { %v1681_v47 = vpop.f32.mrf.mxu2 }
 0x17d   : > { %v1602_v14 = vpop.f32.mrf.mxu0 }
 0x17e   : > { %v1722_v28 = vpop.f32.mrf.mxu3 }
 0x181   : > { %v4302_v50 = vpop.f32.mrf.mxu1 }
 0x182   : > { %4604 = vst [vmem:[#allocation28_spill] sm:$0xff] %v4302_v50 }
 0x184   : > { %v1684_v37 = vpop.f32.mrf.mxu2 }
 0x185   : > { %v1605_v45 = vpop.f32.mrf.mxu0 }
 0x186   : > { %v1725_v51 = vpop.f32.mrf.mxu3 }
 0x189   : > { %v1637_v50 = vpop.f32.mrf.mxu1 }
 0x18a   : > { %v1638_v60 = vadd.f32 %v1637_v50, %v1596_v42  ;;  %v927_v50 = vadd.f32 %v4097_v33, %v886_v54  ;;  %v1154_v54 = vadd.f32 %v4257_v19, %v4233_v25  ;;  %v2249_v19 = vld [vmem:[#allocation3 + $0x360] sm:$0xff]  ;;  %v1252_v25 = vadd.f32 %v1233_v5, %v971_v8 }
 0x18b   : > { %v1160_v8 = vadd.f32 %v4289_v34, %v4255_v9  ;;  %v2168_v9 = vld [vmem:[#allocation3 + $0x2b0] sm:$0xff] }
 0x18c   : > { %v1679_v7 = vadd.f32 %v1678_v49, %v1638_v60  ;;  %v968_v57 = vadd.f32 %v4101_v35, %v927_v50  ;;  %v2251_v35 = vld [vmem:[#allocation3 + $0x370] sm:$0xff]  ;;  %v1687_v60 = vpop.f32.mrf.mxu2 }
 0x18d   : > { %2254 = vmatpush.msrb.mxu2 %v2251_v35 }
 0x18e   : > { %v1720_v38 = vadd.f32 %v1719_v1, %v1679_v7  ;;  %v1251_v39 = vadd.f32 %v1230_v18, %v968_v57  ;;  %v4345_v20 = vpop.f32.mrf.mxu3  ;;  %v933_v18 = vadd.f32 %v4140_v32, %v892_v62  ;;  %v1608_v57 = vpop.f32.mrf.mxu0 }
 0x18f   : > { %2255 = vmatpush.msrb.mxu2 %v2250_v3 }
 0x190   : > { %v1743_v22 = vadd.f32 %v1720_v38, %v1250_v52  ;;  %v2175_v38 = vld [vmem:[#allocation3 + $0x2e8] sm:$0xff] }
 0x191   : > { %v1640_v49 = vpop.f32.mrf.mxu1  ;;  %2256 = vmatpush.msrb.mxu2 %v2249_v19  ;;  %v2090_v19 = vld [vmem:[#allocation3 + $0x210] sm:$0xff] }
 0x192   : > { %v1755_v1 = vadd.f32 %v4322_v55, %v1743_v22  ;;  %v1641_v42 = vadd.f32 %v1640_v49, %v1599_v23  ;;  %v2177_v23 = vld [vmem:[#allocation3 + $0x2f8] sm:$0xff] }
 0x193   : > { %2178 = vmatpush.msra.mxu1 %v2177_v23  ;;  %v2248_v49 = vld [vmem:[#allocation3 + $0x358] sm:$0xff] }
 0x194   : > { %v4333_v33 = vmax.f32 %v1755_v1, 0.0  ;;  %v1682_v40 = vadd.f32 %v1681_v47, %v1641_v42  ;;  %v1157_v1 = vadd.f32 %v4272_v53, %v4243_v12  ;;  %2257 = vmatpush.msrb.mxu2 %v2248_v49  ;;  %v1690_v17 = vpop.f32.mrf.mxu2  ;;  %v4606_v49 = vld [vmem:[#allocation19_spill] sm:$0xff] }
 0x196   : > { %1792 = vst [vmem:[#allocation2 + $0x11] sm:$0xff] %v4333_v33  ;;  %v1723_v30 = vadd.f32 %v1722_v28, %v1682_v40  ;;  %1868 = vmatmul.f32.gmra.mxu0 %v4333_v33  ;;  %v2176_v28 = vld [vmem:[#allocation3 + $0x2f0] sm:$0xff]  ;;  %2258 = vmatpush.msrb.mxu2 %v2247_v46  ;;  %v1731_v58 = vpop.f32.mrf.mxu3 }
 0x197   : > { %2179 = vmatpush.msra.mxu1 %v2176_v28  ;;  %v2325_v40 = vld [vmem:[#allocation3 + $0x3f0] sm:$0xff] }
 0x198   : > { %v1744_v36 = vadd.f32 %v1723_v30, %v1251_v39  ;;  %v2172_v30 = vld [vmem:[#allocation3 + $0x2d0] sm:$0xff]  ;;  %2328 = vmatpush.msrb.mxu3 %v2325_v40  ;;  %2259 = vmatpush.msrb.mxu2 %v2246_v44  ;;  %v4613_v44 = vld [vmem:[#allocation11_spill] sm:$0xff] }
 0x199   : > { %v1643_v47 = vpop.f32.mrf.mxu1  ;;  %2180 = vmatpush.msra.mxu1 %v2175_v38  ;;  %v2169_v38 = vld [vmem:[#allocation3 + $0x2b8] sm:$0xff] }
 0x19a   : > { %v1756_v7 = vadd.f32 %v4322_v55, %v1744_v36  ;;  %v1644_v52 = vadd.f32 %v1643_v47, %v1602_v14  ;;  %v1195_v14 = vadd.f32 %v4245_v16, %v1154_v54  ;;  %v2173_v16 = vld [vmem:[#allocation3 + $0x2d8] sm:$0xff]  ;;  %v2092_v36 = vld [vmem:[#allocation3 + $0x220] sm:$0xff]  ;;  %2329 = vmatpush.msrb.mxu3 %v2324_v15 }
 0x19b   : > { %2181 = vmatpush.msra.mxu1 %v2174_v31  ;;  %v2323_v47 = vld [vmem:[#allocation3 + $0x3e0] sm:$0xff] }
 0x19c   : > { %v4349_v4 = vmax.f32 %v1756_v7, 0.0  ;;  %v1685_v43 = vadd.f32 %v1684_v37, %v1644_v52  ;;  %v2094_v37 = vld [vmem:[#allocation3 + $0x230] sm:$0xff]  ;;  %v1236_v39 = vadd.f32 %v4247_v41, %v1195_v14  ;;  %v2171_v41 = vld [vmem:[#allocation3 + $0x2c8] sm:$0xff]  ;;  %v2245_v54 = vld [vmem:[#allocation3 + $0x340] sm:$0xff]  ;;  %v857_v52 = vadd.f32 %v4128_v13, %v4068_v56  ;;  %2330 = vmatpush.msrb.mxu3 %v2323_v47  ;;  %v1693_v31 = vpop.f32.mrf.mxu2 }
 0x19d   : > { %v1801_v48 = vld [vmem:[#allocation2 + $0x10] sm:$0xff]  ;;  %2113 = vmatpush.msrb.mxu0 %v2094_v37  ;;  %2182 = vmatpush.msra.mxu1 %v2173_v16  ;;  %v2322_v7 = vld [vmem:[#allocation3 + $0x3d8] sm:$0xff]  ;;  %v4605_v13 = vld [vmem:[#allocation14_spill] sm:$0xff] }
 0x19e   : > { %v4351_v50 = vld [vmem:[#allocation2 + $0x12] sm:$0xff]  ;;  %1793 = vst [vmem:[#allocation2 + $0x21] sm:$0xff] %v4349_v4  ;;  %v1726_v22 = vadd.f32 %v1725_v51, %v1685_v43  ;;  %1909 = vmatmul.f32.gmra.mxu1 %v1801_v48  ;;  %2046 = vmatmul.f32.vlgmr.msra.gmra.mxu3 %v1801_v48  ;;  %v854_v51 = vadd.f32 %v4099_v24, %v4050_v29  ;;  %v2089_v16 = vld [vmem:[#allocation3 + $0x208] sm:$0xff]  ;;  %v2241_v15 = vld [vmem:[#allocation3 + $0x320] sm:$0xff] }
 0x19f   : > { %1975 = vmatmul.f32.gmra.mxu2 %v4351_v50  ;;  %1871 = vmatmul.f32.gmra.mxu0 %v4349_v4  ;;  %v974_v29 = vadd.f32 %v4142_v59, %v933_v18  ;;  %v2244_v43 = vld [vmem:[#allocation3 + $0x338] sm:$0xff]  ;;  %v2321_v48 = vld [vmem:[#allocation3 + $0x3d0] sm:$0xff]  ;;  %v1201_v18 = vadd.f32 %v4606_v49, %v1160_v8 }
 0x1a0   : > { %v1745_v63 = vadd.f32 %v1726_v22, %v1252_v25  ;;  %v895_v24 = vadd.f32 %v4191_v2, %v854_v51  ;;  %2114 = vmatpush.msrb.mxu0 %v2093_v26  ;;  %2183 = vmatpush.msra.mxu1 %v2172_v30  ;;  %v1611_v25 = vpop.f32.mrf.mxu0  ;;  %v2243_v37 = vld [vmem:[#allocation3 + $0x330] sm:$0xff]  ;;  %v1734_v51 = vpop.f32.mrf.mxu3  ;;  %v4610_v26 = vld [vmem:[#allocation21_spill] sm:$0xff] }
 0x1a1   : > { %v1646_v42 = vpop.f32.mrf.mxu1  ;;  %v1253_v59 = vadd.f32 %v1236_v39, %v974_v29  ;;  %2260 = vmatpush.msrb.mxu2 %v2245_v54  ;;  %2331 = vmatpush.msrb.mxu3 %v2322_v7  ;;  %v2319_v39 = vld [vmem:[#allocation3 + $0x3c0] sm:$0xff]  ;;  %v4609_v30 = vld [vmem:[#allocation8_spill] sm:$0xff]  ;;  %v4611_v29 = vld [vmem:[#allocation27_spill] sm:$0xff] }
 0x1a2   : > { %v1757_v32 = vadd.f32 %v4322_v55, %v1745_v63  ;;  %v1647_v10 = vadd.f32 %v1646_v42, %v1605_v45  ;;  %v1198_v45 = vadd.f32 %v4251_v61, %v1157_v1  ;;  %v2170_v61 = vld [vmem:[#allocation3 + $0x2c0] sm:$0xff]  ;;  %v936_v28 = vadd.f32 %v4160_v6, %v895_v24  ;;  %2115 = vmatpush.msrb.mxu0 %v2092_v36  ;;  %v2320_v63 = vld [vmem:[#allocation3 + $0x3c8] sm:$0xff]  ;;  %v2165_v54 = vld [vmem:[#allocation3 + $0x298] sm:$0xff] }
 0x1a3   : > { %2184 = vmatpush.msra.mxu1 %v2171_v41  ;;  %2261 = vmatpush.msrb.mxu2 %v2244_v43  ;;  %v2167_v1 = vld [vmem:[#allocation3 + $0x2a8] sm:$0xff]  ;;  %v1163_v24 = vadd.f32 %v4611_v29, %v4610_v26  ;;  %v2166_v41 = vld [vmem:[#allocation3 + $0x2a0] sm:$0xff]  ;;  %v2240_v8 = vld [vmem:[#allocation3 + $0x318] sm:$0xff] }
 0x1a4   : > { %v4366_v12 = vmax.f32 %v1757_v32, 0.0  ;;  %v1688_v53 = vadd.f32 %v1687_v60, %v1647_v10  ;;  %v2091_v60 = vld [vmem:[#allocation3 + $0x218] sm:$0xff]  ;;  %v977_v56 = vadd.f32 %v4162_v11, %v936_v28  ;;  %2332 = vmatpush.msrb.mxu3 %v2321_v48  ;;  %v2242_v42 = vld [vmem:[#allocation3 + $0x328] sm:$0xff]  ;;  %v2088_v32 = vld [vmem:[#allocation3 + $0x200] sm:$0xff]  ;;  %v1696_v48 = vpop.f32.mrf.mxu2 }
 0x1a5   : > { %v4369_v35 = vld [vmem:[#allocation2 + $0x20] sm:$0xff]  ;;  %2185 = vmatpush.msra.mxu1 %v2170_v61  ;;  %2116 = vmatpush.msrb.mxu0 %v2091_v60  ;;  %v4614_v61 = vld [vmem:[#allocation17_spill] sm:$0xff]  ;;  %v2317_v43 = vld [vmem:[#allocation3 + $0x3b0] sm:$0xff] }
 0x1a6   : > { %v4371_v23 = vld [vmem:[#allocation2 + $0x22] sm:$0xff]  ;;  %1794 = vst [vmem:[#allocation2 + $0x31] sm:$0xff] %v4366_v12  ;;  %v1729_v2 = vadd.f32 %v4345_v20, %v1688_v53  ;;  %1912 = vmatmul.f32.gmra.mxu1 %v4369_v35  ;;  %2049 = vmatmul.f32.gmra.mxu3 %v4369_v35  ;;  %v1239_v20 = vadd.f32 %v4253_v21, %v1198_v45  ;;  %v4612_v45 = vld [vmem:[#allocation20_spill] sm:$0xff] }
 0x1a7   : > { %1978 = vmatmul.f32.gmra.mxu2 %v4371_v23  ;;  %1874 = vmatmul.f32.gmra.mxu0 %v4366_v12  ;;  %v898_v21 = vadd.f32 %v4605_v13, %v857_v52  ;;  %v4608_v10 = vld [vmem:[#allocation6_spill] sm:$0xff]  ;;  %v4616_v13 = vld [vmem:[#allocation12_spill] sm:$0xff] }
 0x1a8   : > { %v1746_v5 = vadd.f32 %v1729_v2, %v1253_v59  ;;  %2186 = vmatpush.msra.mxu1 %v2169_v38  ;;  %2117 = vmatpush.msrb.mxu0 %v2090_v19  ;;  %v1254_v27 = vadd.f32 %v1239_v20, %v977_v56  ;;  %v2318_v2 = vld [vmem:[#allocation3 + $0x3b8] sm:$0xff]  ;;  %v4615_v7 = vld [vmem:[#allocation22_spill] sm:$0xff]  ;;  %v1614_v38 = vpop.f32.mrf.mxu0  ;;  %v2164_v19 = vld [vmem:[#allocation3 + $0x290] sm:$0xff] }
 0x1a9   : > { %v1649_v3 = vpop.f32.mrf.mxu1  ;;  %2262 = vmatpush.msrb.mxu2 %v2243_v37  ;;  %2333 = vmatpush.msrb.mxu3 %v2320_v63  ;;  %v1204_v52 = vadd.f32 %v4615_v7, %v1163_v24  ;;  %v2400_v56 = vld [vmem:[#allocation3 + $0x478] sm:$0xff]  ;;  %v4617_v37 = vld [vmem:[#allocation7_spill] sm:$0xff]  ;;  %v2313_v7 = vld [vmem:[#allocation3 + $0x390] sm:$0xff] }
 0x1aa   : > { %v1758_v62 = vadd.f32 %v4322_v55, %v1746_v5  ;;  %v1650_v6 = vadd.f32 %v1649_v3, %v1608_v57  ;;  %v4607_v57 = vld [vmem:[#allocation10_spill] sm:$0xff]  ;;  %2187 = vmatpush.msra.mxu1 %v2168_v9  ;;  %2118 = vmatpush.msrb.mxu0 %v2089_v16  ;;  %v2316_v9 = vld [vmem:[#allocation3 + $0x3a8] sm:$0xff]  ;;  %v1737_v16 = vpop.f32.mrf.mxu3 }
 0x1ab   : > { %v939_v46 = vadd.f32 %v4607_v57, %v898_v21  ;;  %2263 = vmatpush.msrb.mxu2 %v2242_v42  ;;  %2334 = vmatpush.msrb.mxu3 %v2319_v39  ;;  %v4620_v42 = vld [vmem:[#allocation24_spill] sm:$0xff] }
 0x1ac   : > { %v4388_v14 = vmax.f32 %v1758_v62, 0.0  ;;  %v1691_v22 = vadd.f32 %v1690_v17, %v1650_v6  ;;  %v860_v17 = vadd.f32 %v4609_v30, %v4608_v10  ;;  %2188 = vmatpush.msra.mxu1 %v2167_v1  ;;  %2119 = vmatpush.msrb.mxu0 %v2088_v32  ;;  %v2238_v1 = vld [vmem:[#allocation3 + $0x308] sm:$0xff]  ;;  %v4621_v57 = vld [vmem:[#allocation28_spill] sm:$0xff]  ;;  %v2315_v32 = vld [vmem:[#allocation3 + $0x3a0] sm:$0xff] }
 0x1ad   : > { %v4390_v34 = vld [vmem:[#allocation2 + $0x30] sm:$0xff]  ;;  %v980_v47 = vadd.f32 %v4613_v44, %v939_v46  ;;  %2264 = vmatpush.msrb.mxu2 %v2241_v15  ;;  %2335 = vmatpush.msrb.mxu3 %v2318_v2  ;;  %v1166_v46 = vadd.f32 %v4621_v57, %v4620_v42  ;;  %v4622_v10 = vld [vmem:[#allocation13_spill] sm:$0xff]  ;;  %v2393_v57 = vld [vmem:[#allocation3 + $0x440] sm:$0xff] }
 0x1ae   : > { %v4392_v0 = vld [vmem:[#allocation2 + $0x32] sm:$0xff]  ;;  %1795 = vst [vmem:[#allocation2 + $0x41] sm:$0xff] %v4388_v14  ;;  %v1732_v11 = vadd.f32 %v1731_v58, %v1691_v22  ;;  %1915 = vmatmul.f32.gmra.mxu1 %v4390_v34  ;;  %2052 = vmatmul.f32.gmra.mxu3 %v4390_v34  ;;  %v1242_v58 = vadd.f32 %v4612_v45, %v1201_v18  ;;  %v4619_v18 = vld [vmem:[#allocation23_spill] sm:$0xff]  ;;  %v2237_v45 = vld [vmem:[#allocation3 + $0x300] sm:$0xff] }
 0x1af   : > { %1981 = vmatmul.f32.gmra.mxu2 %v4392_v0  ;;  %1877 = vmatmul.f32.gmra.mxu0 %v4388_v14  ;;  %v901_v60 = vadd.f32 %v4614_v61, %v860_v17  ;;  %v4623_v17 = vld [vmem:[#allocation18_spill] sm:$0xff]  ;;  %v2314_v44 = vld [vmem:[#allocation3 + $0x398] sm:$0xff]  ;;  %v2398_v61 = vld [vmem:[#allocation3 + $0x468] sm:$0xff] }
 0x1b0   : > { %v1747_v40 = vadd.f32 %v1732_v11, %v1254_v27  ;;  %2189 = vmatpush.msra.mxu1 %v2166_v41  ;;  %v1255_v62 = vadd.f32 %v1242_v58, %v980_v47  ;;  %2265 = vmatpush.msrb.mxu2 %v2240_v8  ;;  %v4618_v27 = vld [vmem:[#allocation9_spill] sm:$0xff]  ;;  %v1245_v11 = vadd.f32 %v4619_v18, %v1204_v52  ;;  %v1617_v47 = vpop.f32.mrf.mxu0  ;;  %v2397_v52 = vld [vmem:[#allocation3 + $0x460] sm:$0xff]  ;;  %v1699_v8 = vpop.f32.mrf.mxu2 }
 0x1b1   : > { %v1652_v53 = vpop.f32.mrf.mxu1  ;;  %v942_v21 = vadd.f32 %v4616_v13, %v901_v60  ;;  %v863_v49 = vadd.f32 %v4618_v27, %v4617_v37  ;;  %2336 = vmatpush.msrb.mxu3 %v2317_v43  ;;  %2401 = vmatpush.msra.mxu0 %v2400_v56  ;;  %v4625_v60 = vld [vmem:[#allocation15_spill] sm:$0xff]  ;;  %v4627_v13 = vld [vmem:[#allocation16_spill] sm:$0xff] }
 0x1b2   : > { %v1759_v36 = vadd.f32 %v4322_v55, %v1747_v40  ;;  %v1653_v59 = vadd.f32 %v1652_v53, %v1611_v25  ;;  %v2239_v25 = vld [vmem:[#allocation3 + $0x310] sm:$0xff]  ;;  %2190 = vmatpush.msra.mxu1 %v2165_v54  ;;  %v2162_v53 = vld [vmem:[#allocation3 + $0x280] sm:$0xff] }
 0x1b3   : > { %2266 = vmatpush.msrb.mxu2 %v2239_v25  ;;  %2337 = vmatpush.msrb.mxu3 %v2316_v9  ;;  %v983_v30 = vadd.f32 %v4622_v10, %v942_v21  ;;  %v904_v26 = vadd.f32 %v4623_v17, %v863_v49  ;;  %v1740_v25 = vpop.f32.mrf.mxu3  ;;  %v2311_v49 = vld [vmem:[#allocation3 + $0x380] sm:$0xff] }
 0x1b4   : > { %v4409_v28 = vmax.f32 %v1759_v36, 0.0  ;;  %v1694_v5 = vadd.f32 %v1693_v31, %v1653_v59  ;;  %v2399_v31 = vld [vmem:[#allocation3 + $0x470] sm:$0xff]  ;;  %2191 = vmatpush.msra.mxu1 %v2164_v19  ;;  %v4624_v36 = vld [vmem:[#allocation25_spill] sm:$0xff]  ;;  %v2312_v19 = vld [vmem:[#allocation3 + $0x388] sm:$0xff] }
 0x1b5   : > { %v4412_v20 = vld [vmem:[#allocation2 + $0x40] sm:$0xff]  ;;  %2402 = vmatpush.msra.mxu0 %v2399_v31  ;;  %2267 = vmatpush.msrb.mxu2 %v2238_v1  ;;  %v1256_v58 = vadd.f32 %v1245_v11, %v983_v30  ;;  %v1207_v59 = vadd.f32 %v4624_v36, %v1166_v46 }
 0x1b6   : > { %v4414_v3 = vld [vmem:[#allocation2 + $0x42] sm:$0xff]  ;;  %1796 = vst [vmem:[#allocation2 + $0x51] sm:$0xff] %v4409_v28  ;;  %v1735_v6 = vadd.f32 %v1734_v51, %v1694_v5  ;;  %1918 = vmatmul.f32.gmra.mxu1 %v4412_v20  ;;  %2055 = vmatmul.f32.gmra.mxu3 %v4412_v20  ;;  %v945_v5 = vadd.f32 %v4625_v60, %v904_v26 }
 0x1b7   : > { %1984 = vmatmul.f32.gmra.mxu2 %v4414_v3  ;;  %1880 = vmatmul.f32.gmra.mxu0 %v4409_v28  ;;  %v2163_v51 = vld [vmem:[#allocation3 + $0x288] sm:$0xff]  ;;  %v2385_v10 = vld [vmem:[#allocation3 + $0x400] sm:$0xff] }
 0x1b8   : > { %v1748_v22 = vadd.f32 %v1735_v6, %v1255_v62  ;;  %2192 = vmatpush.msra.mxu1 %v2163_v51  ;;  %2338 = vmatpush.msrb.mxu3 %v2315_v32  ;;  %v4626_v62 = vld [vmem:[#allocation26_spill] sm:$0xff]  ;;  %v986_v21 = vadd.f32 %v4627_v13, %v945_v5 }
 0x1b9   : > { %v1655_v63 = vpop.f32.mrf.mxu1  ;;  %2268 = vmatpush.msrb.mxu2 %v2237_v45  ;;  %2403 = vmatpush.msra.mxu0 %v2398_v61  ;;  %v1248_v6 = vadd.f32 %v4626_v62, %v1207_v59 }
 0x1ba   : > { %v1760_v40 = vadd.f32 %v4322_v55, %v1748_v22  ;;  %v1656_v39 = vadd.f32 %v1655_v63, %v1614_v38  ;;  %2193 = vmatpush.msra.mxu1 %v2162_v53  ;;  %2339 = vmatpush.msrb.mxu3 %v2314_v44  ;;  %v2383_v53 = vld [vmem:[#allocation2 + $0x92] sm:$0xff] }
 0x1bb   : > { %2854 = vmatpush.msra.mxu2 %v2400_v56  ;;  %2404 = vmatpush.msra.mxu0 %v2397_v52  ;;  %v1257_v18 = vadd.f32 %v1248_v6, %v986_v21  ;;  %v2396_v56 = vld [vmem:[#allocation3 + $0x458] sm:$0xff] }
 0x1bc   : > { %v4430_v29 = vmax.f32 %v1760_v40, 0.0  ;;  %v1697_v24 = vadd.f32 %v1696_v48, %v1656_v39  ;;  %2340 = vmatpush.msrb.mxu3 %v2313_v7  ;;  %v2392_v40 = vld [vmem:[#allocation3 + $0x438] sm:$0xff]  ;;  %v2391_v39 = vld [vmem:[#allocation3 + $0x430] sm:$0xff] }
 0x1bd   : > { %v4432_v41 = vld [vmem:[#allocation2 + $0x50] sm:$0xff]  ;;  %2855 = vmatpush.msra.mxu2 %v2399_v31  ;;  %2405 = vmatpush.msra.mxu0 %v2396_v56 }
 0x1be   : > { %v4434_v15 = vld [vmem:[#allocation2 + $0x52] sm:$0xff]  ;;  %1797 = vst [vmem:[#allocation2 + $0x61] sm:$0xff] %v4430_v29  ;;  %v1738_v2 = vadd.f32 %v1737_v16, %v1697_v24  ;;  %1921 = vmatmul.f32.gmra.mxu1 %v4432_v41  ;;  %2058 = vmatmul.f32.gmra.mxu3 %v4432_v41 }
 0x1bf   : > { %1987 = vmatmul.f32.gmra.mxu2 %v4434_v15  ;;  %1883 = vmatmul.f32.gmra.mxu0 %v4430_v29  ;;  %v2395_v31 = vld [vmem:[#allocation3 + $0x450] sm:$0xff] }
 0x1c0   : > { %v1749_v54 = vadd.f32 %v1738_v2, %v1256_v58  ;;  %2341 = vmatpush.msrb.mxu3 %v2312_v19  ;;  %2856 = vmatpush.msra.mxu2 %v2398_v61  ;;  %v2309_v24 = vld [vmem:[#allocation2 + $0x91] sm:$0xff] }
 0x1c1   : > { %v1658_v38 = vpop.f32.mrf.mxu1  ;;  %2406 = vmatpush.msra.mxu0 %v2395_v31 }
 0x1c2   : > { %v1761_v43 = vadd.f32 %v4322_v55, %v1749_v54  ;;  %v1659_v48 = vadd.f32 %v1658_v38, %v1617_v47  ;;  %2342 = vmatpush.msrb.mxu3 %v2311_v49  ;;  %2857 = vmatpush.msra.mxu2 %v2397_v52 }
 0x1c4   : > { %v4446_v22 = vmax.f32 %v1761_v43, 0.0  ;;  %v1700_v9 = vadd.f32 %v1699_v8, %v1659_v48  ;;  %2858 = vmatpush.msra.mxu2 %v2396_v56 }
 0x1c5   : > { %v4448_v37 = vld [vmem:[#allocation2 + $0x60] sm:$0xff] }
 0x1c6   : > { %v4450_v27 = vld [vmem:[#allocation2 + $0x62] sm:$0xff]  ;;  %1798 = vst [vmem:[#allocation2 + $0x71] sm:$0xff] %v4446_v22  ;;  %v1741_v11 = vadd.f32 %v1740_v25, %v1700_v9  ;;  %1924 = vmatmul.f32.gmra.mxu1 %v4448_v37  ;;  %2061 = vmatmul.f32.gmra.mxu3 %v4448_v37 }
 0x1c7   : > { %1990 = vmatmul.f32.gmra.mxu2 %v4450_v27  ;;  %1886 = vmatmul.f32.gmra.mxu0 %v4446_v22 }
 0x1c8   : > { %v1750_v63 = vadd.f32 %v1741_v11, %v1257_v18  ;;  %2859 = vmatpush.msra.mxu2 %v2395_v31 }
 0x1ca   : > { %v1762_v16 = vadd.f32 %v4322_v55, %v1750_v63  ;;  %v2394_v55 = vld [vmem:[#allocation3 + $0x448] sm:$0xff] }
 0x1cb   : > { %2407 = vmatpush.msra.mxu0 %v2394_v55  ;;  %2860 = vmatpush.msra.mxu2 %v2394_v55 }
 0x1cc   : > { %v4458_v51 = vmax.f32 %v1762_v16, 0.0 }
 0x1cd   : > { %v4460_v1 = vld [vmem:[#allocation2 + $0x70] sm:$0xff]  ;;  %2408 = vmatpush.msra.mxu0 %v2393_v57  ;;  %2861 = vmatpush.msra.mxu2 %v2393_v57 }
 0x1ce   : > { %v4462_v42 = vld [vmem:[#allocation2 + $0x72] sm:$0xff]  ;;  %1799 = vst [vmem:[#allocation2 + $0x81] sm:$0xff] %v4458_v51  ;;  %1927 = vmatmul.f32.gmra.mxu1 %v4460_v1  ;;  %2064 = vmatmul.f32.gmra.mxu3 %v4460_v1 }
 0x1cf   : > { %1993 = vmatmul.f32.gmra.mxu2 %v4462_v42  ;;  %2120 = vmatmul.f32.vlgmr.msrb.gmra.mxu0 %v4333_v33  ;;  %v2390_v33 = vld [vmem:[#allocation3 + $0x428] sm:$0xff] }
 0x1d0   : > { %2409 = vmatpush.msra.mxu0 %v2392_v40  ;;  %2862 = vmatpush.msra.mxu2 %v2392_v40 }
 0x1d2   : > { %2410 = vmatpush.msra.mxu0 %v2391_v39  ;;  %2863 = vmatpush.msra.mxu2 %v2391_v39 }
 0x1d4   : > { %2411 = vmatpush.msra.mxu0 %v2390_v33  ;;  %2864 = vmatpush.msra.mxu2 %v2390_v33 }
 0x1d5   : > { %v2012_v46 = vld [vmem:[#allocation2 + $0x80] sm:$0xff]  ;;  %v1866_v32 = vpop.f32.mrf.mxu0 }
 0x1d6   : > { %2194 = vmatmul.f32.vlgmr.msra.gmra.mxu1 %v4351_v50  ;;  %2067 = vmatmul.f32.gmra.mxu3 %v2012_v46  ;;  %v2389_v50 = vld [vmem:[#allocation3 + $0x420] sm:$0xff] }
 0x1d7   : > { %2269 = vmatmul.f32.vlgmr.msrb.gmra.mxu2 %v4369_v35  ;;  %2123 = vmatmul.f32.gmra.mxu0 %v4349_v4  ;;  %v2388_v35 = vld [vmem:[#allocation3 + $0x418] sm:$0xff] }
 0x1d8   : > { %2412 = vmatpush.msra.mxu0 %v2389_v50  ;;  %2865 = vmatpush.msra.mxu2 %v2389_v50 }
 0x1d9   : > { %v1907_v30 = vpop.f32.mrf.mxu1 }
 0x1da   : > { %2413 = vmatpush.msra.mxu0 %v2388_v35  ;;  %2866 = vmatpush.msra.mxu2 %v2388_v35 }
 0x1de   : > { %2197 = vmatmul.f32.gmra.mxu1 %v4371_v23  ;;  %2343 = vmatmul.f32.vlgmr.msrb.gmra.mxu3 %v4349_v4  ;;  %v2386_v4 = vld [vmem:[#allocation3 + $0x408] sm:$0xff] }
 0x1df   : > { %2272 = vmatmul.f32.gmra.mxu2 %v4390_v34  ;;  %2126 = vmatmul.f32.gmra.mxu0 %v4366_v12  ;;  %v2387_v34 = vld [vmem:[#allocation3 + $0x410] sm:$0xff] }
 0x1e0   : > { %2414 = vmatpush.msra.mxu0 %v2387_v34  ;;  %2867 = vmatpush.msra.mxu2 %v2387_v34 }
 0x1e2   : > { %2415 = vmatpush.msra.mxu0 %v2386_v4  ;;  %2868 = vmatpush.msra.mxu2 %v2386_v4 }
 0x1e4   : > { %2416 = vmatpush.msra.mxu0 %v2385_v10  ;;  %2869 = vmatpush.msra.mxu2 %v2385_v10 }
 0x1e6   : > { %2200 = vmatmul.f32.gmra.mxu1 %v4392_v0  ;;  %2346 = vmatmul.f32.gmra.mxu3 %v4366_v12  ;;  %v1973_v12 = vpop.f32.mrf.mxu2 }
 0x1e7   : > { %2275 = vmatmul.f32.gmra.mxu2 %v4412_v20  ;;  %2129 = vmatmul.f32.gmra.mxu0 %v4388_v14  ;;  %v1908_v20 = vadd.f32 %v1907_v30, %v1866_v32 }
 0x1e9   : > { %v1997_v17 = vadd.f32 %v1973_v12, %v1908_v20 }
 0x1ee   : > { %2203 = vmatmul.f32.gmra.mxu1 %v4414_v3  ;;  %2349 = vmatmul.f32.gmra.mxu3 %v4388_v14  ;;  %v2160_v14 = vld [vmem:[#allocation2 + $0x82] sm:$0xff] }
 0x1ef   : > { %2278 = vmatmul.f32.gmra.mxu2 %v4432_v41  ;;  %2132 = vmatmul.f32.gmra.mxu0 %v4409_v28 }
 0x1f6   : > { %2206 = vmatmul.f32.gmra.mxu1 %v4434_v15  ;;  %2352 = vmatmul.f32.gmra.mxu3 %v4409_v28  ;;  %v4628_v28 = vmov 0.0  }
 0x1f7   : > { %2281 = vmatmul.f32.gmra.mxu2 %v4448_v37  ;;  %2135 = vmatmul.f32.gmra.mxu0 %v4430_v29 }
 0x1fe   : > { %2209 = vmatmul.f32.gmra.mxu1 %v4450_v27  ;;  %2355 = vmatmul.f32.gmra.mxu3 %v4430_v29 }
 0x1ff   : > { %2284 = vmatmul.f32.gmra.mxu2 %v4460_v1  ;;  %2138 = vmatmul.f32.gmra.mxu0 %v4446_v22 }
 0x206   : > { %2212 = vmatmul.f32.gmra.mxu1 %v4462_v42  ;;  %2358 = vmatmul.f32.gmra.mxu3 %v4446_v22 }
 0x207   : > { %2287 = vmatmul.f32.gmra.mxu2 %v2012_v46  ;;  %2141 = vmatmul.f32.gmra.mxu0 %v4458_v51 }
 0x20e   : > { %2215 = vmatmul.f32.gmra.mxu1 %v2160_v14  ;;  %2361 = vmatmul.f32.gmra.mxu3 %v4458_v51 }
 0x20f   : > { %2290 = vmatmul.f32.gmra.mxu2 %v4628_v28  ;;  %2417 = vmatmul.f32.vlgmr.msra.gmra.mxu0 %v4371_v23 }
 0x213   : > { %v1869_v26 = vpop.f32.mrf.mxu0 }
 0x216   : > { %2364 = vmatmul.f32.gmra.mxu3 %v2309_v24 }
 0x217   : > { %2435 = vmatmul.f32.vlgmr.msra.gmra.mxu2 %v2160_v14  ;;  %2420 = vmatmul.f32.gmra.mxu0 %v4392_v0 }
 0x21b   : > { %v1910_v29 = vpop.f32.mrf.mxu1 }
 0x21c   : > { %v1911_v41 = vadd.f32 %v1910_v29, %v1869_v26  ;;  %v1872_v45 = vpop.f32.mrf.mxu0 }
 0x21f   : > { %2438 = vmatmul.f32.gmra.mxu2 %v2383_v53  ;;  %2423 = vmatmul.f32.gmra.mxu0 %v4414_v3 }
 0x221   : > { %v2047_v59 = vpop.f32.mrf.mxu3 }
 0x222   : > { %v1976_v58 = vpop.f32.mrf.mxu2  ;;  %v4500_v2 = vadd.f32 %v2047_v59, %v1997_v17 }
 0x223   : > { %v1998_v36 = vadd.f32 %v1976_v58, %v1911_v41  ;;  %v1913_v44 = vpop.f32.mrf.mxu1 }
 0x224   : > { %v1914_v23 = vadd.f32 %v1913_v44, %v1872_v45  ;;  %v1875_v47 = vpop.f32.mrf.mxu0 }
 0x227   : > { %2426 = vmatmul.f32.gmra.mxu0 %v4434_v15 }
 0x229   : > { %v2050_v0 = vpop.f32.mrf.mxu3 }
 0x22a   : > { %v1979_v61 = vpop.f32.mrf.mxu2  ;;  %v4503_v5 = vadd.f32 %v2050_v0, %v1998_v36 }
 0x22b   : > { %v1999_v60 = vadd.f32 %v1979_v61, %v1914_v23  ;;  %v1916_v54 = vpop.f32.mrf.mxu1 }
 0x22c   : > { %v1917_v7 = vadd.f32 %v1916_v54, %v1875_v47  ;;  %v1878_v52 = vpop.f32.mrf.mxu0 }
 0x22f   : > { %2429 = vmatmul.f32.gmra.mxu0 %v4450_v27 }
 0x231   : > { %v2053_v8 = vpop.f32.mrf.mxu3 }
 0x232   : > { %v1982_v3 = vpop.f32.mrf.mxu2  ;;  %v4506_v62 = vadd.f32 %v2053_v8, %v1999_v60 }
 0x233   : > { %v2000_v38 = vadd.f32 %v1982_v3, %v1917_v7  ;;  %v1919_v6 = vpop.f32.mrf.mxu1  ;;  %v4536_v3 = vld [vmem:[%s4579_s4] ss:$0 sm:$0xff] }
 0x234   : > { %v1920_v43 = vadd.f32 %v1919_v6, %v1878_v52  ;;  %v1881_v48 = vpop.f32.mrf.mxu0 }
 0x237   : > { %2432 = vmatmul.f32.gmra.mxu0 %v4462_v42 }
 0x239   : > { %v2056_v25 = vpop.f32.mrf.mxu3 }
 0x23a   : > { %v1985_v15 = vpop.f32.mrf.mxu2  ;;  %v4509_v13 = vadd.f32 %v2056_v25, %v2000_v38 }
 0x23b   : > { %v2001_v19 = vadd.f32 %v1985_v15, %v1920_v43  ;;  %v1922_v21 = vpop.f32.mrf.mxu1 }
 0x23c   : > { %v1923_v22 = vadd.f32 %v1922_v21, %v1881_v48  ;;  %v1884_v9 = vpop.f32.mrf.mxu0 }
 0x241   : > { %v2059_v49 = vpop.f32.mrf.mxu3 }
 0x242   : > { %v1988_v37 = vpop.f32.mrf.mxu2  ;;  %v4511_v18 = vadd.f32 %v2059_v49, %v2001_v19 }
 0x243   : > { %v2002_v27 = vadd.f32 %v1988_v37, %v1923_v22  ;;  %v1925_v11 = vpop.f32.mrf.mxu1 }
 0x244   : > { %v1887_v56 = vpop.f32.mrf.mxu0  ;;  %v1926_v31 = vadd.f32 %v1925_v11, %v1884_v9 }
 0x249   : > { %v2062_v51 = vpop.f32.mrf.mxu3 }
 0x24a   : > { %v1991_v63 = vpop.f32.mrf.mxu2  ;;  %v4513_v1 = vadd.f32 %v2062_v51, %v2002_v27 }
 0x24b   : > { %v2003_v16 = vadd.f32 %v1991_v63, %v1926_v31  ;;  %v1928_v42 = vpop.f32.mrf.mxu1 }
 0x24c   : > { %v2121_v55 = vpop.f32.mrf.mxu0  ;;  %v1929_v57 = vadd.f32 %v1928_v42, %v1887_v56 }
 0x24d   : > { %v2145_v47 = vadd.f32 %v2121_v55, %v4500_v2 }
 0x251   : > { %v2065_v39 = vpop.f32.mrf.mxu3 }
 0x252   : > { %v1994_v46 = vpop.f32.mrf.mxu2  ;;  %v2077_v15 = vadd.f32 %v2065_v39, %v2003_v16 }
 0x253   : > { %v2004_v40 = vadd.f32 %v1994_v46, %v1929_v57  ;;  %v2195_v33 = vpop.f32.mrf.mxu1 }
 0x254   : > { %v2124_v50 = vpop.f32.mrf.mxu0  ;;  %v2219_v60 = vadd.f32 %v2195_v33, %v2145_v47 }
 0x255   : > { %v2146_v8 = vadd.f32 %v2124_v50, %v4503_v5 }
 0x259   : > { %v2068_v34 = vpop.f32.mrf.mxu3 }
 0x25a   : > { %v2270_v35 = vpop.f32.mrf.mxu2  ;;  %v2078_v63 = vadd.f32 %v2068_v34, %v2004_v40 }
 0x25b   : > { %v2198_v32 = vpop.f32.mrf.mxu1  ;;  %v2294_v0 = vadd.f32 %v2270_v35, %v2219_v60 }
 0x25c   : > { %v2127_v4 = vpop.f32.mrf.mxu0  ;;  %v2220_v2 = vadd.f32 %v2198_v32, %v2146_v8 }
 0x25d   : > { %v2147_v27 = vadd.f32 %v2127_v4, %v4506_v62 }
 0x261   : > { %v2344_v30 = vpop.f32.mrf.mxu3 }
 0x262   : > { %v2273_v10 = vpop.f32.mrf.mxu2  ;;  %v2368_v52 = vadd.f32 %v2344_v30, %v2294_v0 }
 0x263   : > { %v2201_v12 = vpop.f32.mrf.mxu1  ;;  %v2295_v19 = vadd.f32 %v2273_v10, %v2220_v2 }
 0x264   : > { %v2130_v20 = vpop.f32.mrf.mxu0  ;;  %v2221_v56 = vadd.f32 %v2201_v12, %v2147_v27 }
 0x265   : > { %v2148_v35 = vadd.f32 %v2130_v20, %v4509_v13 }
 0x269   : > { %v2347_v14 = vpop.f32.mrf.mxu3 }
 0x26a   : > { %v2276_v17 = vpop.f32.mrf.mxu2  ;;  %v2369_v22 = vadd.f32 %v2347_v14, %v2295_v19 }
 0x26b   : > { %v2204_v26 = vpop.f32.mrf.mxu1  ;;  %v2296_v16 = vadd.f32 %v2276_v17, %v2221_v56 }
 0x26c   : > { %v4515_v28 = vpop.f32.mrf.mxu0  ;;  %v2222_v34 = vadd.f32 %v2204_v26, %v2148_v35 }
 0x26d   : > { %v2149_v13 = vadd.f32 %v4515_v28, %v4511_v18 }
 0x271   : > { %v2350_v29 = vpop.f32.mrf.mxu3 }
 0x272   : > { %v2279_v24 = vpop.f32.mrf.mxu2  ;;  %v2370_v39 = vadd.f32 %v2350_v29, %v2296_v16 }
 0x273   : > { %v4521_v58 = vpop.f32.mrf.mxu1  ;;  %v2297_v12 = vadd.f32 %v2279_v24, %v2222_v34 }
 0x274   : > { %v4517_v53 = vpop.f32.mrf.mxu0  ;;  %v2223_v26 = vadd.f32 %v4521_v58, %v2149_v13 }
 0x275   : > { %v2150_v0 = vadd.f32 %v4517_v53, %v4513_v1 }
 0x279   : > { %v2353_v45 = vpop.f32.mrf.mxu3 }
 0x27a   : > { %v4519_v41 = vpop.f32.mrf.mxu2  ;;  %v2371_v29 = vadd.f32 %v2353_v45, %v2297_v12 }
 0x27b   : > { %v4528_v61 = vpop.f32.mrf.mxu1  ;;  %v2298_v24 = vadd.f32 %v4519_v41, %v2223_v26 }
 0x27c   : > { %v2139_v36 = vpop.f32.mrf.mxu0 }
 0x27d   : > { %v2151_v21 = vadd.f32 %v2139_v36, %v2077_v15 }
 0x281   : > { %v4525_v44 = vpop.f32.mrf.mxu3 }
 0x282   : > { %v4523_v59 = vpop.f32.mrf.mxu2  ;;  %v2372_v60 = vadd.f32 %v4525_v44, %v2298_v24 }
 0x283   : > { %v2213_v43 = vpop.f32.mrf.mxu1 }
 0x284   : > { %v2142_v23 = vpop.f32.mrf.mxu0  ;;  %v2225_v5 = vadd.f32 %v2213_v43, %v2151_v21 }
 0x285   : > { %v2152_v57 = vadd.f32 %v2142_v23, %v2078_v63 }
 0x289   : > { %v4530_v7 = vpop.f32.mrf.mxu3 }
 0x28a   : > { %v2288_v54 = vpop.f32.mrf.mxu2 }
 0x28b   : > { %v2300_v11 = vadd.f32 %v2288_v54, %v2225_v5  ;;  %v2216_v42 = vpop.f32.mrf.mxu1 }
 0x28c   : > { %v2418_v38 = vpop.f32.mrf.mxu0  ;;  %v2226_v33 = vadd.f32 %v2216_v42, %v2152_v57 }
 0x28d   : > { %v2442_v6 = vadd.f32 %v2418_v38, %v2368_v52  ;;  %v2224_v52 = vadd.f32 %v4528_v61, %v2150_v0 }
 0x28f   : > { %v2454_v48 = vadd.f32 %v4536_v3, %v2442_v6  ;;  %v2299_v28 = vadd.f32 %v4523_v59, %v2224_v52 }
 0x291   : > { %2462 = vst [vmem:[%s4542_s16] sm:$0xff] %v2454_v48  ;;  %v2362_v9 = vpop.f32.mrf.mxu3  ;;  %v2373_v58 = vadd.f32 %v4530_v7, %v2299_v28 }
 0x292   : > { %v2291_v25 = vpop.f32.mrf.mxu2  ;;  %v2374_v51 = vadd.f32 %v2362_v9, %v2300_v11 }
 0x293   : > { %v2301_v40 = vadd.f32 %v2291_v25, %v2226_v33 }
 0x294   : > { %v2421_v37 = vpop.f32.mrf.mxu0 }
 0x295   : > { %v2443_v49 = vadd.f32 %v2421_v37, %v2369_v22 }
 0x297   : > { %v2455_v31 = vadd.f32 %v4536_v3, %v2443_v49 }
 0x299   : > { %2463 = vst [vmem:[%s4542_s16 + $0x8] sm:$0xff] %v2455_v31  ;;  %v2365_v4 = vpop.f32.mrf.mxu3 }
 0x29a   : > { %v2436_v55 = vpop.f32.mrf.mxu2  ;;  %v2375_v30 = vadd.f32 %v2365_v4, %v2301_v40 }
 0x29b   : > { %v2448_v46 = vadd.f32 %v2436_v55, %v2374_v51 }
 0x29c   : > { %v2424_v62 = vpop.f32.mrf.mxu0 }
 0x29d   : > { %v2460_v50 = vadd.f32 %v4536_v3, %v2448_v46  ;;  %v2444_v32 = vadd.f32 %v2424_v62, %v2370_v39 }
 0x29f   : > { %2468 = vst [vmem:[%s4542_s16 + $0x30] sm:$0xff] %v2460_v50  ;;  %v2456_v10 = vadd.f32 %v4536_v3, %v2444_v32 }
 0x2a1   : > { %2464 = vst [vmem:[%s4542_s16 + $0x10] sm:$0xff] %v2456_v10 }
 0x2a2   : > { %v2439_v17 = vpop.f32.mrf.mxu2 }
 0x2a3   : > { %v2449_v14 = vadd.f32 %v2439_v17, %v2375_v30 }
 0x2a4   : > { %v2427_v23 = vpop.f32.mrf.mxu0 }
 0x2a5   : > { %v2461_v36 = vadd.f32 %v4536_v3, %v2449_v14  ;;  %v2445_v20 = vadd.f32 %v2427_v23, %v2371_v29 }
 0x2a7   : > { %2469 = vst [vmem:[%s4542_s16 + $0x38] sm:$0xff] %v2461_v36  ;;  %v2457_v47 = vadd.f32 %v4536_v3, %v2445_v20 }
 0x2a9   : > { %2465 = vst [vmem:[%s4542_s16 + $0x18] sm:$0xff] %v2457_v47 }
 0x2ac   : > { %v2430_v45 = vpop.f32.mrf.mxu0 }
 0x2ad   : > { %v2446_v54 = vadd.f32 %v2430_v45, %v2372_v60 }
 0x2af   : > { %v2458_v18 = vadd.f32 %v4536_v3, %v2446_v54 }
 0x2b1   : > { %2466 = vst [vmem:[%s4542_s16 + $0x20] sm:$0xff] %v2458_v18 }
 0x2b4   : > { %v2433_v38 = vpop.f32.mrf.mxu0 }
 0x2b5   : > { %v2447_v8 = vadd.f32 %v2433_v38, %v2373_v58 }
 0x2b7   : > { %v2459_v41 = vadd.f32 %v4536_v3, %v2447_v8 }
 0x2b9   : > { %2467 = vst [vmem:[%s4542_s16 + $0x28] sm:$0xff] %v2459_v41 }
 0x2ba PF: > { %s16_s18 = sadd.s32 1, %s2935_s18  }
 0x2bb   : > { %p13_p7 = scmp.ge.s32.totalorder %s16_s18, 4  }
 0x2bd   :  { %15 = sbr.rel (!%p13_p7) target bundleno = 1 (0x1), region = 89 }
 0x2c2   :  { %2491 = vsyncpa [#allocation4], 1 }
 0x2c3   :  { %2493 = vsyncpa [#allocation4 + $0x1], 1 }

// kernel: vqgan_forward.5
= control target key start
LH: loop header
LB: loop body
LE: loop exit
PB: predicated region body
PF: predicated region fallthrough
CT: control target
= control target key end

     0   :  { %10 = vsyncpa [#allocation4], 0  ;;  %s2674_s18 = smov 0   ;;  %s4096_s0 = inlined_call_operand.vmem [shape: f32[2,10,10,128], index: 0, kind: input, shape index: {}]   ;;  %s4097_s1 = inlined_call_operand.hbm [shape: f32[9,128,128], index: 1, kind: input, shape index: {}]   ;;  %s4098_s2 = inlined_call_operand.vmem [shape: f32[1,128], index: 2, kind: input, shape index: {}]   ;;  %s4099_s3 = inlined_call_operand.vmem [shape: f32[4,4,128,128], index: 3, kind: input, shape index: {}]   ;;  %s4100_s4 = inlined_call_operand.vmem [shape: f32[1,128], index: 4, kind: input, shape index: {}]   ;;  %s4101_s5 = inlined_call_operand.vmem [shape: f32[2,4,64,128], index: 5, kind: output, shape index: {}]  }
   0x1 LB: > { %s168_s21 = sshll.u32 %s4097_s1, 4  ;;  %s2683_s22 = sadd.s32 4294967295, %s2638_s18   ;;  %s2638_s18 = sphi %s2674_s18, %s16_s18   ;;  %s169_s21 = int_to_ptr.hbm [resolvable:$true] %s168_s21 }
   0x2   : > { %p2214_p0 = scmp.ge.s32.totalorder %s2638_s18, 1  ;;  %p157_p1 = scmp.lt.s32.totalorder %s2638_s18, 3 }
   0x3   : > { %p2578_p2 = scmp.eq.s32.totalorder %s2683_s22, 0  ;;  %s2640_s23 = smov [#allocation3]  }
   0x4   : > { %p158_p3 = pnand %p2214_p0, %p157_p1  ;;  %s170_s24 = sshll.u32 %s2640_s23, 4  ;;  %s171_s24 = int_to_ptr.vmem [resolvable:$true] %s170_s24 }
   0x5   : > { %s2641_s25 = smov 128   ;;  %s2642_s26 = smov 8  }
   0x6   : > { %p2574_p4 = pneg %p158_p3  ;;  %203 = sbr.rel (%p158_p3) target bundleno = 679 (0x2a7), region = 40 }
   0x8   : > { %p2575_p5 = pnand %p2578_p2, %p2574_p4 }
   0xa   : > { %2577 = dma.hbm_to_vmem [thread:$0]  (!%p2575_p5), %s169_s21, 18432, %s171_s24, [#allocation4], %s2641_s25, %s2641_s25, %s2642_s26  }
   0xb   : > { %2633 = dma.done.wait (%p2578_p2), [#allocation4], 18432  }
   0xc   : > { %2635 = vsyncadd (%p2578_p2), [#allocation4], 4294948864  ;;  %v290_v0 = vld [vmem:[#allocation3 + $0xf8] sm:$0xff]  ;;  %v289_v1 = vld [vmem:[#allocation3 + $0xf0] sm:$0xff]  ;;  %p232_p6 = scmp.lt.s32.totalorder %s2683_s22, 1 }
   0xd   : > { %2537 = vmatpush.msra.mxu1 %v290_v0  ;;  %291 = vmatpush.msra.mxu0 %v290_v0  ;;  %v288_v2 = vld [vmem:[#allocation3 + $0xe8] sm:$0xff]  ;;  %v287_v3 = vld [vmem:[#allocation3 + $0xe0] sm:$0xff]  ;;  %v397_v4 = vld [vmem:[#allocation3 + $0x178] sm:$0xff] }
   0xe   : > { %v396_v5 = vld [vmem:[#allocation3 + $0x170] sm:$0xff]  ;;  %v286_v6 = vld [vmem:[#allocation3 + $0xd8] sm:$0xff]  ;;  %398 = vmatpush.msra.mxu2 %v397_v4  ;;  %v395_v8 = vld [vmem:[#allocation3 + $0x168] sm:$0xff]  ;;  %s4103_s22 = smov (!%p232_p6, %s2683_s22), 1 }
   0xf   : > { %2538 = vmatpush.msra.mxu1 %v289_v1  ;;  %292 = vmatpush.msra.mxu0 %v289_v1  ;;  %v472_v7 = vld [vmem:[#allocation3 + $0x1f8] sm:$0xff]  ;;  %v471_v9 = vld [vmem:[#allocation3 + $0x1f0] sm:$0xff]  ;;  %v394_v11 = vld [vmem:[#allocation3 + $0x160] sm:$0xff]  ;;  %s2569_s27 = smul.u32 160, %s4103_s22  ;;  %s2536_s17 = sshll.u32 %s4103_s22, 8 }
  0x10   : > { %v285_v10 = vld [vmem:[#allocation3 + $0xd0] sm:$0xff]  ;;  %399 = vmatpush.msra.mxu2 %v396_v5  ;;  %473 = vmatpush.msra.mxu3 %v472_v7  ;;  %v470_v12 = vld [vmem:[#allocation3 + $0x1e8] sm:$0xff]  ;;  %v393_v14 = vld [vmem:[#allocation3 + $0x158] sm:$0xff]  ;;  %s3812_s25 = scalar_lea.vmem %s4101_s5, %s2536_s17 }
  0x11   : > { %2539 = vmatpush.msra.mxu1 %v288_v2  ;;  %293 = vmatpush.msra.mxu0 %v288_v2  ;;  %v284_v13 = vld [vmem:[#allocation3 + $0xc8] sm:$0xff]  ;;  %v469_v15 = vld [vmem:[#allocation3 + $0x1e0] sm:$0xff]  ;;  %v392_v17 = vld [vmem:[#allocation3 + $0x150] sm:$0xff]  ;;  %s2698_s30 = scalar_lea.vmem %s4096_s0, %s2569_s27 }
  0x12   : > { %400 = vmatpush.msra.mxu2 %v395_v8  ;;  %474 = vmatpush.msra.mxu3 %v471_v9  ;;  %v283_v16 = vld [vmem:[#allocation3 + $0xc0] sm:$0xff]  ;;  %v468_v18 = vld [vmem:[#allocation3 + $0x1d8] sm:$0xff]  ;;  %v391_v20 = vld [vmem:[#allocation3 + $0x148] sm:$0xff] }
  0x13   : > { %2540 = vmatpush.msra.mxu1 %v287_v3  ;;  %294 = vmatpush.msra.mxu0 %v287_v3  ;;  %v282_v19 = vld [vmem:[#allocation3 + $0xb8] sm:$0xff]  ;;  %v467_v21 = vld [vmem:[#allocation3 + $0x1d0] sm:$0xff]  ;;  %v390_v23 = vld [vmem:[#allocation3 + $0x140] sm:$0xff] }
  0x14   : > { %401 = vmatpush.msra.mxu2 %v394_v11  ;;  %475 = vmatpush.msra.mxu3 %v470_v12  ;;  %v281_v22 = vld [vmem:[#allocation3 + $0xb0] sm:$0xff]  ;;  %v466_v24 = vld [vmem:[#allocation3 + $0x1c8] sm:$0xff]  ;;  %v389_v26 = vld [vmem:[#allocation3 + $0x138] sm:$0xff] }
  0x15   : > { %2541 = vmatpush.msra.mxu1 %v286_v6  ;;  %295 = vmatpush.msra.mxu0 %v286_v6  ;;  %v280_v25 = vld [vmem:[#allocation3 + $0xa8] sm:$0xff]  ;;  %v465_v27 = vld [vmem:[#allocation3 + $0x1c0] sm:$0xff]  ;;  %v388_v29 = vld [vmem:[#allocation3 + $0x130] sm:$0xff] }
  0x16   : > { %402 = vmatpush.msra.mxu2 %v393_v14  ;;  %476 = vmatpush.msra.mxu3 %v469_v15  ;;  %v279_v28 = vld [vmem:[#allocation3 + $0xa0] sm:$0xff]  ;;  %v464_v30 = vld [vmem:[#allocation3 + $0x1b8] sm:$0xff]  ;;  %v387_v32 = vld [vmem:[#allocation3 + $0x128] sm:$0xff] }
  0x17   : > { %2542 = vmatpush.msra.mxu1 %v285_v10  ;;  %296 = vmatpush.msra.mxu0 %v285_v10  ;;  %v278_v31 = vld [vmem:[#allocation3 + $0x98] sm:$0xff]  ;;  %v463_v33 = vld [vmem:[#allocation3 + $0x1b0] sm:$0xff]  ;;  %v386_v35 = vld [vmem:[#allocation3 + $0x120] sm:$0xff] }
  0x18   : > { %403 = vmatpush.msra.mxu2 %v392_v17  ;;  %477 = vmatpush.msra.mxu3 %v468_v18  ;;  %v277_v34 = vld [vmem:[#allocation3 + $0x90] sm:$0xff]  ;;  %v462_v36 = vld [vmem:[#allocation3 + $0x1a8] sm:$0xff]  ;;  %v385_v38 = vld [vmem:[#allocation3 + $0x118] sm:$0xff] }
  0x19   : > { %2543 = vmatpush.msra.mxu1 %v284_v13  ;;  %297 = vmatpush.msra.mxu0 %v284_v13  ;;  %v276_v37 = vld [vmem:[#allocation3 + $0x88] sm:$0xff]  ;;  %v461_v39 = vld [vmem:[#allocation3 + $0x1a0] sm:$0xff]  ;;  %v265_v43 = vld [vmem:[#allocation3 + $0x78] sm:$0xff] }
  0x1a   : > { %404 = vmatpush.msra.mxu2 %v391_v20  ;;  %478 = vmatpush.msra.mxu3 %v467_v21  ;;  %v275_v40 = vld [vmem:[#allocation3 + $0x80] sm:$0xff]  ;;  %v546_v44 = vld [vmem:[#allocation3 + $0x278] sm:$0xff]  ;;  %v384_v45 = vld [vmem:[#allocation3 + $0x110] sm:$0xff] }
  0x1b   : > { %2544 = vmatpush.msra.mxu1 %v283_v16  ;;  %298 = vmatpush.msra.mxu0 %v283_v16  ;;  %v2701_v41 = vld [vmem:[%s2698_s30 + $0x41] sm:$0xff]  ;;  %v460_v46 = vld [vmem:[#allocation3 + $0x198] sm:$0xff]  ;;  %v264_v47 = vld [vmem:[#allocation3 + $0x70] sm:$0xff] }
  0x1c   : > { %405 = vmatpush.msra.mxu2 %v390_v23  ;;  %479 = vmatpush.msra.mxu3 %v466_v24  ;;  %v266_v42 = vld [vmem:[%s2698_s30 + $0x1] sm:$0xff]  ;;  %v545_v48 = vld [vmem:[#allocation3 + $0x270] sm:$0xff]  ;;  %v261_v59 = vld [vmem:[#allocation3 + $0x58] sm:$0xff] }
  0x1d   : > { %2545 = vmatpush.msra.mxu1 %v282_v19  ;;  %299 = vmatpush.msra.mxu0 %v282_v19  ;;  %v383_v49 = vld [vmem:[#allocation3 + $0x108] sm:$0xff]  ;;  %v459_v50 = vld [vmem:[#allocation3 + $0x190] sm:$0xff]  ;;  %v382_v53 = vld [vmem:[#allocation3 + $0x100] sm:$0xff] }
  0x1e   : > { %406 = vmatpush.msra.mxu2 %v389_v26  ;;  %480 = vmatpush.msra.mxu3 %v465_v27  ;;  %v263_v51 = vld [vmem:[#allocation3 + $0x68] sm:$0xff]  ;;  %v262_v55 = vld [vmem:[#allocation3 + $0x60] sm:$0xff]  ;;  %v2706_v57 = vld [vmem:[%s2698_s30 + $0x51] sm:$0xff] }
  0x1f   : > { %2546 = vmatpush.msra.mxu1 %v281_v22  ;;  %300 = vmatpush.msra.mxu0 %v281_v22  ;;  %v544_v52 = vld [vmem:[#allocation3 + $0x268] sm:$0xff]  ;;  %v543_v56 = vld [vmem:[#allocation3 + $0x260] sm:$0xff]  ;;  %v2709_v58 = vld [vmem:[%s2698_s30 + $0x11] sm:$0xff] }
  0x20   : > { %407 = vmatpush.msra.mxu2 %v388_v29  ;;  %481 = vmatpush.msra.mxu3 %v464_v30  ;;  %v458_v54 = vld [vmem:[#allocation3 + $0x188] sm:$0xff]  ;;  %v542_v60 = vld [vmem:[#allocation3 + $0x258] sm:$0xff]  ;;  %v457_v62 = vld [vmem:[#allocation3 + $0x180] sm:$0xff] }
  0x21   : > { %2547 = vmatpush.msra.mxu1 %v280_v25  ;;  %301 = vmatpush.msra.mxu0 %v280_v25  ;;  %v373_v61 = vld [vmem:[%s2698_s30 + $0x2] sm:$0xff]  ;;  %v260_v63 = vld [vmem:[#allocation3 + $0x50] sm:$0xff]  ;;  %v695_v1 = vld [vmem:[#allocation3 + $0x378] sm:$0xff] }
  0x22   : > { %408 = vmatpush.msra.mxu2 %v387_v32  ;;  %482 = vmatpush.msra.mxu3 %v463_v33  ;;  %v541_v0 = vld [vmem:[#allocation3 + $0x250] sm:$0xff]  ;;  %v259_v3 = vld [vmem:[#allocation3 + $0x48] sm:$0xff]  ;;  %v769_v5 = vld [vmem:[#allocation3 + $0x3f8] sm:$0xff] }
  0x23   : > { %2548 = vmatpush.msra.mxu1 %v279_v28  ;;  %302 = vmatpush.msra.mxu0 %v279_v28  ;;  %v2715_v2 = vld [vmem:[%s2698_s30 + $0x10] sm:$0xff]  ;;  %v540_v4 = vld [vmem:[#allocation3 + $0x248] sm:$0xff]  ;;  %v258_v7 = vld [vmem:[#allocation3 + $0x40] sm:$0xff] }
  0x24   : > { %409 = vmatpush.msra.mxu2 %v386_v35  ;;  %483 = vmatpush.msra.mxu3 %v462_v36  ;;  %v694_v6 = vld [vmem:[#allocation3 + $0x370] sm:$0xff]  ;;  %v539_v8 = vld [vmem:[#allocation3 + $0x240] sm:$0xff]  ;;  %v257_v11 = vld [vmem:[#allocation3 + $0x38] sm:$0xff] }
  0x25   : > { %2549 = vmatpush.msra.mxu1 %v278_v31  ;;  %303 = vmatpush.msra.mxu0 %v278_v31  ;;  %v2719_v9 = vld [vmem:[%s2698_s30 + $0x61] sm:$0xff]  ;;  %v538_v12 = vld [vmem:[#allocation3 + $0x238] sm:$0xff]  ;;  %v768_v13 = vld [vmem:[#allocation3 + $0x3f0] sm:$0xff] }
  0x26   : > { %410 = vmatpush.msra.mxu2 %v385_v38  ;;  %484 = vmatpush.msra.mxu3 %v461_v39  ;;  %v2722_v10 = vld [vmem:[%s2698_s30 + $0x21] sm:$0xff]  ;;  %v2725_v14 = vld [vmem:[%s2698_s30 + $0x12] sm:$0xff] }
  0x27   : > { %2550 = vmatpush.msra.mxu1 %v277_v34  ;;  %304 = vmatpush.msra.mxu0 %v277_v34  ;;  %v256_v15 = vld [vmem:[#allocation3 + $0x30] sm:$0xff]  ;;  %v693_v17 = vld [vmem:[#allocation3 + $0x368] sm:$0xff]  ;;  %v2730_v18 = vld [vmem:[%s2698_s30 + $0x20] sm:$0xff] }
  0x28   : > { %411 = vmatpush.msra.mxu2 %v384_v45  ;;  %485 = vmatpush.msra.mxu3 %v460_v46  ;;  %v537_v16 = vld [vmem:[#allocation3 + $0x230] sm:$0xff]  ;;  %v255_v19 = vld [vmem:[#allocation3 + $0x28] sm:$0xff]  ;;  %v692_v22 = vld [vmem:[#allocation3 + $0x360] sm:$0xff] }
  0x29   : > { %2551 = vmatpush.msra.mxu1 %v276_v37  ;;  %305 = vmatpush.msra.mxu0 %v276_v37  ;;  %v536_v20 = vld [vmem:[#allocation3 + $0x228] sm:$0xff]  ;;  %v254_v23 = vld [vmem:[#allocation3 + $0x20] sm:$0xff]  ;;  %v2735_v25 = vld [vmem:[%s2698_s30 + $0x71] sm:$0xff] }
  0x2a   : > { %412 = vmatpush.msra.mxu2 %v383_v49  ;;  %486 = vmatpush.msra.mxu3 %v459_v50  ;;  %v767_v21 = vld [vmem:[#allocation3 + $0x3e8] sm:$0xff]  ;;  %v535_v24 = vld [vmem:[#allocation3 + $0x220] sm:$0xff]  ;;  %v2738_v26 = vld [vmem:[%s2698_s30 + $0x31] sm:$0xff] }
  0x2b   : > { %2552 = vmatpush.msra.mxu1 %v275_v40  ;;  %306 = vmatpush.msra.mxu0 %v275_v40  ;;  %v253_v27 = vld [vmem:[#allocation3 + $0x18] sm:$0xff]  ;;  %v766_v29 = vld [vmem:[#allocation3 + $0x3e0] sm:$0xff]  ;;  %v252_v31 = vld [vmem:[#allocation3 + $0x10] sm:$0xff] }
  0x2c   : > { %319 = vmatmul.f32.vlgmr.msra.gmra.mxu1 %v2701_v41  ;;  %307 = vmatmul.f32.vlgmr.msra.gmra.mxu0 %v266_v42  ;;  %v534_v28 = vld [vmem:[#allocation3 + $0x218] sm:$0xff]  ;;  %v2741_v30 = vld [vmem:[%s2698_s30 + $0x22] sm:$0xff]  ;;  %v533_v32 = vld [vmem:[#allocation3 + $0x210] sm:$0xff] }
  0x2d   : > { %332 = vmatpush.msrb.mxu1 %v265_v43  ;;  %547 = vmatpush.msrb.mxu0 %v546_v44  ;;  %v691_v33 = vld [vmem:[#allocation3 + $0x358] sm:$0xff]  ;;  %v2746_v34 = vld [vmem:[%s2698_s30 + $0x30] sm:$0xff]  ;;  %v251_v35 = vld [vmem:[#allocation3 + $0x8] sm:$0xff] }
  0x2e   : > { %413 = vmatpush.msra.mxu2 %v382_v53  ;;  %487 = vmatpush.msra.mxu3 %v458_v54  ;;  %v532_v36 = vld [vmem:[#allocation3 + $0x208] sm:$0xff]  ;;  %v765_v37 = vld [vmem:[#allocation3 + $0x3d8] sm:$0xff]  ;;  %v690_v38 = vld [vmem:[#allocation3 + $0x350] sm:$0xff] }
  0x2f   : > { %333 = vmatpush.msrb.mxu1 %v264_v47  ;;  %548 = vmatpush.msrb.mxu0 %v545_v48  ;;  %v250_v39 = vld [vmem:[#allocation3] sm:$0xff]  ;;  %v620_v43 = vld [vmem:[#allocation3 + $0x2f8] sm:$0xff]  ;;  %v764_v45 = vld [vmem:[#allocation3 + $0x3d0] sm:$0xff] }
  0x30   : > { %414 = vmatmul.f32.vlgmr.msra.gmra.mxu2 %v373_v61  ;;  %488 = vmatpush.msra.mxu3 %v457_v62  ;;  %v531_v40 = vld [vmem:[#allocation3 + $0x200] sm:$0xff]  ;;  %v843_v44 = vld [vmem:[#allocation3 + $0x478] sm:$0xff]  ;;  %v619_v47 = vld [vmem:[#allocation3 + $0x2f0] sm:$0xff] }
  0x31   : > { %334 = vmatpush.msrb.mxu1 %v263_v51  ;;  %549 = vmatpush.msrb.mxu0 %v544_v52  ;;  %v242_v42 = vld [vmem:[%s2698_s30] sm:$0xff]  ;;  %v2752_v46 = vld [vmem:[%s2698_s30 + $0x32] sm:$0xff]  ;;  %v689_v49 = vld [vmem:[#allocation3 + $0x348] sm:$0xff] }
  0x32   : > { %696 = vmatpush.msrb.mxu2 %v695_v1  ;;  %489 = vmatmul.f32.vlgmr.msra.gmra.mxu3 %v2715_v2  ;;  %v842_v48 = vld [vmem:[#allocation3 + $0x470] sm:$0xff]  ;;  %v2756_v50 = vld [vmem:[%s2698_s30 + $0x40] sm:$0xff]  ;;  %v618_v51 = vld [vmem:[#allocation3 + $0x2e8] sm:$0xff] }
  0x33   : > { %335 = vmatpush.msrb.mxu1 %v262_v55  ;;  %550 = vmatpush.msrb.mxu0 %v543_v56  ;;  %v841_v52 = vld [vmem:[#allocation3 + $0x468] sm:$0xff]  ;;  %v688_v54 = vld [vmem:[#allocation3 + $0x340] sm:$0xff]  ;;  %v615_v62 = vld [vmem:[#allocation3 + $0x2d0] sm:$0xff] }
  0x34   : > { %322 = vmatmul.f32.gmra.mxu1 %v2706_v57  ;;  %310 = vmatmul.f32.gmra.mxu0 %v2709_v58  ;;  %v763_v53 = vld [vmem:[#allocation3 + $0x3c8] sm:$0xff]  ;;  %v617_v55 = vld [vmem:[#allocation3 + $0x2e0] sm:$0xff]  ;;  %v2766_v1 = vld [vmem:[%s2698_s30 + $0x50] sm:$0xff] }
  0x35   : > { %336 = vmatpush.msrb.mxu1 %v261_v59  ;;  %551 = vmatpush.msrb.mxu0 %v542_v60  ;;  %v840_v56 = vld [vmem:[#allocation3 + $0x460] sm:$0xff]  ;;  %v839_v59 = vld [vmem:[#allocation3 + $0x458] sm:$0xff] }
  0x36   : > { %770 = vmatpush.msrb.mxu3 %v769_v5  ;;  %697 = vmatpush.msrb.mxu2 %v694_v6  ;;  %v762_v60 = vld [vmem:[#allocation3 + $0x3c0] sm:$0xff]  ;;  %v837_v5 = vld [vmem:[#allocation3 + $0x448] sm:$0xff]  ;;  %v686_v6 = vld [vmem:[#allocation3 + $0x330] sm:$0xff] }
  0x37   : > { %337 = vmatpush.msrb.mxu1 %v260_v63  ;;  %552 = vmatpush.msrb.mxu0 %v541_v0  ;;  %v2761_v61 = vld [vmem:[%s2698_s30 + $0x42] sm:$0xff]  ;;  %v838_v63 = vld [vmem:[#allocation3 + $0x450] sm:$0xff]  ;;  %v687_v0 = vld [vmem:[#allocation3 + $0x338] sm:$0xff] }
  0x38   : > { %771 = vmatpush.msrb.mxu3 %v768_v13  ;;  %417 = vmatmul.f32.gmra.mxu2 %v2725_v14  ;;  %v759_v13 = vld [vmem:[#allocation3 + $0x3a8] sm:$0xff] }
  0x39   : > { %338 = vmatpush.msrb.mxu1 %v259_v3  ;;  %553 = vmatpush.msrb.mxu0 %v540_v4  ;;  %v614_v3 = vld [vmem:[#allocation3 + $0x2c8] sm:$0xff]  ;;  %v761_v4 = vld [vmem:[#allocation3 + $0x3b8] sm:$0xff] }
  0x3a   : > { %698 = vmatpush.msrb.mxu2 %v693_v17  ;;  %492 = vmatmul.f32.gmra.mxu3 %v2730_v18  ;;  %v2776_v17 = vld [vmem:[%s2698_s30 + $0x60] sm:$0xff] }
  0x3b   : > { %339 = vmatpush.msrb.mxu1 %v258_v7  ;;  %554 = vmatpush.msrb.mxu0 %v539_v8  ;;  %v760_v7 = vld [vmem:[#allocation3 + $0x3b0] sm:$0xff]  ;;  %v612_v8 = vld [vmem:[#allocation3 + $0x2b8] sm:$0xff] }
  0x3c   : > { %325 = vmatmul.f32.gmra.mxu1 %v2719_v9  ;;  %313 = vmatmul.f32.gmra.mxu0 %v2722_v10 }
  0x3d   : > { %340 = vmatpush.msrb.mxu1 %v257_v11  ;;  %555 = vmatpush.msrb.mxu0 %v538_v12  ;;  %v836_v11 = vld [vmem:[#allocation3 + $0x440] sm:$0xff]  ;;  %v2771_v12 = vld [vmem:[%s2698_s30 + $0x52] sm:$0xff] }
  0x3e   : > { %772 = vmatpush.msrb.mxu3 %v767_v21  ;;  %699 = vmatpush.msrb.mxu2 %v692_v22  ;;  %v684_v21 = vld [vmem:[#allocation3 + $0x320] sm:$0xff] }
  0x3f   : > { %341 = vmatpush.msrb.mxu1 %v256_v15  ;;  %556 = vmatpush.msrb.mxu0 %v537_v16  ;;  %v611_v15 = vld [vmem:[#allocation3 + $0x2b0] sm:$0xff]  ;;  %v685_v16 = vld [vmem:[#allocation3 + $0x328] sm:$0xff]  ;;  %v758_v22 = vld [vmem:[#allocation3 + $0x3a0] sm:$0xff] }
  0x40   : > { %773 = vmatpush.msrb.mxu3 %v766_v29  ;;  %420 = vmatmul.f32.gmra.mxu2 %v2741_v30  ;;  %v833_v29 = vld [vmem:[#allocation3 + $0x428] sm:$0xff] }
  0x41   : > { %342 = vmatpush.msrb.mxu1 %v255_v19  ;;  %557 = vmatpush.msrb.mxu0 %v536_v20  ;;  %v835_v19 = vld [vmem:[#allocation3 + $0x438] sm:$0xff]  ;;  %v610_v20 = vld [vmem:[#allocation3 + $0x2a8] sm:$0xff] }
  0x42   : > { %700 = vmatpush.msrb.mxu2 %v691_v33  ;;  %495 = vmatmul.f32.gmra.mxu3 %v2746_v34  ;;  %v682_v33 = vld [vmem:[#allocation3 + $0x310] sm:$0xff] }
  0x43   : > { %343 = vmatpush.msrb.mxu1 %v254_v23  ;;  %558 = vmatpush.msrb.mxu0 %v535_v24  ;;  %v834_v23 = vld [vmem:[#allocation3 + $0x430] sm:$0xff]  ;;  %v609_v24 = vld [vmem:[#allocation3 + $0x2a0] sm:$0xff] }
  0x44   : > { %328 = vmatmul.f32.gmra.mxu1 %v2735_v25  ;;  %316 = vmatmul.f32.gmra.mxu0 %v2738_v26 }
  0x45   : > { %344 = vmatpush.msrb.mxu1 %v253_v27  ;;  %559 = vmatpush.msrb.mxu0 %v534_v28  ;;  %v683_v27 = vld [vmem:[#allocation3 + $0x318] sm:$0xff] }
  0x46   : > { %774 = vmatpush.msrb.mxu3 %v765_v37  ;;  %701 = vmatpush.msrb.mxu2 %v690_v38  ;;  %v757_v28 = vld [vmem:[#allocation3 + $0x398] sm:$0xff]  ;;  %v832_v37 = vld [vmem:[#allocation3 + $0x420] sm:$0xff]  ;;  %v607_v38 = vld [vmem:[#allocation3 + $0x290] sm:$0xff] }
  0x47   : > { %345 = vmatpush.msrb.mxu1 %v252_v31  ;;  %560 = vmatpush.msrb.mxu0 %v533_v32  ;;  %v2781_v31 = vld [vmem:[%s2698_s30 + $0x62] sm:$0xff]  ;;  %v608_v32 = vld [vmem:[#allocation3 + $0x298] sm:$0xff] }
  0x48   : > { %775 = vmatpush.msrb.mxu3 %v764_v45  ;;  %423 = vmatmul.f32.gmra.mxu2 %v2752_v46  ;;  %v754_v45 = vld [vmem:[#allocation3 + $0x380] sm:$0xff] }
  0x49   : > { %346 = vmatpush.msrb.mxu1 %v251_v35  ;;  %561 = vmatpush.msrb.mxu0 %v532_v36  ;;  %v756_v35 = vld [vmem:[#allocation3 + $0x390] sm:$0xff] }
  0x4a   : > { %702 = vmatpush.msrb.mxu2 %v689_v49  ;;  %498 = vmatmul.f32.gmra.mxu3 %v2756_v50  ;;  %v2228_v36 = vld [vmem:[%s2698_s30 + $0x70] sm:$0xff]  ;;  %v605_v49 = vld [vmem:[#allocation3 + $0x280] sm:$0xff] }
  0x4b   : > { %347 = vmatpush.msrb.mxu1 %v250_v39  ;;  %562 = vmatpush.msrb.mxu0 %v531_v40  ;;  %v681_v39 = vld [vmem:[#allocation3 + $0x308] sm:$0xff] }
  0x4c   : > { %348 = vmatmul.f32.vlgmr.msrb.gmra.mxu1 %v242_v42  ;;  %563 = vmatmul.f32.vlgmr.msrb.gmra.mxu0 %v2709_v58  ;;  %v616_v58 = vld [vmem:[#allocation3 + $0x2d8] sm:$0xff]  ;;  %v755_v40 = vld [vmem:[#allocation3 + $0x388] sm:$0xff] }
  0x4d   : > { %621 = vmatpush.msra.mxu1 %v620_v43  ;;  %844 = vmatpush.msra.mxu0 %v843_v44  ;;  %v831_v42 = vld [vmem:[#allocation3 + $0x418] sm:$0xff]  ;;  %v606_v43 = vld [vmem:[#allocation3 + $0x288] sm:$0xff]  ;;  %v680_v44 = vld [vmem:[#allocation3 + $0x300] sm:$0xff] }
  0x4e   : > { %776 = vmatpush.msrb.mxu3 %v763_v53  ;;  %703 = vmatpush.msrb.mxu2 %v688_v54  ;;  %v828_v53 = vld [vmem:[#allocation3 + $0x400] sm:$0xff] }
  0x4f   : > { %622 = vmatpush.msra.mxu1 %v619_v47  ;;  %845 = vmatpush.msra.mxu0 %v842_v48  ;;  %v830_v47 = vld [vmem:[#allocation3 + $0x410] sm:$0xff]  ;;  %v2237_v54 = vld [vmem:[%s2698_s30 + $0x81] sm:$0xff] }
  0x50   : > { %777 = vmatpush.msrb.mxu3 %v762_v60  ;;  %426 = vmatmul.f32.gmra.mxu2 %v2761_v61  ;;  %v2788_v48 = vld [vmem:[%s2698_s30 + $0x72] sm:$0xff] }
  0x51   : > { %623 = vmatpush.msra.mxu1 %v618_v51  ;;  %846 = vmatpush.msra.mxu0 %v841_v52  ;;  %v829_v51 = vld [vmem:[#allocation3 + $0x408] sm:$0xff]  ;;  %v2229_v52 = vld [vmem:[%s2698_s30 + $0x80] sm:$0xff]  ;;  %v2269_v60 = vld [vmem:[%s2698_s30 + $0x92] sm:$0xff] }
  0x52   : > { %704 = vmatpush.msrb.mxu2 %v687_v0  ;;  %501 = vmatmul.f32.gmra.mxu3 %v2766_v1  ;;  %v2301_v0 = vld [vmem:[%s4099_s3 + $0x178] sm:$0xff] }
  0x53   : > { %624 = vmatpush.msra.mxu1 %v617_v55  ;;  %847 = vmatpush.msra.mxu0 %v840_v56  ;;  %v963_v56 = vld [vmem:[%s4099_s3 + $0x68] sm:$0xff] }
  0x54   : > { %351 = vmatmul.f32.gmra.mxu1 %v2715_v2  ;;  %566 = vmatmul.f32.gmra.mxu0 %v2722_v10  ;;  %v613_v2 = vld [vmem:[#allocation3 + $0x2c0] sm:$0xff] }
  0x55   : > { %625 = vmatpush.msra.mxu1 %v616_v58  ;;  %848 = vmatpush.msra.mxu0 %v839_v59 }
  0x56   : > { %778 = vmatpush.msrb.mxu3 %v761_v4  ;;  %705 = vmatpush.msrb.mxu2 %v686_v6  ;;  %v2300_v4 = vld [vmem:[%s4099_s3 + $0x170] sm:$0xff] }
  0x57   : > { %626 = vmatpush.msra.mxu1 %v615_v62  ;;  %849 = vmatpush.msra.mxu0 %v838_v63  ;;  %v962_v62 = vld [vmem:[%s4099_s3 + $0x60] sm:$0xff] }
  0x58   : > { %779 = vmatpush.msrb.mxu3 %v760_v7  ;;  %429 = vmatmul.f32.gmra.mxu2 %v2771_v12  ;;  %v960_v7 = vld [vmem:[%s4099_s3 + $0x50] sm:$0xff] }
  0x59   : > { %627 = vmatpush.msra.mxu1 %v614_v3  ;;  %850 = vmatpush.msra.mxu0 %v837_v5  ;;  %v2285_v3 = vld [vmem:[%s4099_s3 + $0xf8] sm:$0xff] }
  0x5a   : > { %780 = vmatpush.msrb.mxu3 %v759_v13  ;;  %706 = vmatpush.msrb.mxu2 %v685_v16  ;;  %v959_v13 = vld [vmem:[%s4099_s3 + $0x48] sm:$0xff]  ;;  %v2298_v16 = vld [vmem:[%s4099_s3 + $0x160] sm:$0xff] }
  0x5b   : > { %628 = vmatpush.msra.mxu1 %v613_v2  ;;  %851 = vmatpush.msra.mxu0 %v836_v11  ;;  %v2284_v11 = vld [vmem:[%s4099_s3 + $0xf0] sm:$0xff] }
  0x5c   : > { %354 = vmatmul.f32.gmra.mxu1 %v2730_v18  ;;  %569 = vmatmul.f32.gmra.mxu0 %v2738_v26 }
  0x5d   : > { %629 = vmatpush.msra.mxu1 %v612_v8  ;;  %504 = vmatmul.f32.gmra.mxu3 %v2776_v17 }
  0x5e   : > { %852 = vmatpush.msra.mxu0 %v835_v19  ;;  %707 = vmatpush.msrb.mxu2 %v684_v21  ;;  %v958_v21 = vld [vmem:[%s4099_s3 + $0x40] sm:$0xff] }
  0x5f   : > { %630 = vmatpush.msra.mxu1 %v611_v15  ;;  %781 = vmatpush.msrb.mxu3 %v758_v22  ;;  %v2283_v15 = vld [vmem:[%s4099_s3 + $0xe8] sm:$0xff] }
  0x60   : > { %853 = vmatpush.msra.mxu0 %v834_v23  ;;  %708 = vmatpush.msrb.mxu2 %v683_v27  ;;  %v2282_v23 = vld [vmem:[%s4099_s3 + $0xe0] sm:$0xff]  ;;  %v957_v27 = vld [vmem:[%s4099_s3 + $0x38] sm:$0xff] }
  0x61   : > { %631 = vmatpush.msra.mxu1 %v610_v20  ;;  %782 = vmatpush.msrb.mxu3 %v757_v28  ;;  %v2281_v28 = vld [vmem:[%s4099_s3 + $0xd8] sm:$0xff] }
  0x62   : > { %854 = vmatpush.msra.mxu0 %v833_v29  ;;  %432 = vmatmul.f32.gmra.mxu2 %v2781_v31  ;;  %v2317_v29 = vld [vmem:[%s4099_s3 + $0x1f8] sm:$0xff] }
  0x63   : > { %632 = vmatpush.msra.mxu1 %v609_v24  ;;  %709 = vmatpush.msrb.mxu2 %v682_v33  ;;  %v2297_v24 = vld [vmem:[%s4099_s3 + $0x158] sm:$0xff]  ;;  %v2316_v33 = vld [vmem:[%s4099_s3 + $0x1f0] sm:$0xff] }
  0x64   : > { %357 = vmatmul.f32.gmra.mxu1 %v2746_v34  ;;  %572 = vmatmul.f32.gmra.mxu0 %v2701_v41 }
  0x65   : > { %633 = vmatpush.msra.mxu1 %v608_v32  ;;  %783 = vmatpush.msrb.mxu3 %v756_v35  ;;  %v2280_v32 = vld [vmem:[%s4099_s3 + $0xd0] sm:$0xff] }
  0x66   : > { %507 = vmatmul.f32.gmra.mxu3 %v2228_v36  ;;  %855 = vmatpush.msra.mxu0 %v832_v37 }
  0x67   : > { %634 = vmatpush.msra.mxu1 %v607_v38  ;;  %710 = vmatpush.msrb.mxu2 %v681_v39  ;;  %v956_v38 = vld [vmem:[%s4099_s3 + $0x30] sm:$0xff]  ;;  %v2279_v39 = vld [vmem:[%s4099_s3 + $0xc8] sm:$0xff] }
  0x68   : > { %784 = vmatpush.msrb.mxu3 %v755_v40  ;;  %856 = vmatpush.msra.mxu0 %v831_v42  ;;  %v2315_v40 = vld [vmem:[%s4099_s3 + $0x1e8] sm:$0xff] }
  0x69   : > { %635 = vmatpush.msra.mxu1 %v606_v43  ;;  %711 = vmatpush.msrb.mxu2 %v680_v44  ;;  %v2295_v43 = vld [vmem:[%s4099_s3 + $0x148] sm:$0xff]  ;;  %v2278_v44 = vld [vmem:[%s4099_s3 + $0xc0] sm:$0xff] }
  0x6a   : > { %785 = vmatpush.msrb.mxu3 %v754_v45  ;;  %857 = vmatpush.msra.mxu0 %v830_v47  ;;  %v2314_v45 = vld [vmem:[%s4099_s3 + $0x1e0] sm:$0xff]  ;;  %v955_v47 = vld [vmem:[%s4099_s3 + $0x28] sm:$0xff] }
  0x6b   : > { %435 = vmatmul.f32.gmra.mxu2 %v2788_v48  ;;  %636 = vmatpush.msra.mxu1 %v605_v49  ;;  %v2313_v49 = vld [vmem:[%s4099_s3 + $0x1d8] sm:$0xff] }
  0x6c   : > { %360 = vmatmul.f32.gmra.mxu1 %v2756_v50  ;;  %575 = vmatmul.f32.gmra.mxu0 %v2706_v57 }
  0x6d   : > { %858 = vmatpush.msra.mxu0 %v829_v51  ;;  %1098 = vmatpush.msra.mxu3 %v2301_v0  ;;  %v2294_v51 = vld [vmem:[%s4099_s3 + $0x140] sm:$0xff] }
  0x6e   : > { %510 = vmatmul.f32.gmra.mxu3 %v2229_v52  ;;  %991 = vmatpush.msrb.mxu1 %v2285_v3  ;;  %v2310_v0 = vld [vmem:[%s4099_s3 + $0x1c0] sm:$0xff]  ;;  %v2643_v3 = vmov 0.0  }
  0x6f   : > { %859 = vmatpush.msra.mxu0 %v828_v53  ;;  %1099 = vmatpush.msra.mxu3 %v2300_v4  ;;  %v2312_v53 = vld [vmem:[%s4099_s3 + $0x1d0] sm:$0xff]  ;;  %915 = vst [vmem:[#allocation2 + $0x10] sm:$0xff] %v2643_v3  ;;  %v2273_v4 = vld [vmem:[%s4099_s3 + $0x98] sm:$0xff] }
  0x70   : > { %992 = vmatpush.msrb.mxu1 %v2284_v11  ;;  %916 = vst [vmem:[#allocation2 + $0x18] sm:$0x3] %v2643_v3  ;;  %v2292_v11 = vld [vmem:[%s4099_s3 + $0x130] sm:$0xff] }
  0x71   : > { %1172 = vmatpush.msrb.mxu0 %v2317_v29  ;;  %913 = vst [vmem:[#allocation2] sm:$0xff] %v2643_v3  ;;  %v2291_v29 = vld [vmem:[%s4099_s3 + $0x128] sm:$0xff] }
  0x72   : > { %993 = vmatpush.msrb.mxu1 %v2283_v15  ;;  %914 = vst [vmem:[#allocation2 + $0x8] sm:$0x3] %v2643_v3 }
  0x73   : > { %712 = vmatmul.f32.vlgmr.msrb.gmra.mxu2 %v2730_v18  ;;  %1173 = vmatpush.msrb.mxu0 %v2316_v33  ;;  %917 = vst [vmem:[#allocation2 + $0x20] sm:$0xff] %v2643_v3  ;;  %v951_v33 = vld [vmem:[%s4099_s3 + $0x8] sm:$0xff] }
  0x74   : > { %363 = vmatmul.f32.gmra.mxu1 %v2766_v1  ;;  %578 = vmatmul.f32.gmra.mxu0 %v2719_v9  ;;  %918 = vst [vmem:[#allocation2 + $0x28] sm:$0x3] %v2643_v3 }
  0x75   : > { %994 = vmatpush.msrb.mxu1 %v2282_v23  ;;  %1174 = vmatpush.msrb.mxu0 %v2315_v40  ;;  %v952_v23 = vld [vmem:[%s4099_s3 + $0x10] sm:$0xff]  ;;  %919 = vst [vmem:[#allocation2 + $0x30] sm:$0xff] %v2643_v3 }
  0x76   : > { %786 = vmatmul.f32.vlgmr.msrb.gmra.mxu3 %v2722_v10  ;;  %v2253_v10 = vld [vmem:[%s2698_s30 + $0x90] sm:$0xff]  ;;  %920 = vst [vmem:[#allocation2 + $0x38] sm:$0x3] %v2643_v3 }
  0x77   : > { %995 = vmatpush.msrb.mxu1 %v2281_v28  ;;  %1175 = vmatpush.msrb.mxu0 %v2314_v45  ;;  %921 = vst [vmem:[#allocation2 + $0x40] sm:$0xff] %v2643_v3  ;;  %v2304_v40 = vld [vmem:[%s4099_s3 + $0x190] sm:$0xff] }
  0x78   : > { %922 = vst [vmem:[#allocation2 + $0x48] sm:$0x3] %v2643_v3 }
  0x79   : > { %996 = vmatpush.msrb.mxu1 %v2280_v32  ;;  %1176 = vmatpush.msrb.mxu0 %v2313_v49  ;;  %v2306_v32 = vld [vmem:[%s4099_s3 + $0x1a0] sm:$0xff]  ;;  %923 = vst [vmem:[#allocation2 + $0x50] sm:$0xff] %v2643_v3 }
  0x7a   : > { %924 = vst [vmem:[#allocation2 + $0x58] sm:$0x3] %v2643_v3  ;;  %v2290_v49 = vld [vmem:[%s4099_s3 + $0x120] sm:$0xff] }
  0x7b   : > { %715 = vmatmul.f32.gmra.mxu2 %v2746_v34  ;;  %v2268_v34 = vld [vmem:[%s2698_s30 + $0x82] sm:$0xff]  ;;  %997 = vmatpush.msrb.mxu1 %v2279_v39  ;;  %925 = vst [vmem:[#allocation2 + $0x60] sm:$0xff] %v2643_v3 }
  0x7c   : > { %366 = vmatmul.f32.gmra.mxu1 %v2776_v17  ;;  %581 = vmatmul.f32.gmra.mxu0 %v2735_v25  ;;  %v3067_v39 = vld [vmem:[#allocation2 + $0x1] sm:$0xff]  ;;  %926 = vst [vmem:[#allocation2 + $0x68] sm:$0x3] %v2643_v3 }
  0x7d   : > { %998 = vmatpush.msrb.mxu1 %v2278_v44  ;;  %1177 = vmatpush.msrb.mxu0 %v2312_v53  ;;  %927 = vst [vmem:[#allocation2 + $0x70] sm:$0xff] %v2643_v3  ;;  %v2289_v53 = vld [vmem:[%s4099_s3 + $0x118] sm:$0xff] }
  0x7e   : > { %789 = vmatmul.f32.gmra.mxu3 %v2738_v26  ;;  %928 = vst [vmem:[#allocation2 + $0x78] sm:$0x3] %v2643_v3 }
  0x7f   : > { %929 = vst [vmem:[#allocation2 + $0x80] sm:$0xff] %v2643_v3 }
  0x80   : > { %930 = vst [vmem:[#allocation2 + $0x88] sm:$0x3] %v2643_v3 }
  0x81   : > { %931 = vst [vmem:[#allocation2 + $0x90] sm:$0xff] %v2643_v3 }
  0x82   : > { %932 = vst [vmem:[#allocation2 + $0x98] sm:$0x3] %v2643_v3 }
  0x83   : > { %718 = vmatmul.f32.gmra.mxu2 %v2756_v50  ;;  %v964_v50 = vld [vmem:[%s4099_s3 + $0x70] sm:$0xff] }
  0x84   : > { %369 = vmatmul.f32.gmra.mxu1 %v2228_v36  ;;  %584 = vmatmul.f32.gmra.mxu0 %v2237_v54 }
  0x86   : > { %792 = vmatmul.f32.gmra.mxu3 %v2701_v41 }
  0x8b   : > { %721 = vmatmul.f32.gmra.mxu2 %v2766_v1  ;;  %v961_v1 = vld [vmem:[%s4099_s3 + $0x58] sm:$0xff] }
  0x8c   : > { %637 = vmatmul.f32.vlgmr.msra.gmra.mxu1 %v2725_v14  ;;  %860 = vmatmul.f32.vlgmr.msra.gmra.mxu0 %v2741_v30 }
  0x8e   : > { %795 = vmatmul.f32.gmra.mxu3 %v2706_v57 }
  0x93   : > { %724 = vmatmul.f32.gmra.mxu2 %v2776_v17 }
  0x94   : > { %640 = vmatmul.f32.gmra.mxu1 %v2741_v30  ;;  %863 = vmatmul.f32.gmra.mxu0 %v2752_v46 }
  0x96   : > { %798 = vmatmul.f32.gmra.mxu3 %v2719_v9  ;;  %v2261_v9 = vld [vmem:[%s2698_s30 + $0x91] sm:$0xff] }
  0x9b   : > { %727 = vmatmul.f32.gmra.mxu2 %v2228_v36 }
  0x9c   : > { %643 = vmatmul.f32.gmra.mxu1 %v2752_v46  ;;  %866 = vmatmul.f32.gmra.mxu0 %v2761_v61 }
  0x9e   : > { %801 = vmatmul.f32.gmra.mxu3 %v2735_v25  ;;  %v965_v25 = vld [vmem:[%s4099_s3 + $0x78] sm:$0xff] }
  0x9f   : > { %1032 = vmatpush.msra.mxu2 %v965_v25  ;;  %v954_v25 = vld [vmem:[%s4099_s3 + $0x20] sm:$0xff] }
  0xa1   : > { %1033 = vmatpush.msra.mxu2 %v964_v50  ;;  %v2311_v50 = vld [vmem:[%s4099_s3 + $0x1c8] sm:$0xff] }
  0xa2   : > { %1178 = vmatpush.msrb.mxu0 %v2311_v50 }
  0xa3   : > { %730 = vmatmul.f32.gmra.mxu2 %v2229_v52  ;;  %v2276_v52 = vld [vmem:[%s4099_s3 + $0xb0] sm:$0xff] }
  0xa4   : > { %646 = vmatmul.f32.gmra.mxu1 %v2761_v61  ;;  %869 = vmatmul.f32.gmra.mxu0 %v2771_v12 }
  0xa5   : > { %1034 = vmatpush.msra.mxu2 %v963_v56  ;;  %1179 = vmatpush.msrb.mxu0 %v2310_v0  ;;  %v2287_v0 = vld [vmem:[%s4099_s3 + $0x108] sm:$0xff] }
  0xa6   : > { %804 = vmatmul.f32.gmra.mxu3 %v2237_v54 }
  0xa7   : > { %1035 = vmatpush.msra.mxu2 %v962_v62  ;;  %v2274_v62 = vld [vmem:[%s4099_s3 + $0xa0] sm:$0xff] }
  0xa9   : > { %v2818_v41 = vpop.f32.mrf.mxu1  ;;  %v2820_v57 = vpop.f32.mrf.mxu0  ;;  %1036 = vmatpush.msra.mxu2 %v961_v1  ;;  %v953_v1 = vld [vmem:[%s4099_s3 + $0x18] sm:$0xff] }
  0xab   : > { %733 = vmatmul.f32.gmra.mxu2 %v2253_v10 }
  0xac   : > { %649 = vmatmul.f32.gmra.mxu1 %v2771_v12  ;;  %872 = vmatmul.f32.gmra.mxu0 %v2781_v31  ;;  %v2299_v12 = vld [vmem:[%s4099_s3 + $0x168] sm:$0xff] }
  0xad   : > { %1037 = vmatpush.msra.mxu2 %v960_v7  ;;  %1100 = vmatpush.msra.mxu3 %v2299_v12  ;;  %v2309_v7 = vld [vmem:[%s4099_s3 + $0x1b8] sm:$0xff]  ;;  %v2272_v12 = vld [vmem:[%s4099_s3 + $0x90] sm:$0xff] }
  0xae   : > { %807 = vmatmul.f32.gmra.mxu3 %v2261_v9  ;;  %1180 = vmatpush.msrb.mxu0 %v2309_v7  ;;  %v2286_v7 = vld [vmem:[%s4099_s3 + $0x100] sm:$0xff] }
  0xaf   : > { %1038 = vmatpush.msra.mxu2 %v959_v13  ;;  %1101 = vmatpush.msra.mxu3 %v2298_v16  ;;  %v2308_v13 = vld [vmem:[%s4099_s3 + $0x1b0] sm:$0xff] }
  0xb0   : > { %1181 = vmatpush.msrb.mxu0 %v2308_v13 }
  0xb1   : > { %v2826_v14 = vpop.f32.mrf.mxu1  ;;  %v2828_v18 = vpop.f32.mrf.mxu0  ;;  %1039 = vmatpush.msra.mxu2 %v958_v21  ;;  %1102 = vmatpush.msra.mxu3 %v2297_v24  ;;  %v2271_v24 = vld [vmem:[%s4099_s3 + $0x88] sm:$0xff] }
  0xb3   : > { %v2840_v46 = vpop.f32.mrf.mxu2  ;;  %1040 = vmatpush.msra.mxu2 %v957_v27  ;;  %v2307_v27 = vld [vmem:[%s4099_s3 + $0x1a8] sm:$0xff] }
  0xb4   : > { %652 = vmatmul.f32.gmra.mxu1 %v2781_v31  ;;  %875 = vmatmul.f32.gmra.mxu0 %v2788_v48  ;;  %v2296_v31 = vld [vmem:[%s4099_s3 + $0x150] sm:$0xff] }
  0xb5   : > { %v2845_v55 = vpop.f32.mrf.mxu3  ;;  %1103 = vmatpush.msra.mxu3 %v2296_v31  ;;  %1041 = vmatpush.msra.mxu2 %v956_v38  ;;  %v2270_v31 = vld [vmem:[%s4099_s3 + $0x80] sm:$0xff]  ;;  %v2305_v38 = vld [vmem:[%s4099_s3 + $0x198] sm:$0xff] }
  0xb6   : > { %1182 = vmatpush.msrb.mxu0 %v2307_v27 }
  0xb7   : > { %1104 = vmatpush.msra.mxu3 %v2295_v43  ;;  %1042 = vmatpush.msra.mxu2 %v955_v47  ;;  %v2303_v47 = vld [vmem:[%s4099_s3 + $0x188] sm:$0xff] }
  0xb8   : > { %1183 = vmatpush.msrb.mxu0 %v2306_v32 }
  0xb9   : > { %v2835_v26 = vpop.f32.mrf.mxu1  ;;  %v2837_v30 = vpop.f32.mrf.mxu0  ;;  %1105 = vmatpush.msra.mxu3 %v2294_v51  ;;  %1043 = vmatpush.msra.mxu2 %v954_v25  ;;  %v950_v51 = vld [vmem:[%s4099_s3] sm:$0xff]  ;;  %v2333_v25 = vld [vmem:[%s4099_s3 + $0x278] sm:$0xff] }
  0xba   : > { %1184 = vmatpush.msrb.mxu0 %v2305_v38 }
  0xbb   : > { %v2856_v61 = vpop.f32.mrf.mxu2  ;;  %1044 = vmatpush.msra.mxu2 %v953_v1 }
  0xbc   : > { %655 = vmatmul.f32.gmra.mxu1 %v2788_v48  ;;  %878 = vmatmul.f32.gmra.mxu0 %v2268_v34  ;;  %v2277_v48 = vld [vmem:[%s4099_s3 + $0xb8] sm:$0xff] }
  0xbd   : > { %v2861_v63 = vpop.f32.mrf.mxu3  ;;  %999 = vmatpush.msrb.mxu1 %v2277_v48  ;;  %1045 = vmatpush.msra.mxu2 %v952_v23 }
  0xbe   : > { %1185 = vmatpush.msrb.mxu0 %v2304_v40 }
  0xbf   : > { %1000 = vmatpush.msrb.mxu1 %v2276_v52  ;;  %1046 = vmatpush.msra.mxu2 %v951_v33  ;;  %v2302_v52 = vld [vmem:[%s4099_s3 + $0x180] sm:$0xff] }
  0xc0   : > { %1186 = vmatpush.msrb.mxu0 %v2303_v47 }
  0xc1   : > { %v2851_v58 = vpop.f32.mrf.mxu1  ;;  %v2853_v59 = vpop.f32.mrf.mxu0  ;;  %1047 = vmatpush.msra.mxu2 %v950_v51 }
  0xc2   : > { %1048 = vmatmul.f32.vlgmr.msra.gmra.mxu2 %v2643_v3  ;;  %1187 = vmatpush.msrb.mxu0 %v2302_v52  ;;  %v2332_v3 = vld [vmem:[%s4099_s3 + $0x270] sm:$0xff] }
  0xc3   : > { %v2879_v2 = vpop.f32.mrf.mxu2  ;;  %1332 = vmatpush.msrb.mxu2 %v2333_v25 }
  0xc4   : > { %658 = vmatmul.f32.gmra.mxu1 %v2268_v34  ;;  %881 = vmatmul.f32.gmra.mxu0 %v2269_v60  ;;  %v2275_v34 = vld [vmem:[%s4099_s3 + $0xa8] sm:$0xff]  ;;  %v2293_v60 = vld [vmem:[%s4099_s3 + $0x138] sm:$0xff] }
  0xc5   : > { %v2884_v8 = vpop.f32.mrf.mxu3  ;;  %1001 = vmatpush.msrb.mxu1 %v2275_v34  ;;  %1106 = vmatpush.msra.mxu3 %v2293_v60  ;;  %v2288_v34 = vld [vmem:[%s4099_s3 + $0x110] sm:$0xff] }
  0xc6   : > { %1333 = vmatpush.msrb.mxu2 %v2332_v3 }
  0xc7   : > { %1002 = vmatpush.msrb.mxu1 %v2274_v62  ;;  %1107 = vmatpush.msra.mxu3 %v2292_v11  ;;  %v2331_v11 = vld [vmem:[%s4099_s3 + $0x268] sm:$0xff] }
  0xc8   : > { %1334 = vmatpush.msrb.mxu2 %v2331_v11  ;;  %v2347_v11 = vld [vmem:[%s4099_s3 + $0x2e8] sm:$0xff] }
  0xc9   : > { %v2875_v5 = vpop.f32.mrf.mxu1  ;;  %v2877_v6 = vpop.f32.mrf.mxu0  ;;  %1003 = vmatpush.msrb.mxu1 %v2273_v4  ;;  %1108 = vmatpush.msra.mxu3 %v2291_v29  ;;  %v2330_v29 = vld [vmem:[%s4099_s3 + $0x260] sm:$0xff] }
  0xca   : > { %v350_v1 = vadd.f32 %v2875_v5, %v2820_v57  ;;  %1335 = vmatpush.msrb.mxu2 %v2330_v29 }
  0xcb   : > { %v2905_v20 = vpop.f32.mrf.mxu2  ;;  %1004 = vmatpush.msrb.mxu1 %v2272_v12  ;;  %1109 = vmatpush.msra.mxu3 %v2290_v49  ;;  %v3155_v49 = vld [vmem:[%s4098_s2] ss:$0 sm:$0xff] }
  0xcc   : > { %v439_v12 = vadd.f32 %v2840_v46, %v350_v1  ;;  %v2365_v46 = vld [vmem:[%s4099_s3 + $0x378] sm:$0xff] }
  0xcd   : > { %v2910_v22 = vpop.f32.mrf.mxu3  ;;  %1005 = vmatpush.msrb.mxu1 %v2271_v24  ;;  %1110 = vmatpush.msra.mxu3 %v2289_v53  ;;  %v2327_v53 = vld [vmem:[%s4099_s3 + $0x248] sm:$0xff] }
  0xce   : > { %v514_v5 = vadd.f32 %v2845_v55, %v439_v12 }
  0xcf   : > { %1006 = vmatpush.msrb.mxu1 %v2270_v31  ;;  %1111 = vmatpush.msra.mxu3 %v2288_v34  ;;  %v2329_v31 = vld [vmem:[%s4099_s3 + $0x258] sm:$0xff] }
  0xd0   : > { %1007 = vmatmul.f32.vlgmr.msrb.gmra.mxu1 %v3067_v39  ;;  %v588_v55 = vadd.f32 %v2877_v6, %v514_v5  ;;  %1336 = vmatpush.msrb.mxu2 %v2329_v31  ;;  %v2364_v6 = vld [vmem:[%s4099_s3 + $0x370] sm:$0xff] }
  0xd1   : > { %v2901_v17 = vpop.f32.mrf.mxu1  ;;  %v2903_v19 = vpop.f32.mrf.mxu0  ;;  %1112 = vmatpush.msra.mxu3 %v2287_v0 }
  0xd2   : > { %v353_v23 = vadd.f32 %v2901_v17, %v2828_v18 }
  0xd3   : > { %v2940_v37 = vpop.f32.mrf.mxu2  ;;  %1113 = vmatpush.msra.mxu3 %v2286_v7 }
  0xd4   : > { %v440_v18 = vadd.f32 %v2856_v61, %v353_v23  ;;  %v2349_v61 = vld [vmem:[%s4099_s3 + $0x2f8] sm:$0xff]  ;;  %v2346_v23 = vld [vmem:[%s4099_s3 + $0x2e0] sm:$0xff] }
  0xd5   : > { %v2951_v42 = vpop.f32.mrf.mxu3  ;;  %1398 = vmatpush.msrb.mxu3 %v2365_v46  ;;  %1291 = vmatpush.msra.mxu1 %v2349_v61  ;;  %v2381_v46 = vld [vmem:[%s4099_s3 + $0x3f8] sm:$0xff] }
  0xd6   : > { %v515_v38 = vadd.f32 %v2861_v63, %v440_v18  ;;  %v2348_v63 = vld [vmem:[%s4099_s3 + $0x2f0] sm:$0xff]  ;;  %1472 = vmatpush.msra.mxu0 %v2381_v46 }
  0xd7   : > { %1399 = vmatpush.msrb.mxu3 %v2364_v6  ;;  %1292 = vmatpush.msra.mxu1 %v2348_v63 }
  0xd8   : > { %v589_v25 = vadd.f32 %v2903_v19, %v515_v38  ;;  %v2344_v38 = vld [vmem:[%s4099_s3 + $0x2d0] sm:$0xff] }
  0xd9   : > { %v2936_v35 = vpop.f32.mrf.mxu1  ;;  %v2938_v36 = vpop.f32.mrf.mxu0  ;;  %1293 = vmatpush.msra.mxu1 %v2347_v11 }
  0xda   : > { %v356_v40 = vadd.f32 %v2936_v35, %v2837_v30  ;;  %v2328_v30 = vld [vmem:[%s4099_s3 + $0x250] sm:$0xff]  ;;  %v2363_v35 = vld [vmem:[%s4099_s3 + $0x368] sm:$0xff] }
  0xdb   : > { %v2984_v9 = vpop.f32.mrf.mxu2  ;;  %1337 = vmatpush.msrb.mxu2 %v2328_v30  ;;  %1400 = vmatpush.msrb.mxu3 %v2363_v35 }
  0xdc   : > { %v441_v34 = vadd.f32 %v2879_v2, %v356_v40  ;;  %1294 = vmatpush.msra.mxu1 %v2346_v23  ;;  %v2380_v40 = vld [vmem:[%s4099_s3 + $0x3f0] sm:$0xff] }
  0xdd   : > { %1338 = vmatpush.msrb.mxu2 %v2327_v53  ;;  %1473 = vmatpush.msra.mxu0 %v2380_v40  ;;  %v2343_v53 = vld [vmem:[%s4099_s3 + $0x2c8] sm:$0xff] }
  0xde   : > { %v516_v12 = vadd.f32 %v2884_v8, %v441_v34  ;;  %v2362_v8 = vld [vmem:[%s4099_s3 + $0x360] sm:$0xff]  ;;  %v2323_v34 = vld [vmem:[%s4099_s3 + $0x228] sm:$0xff] }
  0xdf   : > { %1401 = vmatpush.msrb.mxu3 %v2362_v8 }
  0xe0   : > { %v2995_v56 = vpop.f32.mrf.mxu3  ;;  %v590_v31 = vadd.f32 %v2938_v36, %v516_v12 }
  0xe1   : > { %v2980_v54 = vpop.f32.mrf.mxu1  ;;  %v2982_v10 = vpop.f32.mrf.mxu0 }
  0xe2   : > { %v359_v2 = vadd.f32 %v2980_v54, %v2853_v59  ;;  %v2326_v59 = vld [vmem:[%s4099_s3 + $0x240] sm:$0xff]  ;;  %v2361_v54 = vld [vmem:[%s4099_s3 + $0x358] sm:$0xff] }
  0xe3   : > { %1339 = vmatpush.msrb.mxu2 %v2326_v59  ;;  %1402 = vmatpush.msrb.mxu3 %v2361_v54 }
  0xe5   : > { %v3032_v21 = vpop.f32.mrf.mxu2 }
  0xe9   : > { %v3027_v15 = vpop.f32.mrf.mxu1  ;;  %v3029_v16 = vpop.f32.mrf.mxu0 }
  0xea   : > { %v3044_v28 = vpop.f32.mrf.mxu3  ;;  %v362_v6 = vadd.f32 %v3027_v15, %v2818_v41  ;;  %v2360_v41 = vld [vmem:[%s4099_s3 + $0x350] sm:$0xff]  ;;  %v2378_v15 = vld [vmem:[%s4099_s3 + $0x3e0] sm:$0xff] }
  0xeb   : > { %1403 = vmatpush.msrb.mxu3 %v2360_v41  ;;  %v2337_v41 = vld [vmem:[%s4099_s3 + $0x298] sm:$0xff] }
  0xee   : > { %v3078_v45 = vpop.f32.mrf.mxu2 }
  0xf1   : > { %v3072_v43 = vpop.f32.mrf.mxu1  ;;  %v3074_v44 = vpop.f32.mrf.mxu0 }
  0xf2   : > { %v3084_v48 = vpop.f32.mrf.mxu3 }
  0xf6   : > { %v713_v62 = vpop.f32.mrf.mxu2 }
  0xf9   : > { %v3111_v50 = vpop.f32.mrf.mxu1  ;;  %v3113_v60 = vpop.f32.mrf.mxu0 }
  0xfa   : > { %v787_v4 = vpop.f32.mrf.mxu3 }
  0xfe   : > { %v716_v24 = vpop.f32.mrf.mxu2 }
 0x101   : > { %v3131_v13 = vpop.f32.mrf.mxu1  ;;  %v3133_v57 = vpop.f32.mrf.mxu0 }
 0x102   : > { %v790_v27 = vpop.f32.mrf.mxu3 }
 0x106   : > { %v719_v52 = vpop.f32.mrf.mxu2 }
 0x109   : > { %v638_v17 = vpop.f32.mrf.mxu1  ;;  %v861_v32 = vpop.f32.mrf.mxu0 }
 0x10a   : > { %v662_v33 = vadd.f32 %v638_v17, %v588_v55  ;;  %v793_v0 = vpop.f32.mrf.mxu3  ;;  %v442_v55 = vadd.f32 %v2905_v20, %v359_v2  ;;  %v2376_v2 = vld [vmem:[%s4099_s3 + $0x3d0] sm:$0xff] }
 0x10c   : > { %v737_v47 = vadd.f32 %v713_v62, %v662_v33  ;;  %v517_v61 = vadd.f32 %v2910_v22, %v442_v55  ;;  %v2324_v22 = vld [vmem:[%s4099_s3 + $0x230] sm:$0xff]  ;;  %v2321_v55 = vld [vmem:[%s4099_s3 + $0x218] sm:$0xff] }
 0x10e   : > { %v811_v51 = vadd.f32 %v787_v4, %v737_v47  ;;  %v722_v17 = vpop.f32.mrf.mxu2 }
 0x110   : > { %v885_v62 = vadd.f32 %v861_v32, %v811_v51  ;;  %v2379_v51 = vld [vmem:[%s4099_s3 + $0x3e8] sm:$0xff] }
 0x111   : > { %v641_v1 = vpop.f32.mrf.mxu1  ;;  %v864_v4 = vpop.f32.mrf.mxu0  ;;  %1474 = vmatpush.msra.mxu0 %v2379_v51 }
 0x112   : > { %v897_v7 = vadd.f32 %v3155_v49, %v885_v62  ;;  %v663_v3 = vadd.f32 %v641_v1, %v589_v25  ;;  %v796_v20 = vpop.f32.mrf.mxu3  ;;  %v591_v62 = vadd.f32 %v2982_v10, %v517_v61  ;;  %v368_v61 = vadd.f32 %v3111_v50, %v2835_v26  ;;  %v2356_v26 = vld [vmem:[%s4099_s3 + $0x330] sm:$0xff] }
 0x113   : > { %1475 = vmatpush.msra.mxu0 %v2378_v15  ;;  %v2372_v50 = vld [vmem:[%s4099_s3 + $0x3b0] sm:$0xff] }
 0x114   : > { %v3184_v19 = vmax.f32 %v897_v7, 0.0  ;;  %v738_v5 = vadd.f32 %v716_v24, %v663_v3  ;;  %v2325_v24 = vld [vmem:[%s4099_s3 + $0x238] sm:$0xff] }
 0x115   : > { %1340 = vmatpush.msrb.mxu2 %v2325_v24  ;;  %v2377_v7 = vld [vmem:[%s4099_s3 + $0x3d8] sm:$0xff] }
 0x116   : > { %934 = vst [vmem:[#allocation2 + $0x11] sm:$0xff] %v3184_v19  ;;  %v812_v29 = vadd.f32 %v790_v27, %v738_v5  ;;  %1010 = vmatmul.f32.gmra.mxu1 %v3184_v19  ;;  %1188 = vmatmul.f32.vlgmr.msrb.gmra.mxu0 %v3184_v19  ;;  %v2345_v27 = vld [vmem:[%s4099_s3 + $0x2d8] sm:$0xff]  ;;  %v725_v5 = vpop.f32.mrf.mxu2 }
 0x117   : > { %1295 = vmatpush.msra.mxu1 %v2345_v27  ;;  %1341 = vmatpush.msrb.mxu2 %v2324_v22  ;;  %v2340_v27 = vld [vmem:[%s4099_s3 + $0x2b0] sm:$0xff] }
 0x118   : > { %v886_v18 = vadd.f32 %v864_v4, %v812_v29  ;;  %v2342_v4 = vld [vmem:[%s4099_s3 + $0x2c0] sm:$0xff]  ;;  %1476 = vmatpush.msra.mxu0 %v2377_v7  ;;  %v365_v29 = vadd.f32 %v3072_v43, %v2826_v14  ;;  %v2375_v43 = vld [vmem:[%s4099_s3 + $0x3c8] sm:$0xff] }
 0x119   : > { %v644_v32 = vpop.f32.mrf.mxu1  ;;  %v867_v33 = vpop.f32.mrf.mxu0  ;;  %1296 = vmatpush.msra.mxu1 %v2344_v38  ;;  %1342 = vmatpush.msrb.mxu2 %v2323_v34  ;;  %v2358_v14 = vld [vmem:[%s4099_s3 + $0x340] sm:$0xff]  ;;  %v2319_v34 = vld [vmem:[%s4099_s3 + $0x208] sm:$0xff] }
 0x11a   : > { %v898_v36 = vadd.f32 %v3155_v49, %v886_v18  ;;  %v664_v47 = vadd.f32 %v644_v32, %v590_v31  ;;  %v799_v24 = vpop.f32.mrf.mxu3  ;;  %1477 = vmatpush.msra.mxu0 %v2376_v2  ;;  %v2357_v31 = vld [vmem:[%s4099_s3 + $0x338] sm:$0xff]  ;;  %v2374_v38 = vld [vmem:[%s4099_s3 + $0x3c0] sm:$0xff]  ;;  %v2371_v7 = vld [vmem:[%s4099_s3 + $0x3a8] sm:$0xff] }
 0x11b   : > { %1297 = vmatpush.msra.mxu1 %v2343_v53  ;;  %v2370_v2 = vld [vmem:[%s4099_s3 + $0x3a0] sm:$0xff] }
 0x11c   : > { %v3225_v30 = vmax.f32 %v898_v36, 0.0  ;;  %v739_v63 = vadd.f32 %v719_v52, %v664_v47  ;;  %v2359_v52 = vld [vmem:[%s4099_s3 + $0x348] sm:$0xff]  ;;  %1478 = vmatpush.msra.mxu0 %v2375_v43 }
 0x11d   : > { %v3227_v35 = vld [vmem:[#allocation2 + $0x10] sm:$0xff]  ;;  %1404 = vmatpush.msrb.mxu3 %v2359_v52  ;;  %1298 = vmatpush.msra.mxu1 %v2342_v4  ;;  %v2355_v52 = vld [vmem:[%s4099_s3 + $0x328] sm:$0xff] }
 0x11e   : > { %935 = vst [vmem:[#allocation2 + $0x21] sm:$0xff] %v3225_v30  ;;  %v813_v25 = vadd.f32 %v793_v0, %v739_v63  ;;  %1051 = vmatmul.f32.gmra.mxu2 %v3227_v35  ;;  %1114 = vmatmul.f32.vlgmr.msra.gmra.mxu3 %v3227_v35  ;;  %v443_v0 = vadd.f32 %v2940_v37, %v362_v6  ;;  %v2341_v37 = vld [vmem:[%s4099_s3 + $0x2b8] sm:$0xff]  ;;  %v2336_v4 = vld [vmem:[%s4099_s3 + $0x290] sm:$0xff] }
 0x11f   : > { %1013 = vmatmul.f32.gmra.mxu1 %v3225_v30  ;;  %1191 = vmatmul.f32.gmra.mxu0 %v3225_v30 }
 0x120   : > { %v887_v1 = vadd.f32 %v867_v33, %v813_v25  ;;  %v518_v23 = vadd.f32 %v2951_v42, %v443_v0  ;;  %1299 = vmatpush.msra.mxu1 %v2341_v37  ;;  %v2322_v42 = vld [vmem:[%s4099_s3 + $0x220] sm:$0xff]  ;;  %1405 = vmatpush.msrb.mxu3 %v2358_v14  ;;  %v2339_v33 = vld [vmem:[%s4099_s3 + $0x2a8] sm:$0xff]  ;;  %v728_v25 = vpop.f32.mrf.mxu2  ;;  %v445_v0 = vadd.f32 %v3032_v21, %v368_v61 }
 0x121   : > { %v647_v3 = vpop.f32.mrf.mxu1  ;;  %v870_v11 = vpop.f32.mrf.mxu0  ;;  %1343 = vmatpush.msrb.mxu2 %v2322_v42  ;;  %1479 = vmatpush.msra.mxu0 %v2374_v38  ;;  %v2318_v21 = vld [vmem:[%s4099_s3 + $0x200] sm:$0xff]  ;;  %v2335_v37 = vld [vmem:[%s4099_s3 + $0x288] sm:$0xff]  ;;  %v2352_v42 = vld [vmem:[%s4099_s3 + $0x310] sm:$0xff] }
 0x122   : > { %v899_v12 = vadd.f32 %v3155_v49, %v887_v1  ;;  %v665_v10 = vadd.f32 %v647_v3, %v591_v62  ;;  %v592_v18 = vadd.f32 %v3029_v16, %v518_v23  ;;  %1300 = vmatpush.msra.mxu1 %v2340_v27  ;;  %1406 = vmatpush.msrb.mxu3 %v2357_v31  ;;  %v802_v15 = vpop.f32.mrf.mxu3  ;;  %v2353_v27 = vld [vmem:[%s4099_s3 + $0x318] sm:$0xff]  ;;  %v2366_v61 = vld [vmem:[%s4099_s3 + $0x380] sm:$0xff] }
 0x123   : > { %1344 = vmatpush.msrb.mxu2 %v2321_v55  ;;  %v371_v23 = vadd.f32 %v3131_v13, %v2851_v58  ;;  %v2369_v13 = vld [vmem:[%s4099_s3 + $0x398] sm:$0xff] }
 0x124   : > { %v3270_v8 = vmax.f32 %v899_v12, 0.0  ;;  %v740_v59 = vadd.f32 %v722_v17, %v665_v10  ;;  %v444_v17 = vadd.f32 %v2984_v9, %v365_v29  ;;  %v2338_v9 = vld [vmem:[%s4099_s3 + $0x2a0] sm:$0xff]  ;;  %1301 = vmatpush.msra.mxu1 %v2339_v33  ;;  %1407 = vmatpush.msrb.mxu3 %v2356_v26 }
 0x125   : > { %v3272_v54 = vld [vmem:[#allocation2 + $0x20] sm:$0xff]  ;;  %v446_v31 = vadd.f32 %v3078_v45, %v371_v23 }
 0x126   : > { %936 = vst [vmem:[#allocation2 + $0x31] sm:$0xff] %v3270_v8  ;;  %v814_v46 = vadd.f32 %v796_v20, %v740_v59  ;;  %1054 = vmatmul.f32.gmra.mxu2 %v3272_v54  ;;  %1117 = vmatmul.f32.gmra.mxu3 %v3272_v54  ;;  %v2373_v20 = vld [vmem:[%s4099_s3 + $0x3b8] sm:$0xff]  ;;  %v519_v51 = vadd.f32 %v2995_v56, %v444_v17  ;;  %v2320_v56 = vld [vmem:[%s4099_s3 + $0x210] sm:$0xff]  ;;  %v2402_v26 = vld [vmem:[%s4099_s3 + $0x460] sm:$0xff] }
 0x127   : > { %1016 = vmatmul.f32.gmra.mxu1 %v3270_v8  ;;  %1194 = vmatmul.f32.gmra.mxu0 %v3270_v8  ;;  %v2404_v17 = vld [vmem:[%s4099_s3 + $0x470] sm:$0xff] }
 0x128   : > { %v888_v32 = vadd.f32 %v870_v11, %v814_v46  ;;  %1302 = vmatpush.msra.mxu1 %v2338_v9  ;;  %1480 = vmatpush.msra.mxu0 %v2373_v20  ;;  %v593_v62 = vadd.f32 %v3074_v44, %v519_v51  ;;  %v2354_v44 = vld [vmem:[%s4099_s3 + $0x320] sm:$0xff]  ;;  %v731_v14 = vpop.f32.mrf.mxu2 }
 0x129   : > { %v650_v40 = vpop.f32.mrf.mxu1  ;;  %v873_v36 = vpop.f32.mrf.mxu0  ;;  %1345 = vmatpush.msrb.mxu2 %v2320_v56  ;;  %1408 = vmatpush.msrb.mxu3 %v2355_v52  ;;  %v2334_v46 = vld [vmem:[%s4099_s3 + $0x280] sm:$0xff] }
 0x12a   : > { %v900_v47 = vadd.f32 %v3155_v49, %v888_v32  ;;  %v666_v16 = vadd.f32 %v650_v40, %v592_v18  ;;  %1303 = vmatpush.msra.mxu1 %v2337_v41  ;;  %1481 = vmatpush.msra.mxu0 %v2372_v50  ;;  %v2368_v18 = vld [vmem:[%s4099_s3 + $0x390] sm:$0xff]  ;;  %v805_v33 = vpop.f32.mrf.mxu3  ;;  %v2367_v40 = vld [vmem:[%s4099_s3 + $0x388] sm:$0xff]  ;;  %v2350_v51 = vld [vmem:[%s4099_s3 + $0x300] sm:$0xff] }
 0x12b   : > { %1346 = vmatpush.msrb.mxu2 %v2319_v34  ;;  %1409 = vmatpush.msrb.mxu3 %v2354_v44  ;;  %v2400_v44 = vld [vmem:[%s4099_s3 + $0x450] sm:$0xff] }
 0x12c   : > { %v3315_v6 = vmax.f32 %v900_v47, 0.0  ;;  %v741_v63 = vadd.f32 %v725_v5, %v666_v16  ;;  %1304 = vmatpush.msra.mxu1 %v2336_v4  ;;  %1482 = vmatpush.msra.mxu0 %v2371_v7  ;;  %v520_v5 = vadd.f32 %v3044_v28, %v445_v0  ;;  %v2405_v28 = vld [vmem:[%s4099_s3 + $0x478] sm:$0xff]  ;;  %v521_v47 = vadd.f32 %v3084_v48, %v446_v31  ;;  %v2403_v48 = vld [vmem:[%s4099_s3 + $0x468] sm:$0xff]  ;;  %v2432_v31 = vld [vmem:[%s4099_s3 + $0x550] sm:$0xff] }
 0x12d   : > { %v3317_v53 = vld [vmem:[#allocation2 + $0x30] sm:$0xff]  ;;  %1347 = vmatpush.msrb.mxu2 %v2318_v21  ;;  %1410 = vmatpush.msrb.mxu3 %v2353_v27  ;;  %v2401_v7 = vld [vmem:[%s4099_s3 + $0x458] sm:$0xff]  ;;  %v2434_v27 = vld [vmem:[%s4099_s3 + $0x560] sm:$0xff] }
 0x12e   : > { %937 = vst [vmem:[#allocation2 + $0x41] sm:$0xff] %v3315_v6  ;;  %v815_v22 = vadd.f32 %v799_v24, %v741_v63  ;;  %1057 = vmatmul.f32.gmra.mxu2 %v3317_v53  ;;  %1120 = vmatmul.f32.gmra.mxu3 %v3317_v53  ;;  %v594_v43 = vadd.f32 %v3113_v60, %v520_v5  ;;  %v2351_v60 = vld [vmem:[%s4099_s3 + $0x308] sm:$0xff]  ;;  %v2420_v21 = vld [vmem:[%s4099_s3 + $0x4f0] sm:$0xff] }
 0x12f   : > { %1019 = vmatmul.f32.gmra.mxu1 %v3315_v6  ;;  %1197 = vmatmul.f32.gmra.mxu0 %v3315_v6  ;;  %v595_v41 = vadd.f32 %v3133_v57, %v521_v47  ;;  %v1266_v5 = vld [vmem:[#allocation2 + $0x2] sm:$0xff] }
 0x130   : > { %v889_v1 = vadd.f32 %v873_v36, %v815_v22  ;;  %1305 = vmatpush.msra.mxu1 %v2335_v37  ;;  %1483 = vmatpush.msra.mxu0 %v2370_v2  ;;  %v734_v50 = vpop.f32.mrf.mxu2  ;;  %v2414_v47 = vld [vmem:[%s4099_s3 + $0x4c0] sm:$0xff] }
 0x131   : > { %v653_v3 = vpop.f32.mrf.mxu1  ;;  %v876_v11 = vpop.f32.mrf.mxu0  ;;  %1633 = vmatpush.msra.mxu2 %v2405_v28  ;;  %1411 = vmatpush.msrb.mxu3 %v2352_v42  ;;  %v2433_v28 = vld [vmem:[%s4099_s3 + $0x558] sm:$0xff] }
 0x132   : > { %v901_v12 = vadd.f32 %v3155_v49, %v889_v1  ;;  %v667_v10 = vadd.f32 %v653_v3, %v593_v62  ;;  %1306 = vmatpush.msra.mxu1 %v2334_v46  ;;  %1484 = vmatpush.msra.mxu0 %v2369_v13  ;;  %v808_v34 = vpop.f32.mrf.mxu3  ;;  %v2421_v3 = vld [vmem:[%s4099_s3 + $0x4f8] sm:$0xff]  ;;  %v2398_v46 = vld [vmem:[%s4099_s3 + $0x440] sm:$0xff] }
 0x133   : > { %1634 = vmatpush.msra.mxu2 %v2404_v17  ;;  %1412 = vmatpush.msrb.mxu3 %v2351_v60  ;;  %v2397_v42 = vld [vmem:[%s4099_s3 + $0x438] sm:$0xff]  ;;  %v2395_v60 = vld [vmem:[%s4099_s3 + $0x428] sm:$0xff] }
 0x134   : > { %v3366_v29 = vmax.f32 %v901_v12, 0.0  ;;  %v742_v59 = vadd.f32 %v728_v25, %v667_v10  ;;  %1485 = vmatpush.msra.mxu0 %v2368_v18  ;;  %v2437_v25 = vld [vmem:[%s4099_s3 + $0x578] sm:$0xff]  ;;  %1592 = vmatpush.msrb.mxu1 %v2421_v3  ;;  %v2435_v10 = vld [vmem:[%s4099_s3 + $0x568] sm:$0xff] }
 0x135   : > { %v3368_v24 = vld [vmem:[#allocation2 + $0x40] sm:$0xff]  ;;  %1413 = vmatpush.msrb.mxu3 %v2350_v51  ;;  %1635 = vmatpush.msra.mxu2 %v2403_v48  ;;  %v2431_v18 = vld [vmem:[%s4099_s3 + $0x548] sm:$0xff]  ;;  %v2453_v17 = vld [vmem:[%s4099_s3 + $0x5f8] sm:$0xff] }
 0x136   : > { %938 = vst [vmem:[#allocation2 + $0x51] sm:$0xff] %v3366_v29  ;;  %v816_v58 = vadd.f32 %v802_v15, %v742_v59  ;;  %1060 = vmatmul.f32.gmra.mxu2 %v3368_v24  ;;  %1123 = vmatmul.f32.gmra.mxu3 %v3368_v24  ;;  %v2399_v59 = vld [vmem:[%s4099_s3 + $0x448] sm:$0xff]  ;;  %v2450_v51 = vld [vmem:[%s4099_s3 + $0x5e0] sm:$0xff]  ;;  %v3554_v48 = vld [vmem:[#allocation2 + $0x32] sm:$0xff] }
 0x137   : > { %1022 = vmatmul.f32.gmra.mxu1 %v3366_v29  ;;  %1200 = vmatmul.f32.gmra.mxu0 %v3366_v29  ;;  %v2445_v3 = vld [vmem:[%s4099_s3 + $0x5b8] sm:$0xff] }
 0x138   : > { %v890_v55 = vadd.f32 %v876_v11, %v816_v58  ;;  %1486 = vmatpush.msra.mxu0 %v2367_v40  ;;  %1700 = vmatpush.msra.mxu3 %v2437_v25  ;;  %v2436_v11 = vld [vmem:[%s4099_s3 + $0x570] sm:$0xff]  ;;  %v2418_v58 = vld [vmem:[%s4099_s3 + $0x4e0] sm:$0xff] }
 0x139   : > { %v656_v32 = vpop.f32.mrf.mxu1  ;;  %v879_v36 = vpop.f32.mrf.mxu0  ;;  %1636 = vmatpush.msra.mxu2 %v2402_v26  ;;  %1593 = vmatpush.msrb.mxu1 %v2420_v21  ;;  %v2394_v40 = vld [vmem:[%s4099_s3 + $0x420] sm:$0xff]  ;;  %v2412_v25 = vld [vmem:[%s4099_s3 + $0x4b0] sm:$0xff] }
 0x13a   : > { %v902_v45 = vadd.f32 %v3155_v49, %v890_v55  ;;  %v668_v38 = vadd.f32 %v656_v32, %v594_v43  ;;  %1487 = vmatpush.msra.mxu0 %v2366_v61  ;;  %1701 = vmatpush.msra.mxu3 %v2436_v11  ;;  %v2417_v43 = vld [vmem:[%s4099_s3 + $0x4d8] sm:$0xff]  ;;  %v2416_v55 = vld [vmem:[%s4099_s3 + $0x4d0] sm:$0xff]  ;;  %v2426_v11 = vld [vmem:[%s4099_s3 + $0x520] sm:$0xff] }
 0x13b   : > { %1637 = vmatpush.msra.mxu2 %v2401_v7  ;;  %v2452_v32 = vld [vmem:[%s4099_s3 + $0x5f0] sm:$0xff]  ;;  %v2413_v61 = vld [vmem:[%s4099_s3 + $0x4b8] sm:$0xff]  ;;  %v2391_v7 = vld [vmem:[%s4099_s3 + $0x408] sm:$0xff] }
 0x13c   : > { %v3406_v16 = vmax.f32 %v902_v45, 0.0  ;;  %v743_v9 = vadd.f32 %v731_v14, %v668_v38  ;;  %1702 = vmatpush.msra.mxu3 %v2435_v10  ;;  %v3488_v14 = vld [vmem:[#allocation2 + $0x12] sm:$0xff]  ;;  %1774 = vmatpush.msrb.mxu0 %v2453_v17  ;;  %v2415_v45 = vld [vmem:[%s4099_s3 + $0x4c8] sm:$0xff]  ;;  %v2430_v38 = vld [vmem:[%s4099_s3 + $0x540] sm:$0xff] }
 0x13d   : > { %v3408_v20 = vld [vmem:[#allocation2 + $0x50] sm:$0xff]  ;;  %1638 = vmatpush.msra.mxu2 %v2400_v44  ;;  %v2390_v21 = vld [vmem:[%s4099_s3 + $0x400] sm:$0xff]  ;;  %v2425_v10 = vld [vmem:[%s4099_s3 + $0x518] sm:$0xff] }
 0x13e   : > { %939 = vst [vmem:[#allocation2 + $0x61] sm:$0xff] %v3406_v16  ;;  %v817_v63 = vadd.f32 %v805_v33, %v743_v9  ;;  %1063 = vmatmul.f32.gmra.mxu2 %v3408_v20  ;;  %1126 = vmatmul.f32.gmra.mxu3 %v3408_v20  ;;  %v3518_v33 = vld [vmem:[#allocation2 + $0x22] sm:$0xff]  ;;  %v2429_v9 = vld [vmem:[%s4099_s3 + $0x538] sm:$0xff]  ;;  %v2448_v26 = vld [vmem:[%s4099_s3 + $0x5d0] sm:$0xff] }
 0x13f   : > { %1025 = vmatmul.f32.gmra.mxu1 %v3406_v16  ;;  %1203 = vmatmul.f32.gmra.mxu0 %v3406_v16  ;;  %v2408_v44 = vld [vmem:[%s4099_s3 + $0x490] sm:$0xff]  ;;  %v2475_v17 = vld [vmem:[%s4099_s3 + $0x668] sm:$0xff] }
 0x140   : > { %v891_v22 = vadd.f32 %v879_v36, %v817_v63  ;;  %1639 = vmatpush.msra.mxu2 %v2399_v59  ;;  %1703 = vmatpush.msra.mxu3 %v2434_v27  ;;  %v2451_v36 = vld [vmem:[%s4099_s3 + $0x5e8] sm:$0xff]  ;;  %v2449_v63 = vld [vmem:[%s4099_s3 + $0x5d8] sm:$0xff]  ;;  %v2406_v59 = vld [vmem:[%s4099_s3 + $0x480] sm:$0xff] }
 0x141   : > { %v659_v56 = vpop.f32.mrf.mxu1  ;;  %v882_v1 = vpop.f32.mrf.mxu0  ;;  %1775 = vmatpush.msrb.mxu0 %v2452_v32  ;;  %v3634_v27 = vld [vmem:[#allocation2 + $0x52] sm:$0xff]  ;;  %v2438_v32 = vld [vmem:[%s4099_s3 + $0x580] sm:$0xff] }
 0x142   : > { %v903_v15 = vadd.f32 %v3155_v49, %v891_v22  ;;  %v669_v52 = vadd.f32 %v659_v56, %v595_v41  ;;  %1640 = vmatpush.msra.mxu2 %v2398_v46  ;;  %1704 = vmatpush.msra.mxu3 %v2433_v28  ;;  %v2393_v41 = vld [vmem:[%s4099_s3 + $0x418] sm:$0xff]  ;;  %v2428_v22 = vld [vmem:[%s4099_s3 + $0x530] sm:$0xff] }
 0x143   : > { %1776 = vmatpush.msrb.mxu0 %v2451_v36  ;;  %v2392_v56 = vld [vmem:[%s4099_s3 + $0x410] sm:$0xff]  ;;  %v2477_v46 = vld [vmem:[%s4099_s3 + $0x678] sm:$0xff] }
 0x144   : > { %v3432_v62 = vmax.f32 %v903_v15, 0.0  ;;  %v744_v0 = vadd.f32 %v734_v50, %v669_v52  ;;  %1641 = vmatpush.msra.mxu2 %v2397_v42  ;;  %1705 = vmatpush.msra.mxu3 %v2432_v31  ;;  %v2427_v50 = vld [vmem:[%s4099_s3 + $0x528] sm:$0xff]  ;;  %v2441_v28 = vld [vmem:[%s4099_s3 + $0x598] sm:$0xff]  ;;  %v2476_v42 = vld [vmem:[%s4099_s3 + $0x670] sm:$0xff] }
 0x145   : > { %v3434_v57 = vld [vmem:[#allocation2 + $0x60] sm:$0xff]  ;;  %1777 = vmatpush.msrb.mxu0 %v2450_v51  ;;  %v2411_v15 = vld [vmem:[%s4099_s3 + $0x4a8] sm:$0xff]  ;;  %v2440_v31 = vld [vmem:[%s4099_s3 + $0x590] sm:$0xff] }
 0x146   : > { %940 = vst [vmem:[#allocation2 + $0x71] sm:$0xff] %v3432_v62  ;;  %v818_v4 = vadd.f32 %v808_v34, %v744_v0  ;;  %1066 = vmatmul.f32.gmra.mxu2 %v3434_v57  ;;  %1129 = vmatmul.f32.gmra.mxu3 %v3434_v57  ;;  %v2447_v52 = vld [vmem:[%s4099_s3 + $0x5c8] sm:$0xff]  ;;  %v2410_v34 = vld [vmem:[%s4099_s3 + $0x4a0] sm:$0xff] }
 0x147   : > { %1028 = vmatmul.f32.gmra.mxu1 %v3432_v62  ;;  %1206 = vmatmul.f32.gmra.mxu0 %v3432_v62  ;;  %v2446_v0 = vld [vmem:[%s4099_s3 + $0x5c0] sm:$0xff] }
 0x148   : > { %v892_v12 = vadd.f32 %v882_v1, %v818_v4  ;;  %1706 = vmatpush.msra.mxu3 %v2431_v18  ;;  %1778 = vmatpush.msrb.mxu0 %v2449_v63  ;;  %v3590_v1 = vld [vmem:[#allocation2 + $0x42] sm:$0xff]  ;;  %v2409_v4 = vld [vmem:[%s4099_s3 + $0x498] sm:$0xff]  ;;  %v2492_v63 = vld [vmem:[%s4099_s3 + $0x6f0] sm:$0xff] }
 0x149   : > { %v3664_v18 = vld [vmem:[#allocation2 + $0x62] sm:$0xff] }
 0x14a   : > { %v904_v37 = vadd.f32 %v3155_v49, %v892_v12  ;;  %v2419_v49 = vld [vmem:[%s4099_s3 + $0x4e8] sm:$0xff]  ;;  %1707 = vmatpush.msra.mxu3 %v2430_v38  ;;  %1779 = vmatpush.msrb.mxu0 %v2448_v26  ;;  %v2444_v12 = vld [vmem:[%s4099_s3 + $0x5b0] sm:$0xff]  ;;  %v2509_v38 = vld [vmem:[%s4099_s3 + $0x778] sm:$0xff] }
 0x14b   : > { %1594 = vmatpush.msrb.mxu1 %v2419_v49  ;;  %v2442_v49 = vld [vmem:[%s4099_s3 + $0x5a0] sm:$0xff] }
 0x14c   : > { %v3460_v2 = vmax.f32 %v904_v37, 0.0  ;;  %1708 = vmatpush.msra.mxu3 %v2429_v9  ;;  %1780 = vmatpush.msrb.mxu0 %v2447_v52  ;;  %v2407_v37 = vld [vmem:[%s4099_s3 + $0x488] sm:$0xff]  ;;  %v2508_v9 = vld [vmem:[%s4099_s3 + $0x770] sm:$0xff]  ;;  %v2490_v52 = vld [vmem:[%s4099_s3 + $0x6e0] sm:$0xff] }
 0x14d   : > { %v3462_v23 = vld [vmem:[#allocation2 + $0x70] sm:$0xff]  ;;  %1595 = vmatpush.msrb.mxu1 %v2418_v58  ;;  %v1008_v36 = vpop.f32.mrf.mxu1 }
 0x14e   : > { %941 = vst [vmem:[#allocation2 + $0x81] sm:$0xff] %v3460_v2  ;;  %1069 = vmatmul.f32.gmra.mxu2 %v3462_v23  ;;  %1132 = vmatmul.f32.gmra.mxu3 %v3462_v23  ;;  %v2424_v58 = vld [vmem:[%s4099_s3 + $0x510] sm:$0xff] }
 0x14f   : > { %1209 = vmatmul.f32.gmra.mxu0 %v3460_v2  ;;  %1307 = vmatmul.f32.vlgmr.msra.gmra.mxu1 %v1266_v5  ;;  %v2443_v5 = vld [vmem:[%s4099_s3 + $0x5a8] sm:$0xff] }
 0x150   : > { %1596 = vmatpush.msrb.mxu1 %v2417_v43  ;;  %1709 = vmatpush.msra.mxu3 %v2428_v22  ;;  %v2423_v43 = vld [vmem:[%s4099_s3 + $0x508] sm:$0xff]  ;;  %v2506_v22 = vld [vmem:[%s4099_s3 + $0x760] sm:$0xff] }
 0x151   : > { %1781 = vmatpush.msrb.mxu0 %v2446_v0  ;;  %v2504_v0 = vld [vmem:[%s4099_s3 + $0x750] sm:$0xff] }
 0x152   : > { %1597 = vmatpush.msrb.mxu1 %v2416_v55  ;;  %1710 = vmatpush.msra.mxu3 %v2427_v50  ;;  %v2439_v55 = vld [vmem:[%s4099_s3 + $0x588] sm:$0xff]  ;;  %v1049_v50 = vpop.f32.mrf.mxu2 }
 0x153   : > { %1782 = vmatpush.msrb.mxu0 %v2445_v3 }
 0x154   : > { %1598 = vmatpush.msrb.mxu1 %v2415_v45  ;;  %1711 = vmatpush.msra.mxu3 %v2426_v11  ;;  %v2474_v45 = vld [vmem:[%s4099_s3 + $0x660] sm:$0xff]  ;;  %v2488_v11 = vld [vmem:[%s4099_s3 + $0x6d0] sm:$0xff] }
 0x155   : > { %v3486_v13 = vld [vmem:[#allocation2 + $0x80] sm:$0xff]  ;;  %1783 = vmatpush.msrb.mxu0 %v2444_v12  ;;  %v3771_v12 = vld [vmem:[%s4099_s3 + $0x7e8] sm:$0xff] }
 0x156   : > { %1135 = vmatmul.f32.gmra.mxu3 %v3486_v13  ;;  %1348 = vmatmul.f32.vlgmr.msrb.gmra.mxu2 %v3067_v39  ;;  %v2396_v39 = vld [vmem:[%s4099_s3 + $0x430] sm:$0xff]  ;;  %v3697_v51 = vld [vmem:[#allocation2 + $0x82] sm:$0xff] }
 0x157   : > { %1310 = vmatmul.f32.gmra.mxu1 %v3488_v14  ;;  %1488 = vmatmul.f32.vlgmr.msra.gmra.mxu0 %v3488_v14 }
 0x158   : > { %1642 = vmatpush.msra.mxu2 %v2396_v39  ;;  %1599 = vmatpush.msrb.mxu1 %v2414_v47  ;;  %v2422_v39 = vld [vmem:[%s4099_s3 + $0x500] sm:$0xff]  ;;  %v2493_v47 = vld [vmem:[%s4099_s3 + $0x6f8] sm:$0xff] }
 0x159   : > { %1712 = vmatpush.msra.mxu3 %v2425_v10  ;;  %1784 = vmatpush.msrb.mxu0 %v2443_v5  ;;  %v1050_v10 = vadd.f32 %v1049_v50, %v1008_v36  ;;  %v2467_v5 = vld [vmem:[%s4099_s3 + $0x628] sm:$0xff]  ;;  %v3866_v50 = vld [vmem:[%s4099_s3 + $0x7c0] sm:$0xff] }
 0x15a   : > { %1643 = vmatpush.msra.mxu2 %v2395_v60  ;;  %1600 = vmatpush.msrb.mxu1 %v2413_v61  ;;  %v3676_v60 = vld [vmem:[#allocation2 + $0x72] sm:$0xff] }
 0x15b   : > { %1785 = vmatpush.msrb.mxu0 %v2442_v49  ;;  %1713 = vmatpush.msra.mxu3 %v2424_v58  ;;  %v2472_v61 = vld [vmem:[%s4099_s3 + $0x650] sm:$0xff]  ;;  %v2502_v49 = vld [vmem:[%s4099_s3 + $0x740] sm:$0xff] }
 0x15c   : > { %1644 = vmatpush.msra.mxu2 %v2394_v40  ;;  %1601 = vmatpush.msrb.mxu1 %v2412_v25  ;;  %v2473_v40 = vld [vmem:[%s4099_s3 + $0x658] sm:$0xff]  ;;  %v2507_v25 = vld [vmem:[%s4099_s3 + $0x768] sm:$0xff]  ;;  %v3792_v58 = vld [vmem:[%s4099_s3 + $0x7e0] sm:$0xff] }
 0x15d   : > { %1786 = vmatpush.msrb.mxu0 %v2441_v28  ;;  %1714 = vmatpush.msra.mxu3 %v2423_v43  ;;  %v2485_v43 = vld [vmem:[%s4099_s3 + $0x6b8] sm:$0xff] }
 0x15e   : > { %1351 = vmatmul.f32.gmra.mxu2 %v3184_v19  ;;  %1414 = vmatmul.f32.vlgmr.msrb.gmra.mxu3 %v3184_v19 }
 0x15f   : > { %1313 = vmatmul.f32.gmra.mxu1 %v3518_v33  ;;  %1491 = vmatmul.f32.gmra.mxu0 %v3518_v33 }
 0x160   : > { %1645 = vmatpush.msra.mxu2 %v2393_v41  ;;  %1602 = vmatpush.msrb.mxu1 %v2411_v15  ;;  %v2471_v41 = vld [vmem:[%s4099_s3 + $0x648] sm:$0xff]  ;;  %v2470_v15 = vld [vmem:[%s4099_s3 + $0x640] sm:$0xff] }
 0x161   : > { %1787 = vmatpush.msrb.mxu0 %v2440_v31  ;;  %1715 = vmatpush.msra.mxu3 %v2422_v39 }
 0x162   : > { %1646 = vmatpush.msra.mxu2 %v2392_v56  ;;  %1603 = vmatpush.msrb.mxu1 %v2410_v34  ;;  %v2505_v34 = vld [vmem:[%s4099_s3 + $0x758] sm:$0xff] }
 0x163   : > { %1788 = vmatpush.msrb.mxu0 %v2439_v55  ;;  %2001 = vmatpush.msrb.mxu3 %v2509_v38  ;;  %v3830_v38 = vld [vmem:[%s4099_s3 + $0x7d0] sm:$0xff] }
 0x164   : > { %1647 = vmatpush.msra.mxu2 %v2391_v7  ;;  %1604 = vmatpush.msrb.mxu1 %v2409_v4  ;;  %v3746_v4 = vld [vmem:[%s4099_s3 + $0x7f8] sm:$0xff] }
 0x165   : > { %1789 = vmatpush.msrb.mxu0 %v2438_v32  ;;  %2002 = vmatpush.msrb.mxu3 %v2508_v9  ;;  %v2484_v32 = vld [vmem:[%s4099_s3 + $0x6b0] sm:$0xff] }
 0x166   : > { %1354 = vmatmul.f32.gmra.mxu2 %v3225_v30  ;;  %1417 = vmatmul.f32.gmra.mxu3 %v3225_v30 }
 0x167   : > { %1316 = vmatmul.f32.gmra.mxu1 %v3554_v48  ;;  %1494 = vmatmul.f32.gmra.mxu0 %v3554_v48 }
 0x168   : > { %1605 = vmatpush.msrb.mxu1 %v2408_v44  ;;  %1648 = vmatpush.msra.mxu2 %v2390_v21  ;;  %v3759_v44 = vld [vmem:[%s4099_s3 + $0x7f0] sm:$0xff]  ;;  %v2487_v21 = vld [vmem:[%s4099_s3 + $0x6c8] sm:$0xff] }
 0x169   : > { %2003 = vmatpush.msrb.mxu3 %v2507_v25  ;;  %2075 = vmatpush.msra.mxu0 %v3746_v4  ;;  %v3853_v25 = vld [vmem:[%s4099_s3 + $0x7c8] sm:$0xff] }
 0x16a   : > { %1606 = vmatpush.msrb.mxu1 %v2407_v37  ;;  %1935 = vmatpush.msrb.mxu2 %v2477_v46  ;;  %v2468_v37 = vld [vmem:[%s4099_s3 + $0x630] sm:$0xff]  ;;  %v2486_v46 = vld [vmem:[%s4099_s3 + $0x6c0] sm:$0xff] }
 0x16b   : > { %2004 = vmatpush.msrb.mxu3 %v2506_v22  ;;  %2076 = vmatpush.msra.mxu0 %v3759_v44 }
 0x16c   : > { %1607 = vmatpush.msrb.mxu1 %v2406_v59  ;;  %1936 = vmatpush.msrb.mxu2 %v2476_v42  ;;  %v3798_v42 = vld [vmem:[%s4100_s4] ss:$0 sm:$0xff] }
 0x16d   : > { %2005 = vmatpush.msrb.mxu3 %v2505_v34  ;;  %2077 = vmatpush.msra.mxu0 %v3771_v12  ;;  %v3879_v34 = vld [vmem:[%s4099_s3 + $0x7b8] sm:$0xff] }
 0x16e   : > { %1357 = vmatmul.f32.gmra.mxu2 %v3270_v8  ;;  %1420 = vmatmul.f32.gmra.mxu3 %v3270_v8 }
 0x16f   : > { %1319 = vmatmul.f32.gmra.mxu1 %v3590_v1  ;;  %1497 = vmatmul.f32.gmra.mxu0 %v3590_v1 }
 0x170   : > { %1937 = vmatpush.msrb.mxu2 %v2475_v17  ;;  %1894 = vmatpush.msra.mxu1 %v2493_v47  ;;  %v3817_v17 = vld [vmem:[%s4099_s3 + $0x7d8] sm:$0xff] }
 0x171   : > { %2006 = vmatpush.msrb.mxu3 %v2504_v0  ;;  %2078 = vmatpush.msra.mxu0 %v3792_v58  ;;  %v2465_v47 = vld [vmem:[%s4099_s3 + $0x618] sm:$0xff]  ;;  %v2463_v0 = vld [vmem:[%s4099_s3 + $0x608] sm:$0xff] }
 0x172   : > { %1938 = vmatpush.msrb.mxu2 %v2474_v45  ;;  %1895 = vmatpush.msra.mxu1 %v2492_v63  ;;  %v2500_v63 = vld [vmem:[%s4099_s3 + $0x730] sm:$0xff] }
 0x173   : > { %2079 = vmatpush.msra.mxu0 %v3817_v17 }
 0x174   : > { %1939 = vmatpush.msrb.mxu2 %v2473_v40  ;;  %v2483_v40 = vld [vmem:[%s4099_s3 + $0x6a8] sm:$0xff] }
 0x175   : > { %2080 = vmatpush.msra.mxu0 %v3830_v38 }
 0x176   : > { %1360 = vmatmul.f32.gmra.mxu2 %v3315_v6  ;;  %1423 = vmatmul.f32.gmra.mxu3 %v3315_v6 }
 0x177   : > { %1322 = vmatmul.f32.gmra.mxu1 %v3634_v27  ;;  %1500 = vmatmul.f32.gmra.mxu0 %v3634_v27 }
 0x178   : > { %1940 = vmatpush.msrb.mxu2 %v2472_v61  ;;  %2081 = vmatpush.msra.mxu0 %v3853_v25 }
 0x17a   : > { %1941 = vmatpush.msrb.mxu2 %v2471_v41  ;;  %v2482_v41 = vld [vmem:[%s4099_s3 + $0x6a0] sm:$0xff]  ;;  %2082 = vmatpush.msra.mxu0 %v3866_v50 }
 0x17c   : > { %1942 = vmatpush.msrb.mxu2 %v2470_v15  ;;  %v2481_v15 = vld [vmem:[%s4099_s3 + $0x698] sm:$0xff]  ;;  %2083 = vmatpush.msra.mxu0 %v3879_v34 }
 0x17e   : > { %1363 = vmatmul.f32.gmra.mxu2 %v3366_v29  ;;  %1426 = vmatmul.f32.gmra.mxu3 %v3366_v29 }
 0x17f   : > { %1325 = vmatmul.f32.gmra.mxu1 %v3664_v18  ;;  %1503 = vmatmul.f32.gmra.mxu0 %v3664_v18 }
 0x186   : > { %1366 = vmatmul.f32.gmra.mxu2 %v3406_v16  ;;  %1429 = vmatmul.f32.gmra.mxu3 %v3406_v16 }
 0x187   : > { %1328 = vmatmul.f32.gmra.mxu1 %v3676_v60  ;;  %1506 = vmatmul.f32.gmra.mxu0 %v3676_v60 }
 0x18e   : > { %1369 = vmatmul.f32.gmra.mxu2 %v3432_v62  ;;  %1432 = vmatmul.f32.gmra.mxu3 %v3432_v62 }
 0x18f   : > { %1509 = vmatmul.f32.gmra.mxu0 %v3697_v51  ;;  %1608 = vmatmul.f32.vlgmr.msrb.gmra.mxu1 %v3184_v19  ;;  %v2491_v19 = vld [vmem:[%s4099_s3 + $0x6e8] sm:$0xff] }
 0x190   : > { %1896 = vmatpush.msra.mxu1 %v2491_v19 }
 0x192   : > { %1897 = vmatpush.msra.mxu1 %v2490_v52 }
 0x193   : > { %v3719_v26 = vpop.f32.mrf.mxu1  ;;  %v1189_v56 = vpop.f32.mrf.mxu0 }
 0x196   : > { %1435 = vmatmul.f32.gmra.mxu3 %v3460_v2  ;;  %1649 = vmatmul.f32.vlgmr.msra.gmra.mxu2 %v3227_v35  ;;  %v2469_v35 = vld [vmem:[%s4099_s3 + $0x638] sm:$0xff] }
 0x197   : > { %1611 = vmatmul.f32.gmra.mxu1 %v3225_v30  ;;  %1790 = vmatmul.f32.vlgmr.msrb.gmra.mxu0 %v3225_v30  ;;  %v2489_v30 = vld [vmem:[%s4099_s3 + $0x6d8] sm:$0xff] }
 0x198   : > { %1943 = vmatpush.msrb.mxu2 %v2469_v35  ;;  %1898 = vmatpush.msra.mxu1 %v2489_v30  ;;  %v2480_v35 = vld [vmem:[%s4099_s3 + $0x690] sm:$0xff] }
 0x19a   : > { %1899 = vmatpush.msra.mxu1 %v2488_v11  ;;  %1944 = vmatpush.msrb.mxu2 %v2468_v37 }
 0x19c   : > { %v3748_v7 = vpop.f32.mrf.mxu1  ;;  %v3750_v3 = vpop.f32.mrf.mxu0  ;;  %1900 = vmatpush.msra.mxu1 %v2487_v21  ;;  %1945 = vmatpush.msrb.mxu2 %v2467_v5  ;;  %v3902_v21 = vld [vmem:[%s4099_s3 + $0x7b0] sm:$0xff] }
 0x19d   : > { %2084 = vmatpush.msra.mxu0 %v3902_v21 }
 0x19e   : > { %1652 = vmatmul.f32.gmra.mxu2 %v3272_v54  ;;  %1716 = vmatmul.f32.vlgmr.msra.gmra.mxu3 %v3272_v54  ;;  %v2503_v54 = vld [vmem:[%s4099_s3 + $0x748] sm:$0xff] }
 0x19f   : > { %1614 = vmatmul.f32.gmra.mxu1 %v3270_v8  ;;  %1793 = vmatmul.f32.gmra.mxu0 %v3270_v8 }
 0x1a0   : > { %2007 = vmatpush.msrb.mxu3 %v2503_v54  ;;  %1901 = vmatpush.msra.mxu1 %v2486_v46 }
 0x1a1   : > { %v1052_v8 = vpop.f32.mrf.mxu2  ;;  %v1115_v59 = vpop.f32.mrf.mxu3 }
 0x1a2   : > { %v1139_v28 = vadd.f32 %v1115_v59, %v1050_v10  ;;  %2008 = vmatpush.msrb.mxu3 %v2502_v49  ;;  %1902 = vmatpush.msra.mxu1 %v2485_v43  ;;  %v1053_v36 = vadd.f32 %v1052_v8, %v3719_v26  ;;  %v2479_v10 = vld [vmem:[%s4099_s3 + $0x688] sm:$0xff]  ;;  %v2478_v49 = vld [vmem:[%s4099_s3 + $0x680] sm:$0xff] }
 0x1a3   : > { %v3915_v59 = vld [vmem:[%s4099_s3 + $0x7a8] sm:$0xff] }
 0x1a4   : > { %v1213_v31 = vadd.f32 %v1189_v56, %v1139_v28  ;;  %v3804_v39 = vpop.f32.mrf.mxu1  ;;  %v3806_v55 = vpop.f32.mrf.mxu0  ;;  %1903 = vmatpush.msra.mxu1 %v2484_v32  ;;  %v3928_v28 = vld [vmem:[%s4099_s3 + $0x7a0] sm:$0xff]  ;;  %2085 = vmatpush.msra.mxu0 %v3915_v59 }
 0x1a6   : > { %v1225_v45 = vadd.f32 %v3798_v42, %v1213_v31  ;;  %1655 = vmatmul.f32.gmra.mxu2 %v3317_v53  ;;  %1719 = vmatmul.f32.gmra.mxu3 %v3317_v53  ;;  %v2466_v53 = vld [vmem:[%s4099_s3 + $0x620] sm:$0xff] }
 0x1a7   : > { %1617 = vmatmul.f32.gmra.mxu1 %v3315_v6  ;;  %1796 = vmatmul.f32.gmra.mxu0 %v3315_v6  ;;  %v2501_v6 = vld [vmem:[%s4099_s3 + $0x738] sm:$0xff]  ;;  %v2462_v31 = vld [vmem:[%s4099_s3 + $0x600] sm:$0xff] }
 0x1a8   : > { %1233 = vst [vmem:[%s3812_s25] sm:$0xff] %v1225_v45  ;;  %1946 = vmatpush.msrb.mxu2 %v2466_v53  ;;  %2009 = vmatpush.msrb.mxu3 %v2501_v6  ;;  %v3954_v6 = vld [vmem:[%s4099_s3 + $0x790] sm:$0xff] }
 0x1a9   : > { %v1055_v9 = vpop.f32.mrf.mxu2  ;;  %v1118_v61 = vpop.f32.mrf.mxu3  ;;  %1904 = vmatpush.msra.mxu1 %v2483_v40  ;;  %2086 = vmatpush.msra.mxu0 %v3928_v28 }
 0x1aa   : > { %v1140_v19 = vadd.f32 %v1118_v61, %v1053_v36  ;;  %1947 = vmatpush.msrb.mxu2 %v2465_v47  ;;  %2010 = vmatpush.msrb.mxu3 %v2500_v63  ;;  %v1056_v30 = vadd.f32 %v1055_v9, %v3748_v7  ;;  %v2498_v7 = vld [vmem:[%s4099_s3 + $0x720] sm:$0xff] }
 0x1ab   : > { %1905 = vmatpush.msra.mxu1 %v2482_v41 }
 0x1ac   : > { %v1214_v22 = vadd.f32 %v3750_v3, %v1140_v19  ;;  %v3860_v26 = vpop.f32.mrf.mxu1  ;;  %v1198_v56 = vpop.f32.mrf.mxu0 }
 0x1ad   : > { %1906 = vmatpush.msra.mxu1 %v2481_v15 }
 0x1ae   : > { %v1226_v52 = vadd.f32 %v3798_v42, %v1214_v22  ;;  %1658 = vmatmul.f32.gmra.mxu2 %v3368_v24  ;;  %1722 = vmatmul.f32.gmra.mxu3 %v3368_v24  ;;  %v2464_v24 = vld [vmem:[%s4099_s3 + $0x610] sm:$0xff] }
 0x1af   : > { %1620 = vmatmul.f32.gmra.mxu1 %v3366_v29  ;;  %1799 = vmatmul.f32.gmra.mxu0 %v3366_v29  ;;  %v2499_v29 = vld [vmem:[%s4099_s3 + $0x728] sm:$0xff] }
 0x1b0   : > { %1234 = vst [vmem:[%s3812_s25 + $0x8] sm:$0xff] %v1226_v52  ;;  %1948 = vmatpush.msrb.mxu2 %v2464_v24  ;;  %2011 = vmatpush.msrb.mxu3 %v2499_v29  ;;  %v3994_v24 = vld [vmem:[#allocation2 + $0x91] sm:$0xff] }
 0x1b1   : > { %v1058_v3 = vpop.f32.mrf.mxu2  ;;  %v1121_v11 = vpop.f32.mrf.mxu3  ;;  %1907 = vmatpush.msra.mxu1 %v2480_v35 }
 0x1b2   : > { %v1141_v37 = vadd.f32 %v1121_v11, %v1056_v30  ;;  %1949 = vmatpush.msrb.mxu2 %v2463_v0  ;;  %2012 = vmatpush.msrb.mxu3 %v2498_v7  ;;  %v1059_v43 = vadd.f32 %v1058_v3, %v3804_v39  ;;  %v3945_v39 = vld [vmem:[%s4099_s3 + $0x798] sm:$0xff]  ;;  %v2597_v7 = vld [vmem:[#allocation2] sm:$0xff] }
 0x1b3   : > { %1908 = vmatpush.msra.mxu1 %v2479_v10  ;;  %2087 = vmatpush.msra.mxu0 %v3945_v39 }
 0x1b4   : > { %v1215_v54 = vadd.f32 %v3806_v55, %v1141_v37  ;;  %v3909_v5 = vpop.f32.mrf.mxu1  ;;  %v1201_v8 = vpop.f32.mrf.mxu0  ;;  %1950 = vmatpush.msrb.mxu2 %v2462_v31 }
 0x1b5   : > { %1909 = vmatpush.msra.mxu1 %v2478_v49  ;;  %2088 = vmatpush.msra.mxu0 %v3954_v6 }
 0x1b6   : > { %v1227_v46 = vadd.f32 %v3798_v42, %v1215_v54  ;;  %1661 = vmatmul.f32.gmra.mxu2 %v3408_v20  ;;  %1725 = vmatmul.f32.gmra.mxu3 %v3408_v20  ;;  %v2497_v20 = vld [vmem:[%s4099_s3 + $0x718] sm:$0xff] }
 0x1b7   : > { %1623 = vmatmul.f32.gmra.mxu1 %v3406_v16  ;;  %1802 = vmatmul.f32.gmra.mxu0 %v3406_v16  ;;  %v2496_v16 = vld [vmem:[%s4099_s3 + $0x710] sm:$0xff] }
 0x1b8   : > { %1235 = vst [vmem:[%s3812_s25 + $0x10] sm:$0xff] %v1227_v46  ;;  %2013 = vmatpush.msrb.mxu3 %v2497_v20  ;;  %2553 = vmatpush.msra.mxu2 %v3746_v4  ;;  %v2495_v4 = vld [vmem:[%s4099_s3 + $0x708] sm:$0xff] }
 0x1b9   : > { %v1061_v55 = vpop.f32.mrf.mxu2  ;;  %v1124_v32 = vpop.f32.mrf.mxu3 }
 0x1ba   : > { %v1142_v45 = vadd.f32 %v1124_v32, %v1059_v43  ;;  %2014 = vmatpush.msrb.mxu3 %v2496_v16  ;;  %2554 = vmatpush.msra.mxu2 %v3759_v44  ;;  %v3967_v44 = vld [vmem:[%s4099_s3 + $0x788] sm:$0xff]  ;;  %v1062_v9 = vadd.f32 %v1061_v55, %v3860_v26  ;;  %v4021_v43 = vld [vmem:[%s4100_s4] ss:$0 sm:$0xff]  ;;  %v1846_v16 = vld [vmem:[#allocation2 + $0x31] sm:$0xff] }
 0x1bb   : > { %2089 = vmatpush.msra.mxu0 %v3967_v44 }
 0x1bc   : > { %v1216_v40 = vadd.f32 %v1198_v56, %v1142_v45  ;;  %v1026_v36 = vpop.f32.mrf.mxu1  ;;  %v1204_v53 = vpop.f32.mrf.mxu0  ;;  %2015 = vmatpush.msrb.mxu3 %v2495_v4  ;;  %2555 = vmatpush.msra.mxu2 %v3771_v12 }
 0x1be   : > { %v1228_v47 = vadd.f32 %v3798_v42, %v1216_v40  ;;  %1664 = vmatmul.f32.gmra.mxu2 %v3434_v57  ;;  %1728 = vmatmul.f32.gmra.mxu3 %v3434_v57  ;;  %v2494_v57 = vld [vmem:[%s4099_s3 + $0x700] sm:$0xff] }
 0x1bf   : > { %1626 = vmatmul.f32.gmra.mxu1 %v3432_v62  ;;  %1805 = vmatmul.f32.gmra.mxu0 %v3432_v62  ;;  %v3978_v62 = vld [vmem:[%s4099_s3 + $0x780] sm:$0xff] }
 0x1c0   : > { %1236 = vst [vmem:[%s3812_s25 + $0x18] sm:$0xff] %v1228_v47  ;;  %2016 = vmatpush.msrb.mxu3 %v2494_v57  ;;  %2556 = vmatpush.msra.mxu2 %v3792_v58 }
 0x1c1   : > { %v1064_v61 = vpop.f32.mrf.mxu2  ;;  %v1127_v63 = vpop.f32.mrf.mxu3  ;;  %2090 = vmatpush.msra.mxu0 %v3978_v62 }
 0x1c2   : > { %v1143_v41 = vadd.f32 %v1127_v63, %v1062_v9  ;;  %2557 = vmatpush.msra.mxu2 %v3817_v17  ;;  %v1065_v12 = vadd.f32 %v1064_v61, %v3909_v5 }
 0x1c4   : > { %v1217_v19 = vadd.f32 %v1201_v8, %v1143_v41  ;;  %v1029_v22 = vpop.f32.mrf.mxu1  ;;  %v1207_v26 = vpop.f32.mrf.mxu0  ;;  %2558 = vmatpush.msra.mxu2 %v3830_v38  ;;  %v1845_v8 = vld [vmem:[#allocation2 + $0x21] sm:$0xff] }
 0x1c6   : > { %v1229_v56 = vadd.f32 %v3798_v42, %v1217_v19  ;;  %1667 = vmatmul.f32.gmra.mxu2 %v3462_v23  ;;  %1731 = vmatmul.f32.gmra.mxu3 %v3462_v23 }
 0x1c7   : > { %1629 = vmatmul.f32.gmra.mxu1 %v3460_v2  ;;  %1808 = vmatmul.f32.gmra.mxu0 %v3460_v2 }
 0x1c8   : > { %1237 = vst [vmem:[%s3812_s25 + $0x20] sm:$0xff] %v1229_v56  ;;  %2559 = vmatpush.msra.mxu2 %v3853_v25 }
 0x1c9   : > { %v1067_v58 = vpop.f32.mrf.mxu2  ;;  %v1130_v15 = vpop.f32.mrf.mxu3 }
 0x1ca   : > { %v1144_v52 = vadd.f32 %v1130_v15, %v1065_v12  ;;  %2560 = vmatpush.msra.mxu2 %v3866_v50  ;;  %v1068_v23 = vadd.f32 %v1067_v58, %v1026_v36  ;;  %v1849_v15 = vld [vmem:[#allocation2 + $0x61] sm:$0xff] }
 0x1cc   : > { %v1218_v17 = vadd.f32 %v1204_v53, %v1144_v52  ;;  %v1210_v35 = vpop.f32.mrf.mxu0  ;;  %v1308_v30 = vpop.f32.mrf.mxu1  ;;  %2561 = vmatpush.msra.mxu2 %v3879_v34 }
 0x1ce   : > { %v1230_v2 = vadd.f32 %v3798_v42, %v1218_v17  ;;  %1670 = vmatmul.f32.gmra.mxu2 %v3486_v13  ;;  %1734 = vmatmul.f32.gmra.mxu3 %v3486_v13  ;;  %v1844_v13 = vld [vmem:[#allocation2 + $0x11] sm:$0xff] }
 0x1cf   : > { %1811 = vmatmul.f32.gmra.mxu0 %v3994_v24  ;;  %1910 = vmatmul.f32.vlgmr.msra.gmra.mxu1 %v3488_v14 }
 0x1d0   : > { %1238 = vst [vmem:[%s3812_s25 + $0x28] sm:$0xff] %v1230_v2  ;;  %2562 = vmatpush.msra.mxu2 %v3902_v21 }
 0x1d1   : > { %v1070_v38 = vpop.f32.mrf.mxu2  ;;  %v1133_v25 = vpop.f32.mrf.mxu3 }
 0x1d2   : > { %v1145_v29 = vadd.f32 %v1133_v25, %v1068_v23  ;;  %2563 = vmatpush.msra.mxu2 %v3915_v59  ;;  %v1071_v14 = vadd.f32 %v1070_v38, %v1029_v22  ;;  %v1850_v25 = vld [vmem:[#allocation2 + $0x71] sm:$0xff] }
 0x1d4   : > { %v1219_v50 = vadd.f32 %v1207_v26, %v1145_v29  ;;  %v1311_v0 = vpop.f32.mrf.mxu1  ;;  %v1489_v3 = vpop.f32.mrf.mxu0  ;;  %2564 = vmatpush.msra.mxu2 %v3928_v28 }
 0x1d6   : > { %v1231_v11 = vadd.f32 %v3798_v42, %v1219_v50  ;;  %1737 = vmatmul.f32.gmra.mxu3 %v2597_v7  ;;  %1951 = vmatmul.f32.vlgmr.msrb.gmra.mxu2 %v1844_v13 }
 0x1d7   : > { %1913 = vmatmul.f32.gmra.mxu1 %v3518_v33  ;;  %2091 = vmatmul.f32.vlgmr.msra.gmra.mxu0 %v3518_v33 }
 0x1d8   : > { %1239 = vst [vmem:[%s3812_s25 + $0x30] sm:$0xff] %v1231_v11  ;;  %2565 = vmatpush.msra.mxu2 %v3945_v39 }
 0x1d9   : > { %v1136_v34 = vpop.f32.mrf.mxu3  ;;  %v1349_v21 = vpop.f32.mrf.mxu2 }
 0x1da   : > { %v1146_v10 = vadd.f32 %v1136_v34, %v1071_v14  ;;  %2566 = vmatpush.msra.mxu2 %v3954_v6  ;;  %v1350_v33 = vadd.f32 %v1349_v21, %v1308_v30  ;;  %v1847_v6 = vld [vmem:[#allocation2 + $0x41] sm:$0xff] }
 0x1db   : > { %v1851_v14 = vld [vmem:[#allocation2 + $0x81] sm:$0xff] }
 0x1dc   : > { %v1220_v37 = vadd.f32 %v1210_v35, %v1146_v10  ;;  %v1314_v54 = vpop.f32.mrf.mxu1  ;;  %v1492_v5 = vpop.f32.mrf.mxu0  ;;  %2567 = vmatpush.msra.mxu2 %v3967_v44 }
 0x1de   : > { %v1232_v59 = vadd.f32 %v3798_v42, %v1220_v37  ;;  %1954 = vmatmul.f32.gmra.mxu2 %v1845_v8  ;;  %2017 = vmatmul.f32.vlgmr.msrb.gmra.mxu3 %v1845_v8 }
 0x1df   : > { %1916 = vmatmul.f32.gmra.mxu1 %v3554_v48  ;;  %2094 = vmatmul.f32.gmra.mxu0 %v3554_v48 }
 0x1e0   : > { %1240 = vst [vmem:[%s3812_s25 + $0x38] sm:$0xff] %v1232_v59  ;;  %2568 = vmatpush.msra.mxu2 %v3978_v62  ;;  %v1848_v62 = vld [vmem:[#allocation2 + $0x51] sm:$0xff] }
 0x1e1   : > { %v1352_v49 = vpop.f32.mrf.mxu2  ;;  %v1415_v46 = vpop.f32.mrf.mxu3 }
 0x1e2   : > { %v1439_v28 = vadd.f32 %v1415_v46, %v1350_v33  ;;  %v1353_v55 = vadd.f32 %v1352_v49, %v1311_v0 }
 0x1e4   : > { %v1513_v42 = vadd.f32 %v1489_v3, %v1439_v28  ;;  %v1317_v31 = vpop.f32.mrf.mxu1  ;;  %v1495_v20 = vpop.f32.mrf.mxu0 }
 0x1e6   : > { %v1525_v48 = vadd.f32 %v4021_v43, %v1513_v42  ;;  %1957 = vmatmul.f32.gmra.mxu2 %v1846_v16  ;;  %2020 = vmatmul.f32.gmra.mxu3 %v1846_v16 }
 0x1e7   : > { %1919 = vmatmul.f32.gmra.mxu1 %v3590_v1  ;;  %2097 = vmatmul.f32.gmra.mxu0 %v3590_v1 }
 0x1e8   : > { %2382 = vst [vmem:[%s3812_s25 + $0x40] sm:$0xff] %v1525_v48 }
 0x1e9   : > { %v1355_v32 = vpop.f32.mrf.mxu2  ;;  %v1418_v39 = vpop.f32.mrf.mxu3 }
 0x1ea   : > { %v1440_v45 = vadd.f32 %v1418_v39, %v1353_v55  ;;  %v1356_v1 = vadd.f32 %v1355_v32, %v1314_v54 }
 0x1ec   : > { %v1514_v40 = vadd.f32 %v1492_v5, %v1440_v45  ;;  %v1320_v36 = vpop.f32.mrf.mxu1  ;;  %v1498_v53 = vpop.f32.mrf.mxu0 }
 0x1ee   : > { %v1526_v47 = vadd.f32 %v4021_v43, %v1514_v40  ;;  %1960 = vmatmul.f32.gmra.mxu2 %v1847_v6  ;;  %2023 = vmatmul.f32.gmra.mxu3 %v1847_v6 }
 0x1ef   : > { %1922 = vmatmul.f32.gmra.mxu1 %v3634_v27  ;;  %2100 = vmatmul.f32.gmra.mxu0 %v3634_v27 }
 0x1f0   : > { %2383 = vst [vmem:[%s3812_s25 + $0x48] sm:$0xff] %v1526_v47 }
 0x1f1   : > { %v1358_v4 = vpop.f32.mrf.mxu2  ;;  %v1421_v44 = vpop.f32.mrf.mxu3 }
 0x1f2   : > { %v1441_v9 = vadd.f32 %v1421_v44, %v1356_v1  ;;  %v1359_v27 = vadd.f32 %v1358_v4, %v1317_v31  ;;  %v2057_v31 = vld [vmem:[#allocation2 + $0x92] sm:$0xff] }
 0x1f4   : > { %v1515_v57 = vadd.f32 %v1495_v20, %v1441_v9  ;;  %v1323_v61 = vpop.f32.mrf.mxu1  ;;  %v1501_v63 = vpop.f32.mrf.mxu0 }
 0x1f6   : > { %v1527_v41 = vadd.f32 %v4021_v43, %v1515_v57  ;;  %1963 = vmatmul.f32.gmra.mxu2 %v1848_v62  ;;  %2026 = vmatmul.f32.gmra.mxu3 %v1848_v62 }
 0x1f7   : > { %1925 = vmatmul.f32.gmra.mxu1 %v3664_v18  ;;  %2103 = vmatmul.f32.gmra.mxu0 %v3664_v18 }
 0x1f8   : > { %2384 = vst [vmem:[%s3812_s25 + $0x50] sm:$0xff] %v1527_v41 }
 0x1f9   : > { %v1361_v19 = vpop.f32.mrf.mxu2  ;;  %v1424_v22 = vpop.f32.mrf.mxu3 }
 0x1fa   : > { %v1442_v26 = vadd.f32 %v1424_v22, %v1359_v27  ;;  %v1362_v18 = vadd.f32 %v1361_v19, %v1320_v36 }
 0x1fc   : > { %v1516_v56 = vadd.f32 %v1498_v53, %v1442_v26  ;;  %v1326_v12 = vpop.f32.mrf.mxu1  ;;  %v1504_v58 = vpop.f32.mrf.mxu0 }
 0x1fe   : > { %v1528_v52 = vadd.f32 %v4021_v43, %v1516_v56  ;;  %1966 = vmatmul.f32.gmra.mxu2 %v1849_v15  ;;  %2029 = vmatmul.f32.gmra.mxu3 %v1849_v15 }
 0x1ff   : > { %1928 = vmatmul.f32.gmra.mxu1 %v3676_v60  ;;  %2106 = vmatmul.f32.gmra.mxu0 %v3676_v60 }
 0x200   : > { %2385 = vst [vmem:[%s3812_s25 + $0x58] sm:$0xff] %v1528_v52 }
 0x201   : > { %v1364_v17 = vpop.f32.mrf.mxu2  ;;  %v1427_v35 = vpop.f32.mrf.mxu3 }
 0x202   : > { %v1443_v30 = vadd.f32 %v1427_v35, %v1362_v18  ;;  %v1365_v50 = vadd.f32 %v1364_v17, %v1323_v61 }
 0x204   : > { %v1517_v2 = vadd.f32 %v1501_v63, %v1443_v30  ;;  %v1329_v23 = vpop.f32.mrf.mxu1  ;;  %v1507_v38 = vpop.f32.mrf.mxu0 }
 0x206   : > { %v1529_v29 = vadd.f32 %v4021_v43, %v1517_v2  ;;  %1969 = vmatmul.f32.gmra.mxu2 %v1850_v25  ;;  %2032 = vmatmul.f32.gmra.mxu3 %v1850_v25 }
 0x207   : > { %1931 = vmatmul.f32.gmra.mxu1 %v3697_v51 }
 0x208   : > { %2386 = vst [vmem:[%s3812_s25 + $0x60] sm:$0xff] %v1529_v29 }
 0x209   : > { %v1367_v0 = vpop.f32.mrf.mxu2  ;;  %v1430_v60 = vpop.f32.mrf.mxu3 }
 0x20a   : > { %v1444_v3 = vadd.f32 %v1430_v60, %v1365_v50  ;;  %v1368_v21 = vadd.f32 %v1367_v0, %v1326_v12 }
 0x20c   : > { %v1518_v13 = vadd.f32 %v1504_v58, %v1444_v3  ;;  %v1510_v11 = vpop.f32.mrf.mxu0  ;;  %v1609_v7 = vpop.f32.mrf.mxu1 }
 0x20e   : > { %v1530_v34 = vadd.f32 %v4021_v43, %v1518_v13  ;;  %1972 = vmatmul.f32.gmra.mxu2 %v1851_v14  ;;  %2035 = vmatmul.f32.gmra.mxu3 %v1851_v14 }
 0x210   : > { %2387 = vst [vmem:[%s3812_s25 + $0x68] sm:$0xff] %v1530_v34 }
 0x211   : > { %v1370_v10 = vpop.f32.mrf.mxu2  ;;  %v1433_v37 = vpop.f32.mrf.mxu3 }
 0x212   : > { %v1445_v54 = vadd.f32 %v1433_v37, %v1368_v21  ;;  %v1371_v49 = vadd.f32 %v1370_v10, %v1329_v23 }
 0x214   : > { %v1519_v5 = vadd.f32 %v1507_v38, %v1445_v54  ;;  %v1612_v8 = vpop.f32.mrf.mxu1  ;;  %v1791_v59 = vpop.f32.mrf.mxu0 }
 0x216   : > { %v1531_v33 = vadd.f32 %v4021_v43, %v1519_v5  ;;  %2038 = vmatmul.f32.gmra.mxu3 %v3994_v24  ;;  %2109 = vmatmul.f32.vlgmr.msra.gmra.mxu2 %v3697_v51  ;;  %v4054_v51 = vld [vmem:[%s4100_s4] ss:$0 sm:$0xff] }
 0x218   : > { %2388 = vst [vmem:[%s3812_s25 + $0x70] sm:$0xff] %v1531_v33 }
 0x219   : > { %v1436_v46 = vpop.f32.mrf.mxu3  ;;  %v1650_v28 = vpop.f32.mrf.mxu2 }
 0x21a   : > { %v1446_v42 = vadd.f32 %v1436_v46, %v1371_v49  ;;  %v1651_v32 = vadd.f32 %v1650_v28, %v1609_v7 }
 0x21c   : > { %v1520_v20 = vadd.f32 %v1510_v11, %v1446_v42  ;;  %v1615_v16 = vpop.f32.mrf.mxu1  ;;  %v1794_v48 = vpop.f32.mrf.mxu0 }
 0x21e   : > { %v1532_v55 = vadd.f32 %v4021_v43, %v1520_v20  ;;  %2112 = vmatmul.f32.gmra.mxu2 %v2057_v31 }
 0x220   : > { %2389 = vst [vmem:[%s3812_s25 + $0x78] sm:$0xff] %v1532_v55 }
 0x221   : > { %v1653_v39 = vpop.f32.mrf.mxu2  ;;  %v1717_v45 = vpop.f32.mrf.mxu3 }
 0x222   : > { %v1741_v24 = vadd.f32 %v1717_v45, %v1651_v32  ;;  %v1654_v47 = vadd.f32 %v1653_v39, %v1612_v8 }
 0x224   : > { %v1815_v40 = vadd.f32 %v1791_v59, %v1741_v24  ;;  %v1618_v36 = vpop.f32.mrf.mxu1  ;;  %v1797_v53 = vpop.f32.mrf.mxu0  ;;  %v4075_v24 = vld [vmem:[%s4100_s4] ss:$0 sm:$0xff] }
 0x226   : > { %v1827_v6 = vadd.f32 %v4054_v51, %v1815_v40 }
 0x228   : > { %2454 = vst [vmem:[%s3812_s25 + $0x80] sm:$0xff] %v1827_v6 }
 0x229   : > { %v1656_v43 = vpop.f32.mrf.mxu2  ;;  %v1720_v1 = vpop.f32.mrf.mxu3 }
 0x22a   : > { %v1742_v4 = vadd.f32 %v1720_v1, %v1654_v47  ;;  %v1657_v63 = vadd.f32 %v1656_v43, %v1615_v16 }
 0x22c   : > { %v1816_v44 = vadd.f32 %v1794_v48, %v1742_v4  ;;  %v1621_v9 = vpop.f32.mrf.mxu1  ;;  %v1800_v57 = vpop.f32.mrf.mxu0 }
 0x22e   : > { %v1828_v61 = vadd.f32 %v4054_v51, %v1816_v44 }
 0x230   : > { %2455 = vst [vmem:[%s3812_s25 + $0x88] sm:$0xff] %v1828_v61 }
 0x231   : > { %v1659_v62 = vpop.f32.mrf.mxu2  ;;  %v1723_v41 = vpop.f32.mrf.mxu3 }
 0x232   : > { %v1743_v27 = vadd.f32 %v1723_v41, %v1657_v63  ;;  %v1660_v12 = vadd.f32 %v1659_v62, %v1618_v36 }
 0x234   : > { %v1817_v19 = vadd.f32 %v1797_v53, %v1743_v27  ;;  %v1803_v22 = vpop.f32.mrf.mxu0  ;;  %v1624_v56 = vpop.f32.mrf.mxu1 }
 0x236   : > { %v1829_v26 = vadd.f32 %v4054_v51, %v1817_v19 }
 0x238   : > { %2456 = vst [vmem:[%s3812_s25 + $0x90] sm:$0xff] %v1829_v26 }
 0x239   : > { %v1662_v58 = vpop.f32.mrf.mxu2  ;;  %v1726_v15 = vpop.f32.mrf.mxu3 }
 0x23a   : > { %v1744_v52 = vadd.f32 %v1726_v15, %v1660_v12  ;;  %v1663_v30 = vadd.f32 %v1662_v58, %v1621_v9 }
 0x23c   : > { %v1818_v18 = vadd.f32 %v1800_v57, %v1744_v52  ;;  %v1806_v17 = vpop.f32.mrf.mxu0  ;;  %v1627_v2 = vpop.f32.mrf.mxu1 }
 0x23e   : > { %v1830_v35 = vadd.f32 %v4054_v51, %v1818_v18 }
 0x240   : > { %2457 = vst [vmem:[%s3812_s25 + $0x98] sm:$0xff] %v1830_v35 }
 0x241   : > { %v1665_v23 = vpop.f32.mrf.mxu2  ;;  %v1729_v38 = vpop.f32.mrf.mxu3 }
 0x242   : > { %v1745_v25 = vadd.f32 %v1729_v38, %v1663_v30  ;;  %v1666_v60 = vadd.f32 %v1665_v23, %v1624_v56 }
 0x244   : > { %v1819_v29 = vadd.f32 %v1803_v22, %v1745_v25  ;;  %v1809_v50 = vpop.f32.mrf.mxu0  ;;  %v1630_v7 = vpop.f32.mrf.mxu1 }
 0x246   : > { %v1831_v0 = vadd.f32 %v4054_v51, %v1819_v29 }
 0x248   : > { %2458 = vst [vmem:[%s3812_s25 + $0xa0] sm:$0xff] %v1831_v0 }
 0x249   : > { %v1668_v3 = vpop.f32.mrf.mxu2  ;;  %v1732_v13 = vpop.f32.mrf.mxu3 }
 0x24a   : > { %v1746_v11 = vadd.f32 %v1732_v13, %v1666_v60  ;;  %v1669_v10 = vadd.f32 %v1668_v3, %v1627_v2 }
 0x24c   : > { %v1820_v14 = vadd.f32 %v1806_v17, %v1746_v11  ;;  %v1812_v21 = vpop.f32.mrf.mxu0  ;;  %v1911_v59 = vpop.f32.mrf.mxu1 }
 0x24e   : > { %v1832_v34 = vadd.f32 %v4054_v51, %v1820_v14 }
 0x250   : > { %2459 = vst [vmem:[%s3812_s25 + $0xa8] sm:$0xff] %v1832_v34 }
 0x251   : > { %v1671_v37 = vpop.f32.mrf.mxu2  ;;  %v1735_v54 = vpop.f32.mrf.mxu3 }
 0x252   : > { %v1747_v5 = vadd.f32 %v1735_v54, %v1669_v10  ;;  %v1672_v49 = vadd.f32 %v1671_v37, %v1630_v7 }
 0x254   : > { %v1821_v8 = vadd.f32 %v1809_v50, %v1747_v5  ;;  %v2092_v46 = vpop.f32.mrf.mxu0  ;;  %v1914_v48 = vpop.f32.mrf.mxu1 }
 0x256   : > { %v1833_v33 = vadd.f32 %v4054_v51, %v1821_v8 }
 0x258   : > { %2460 = vst [vmem:[%s3812_s25 + $0xb0] sm:$0xff] %v1833_v33 }
 0x259   : > { %v1738_v28 = vpop.f32.mrf.mxu3  ;;  %v1952_v42 = vpop.f32.mrf.mxu2 }
 0x25a   : > { %v1748_v31 = vadd.f32 %v1738_v28, %v1672_v49  ;;  %v1953_v55 = vadd.f32 %v1952_v42, %v1911_v59 }
 0x25c   : > { %v1822_v20 = vadd.f32 %v1812_v21, %v1748_v31  ;;  %v2095_v40 = vpop.f32.mrf.mxu0  ;;  %v1917_v47 = vpop.f32.mrf.mxu1 }
 0x25e   : > { %v1834_v16 = vadd.f32 %v4054_v51, %v1822_v20 }
 0x260   : > { %2461 = vst [vmem:[%s3812_s25 + $0xb8] sm:$0xff] %v1834_v16 }
 0x261   : > { %v1955_v32 = vpop.f32.mrf.mxu2  ;;  %v2018_v39 = vpop.f32.mrf.mxu3 }
 0x262   : > { %v2042_v45 = vadd.f32 %v2018_v39, %v1953_v55  ;;  %v1956_v6 = vadd.f32 %v1955_v32, %v1914_v48 }
 0x264   : > { %v2116_v36 = vadd.f32 %v2092_v46, %v2042_v45  ;;  %v2098_v44 = vpop.f32.mrf.mxu0  ;;  %v1920_v41 = vpop.f32.mrf.mxu1 }
 0x266   : > { %v2128_v53 = vadd.f32 %v4075_v24, %v2116_v36 }
 0x268   : > { %2526 = vst [vmem:[%s3812_s25 + $0xc0] sm:$0xff] %v2128_v53 }
 0x269   : > { %v1958_v51 = vpop.f32.mrf.mxu2  ;;  %v2021_v43 = vpop.f32.mrf.mxu3 }
 0x26a   : > { %v2043_v1 = vadd.f32 %v2021_v43, %v1956_v6  ;;  %v1959_v57 = vadd.f32 %v1958_v51, %v1917_v47 }
 0x26c   : > { %v2117_v4 = vadd.f32 %v2095_v40, %v2043_v1  ;;  %v2101_v22 = vpop.f32.mrf.mxu0  ;;  %v1923_v52 = vpop.f32.mrf.mxu1 }
 0x26e   : > { %v2129_v9 = vadd.f32 %v4075_v24, %v2117_v4 }
 0x270   : > { %2527 = vst [vmem:[%s3812_s25 + $0xc8] sm:$0xff] %v2129_v9 }
 0x271   : > { %v1961_v61 = vpop.f32.mrf.mxu2  ;;  %v2024_v63 = vpop.f32.mrf.mxu3 }
 0x272   : > { %v2044_v62 = vadd.f32 %v2024_v63, %v1959_v57  ;;  %v1962_v26 = vadd.f32 %v1961_v61, %v1920_v41 }
 0x274   : > { %v2118_v27 = vadd.f32 %v2098_v44, %v2044_v62  ;;  %v2104_v35 = vpop.f32.mrf.mxu0  ;;  %v1926_v29 = vpop.f32.mrf.mxu1 }
 0x276   : > { %v2130_v19 = vadd.f32 %v4075_v24, %v2118_v27 }
 0x278   : > { %2528 = vst [vmem:[%s3812_s25 + $0xd0] sm:$0xff] %v2130_v19 }
 0x279   : > { %v1964_v56 = vpop.f32.mrf.mxu2  ;;  %v2027_v12 = vpop.f32.mrf.mxu3 }
 0x27a   : > { %v2045_v58 = vadd.f32 %v2027_v12, %v1962_v26  ;;  %v1965_v17 = vadd.f32 %v1964_v56, %v1923_v52 }
 0x27c   : > { %v2119_v15 = vadd.f32 %v2101_v22, %v2045_v58  ;;  %v2107_v13 = vpop.f32.mrf.mxu0  ;;  %v1929_v34 = vpop.f32.mrf.mxu1 }
 0x27e   : > { %v2131_v18 = vadd.f32 %v4075_v24, %v2119_v15 }
 0x280   : > { %2529 = vst [vmem:[%s3812_s25 + $0xd8] sm:$0xff] %v2131_v18 }
 0x281   : > { %v1967_v30 = vpop.f32.mrf.mxu2  ;;  %v2030_v2 = vpop.f32.mrf.mxu3 }
 0x282   : > { %v2046_v23 = vadd.f32 %v2030_v2, %v1965_v17  ;;  %v1968_v50 = vadd.f32 %v1967_v30, %v1926_v29 }
 0x284   : > { %v2120_v38 = vadd.f32 %v2104_v35, %v2046_v23  ;;  %v1932_v59 = vpop.f32.mrf.mxu1 }
 0x286   : > { %v2132_v25 = vadd.f32 %v4075_v24, %v2120_v38 }
 0x288   : > { %2530 = vst [vmem:[%s3812_s25 + $0xe0] sm:$0xff] %v2132_v25 }
 0x289   : > { %v1970_v0 = vpop.f32.mrf.mxu2  ;;  %v2033_v60 = vpop.f32.mrf.mxu3 }
 0x28a   : > { %v2047_v3 = vadd.f32 %v2033_v60, %v1968_v50  ;;  %v1971_v10 = vadd.f32 %v1970_v0, %v1929_v34 }
 0x28c   : > { %v2121_v11 = vadd.f32 %v2107_v13, %v2047_v3 }
 0x28e   : > { %v2133_v7 = vadd.f32 %v4075_v24, %v2121_v11 }
 0x290   : > { %2531 = vst [vmem:[%s3812_s25 + $0xe8] sm:$0xff] %v2133_v7 }
 0x291   : > { %v1973_v14 = vpop.f32.mrf.mxu2  ;;  %v2036_v21 = vpop.f32.mrf.mxu3 }
 0x292   : > { %v2048_v37 = vadd.f32 %v2036_v21, %v1971_v10  ;;  %v1974_v49 = vadd.f32 %v1973_v14, %v1932_v59 }
 0x299   : > { %v2110_v54 = vpop.f32.mrf.mxu2  ;;  %v2039_v33 = vpop.f32.mrf.mxu3 }
 0x29a   : > { %v2122_v5 = vadd.f32 %v2110_v54, %v2048_v37  ;;  %v2049_v46 = vadd.f32 %v2039_v33, %v1974_v49 }
 0x29c   : > { %v2134_v8 = vadd.f32 %v4075_v24, %v2122_v5 }
 0x29e   : > { %2532 = vst [vmem:[%s3812_s25 + $0xf0] sm:$0xff] %v2134_v8 }
 0x2a1   : > { %v2113_v28 = vpop.f32.mrf.mxu2 }
 0x2a2   : > { %v2123_v42 = vadd.f32 %v2113_v28, %v2049_v46 }
 0x2a4   : > { %v2135_v31 = vadd.f32 %v4075_v24, %v2123_v42 }
 0x2a6   : > { %2533 = vst [vmem:[%s3812_s25 + $0xf8] sm:$0xff] %v2135_v31 }
 0x2a7 PF: > { %s16_s18 = sadd.s32 1, %s2638_s18  }
 0x2a8   : > { %p13_p7 = scmp.ge.s32.totalorder %s16_s18, 4  }
 0x2aa   :  { %15 = sbr.rel (!%p13_p7) target bundleno = 1 (0x1), region = 105 }
 0x2af   :  { %2166 = vsyncpa [#allocation4], 1 }
 0x2b0   :  { %2168 = vsyncpa [#allocation4 + $0x1], 1 }

</bundles_post_ra>
